<compile_context>
chip_gen: v7x
topology: tpu7x:2x2x1
jax: 0.10.0
libtpu: 0.0.40
codegen_flags: <defaults>
</compile_context>

<pallas_src>
import functools

import jax
import jax.numpy as jnp
from jax import lax
from jax.experimental import pallas as pl
from jax.experimental.pallas import tpu as pltpu

jax.config.update("jax_default_matmul_precision", "highest")

BN_EPS = 1e-5
LN_EPS = 1e-5
_VMEM_LIMIT = 32 * 1024 * 1024          # fits v5e/v6e scoped default, v7x 64MiB


def _silu(x):
    return x * (1.0 / (1.0 + jnp.exp(-x)))


def _cparams(*sems):
    return pltpu.CompilerParams(dimension_semantics=tuple(sems),
                                vmem_limit_bytes=_VMEM_LIMIT)


def _pick_tile(m, cap=1024):
    """Largest row tile that divides m (whole array if it fits under cap)."""
    if m <= cap:
        return m
    for d in range(cap, 7, -1):
        if m % d == 0 and d % 8 == 0:
            return d
    return m


def _combine_stats(bmean, bssq, n_block, m_total):
    """Merge per-block (mean, centered sum-of-squares) -> global mean/biased
    variance via the parallel-variance formula (no E[x^2]-mean^2 cancellation)."""
    bmean = bmean.reshape(bmean.shape[0], -1)
    bssq = bssq.reshape(bssq.shape[0], -1)
    mean = jnp.sum(bmean, axis=0, keepdims=True) * (n_block / m_total)
    var = (jnp.sum(bssq, axis=0, keepdims=True)
           + n_block * jnp.sum((bmean - mean) ** 2, axis=0, keepdims=True)
           ) / m_total
    return mean, var


def _fold_bn(gamma, beta, mean, var):
    scale = gamma * lax.rsqrt(var + BN_EPS)
    shift = beta - mean * scale
    return scale, shift


# ------------------------------------------------ 3x3 conv + fused BN stats --
def _conv3x3_stats_kernel(xp_ref, w_ref, y_ref, mean_ref, ssq_ref, *, kh, kw):
    # xp_ref: (1, H+kh-1, W+kw-1, Cin) padded image; w_ref: (kh*kw, Cin, Cout)
    Hp, Wp, cin = xp_ref.shape[1], xp_ref.shape[2], xp_ref.shape[3]
    H, W = Hp - (kh - 1), Wp - (kw - 1)
    cout = w_ref.shape[2]
    acc = jnp.zeros((H * W, cout), jnp.float32)
    for di in range(kh):                       # in-kernel taps: no 9x im2col
        for dj in range(kw):
            patch = xp_ref[0, di:di + H, dj:dj + W, :].reshape(H * W, cin)
            acc = acc + jnp.dot(patch, w_ref[di * kw + dj],
                                preferred_element_type=jnp.float32)
    y_ref[...] = acc
    bmean = jnp.sum(acc, axis=0, keepdims=True) * (1.0 / (H * W))
    d = acc - bmean
    mean_ref[0] = bmean
    ssq_ref[0] = jnp.sum(d * d, axis=0, keepdims=True)


def conv3x3_stats(xp, w_oihw):
    """xp is already zero-padded NHWC.  Returns raw conv output + batch stats."""
    N, Hp, Wp, cin = xp.shape
    cout, _, kh, kw = w_oihw.shape
    H, W = Hp - (kh - 1), Wp - (kw - 1)
    wm = jnp.transpose(w_oihw, (2, 3, 1, 0)).reshape(kh * kw, cin, cout)
    kern = functools.partial(_conv3x3_stats_kernel, kh=kh, kw=kw)
    y, bmean, bssq = pl.pallas_call(
        kern,
        out_shape=(jax.ShapeDtypeStruct((N * H * W, cout), jnp.float32),
                   jax.ShapeDtypeStruct((N, 1, cout), jnp.float32),
                   jax.ShapeDtypeStruct((N, 1, cout), jnp.float32)),
        grid_spec=pltpu.PrefetchScalarGridSpec(
            num_scalar_prefetch=0, grid=(N,),
            in_specs=[pl.BlockSpec((1, Hp, Wp, cin), lambda n: (n, 0, 0, 0)),
                      pl.BlockSpec((kh * kw, cin, cout), lambda n: (0, 0, 0))],
            out_specs=(pl.BlockSpec((H * W, cout), lambda n: (n, 0)),
                       pl.BlockSpec((1, 1, cout), lambda n: (n, 0, 0)),
                       pl.BlockSpec((1, 1, cout), lambda n: (n, 0, 0)))),
        compiler_params=_cparams("parallel"),
    )(xp, wm)
    mean, var = _combine_stats(bmean, bssq, H * W, N * H * W)
    return y, mean, var


# ------------------------------- 1x1 conv as matmul + fused prologue & stats --
def _matmul_stats_kernel(a_ref, s_ref, t_ref, w_ref, y_ref, mean_ref, ssq_ref,
                         *, prologue):
    a = a_ref[...]
    if prologue:                   # fused BN+SiLU epilogue of the previous conv
        a = _silu(a * s_ref[...] + t_ref[...])
    y = jnp.dot(a, w_ref[...], preferred_element_type=jnp.float32)
    y_ref[...] = y
    bmean = jnp.sum(y, axis=0, keepdims=True) * (1.0 / y.shape[0])
    d = y - bmean
    mean_ref[0] = bmean
    ssq_ref[0] = jnp.sum(d * d, axis=0, keepdims=True)


def matmul_stats(a, w, scale=None, shift=None, *, prologue=False):
    M, K = a.shape
    C = w.shape[1]
    if scale is None:
        scale = jnp.ones((1, K), jnp.float32)
        shift = jnp.zeros((1, K), jnp.float32)
    tm = _pick_tile(M)
    g = M // tm
    kern = functools.partial(_matmul_stats_kernel, prologue=prologue)
    y, bmean, bssq = pl.pallas_call(
        kern,
        out_shape=(jax.ShapeDtypeStruct((M, C), jnp.float32),
                   jax.ShapeDtypeStruct((g, 1, C), jnp.float32),
                   jax.ShapeDtypeStruct((g, 1, C), jnp.float32)),
        grid_spec=pltpu.PrefetchScalarGridSpec(
            num_scalar_prefetch=0, grid=(g,),
            in_specs=[pl.BlockSpec((tm, K), lambda i: (i, 0)),
                      pl.BlockSpec((1, K), lambda i: (0, 0)),
                      pl.BlockSpec((1, K), lambda i: (0, 0)),
                      pl.BlockSpec((K, C), lambda i: (0, 0))],
            out_specs=(pl.BlockSpec((tm, C), lambda i: (i, 0)),
                       pl.BlockSpec((1, 1, C), lambda i: (i, 0, 0)),
                       pl.BlockSpec((1, 1, C), lambda i: (i, 0, 0)))),
        compiler_params=_cparams("parallel"),
    )(a, scale, shift, w)
    mean, var = _combine_stats(bmean, bssq, tm, M)
    return y, mean, var


# -------------------------------------------------------- fused BN + SiLU ----
def _bn_silu_kernel(x_ref, s_ref, t_ref, o_ref):
    o_ref[...] = _silu(x_ref[...] * s_ref[...] + t_ref[...])


def bn_silu(x, scale, shift):
    M, C = x.shape
    tm = _pick_tile(M)
    return pl.pallas_call(
        _bn_silu_kernel,
        out_shape=jax.ShapeDtypeStruct((M, C), jnp.float32),
        grid_spec=pltpu.PrefetchScalarGridSpec(
            num_scalar_prefetch=0, grid=(M // tm,),
            in_specs=[pl.BlockSpec((tm, C), lambda i: (i, 0)),
                      pl.BlockSpec((1, C), lambda i: (0, 0)),
                      pl.BlockSpec((1, C), lambda i: (0, 0))],
            out_specs=pl.BlockSpec((tm, C), lambda i: (i, 0))),
        compiler_params=_cparams("parallel"),
    )(x, scale, shift)


# --------------- fused [BN2+SiLU prologue] + full Transformer + conv3 1x1 ----
def _transformer_conv3_kernel(x_ref, s2_ref, t2_ref,
                              ag_ref, ab_ref, wqkv_ref, wout_ref, bout_ref,
                              fg_ref, fb_ref, w1_ref, b1_ref, w2_ref, b2_ref,
                              w3_ref, y3_ref, m3_ref, ss3_ref, acc_ref,
                              *, heads, dim_head, scale):
    d = pl.program_id(1)
    inner = heads * dim_head

    # depth step 0: initialize the residual stream from conv2 raw output
    # with conv2's BN+SiLU applied as a prologue (stays in VMEM across depth).
    @pl.when(d == 0)
    def _():
        acc_ref[...] = _silu(x_ref[0] * s2_ref[...] + t2_ref[...])

    x = acc_ref[...]                                       # (L, D)

    # ---- PreNorm + MHSA + out-proj + residual --------------------------------
    mu = jnp.mean(x, axis=-1, keepdims=True)
    xc = x - mu
    var = jnp.mean(xc * xc, axis=-1, keepdims=True)
    xn = xc * lax.rsqrt(var + LN_EPS) * ag_ref[0] + ab_ref[0]
    qkv = jnp.dot(xn, wqkv_ref[0], preferred_element_type=jnp.float32)
    wout = wout_ref[0]                                     # (inner, D)
    y = x + bout_ref[0]                                    # residual + proj bias
    for h in range(heads):
        lo = h * dim_head
        q = qkv[:, lo:lo + dim_head]
        k = qkv[:, inner + lo:inner + lo + dim_head]
        v = qkv[:, 2 * inner + lo:2 * inner + lo + dim_head]
        s = lax.dot_general(q, k, (((1,), (1,)), ((), ())),
                            preferred_element_type=jnp.float32) * scale
        s = s - jnp.max(s, axis=-1, keepdims=True)
        p = jnp.exp(s)
        p = p / jnp.sum(p, axis=-1, keepdims=True)
        oh = jnp.dot(p, v, preferred_element_type=jnp.float32)        # (L, dh)
        # concat_h(oh) @ Wout == sum_h oh @ Wout[h*dh:(h+1)*dh] (no lane concat)
        y = y + jnp.dot(oh, wout[lo:lo + dim_head, :],
                        preferred_element_type=jnp.float32)

    # ---- PreNorm + MLP(SiLU) + residual ---------------------------------------
    mu2 = jnp.mean(y, axis=-1, keepdims=True)
    yc = y - mu2
    var2 = jnp.mean(yc * yc, axis=-1, keepdims=True)
    yn = yc * lax.rsqrt(var2 + LN_EPS) * fg_ref[0] + fb_ref[0]
    h1 = _silu(jnp.dot(yn, w1_ref[0], preferred_element_type=jnp.float32)
               + b1_ref[0])
    y = y + jnp.dot(h1, w2_ref[0], preferred_element_type=jnp.float32) + b2_ref[0]

    acc_ref[...] = y

    # last depth step: fused conv3 1x1 (dim -> channel) + BN batch-stat partials
    @pl.when(d == pl.num_programs(1) - 1)
    def _():
        y3 = jnp.dot(y, w3_ref[...], preferred_element_type=jnp.float32)
        y3_ref[0] = y3
        bmean = jnp.sum(y3, axis=0, keepdims=True) * (1.0 / y3.shape[0])
        dd = y3 - bmean
        m3_ref[0] = bmean
        ss3_ref[0] = jnp.sum(dd * dd, axis=0, keepdims=True)


def transformer_conv3(tok, s2, t2, lp, w3, *, heads, dim_head):
    BP, L, D = tok.shape
    depth = lp["wqkv"].shape[0]
    inner = heads * dim_head
    Hd = lp["ff_w1"].shape[2]
    C = w3.shape[1]
    kern = functools.partial(_transformer_conv3_kernel, heads=heads,
                             dim_head=dim_head, scale=float(dim_head) ** -0.5)
    xmap = lambda b, d: (b, 0, 0)
    dmap = lambda b, d: (d, 0, 0)
    cmap = lambda b, d: (0, 0)
    y3, m3, ss3 = pl.pallas_call(
        kern,
        out_shape=(jax.ShapeDtypeStruct((BP, L, C), jnp.float32),
                   jax.ShapeDtypeStruct((BP, 1, C), jnp.float32),
                   jax.ShapeDtypeStruct((BP, 1, C), jnp.float32)),
        grid_spec=pltpu.PrefetchScalarGridSpec(
            num_scalar_prefetch=0, grid=(BP, depth),
            in_specs=[pl.BlockSpec((1, L, D), xmap),
                      pl.BlockSpec((1, D), cmap),
                      pl.BlockSpec((1, D), cmap),
                      pl.BlockSpec((1, 1, D), dmap),            # attn_ln_g
                      pl.BlockSpec((1, 1, D), dmap),            # attn_ln_b
                      pl.BlockSpec((1, D, 3 * inner), dmap),    # wqkv
                      pl.BlockSpec((1, inner, D), dmap),        # wout
                      pl.BlockSpec((1, 1, D), dmap),            # bout
                      pl.BlockSpec((1, 1, D), dmap),            # ff_ln_g
                      pl.BlockSpec((1, 1, D), dmap),            # ff_ln_b
                      pl.BlockSpec((1, D, Hd), dmap),           # ff_w1
                      pl.BlockSpec((1, 1, Hd), dmap),           # ff_b1
                      pl.BlockSpec((1, Hd, D), dmap),           # ff_w2
                      pl.BlockSpec((1, 1, D), dmap),            # ff_b2
                      pl.BlockSpec((D, C), cmap)],              # conv3 weight
            out_specs=(pl.BlockSpec((1, L, C), xmap),
                       pl.BlockSpec((1, 1, C), xmap),
                       pl.BlockSpec((1, 1, C), xmap)),
            scratch_shapes=[pltpu.VMEM((L, D), jnp.float32)]),
        compiler_params=_cparams("parallel", "arbitrary"),
    )(tok, s2, t2,
      lp["attn_ln_g"], lp["attn_ln_b"], lp["wqkv"], lp["wout"], lp["bout"],
      lp["ff_ln_g"], lp["ff_ln_b"], lp["ff_w1"], lp["ff_b1"],
      lp["ff_w2"], lp["ff_b2"], w3)
    return y3, m3, ss3


# --------- conv4 3x3 over [SiLU(BN(conv3)), input] with fused prologue -------
def _conv4_kernel(rp_ref, s_ref, t_ref, xp_ref, wa_ref, wb_ref,
                  y_ref, mean_ref, ssq_ref, ap_ref, *, kh, kw):
    # rp_ref: (1, Hp, Wp, C) zero-padded RAW conv3 output; s/t: folded BN3.
    # xp_ref: (1, Hp, Wp, C) zero-padded original input (shared with conv1).
    Hp, Wp, C = rp_ref.shape[1], rp_ref.shape[2], rp_ref.shape[3]
    H, W = Hp - (kh - 1), Wp - (kw - 1)
    cout = wa_ref.shape[2]
    ph, pw = kh // 2, kw // 2
    # interior mask: padded border of the conv3 branch must stay exactly zero
    row = lax.broadcasted_iota(jnp.int32, (Hp, Wp), 0)
    col = lax.broadcasted_iota(jnp.int32, (Hp, Wp), 1)
    mask = ((row >= ph) & (row < ph + H) &
            (col >= pw) & (col < pw + W)).astype(jnp.float32)[:, :, None]
    s = s_ref[...].reshape(1, 1, C)
    t = t_ref[...].reshape(1, 1, C)
    ap_ref[0] = mask * _silu(rp_ref[0] * s + t)            # activated, padded
    acc = jnp.zeros((H * W, cout), jnp.float32)
    for di in range(kh):
        for dj in range(kw):
            pa = ap_ref[0, di:di + H, dj:dj + W, :].reshape(H * W, C)
            pb = xp_ref[0, di:di + H, dj:dj + W, :].reshape(H * W, C)
            acc = acc + jnp.dot(pa, wa_ref[di * kw + dj],
                                preferred_element_type=jnp.float32)
            acc = acc + jnp.dot(pb, wb_ref[di * kw + dj],
                                preferred_element_type=jnp.float32)
    y_ref[...] = acc
    bmean = jnp.sum(acc, axis=0, keepdims=True) * (1.0 / (H * W))
    d = acc - bmean
    mean_ref[0] = bmean
    ssq_ref[0] = jnp.sum(d * d, axis=0, keepdims=True)


def conv4_fused(rp, s3, t3, xp, w_oihw):
    N, Hp, Wp, C = rp.shape
    cout, cin2, kh, kw = w_oihw.shape
    H, W = Hp - (kh - 1), Wp - (kw - 1)
    wm = jnp.transpose(w_oihw, (2, 3, 1, 0)).reshape(kh * kw, cin2, cout)
    wa, wb = wm[:, :C, :], wm[:, C:, :]          # [conv3 branch, input branch]
    kern = functools.partial(_conv4_kernel, kh=kh, kw=kw)
    y, bmean, bssq = pl.pallas_call(
        kern,
        out_shape=(jax.ShapeDtypeStruct((N * H * W, cout), jnp.float32),
                   jax.ShapeDtypeStruct((N, 1, cout), jnp.float32),
                   jax.ShapeDtypeStruct((N, 1, cout), jnp.float32)),
        grid_spec=pltpu.PrefetchScalarGridSpec(
            num_scalar_prefetch=0, grid=(N,),
            in_specs=[pl.BlockSpec((1, Hp, Wp, C), lambda n: (n, 0, 0, 0)),
                      pl.BlockSpec((1, C), lambda n: (0, 0)),
                      pl.BlockSpec((1, C), lambda n: (0, 0)),
                      pl.BlockSpec((1, Hp, Wp, C), lambda n: (n, 0, 0, 0)),
                      pl.BlockSpec((kh * kw, C, cout), lambda n: (0, 0, 0)),
                      pl.BlockSpec((kh * kw, C, cout), lambda n: (0, 0, 0))],
            out_specs=(pl.BlockSpec((H * W, cout), lambda n: (n, 0)),
                       pl.BlockSpec((1, 1, cout), lambda n: (n, 0, 0)),
                       pl.BlockSpec((1, 1, cout), lambda n: (n, 0, 0))),
            scratch_shapes=[pltpu.VMEM((1, Hp, Wp, C), jnp.float32)]),
        compiler_params=_cparams("parallel"),
    )(rp, s3, t3, xp, wa, wb)
    mean, var = _combine_stats(bmean, bssq, H * W, N * H * W)
    return y, mean, var


# ----------------------------------------------------------------- forward ---
def _conv1x1_mat(w_oihw):
    return jnp.transpose(w_oihw[:, :, 0, 0], (1, 0))        # (Cin, Cout)


def mobilevit_block_forward(x_nchw, params, *, patch_size, heads=4, dim_head=8):
    x = jnp.transpose(x_nchw, (0, 2, 3, 1)).astype(jnp.float32)   # NHWC
    N, H, W, C = x.shape
    M = N * H * W
    xp = jnp.pad(x, ((0, 0), (1, 1), (1, 1), (0, 0)))        # shared by conv1/conv4

    # conv1 3x3 C->C (+fused stats); its BN+SiLU is fused into conv2's prologue
    y1, m1, v1 = conv3x3_stats(xp, params["conv1_w"])
    s1, t1 = _fold_bn(params["conv1_g"], params["conv1_b"], m1, v1)

    # conv2 1x1 C->dim with fused (BN1+SiLU) prologue and fused stats
    y2, m2, v2 = matmul_stats(y1, _conv1x1_mat(params["conv2_w"]),
                              scale=s1, shift=t1, prologue=True)
    s2, t2 = _fold_bn(params["conv2_g"], params["conv2_b"], m2, v2)
    D = y2.shape[1]

    # patchify (raw conv2 output; BN2+SiLU is applied inside the fused kernel):
    # 'b d (h ph) (w pw) -> b (ph pw) (h w) d'  (pure layout glue)
    ph = pw = patch_size
    hh, ww = H // ph, W // pw
    tok = (y2.reshape(N, hh, ph, ww, pw, D)
             .transpose(0, 2, 4, 1, 3, 5)
             .reshape(N * ph * pw, hh * ww, D))

    # fused [BN2+SiLU] + full transformer + conv3 1x1 (+ BN3 stat partials)
    lp = {k: jnp.stack([layer[k] for layer in params["layers"]], axis=0)
          for k in params["layers"][0]}
    y3, m3b, ss3b = transformer_conv3(tok, s2, t2, lp,
                                      _conv1x1_mat(params["conv3_w"]),
                                      heads=heads, dim_head=dim_head)
    m3, v3 = _combine_stats(m3b, ss3b, hh * ww, M)
    s3, t3 = _fold_bn(params["conv3_g"], params["conv3_b"], m3, v3)

    # un-patchify the RAW conv3 output (1x1 conv commutes with the permutation)
    r = (y3.reshape(N, ph, pw, hh, ww, C)
           .transpose(0, 3, 1, 4, 2, 5)
           .reshape(N, H, W, C))
    rp = jnp.pad(r, ((0, 0), (1, 1), (1, 1), (0, 0)))

    # conv4 3x3 over concat([SiLU(BN3(conv3)), x]) fused in-kernel, then BN+SiLU
    y4, m4, v4 = conv4_fused(rp, s3, t3, xp, params["conv4_w"])
    s4, t4 = _fold_bn(params["conv4_g"], params["conv4_b"], m4, v4)
    out = bn_silu(y4, s4, t4).reshape(N, H, W, C)
    return jnp.transpose(out, (0, 3, 1, 2))                   # NCHW


# ------------------------------------------------------ pure-JAX reference ---
def _ref_conv(x, w_oihw, pad):
    w = jnp.transpose(w_oihw, (2, 3, 1, 0))                   # HWIO
    return lax.conv_general_dilated(
        x, w, (1, 1), ((pad, pad), (pad, pad)),
        dimension_numbers=("NHWC", "HWIO", "NHWC"))


def _ref_bn_silu(y, g, b):
    mean = jnp.mean(y, axis=(0, 1, 2), keepdims=True)
    var = jnp.var(y, axis=(0, 1, 2), keepdims=True)
    yh = ((y - mean) * lax.rsqrt(var + BN_EPS) * g.reshape(1, 1, 1, -1)
          + b.reshape(1, 1, 1, -1))
    return _silu(yh)


def _ref_ln(x, g, b):
    mu = jnp.mean(x, axis=-1, keepdims=True)
    var = jnp.mean((x - mu) ** 2, axis=-1, keepdims=True)
    return (x - mu) * lax.rsqrt(var + LN_EPS) * g + b


def _ref_attn(x, layer, heads, dim_head):
    B, P, n, d = x.shape
    inner = heads * dim_head
    xn = _ref_ln(x, layer["attn_ln_g"], layer["attn_ln_b"])
    qkv = xn @ layer["wqkv"]
    q, k, v = jnp.split(qkv, 3, axis=-1)
    hf = lambda a: a.reshape(B, P, n, heads, dim_head).transpose(0, 1, 3, 2, 4)
    q, k, v = map(hf, (q, k, v))
    dots = jnp.einsum("bphnd,bphmd->bphnm", q, k) * (float(dim_head) ** -0.5)
    attn = jax.nn.softmax(dots, axis=-1)
    o = jnp.einsum("bphnm,bphmd->bphnd", attn, v)
    o = o.transpose(0, 1, 3, 2, 4).reshape(B, P, n, inner)
    return o @ layer["wout"] + layer["bout"]


def _ref_ff(x, layer):
    xn = _ref_ln(x, layer["ff_ln_g"], layer["ff_ln_b"])
    h = _silu(xn @ layer["ff_w1"] + layer["ff_b1"])
    return h @ layer["ff_w2"] + layer["ff_b2"]


def reference(x_nchw, params, *, patch_size, heads, dim_head):
    x = jnp.transpose(x_nchw, (0, 2, 3, 1)).astype(jnp.float32)
    y0 = x
    h = _ref_bn_silu(_ref_conv(x, params["conv1_w"], 1),
                     params["conv1_g"], params["conv1_b"])
    h = _ref_bn_silu(_ref_conv(h, params["conv2_w"], 0),
                     params["conv2_g"], params["conv2_b"])
    N, H, W, D = h.shape
    ph = pw = patch_size
    hh, ww = H // ph, W // pw
    t = (h.reshape(N, hh, ph, ww, pw, D).transpose(0, 2, 4, 1, 3, 5)
          .reshape(N, ph * pw, hh * ww, D))
    for layer in params["layers"]:
        t = _ref_attn(t, layer, heads, dim_head) + t
        t = _ref_ff(t, layer) + t
    h = (t.reshape(N, ph, pw, hh, ww, D).transpose(0, 3, 1, 4, 2, 5)
          .reshape(N, H, W, D))
    h = _ref_bn_silu(_ref_conv(h, params["conv3_w"], 0),
                     params["conv3_g"], params["conv3_b"])
    h = jnp.concatenate([h, y0], axis=-1)
    h = _ref_bn_silu(_ref_conv(h, params["conv4_w"], 1),
                     params["conv4_g"], params["conv4_b"])
    return jnp.transpose(h, (0, 3, 1, 2))


# -------------------------------------------------------------------- main ---
if __name__ == "__main__":
    N, channel, H, W = 2, 4, 16, 16
    dim, depth, patch_size, mlp_dim = 32, 2, 2, 64
    heads, dim_head = 4, 8                    # fixed inside the torch module
    inner = heads * dim_head

    keys = iter(jax.random.split(jax.random.PRNGKey(0), 64))

    def nrm(shape, fan_in):
        return (jax.random.normal(next(keys), shape, jnp.float32)
                / jnp.sqrt(float(fan_in)))

    def affine(c):
        g = 1.0 + 0.1 * jax.random.normal(next(keys), (1, c), jnp.float32)
        b = 0.1 * jax.random.normal(next(keys), (1, c), jnp.float32)
        return g, b

    params = {}
    params["conv1_w"] = nrm((channel, channel, 3, 3), channel * 9)
    params["conv1_g"], params["conv1_b"] = affine(channel)
    params["conv2_w"] = nrm((dim, channel, 1, 1), channel)
    params["conv2_g"], params["conv2_b"] = affine(dim)
    layers = []
    for _ in range(depth):
        lg, lb = affine(dim)
        fg, fb = affine(dim)
        layers.append({
            "attn_ln_g": lg, "attn_ln_b": lb,
            "wqkv": nrm((dim, 3 * inner), dim),
            "wout": nrm((inner, dim), inner),
            "bout": 0.1 * jax.random.normal(next(keys), (1, dim), jnp.float32),
            "ff_ln_g": fg, "ff_ln_b": fb,
            "ff_w1": nrm((dim, mlp_dim), dim),
            "ff_b1": 0.1 * jax.random.normal(next(keys), (1, mlp_dim), jnp.float32),
            "ff_w2": nrm((mlp_dim, dim), mlp_dim),
            "ff_b2": 0.1 * jax.random.normal(next(keys), (1, dim), jnp.float32),
        })
    params["layers"] = layers
    params["conv3_w"] = nrm((channel, dim, 1, 1), dim)
    params["conv3_g"], params["conv3_b"] = affine(channel)
    params["conv4_w"] = nrm((channel, 2 * channel, 3, 3), 2 * channel * 9)
    params["conv4_g"], params["conv4_b"] = affine(channel)

    x = jax.random.normal(next(keys), (N, channel, H, W), jnp.float32)

    out = jax.block_until_ready(
        mobilevit_block_forward(x, params, patch_size=patch_size,
                                heads=heads, dim_head=dim_head))
    ref = jax.block_until_ready(
        reference(x, params, patch_size=patch_size, heads=heads,
                  dim_head=dim_head))

    assert out.shape == (N, channel, H, W), out.shape
    err = float(jnp.max(jnp.abs(out - ref)))
    assert jnp.allclose(out, ref, atol=2e-3, rtol=2e-3), err
    print("KERNEL_OK")
</pallas_src>

<mosaic_0001>
module attributes {stable_mosaic.version = 11 : i64} {
  func.func @_conv3x3_stats_kernel(%arg0: i32, %arg1: memref<1x18x18x4xf32, #tpu.memory_space<vmem>>, %arg2: memref<9x4x4xf32, #tpu.memory_space<vmem>>, %arg3: memref<256x4xf32, #tpu.memory_space<vmem>>, %arg4: memref<1x1x4xf32, #tpu.memory_space<vmem>>, %arg5: memref<1x1x4xf32, #tpu.memory_space<vmem>>) attributes {dimension_semantics = [#tpu.dimension_semantics<parallel>], iteration_bounds = array<i64: 2>, scalar_prefetch = 0 : i64, scratch_operands = 0 : i64, tpu.core_type = #tpu.core_type<tc>, window_params = [{transform_indices = @transform_0, window_bounds = array<i64: 1, 18, 18, 4>}, {pipeline_mode = #tpu.pipeline_mode<synchronous>, transform_indices = @transform_1, window_bounds = array<i64: 9, 4, 4>}, {transform_indices = @transform_2, window_bounds = array<i64: 256, 4>}, {transform_indices = @transform_3, window_bounds = array<i64: 1, 1, 4>}, {transform_indices = @transform_4, window_bounds = array<i64: 1, 1, 4>}]} {
    %cst = arith.constant 0.000000e+00 : f32
    %0 = vector.broadcast %cst : f32 to vector<256x4xf32>
    %c0 = arith.constant 0 : index
    %c0_0 = arith.constant 0 : index
    %c0_1 = arith.constant 0 : index
    %c0_2 = arith.constant 0 : index
    %1 = vector.load %arg1[%c0, %c0_0, %c0_1, %c0_2] : memref<1x18x18x4xf32, #tpu.memory_space<vmem>>, vector<1x16x16x4xf32>
    %2 = vector.shape_cast %1 : vector<1x16x16x4xf32> to vector<16x16x4xf32>
    %3 = vector.shape_cast %2 : vector<16x16x4xf32> to vector<256x4xf32>
    %c0_3 = arith.constant 0 : index
    %c0_4 = arith.constant 0 : index
    %c0_5 = arith.constant 0 : index
    %4 = vector.load %arg2[%c0_3, %c0_4, %c0_5] : memref<9x4x4xf32, #tpu.memory_space<vmem>>, vector<1x4x4xf32>
    %5 = vector.shape_cast %4 : vector<1x4x4xf32> to vector<4x4xf32>
    %cst_6 = arith.constant dense<0.000000e+00> : vector<256x4xf32>
    %6 = tpu.matmul %3, %5, %cst_6 {dimension_numbers = #tpu.dot_dimension_numbers<[1], [0], [0], [1], [0, 0, 1, 1], [], []>, precision = #tpu.contract_precision<fp32>} : vector<256x4xf32>, vector<4x4xf32>, vector<256x4xf32> -> vector<256x4xf32>
    %7 = arith.addf %0, %6 : vector<256x4xf32>
    %c0_7 = arith.constant 0 : index
    %c0_8 = arith.constant 0 : index
    %c1 = arith.constant 1 : index
    %c0_9 = arith.constant 0 : index
    %8 = vector.load %arg1[%c0_7, %c0_8, %c1, %c0_9] : memref<1x18x18x4xf32, #tpu.memory_space<vmem>>, vector<1x16x16x4xf32>
    %9 = vector.shape_cast %8 : vector<1x16x16x4xf32> to vector<16x16x4xf32>
    %10 = vector.shape_cast %9 : vector<16x16x4xf32> to vector<256x4xf32>
    %c1_10 = arith.constant 1 : index
    %c0_11 = arith.constant 0 : index
    %c0_12 = arith.constant 0 : index
    %11 = vector.load %arg2[%c1_10, %c0_11, %c0_12] : memref<9x4x4xf32, #tpu.memory_space<vmem>>, vector<1x4x4xf32>
    %12 = vector.shape_cast %11 : vector<1x4x4xf32> to vector<4x4xf32>
    %cst_13 = arith.constant dense<0.000000e+00> : vector<256x4xf32>
    %13 = tpu.matmul %10, %12, %cst_13 {dimension_numbers = #tpu.dot_dimension_numbers<[1], [0], [0], [1], [0, 0, 1, 1], [], []>, precision = #tpu.contract_precision<fp32>} : vector<256x4xf32>, vector<4x4xf32>, vector<256x4xf32> -> vector<256x4xf32>
    %14 = arith.addf %7, %13 : vector<256x4xf32>
    %c0_14 = arith.constant 0 : index
    %c0_15 = arith.constant 0 : index
    %c2 = arith.constant 2 : index
    %c0_16 = arith.constant 0 : index
    %15 = vector.load %arg1[%c0_14, %c0_15, %c2, %c0_16] : memref<1x18x18x4xf32, #tpu.memory_space<vmem>>, vector<1x16x16x4xf32>
    %16 = vector.shape_cast %15 : vector<1x16x16x4xf32> to vector<16x16x4xf32>
    %17 = vector.shape_cast %16 : vector<16x16x4xf32> to vector<256x4xf32>
    %c2_17 = arith.constant 2 : index
    %c0_18 = arith.constant 0 : index
    %c0_19 = arith.constant 0 : index
    %18 = vector.load %arg2[%c2_17, %c0_18, %c0_19] : memref<9x4x4xf32, #tpu.memory_space<vmem>>, vector<1x4x4xf32>
    %19 = vector.shape_cast %18 : vector<1x4x4xf32> to vector<4x4xf32>
    %cst_20 = arith.constant dense<0.000000e+00> : vector<256x4xf32>
    %20 = tpu.matmul %17, %19, %cst_20 {dimension_numbers = #tpu.dot_dimension_numbers<[1], [0], [0], [1], [0, 0, 1, 1], [], []>, precision = #tpu.contract_precision<fp32>} : vector<256x4xf32>, vector<4x4xf32>, vector<256x4xf32> -> vector<256x4xf32>
    %21 = arith.addf %14, %20 : vector<256x4xf32>
    %c0_21 = arith.constant 0 : index
    %c1_22 = arith.constant 1 : index
    %c0_23 = arith.constant 0 : index
    %c0_24 = arith.constant 0 : index
    %22 = vector.load %arg1[%c0_21, %c1_22, %c0_23, %c0_24] : memref<1x18x18x4xf32, #tpu.memory_space<vmem>>, vector<1x16x16x4xf32>
    %23 = vector.shape_cast %22 : vector<1x16x16x4xf32> to vector<16x16x4xf32>
    %24 = vector.shape_cast %23 : vector<16x16x4xf32> to vector<256x4xf32>
    %c3 = arith.constant 3 : index
    %c0_25 = arith.constant 0 : index
    %c0_26 = arith.constant 0 : index
    %25 = vector.load %arg2[%c3, %c0_25, %c0_26] : memref<9x4x4xf32, #tpu.memory_space<vmem>>, vector<1x4x4xf32>
    %26 = vector.shape_cast %25 : vector<1x4x4xf32> to vector<4x4xf32>
    %cst_27 = arith.constant dense<0.000000e+00> : vector<256x4xf32>
    %27 = tpu.matmul %24, %26, %cst_27 {dimension_numbers = #tpu.dot_dimension_numbers<[1], [0], [0], [1], [0, 0, 1, 1], [], []>, precision = #tpu.contract_precision<fp32>} : vector<256x4xf32>, vector<4x4xf32>, vector<256x4xf32> -> vector<256x4xf32>
    %28 = arith.addf %21, %27 : vector<256x4xf32>
    %c0_28 = arith.constant 0 : index
    %c1_29 = arith.constant 1 : index
    %c1_30 = arith.constant 1 : index
    %c0_31 = arith.constant 0 : index
    %29 = vector.load %arg1[%c0_28, %c1_29, %c1_30, %c0_31] : memref<1x18x18x4xf32, #tpu.memory_space<vmem>>, vector<1x16x16x4xf32>
    %30 = vector.shape_cast %29 : vector<1x16x16x4xf32> to vector<16x16x4xf32>
    %31 = vector.shape_cast %30 : vector<16x16x4xf32> to vector<256x4xf32>
    %c4 = arith.constant 4 : index
    %c0_32 = arith.constant 0 : index
    %c0_33 = arith.constant 0 : index
    %32 = vector.load %arg2[%c4, %c0_32, %c0_33] : memref<9x4x4xf32, #tpu.memory_space<vmem>>, vector<1x4x4xf32>
    %33 = vector.shape_cast %32 : vector<1x4x4xf32> to vector<4x4xf32>
    %cst_34 = arith.constant dense<0.000000e+00> : vector<256x4xf32>
    %34 = tpu.matmul %31, %33, %cst_34 {dimension_numbers = #tpu.dot_dimension_numbers<[1], [0], [0], [1], [0, 0, 1, 1], [], []>, precision = #tpu.contract_precision<fp32>} : vector<256x4xf32>, vector<4x4xf32>, vector<256x4xf32> -> vector<256x4xf32>
    %35 = arith.addf %28, %34 : vector<256x4xf32>
    %c0_35 = arith.constant 0 : index
    %c1_36 = arith.constant 1 : index
    %c2_37 = arith.constant 2 : index
    %c0_38 = arith.constant 0 : index
    %36 = vector.load %arg1[%c0_35, %c1_36, %c2_37, %c0_38] : memref<1x18x18x4xf32, #tpu.memory_space<vmem>>, vector<1x16x16x4xf32>
    %37 = vector.shape_cast %36 : vector<1x16x16x4xf32> to vector<16x16x4xf32>
    %38 = vector.shape_cast %37 : vector<16x16x4xf32> to vector<256x4xf32>
    %c5 = arith.constant 5 : index
    %c0_39 = arith.constant 0 : index
    %c0_40 = arith.constant 0 : index
    %39 = vector.load %arg2[%c5, %c0_39, %c0_40] : memref<9x4x4xf32, #tpu.memory_space<vmem>>, vector<1x4x4xf32>
    %40 = vector.shape_cast %39 : vector<1x4x4xf32> to vector<4x4xf32>
    %cst_41 = arith.constant dense<0.000000e+00> : vector<256x4xf32>
    %41 = tpu.matmul %38, %40, %cst_41 {dimension_numbers = #tpu.dot_dimension_numbers<[1], [0], [0], [1], [0, 0, 1, 1], [], []>, precision = #tpu.contract_precision<fp32>} : vector<256x4xf32>, vector<4x4xf32>, vector<256x4xf32> -> vector<256x4xf32>
    %42 = arith.addf %35, %41 : vector<256x4xf32>
    %c0_42 = arith.constant 0 : index
    %c2_43 = arith.constant 2 : index
    %c0_44 = arith.constant 0 : index
    %c0_45 = arith.constant 0 : index
    %43 = vector.load %arg1[%c0_42, %c2_43, %c0_44, %c0_45] : memref<1x18x18x4xf32, #tpu.memory_space<vmem>>, vector<1x16x16x4xf32>
    %44 = vector.shape_cast %43 : vector<1x16x16x4xf32> to vector<16x16x4xf32>
    %45 = vector.shape_cast %44 : vector<16x16x4xf32> to vector<256x4xf32>
    %c6 = arith.constant 6 : index
    %c0_46 = arith.constant 0 : index
    %c0_47 = arith.constant 0 : index
    %46 = vector.load %arg2[%c6, %c0_46, %c0_47] : memref<9x4x4xf32, #tpu.memory_space<vmem>>, vector<1x4x4xf32>
    %47 = vector.shape_cast %46 : vector<1x4x4xf32> to vector<4x4xf32>
    %cst_48 = arith.constant dense<0.000000e+00> : vector<256x4xf32>
    %48 = tpu.matmul %45, %47, %cst_48 {dimension_numbers = #tpu.dot_dimension_numbers<[1], [0], [0], [1], [0, 0, 1, 1], [], []>, precision = #tpu.contract_precision<fp32>} : vector<256x4xf32>, vector<4x4xf32>, vector<256x4xf32> -> vector<256x4xf32>
    %49 = arith.addf %42, %48 : vector<256x4xf32>
    %c0_49 = arith.constant 0 : index
    %c2_50 = arith.constant 2 : index
    %c1_51 = arith.constant 1 : index
    %c0_52 = arith.constant 0 : index
    %50 = vector.load %arg1[%c0_49, %c2_50, %c1_51, %c0_52] : memref<1x18x18x4xf32, #tpu.memory_space<vmem>>, vector<1x16x16x4xf32>
    %51 = vector.shape_cast %50 : vector<1x16x16x4xf32> to vector<16x16x4xf32>
    %52 = vector.shape_cast %51 : vector<16x16x4xf32> to vector<256x4xf32>
    %c7 = arith.constant 7 : index
    %c0_53 = arith.constant 0 : index
    %c0_54 = arith.constant 0 : index
    %53 = vector.load %arg2[%c7, %c0_53, %c0_54] : memref<9x4x4xf32, #tpu.memory_space<vmem>>, vector<1x4x4xf32>
    %54 = vector.shape_cast %53 : vector<1x4x4xf32> to vector<4x4xf32>
    %cst_55 = arith.constant dense<0.000000e+00> : vector<256x4xf32>
    %55 = tpu.matmul %52, %54, %cst_55 {dimension_numbers = #tpu.dot_dimension_numbers<[1], [0], [0], [1], [0, 0, 1, 1], [], []>, precision = #tpu.contract_precision<fp32>} : vector<256x4xf32>, vector<4x4xf32>, vector<256x4xf32> -> vector<256x4xf32>
    %56 = arith.addf %49, %55 : vector<256x4xf32>
    %c0_56 = arith.constant 0 : index
    %c2_57 = arith.constant 2 : index
    %c2_58 = arith.constant 2 : index
    %c0_59 = arith.constant 0 : index
    %57 = vector.load %arg1[%c0_56, %c2_57, %c2_58, %c0_59] : memref<1x18x18x4xf32, #tpu.memory_space<vmem>>, vector<1x16x16x4xf32>
    %58 = vector.shape_cast %57 : vector<1x16x16x4xf32> to vector<16x16x4xf32>
    %59 = vector.shape_cast %58 : vector<16x16x4xf32> to vector<256x4xf32>
    %c8 = arith.constant 8 : index
    %c0_60 = arith.constant 0 : index
    %c0_61 = arith.constant 0 : index
    %60 = vector.load %arg2[%c8, %c0_60, %c0_61] : memref<9x4x4xf32, #tpu.memory_space<vmem>>, vector<1x4x4xf32>
    %61 = vector.shape_cast %60 : vector<1x4x4xf32> to vector<4x4xf32>
    %cst_62 = arith.constant dense<0.000000e+00> : vector<256x4xf32>
    %62 = tpu.matmul %59, %61, %cst_62 {dimension_numbers = #tpu.dot_dimension_numbers<[1], [0], [0], [1], [0, 0, 1, 1], [], []>, precision = #tpu.contract_precision<fp32>} : vector<256x4xf32>, vector<4x4xf32>, vector<256x4xf32> -> vector<256x4xf32>
    %63 = arith.addf %56, %62 : vector<256x4xf32>
    %c0_63 = arith.constant 0 : index
    %c0_64 = arith.constant 0 : index
    %64 = vector.load %arg3[%c0_63, %c0_64] : memref<256x4xf32, #tpu.memory_space<vmem>>, vector<256x4xf32>
    tpu.vector_store %arg3[%c0_63, %c0_64], %63 {strides = array<i32>} : memref<256x4xf32, #tpu.memory_space<vmem>>, vector<256x4xf32>,
    %cst_65 = arith.constant dense<0.000000e+00> : vector<4xf32>
    %65 = vector.multi_reduction <add>, %63, %cst_65 [0] : vector<256x4xf32> to vector<4xf32>
    %66 = vector.shape_cast %65 : vector<4xf32> to vector<1x4xf32>
    %cst_66 = arith.constant 3.906250e-03 : f32
    %67 = vector.broadcast %cst_66 : f32 to vector<1x4xf32>
    %68 = arith.mulf %66, %67 : vector<1x4xf32>
    %69 = vector.broadcast %68 : vector<1x4xf32> to vector<256x4xf32>
    %70 = arith.subf %63, %69 : vector<256x4xf32>
    %c0_67 = arith.constant 0 : index
    %c0_68 = arith.constant 0 : index
    %c0_69 = arith.constant 0 : index
    %71 = vector.load %arg4[%c0_67, %c0_68, %c0_69] : memref<1x1x4xf32, #tpu.memory_space<vmem>>, vector<1x1x4xf32>
    %72 = vector.shape_cast %71 : vector<1x1x4xf32> to vector<1x4xf32>
    %73 = vector.shape_cast %68 : vector<1x4xf32> to vector<1x1x4xf32>
    tpu.vector_store %arg4[%c0_67, %c0_68, %c0_69], %73 {strides = array<i32>} : memref<1x1x4xf32, #tpu.memory_space<vmem>>, vector<1x1x4xf32>,
    %74 = arith.mulf %70, %70 : vector<256x4xf32>
    %cst_70 = arith.constant dense<0.000000e+00> : vector<4xf32>
    %75 = vector.multi_reduction <add>, %74, %cst_70 [0] : vector<256x4xf32> to vector<4xf32>
    %76 = vector.shape_cast %75 : vector<4xf32> to vector<1x4xf32>
    %c0_71 = arith.constant 0 : index
    %c0_72 = arith.constant 0 : index
    %c0_73 = arith.constant 0 : index
    %77 = vector.load %arg5[%c0_71, %c0_72, %c0_73] : memref<1x1x4xf32, #tpu.memory_space<vmem>>, vector<1x1x4xf32>
    %78 = vector.shape_cast %77 : vector<1x1x4xf32> to vector<1x4xf32>
    %79 = vector.shape_cast %76 : vector<1x4xf32> to vector<1x1x4xf32>
    tpu.vector_store %arg5[%c0_71, %c0_72, %c0_73], %79 {strides = array<i32>} : memref<1x1x4xf32, #tpu.memory_space<vmem>>, vector<1x1x4xf32>,
    return
  }
  func.func @transform_0(%arg0: i32) -> (i32, i32, i32, i32) {
    %c0_i32 = arith.constant 0 : i32
    %c0_i32_0 = arith.constant 0 : i32
    %c0_i32_1 = arith.constant 0 : i32
    %c0_i32_2 = arith.constant 0 : i32
    return %arg0, %c0_i32, %c0_i32_0, %c0_i32_1 : i32, i32, i32, i32
  }
  func.func @transform_1(%arg0: i32) -> (i32, i32, i32) {
    %c0_i32 = arith.constant 0 : i32
    %c0_i32_0 = arith.constant 0 : i32
    %c0_i32_1 = arith.constant 0 : i32
    %c0_i32_2 = arith.constant 0 : i32
    return %c0_i32, %c0_i32_0, %c0_i32_1 : i32, i32, i32
  }
  func.func @transform_2(%arg0: i32) -> (i32, i32) {
    %c0_i32 = arith.constant 0 : i32
    %c0_i32_0 = arith.constant 0 : i32
    return %arg0, %c0_i32 : i32, i32
  }
  func.func @transform_3(%arg0: i32) -> (i32, i32, i32) {
    %c0_i32 = arith.constant 0 : i32
    %c0_i32_0 = arith.constant 0 : i32
    %c0_i32_1 = arith.constant 0 : i32
    return %arg0, %c0_i32, %c0_i32_0 : i32, i32, i32
  }
  func.func @transform_4(%arg0: i32) -> (i32, i32, i32) {
    %c0_i32 = arith.constant 0 : i32
    %c0_i32_0 = arith.constant 0 : i32
    %c0_i32_1 = arith.constant 0 : i32
    return %arg0, %c0_i32, %c0_i32_0 : i32, i32, i32
  }
}

</mosaic_0001>

<bundles_post_ra>
// kernel: tpu_custom_call.1
= control target key start
LH: loop header
LB: loop body
LE: loop exit
PB: predicated region body
PF: predicated region fallthrough
CT: control target
= control target key end

     0   :  { %10 = vsyncpa [#allocation3], 0  ;;  %s29822_s0 = inlined_call_operand.vmem [shape: f32[2,18,18,4], index: 0, kind: input, shape index: {}]   ;;  %s29823_s1 = inlined_call_operand.vmem [shape: f32[9,4,4], index: 1, kind: input, shape index: {}]   ;;  %s29824_s2 = inlined_call_operand.vmem [shape: f32[512,4], index: 2, kind: output, shape index: {0}]   ;;  %s29825_s3 = inlined_call_operand.hbm [shape: f32[2,1,4], index: 3, kind: output, shape index: {1}]   ;;  %s29826_s4 = inlined_call_operand.hbm [shape: f32[2,1,4], index: 4, kind: output, shape index: {2}]  }
   0x1   :  { %12 = vsyncpa [#allocation3 + $0x1], 0 }
   0x2   :  { %13 = vsyncpa [#allocation5], 0 }
   0x3   :  { %15 = vsyncpa [#allocation5 + $0x1], 0  ;;  %s24595_s15 = smov 0   ;;  %s24597_s16 = smov 0  }
   0x4   :  { %s24599_s17 = smov 0   ;;  %s24601_s18 = smov 0  }
   0x5 LB: > { %s24616_s19 = sadd.s32 4294967295, %s24566_s18   ;;  %s18038_s20 = sadd.s32 4294967294, %s24566_s18   ;;  %s24566_s18 = sphi %s24601_s18, %s32272_s18   ;;  %s24562_s17 = sphi %s24599_s17, %s32271_s17   ;;  %s24558_s16 = sphi %s24597_s16, %s32270_s16   ;;  %s24554_s15 = sphi %s24595_s15, %s32269_s15  }
   0x6   : > { %s24620_s21 = sadd.s32 1, %s24566_s18   ;;  %s101_s22 = sadd.s32 1, %s24562_s17 }
   0x7   : > { %s98_s23 = ssub.s32 %s24566_s18, %s24620_s21  ;;  %p111_p0 = scmp.ne.s32.totalorder %s24562_s17, %s24558_s16 }
   0x8   : > { %p99_p1 = scmp.eq.s32.totalorder %s98_s23, 0  ;;  %p112_p2 = scmp.eq.s32.totalorder %s24616_s19, 1 }
   0x9   : > { %p117_p3 = scmp.ne.s32.totalorder %s24558_s16, %s24554_s15  ;;  %p118_p4 = scmp.eq.s32.totalorder %s18038_s20, 1 }
   0xa   : > { %s24631_s24 = scalar_select %p99_p1, %s24562_s17, %s101_s22  }
   0xb   : > { %p24633_p5 = por %p112_p2, %p111_p0  ;;  %p24637_p6 = por %p118_p4, %p117_p3 }
   0xc   : > { %p18041_p7 = scmp.ge.s32.totalorder %s24566_s18, 1  ;;  %p173_p8 = scmp.lt.s32.totalorder %s24566_s18, 3 }
   0xe   : > { %p174_p9 = pnand %p18041_p7, %p173_p8 }
  0x10   : > { %177 = sbr.rel (%p174_p9) target bundleno = 2114 (0x842), region = 28 }
  0x17   : > { %vm382_vm0 = vcmask 1043456   ;;  %v18112_v0 = vld [vmem:[%s29823_s1 + $0x10] sm:$0xf]  ;;  %p207_p10 = scmp.lt.s32.totalorder %s24616_s19, 1  ;;  %v18045_v2 = vld [vmem:[%s29823_s1 + $0x4] sm:$0xf] }
  0x18   : > { %v8063_v1 = vsel %vm382_vm0, %v18112_v0, 0  ;;  %v384_v4 = vsel %vm382_vm0, %v18045_v2, 0  ;;  %vm285_vm1 = vcmask 31744   ;;  %s18043_s7 = sshll.u32 %s24616_s19, 5  ;;  %s29561_s12 = sand.u32 1, %s24558_s16   ;;  %vm17787_vm2 = vcmask 24576  }
  0x19   : > { %v24651_v3 = vand.u32 4294901760, %v8063_v1  ;;  %s208_s5 = scalar_select %p207_p10, %s24616_s19, 1  ;;  %v24655_v5 = vand.u32 4294901760, %v384_v4 }
  0x1a   : > { %p213_p11 = scmp.lt.s32.totalorder %s18043_s7, 63  ;;  %s18245_s13 = sshll.u32 %s24616_s19, 4 }
  0x1b   : > { %30821 = vst [vmem:[#allocation8_spill] sm:$0xff] %v24651_v3  ;;  %21381 = vmatprep.subr.mxu0 %v24651_v3  ;;  %s24427_s6 = smul.u32 432, %s208_s5  ;;  %v24659_v6 = vsub.f32 %v8063_v1, %v24651_v3  ;;  %20031 = vmatprep.subr.mxu1 %v24655_v5  ;;  %v24664_v7 = vsub.f32 %v384_v4, %v24655_v5  ;;  %s200_s14 = scalar_lea.vmem [#allocation2], %s29561_s12 }
  0x1c   : > { %21382 = vmatpush3.msra.mxu0 %v24651_v3  ;;  %20032 = vmatpush3.msra.mxu1 %v24655_v5  ;;  %s32274_s7 = smov (!%p213_p11, %s18043_s7), 63  ;;  %s17917_s20 = sshll.u32 %s200_s14, 4  ;;  %s29574_s20 = int_to_ptr.vmem [resolvable:$true] %s17917_s20 }
  0x1d   : > { %30822 = vst [vmem:[#allocation9_spill] sm:$0xff] %v24659_v6  ;;  %s24669_s9 = scalar_lea.vmem %s29822_s0, %s24427_s6  ;;  %v24673_v8 = vand.u32 4294901760, %v24659_v6  ;;  %v24679_v12 = vand.u32 4294901760, %v24664_v7  ;;  %s18044_s8 = sshll.u32 %s32274_s7, 3 }
  0x1e   : > { %v18080_v9 = vld [vmem:[%s24669_s9 + $0x19] sm:$0xff]  ;;  %v18081_v10 = vld [vmem:[%s24669_s9 + $0x21] sm:$0xff]  ;;  %v18082_v16 = vld [vmem:[%s24669_s9 + $0x31] sm:$0xff]  ;;  %s29334_s11 = scalar_lea.vmem %s29824_s2, %s18044_s8  ;;  %s29572_s27 = scalar_lea.hbm %s29825_s3, %s18245_s13 }
  0x1f   : > { %30823 = vst [vmem:[#allocation10_spill] sm:$0xff] %v24673_v8  ;;  %v251_v11 = vld [vmem:[%s24669_s9 + $0x1] sm:$0xff]  ;;  %v7967_v13 = vsel %vm285_vm1, %v18080_v9, 0  ;;  %v7970_v14 = vsel %vm285_vm1, %v18081_v10, 0  ;;  %21431 = vmatprep.subr.mxu0 %v24673_v8  ;;  %v252_v17 = vld [vmem:[%s24669_s9 + $0x9] sm:$0xff]  ;;  %v18083_v18 = vld [vmem:[%s24669_s9 + $0x39] sm:$0xff]  ;;  %v776_v22 = vsub.f32 %v24664_v7, %v24679_v12 }
  0x20   : > { %v287_v15 = vsel %vm285_vm1, %v251_v11, 0  ;;  %v24688_v19 = vand.u32 4294901760, %v7967_v13  ;;  %v24690_v20 = vand.u32 4294901760, %v7970_v14  ;;  %v18084_v23 = vld [vmem:[%s24669_s9 + $0x49] sm:$0xff]  ;;  %v7973_v24 = vsel %vm285_vm1, %v18082_v16, 0  ;;  %v18085_v28 = vld [vmem:[%s24669_s9 + $0x51] sm:$0xff] }
  0x21   : > { %v24692_v21 = vand.u32 4294901760, %v287_v15  ;;  %v290_v25 = vsel %vm285_vm1, %v252_v17, 0  ;;  %v7976_v26 = vsel %vm285_vm1, %v18083_v18, 0  ;;  %v7979_v27 = vsel %vm285_vm1, %v18084_v23, 0  ;;  %v18086_v48 = vld [vmem:[%s24669_s9 + $0x61] sm:$0xff]  ;;  %v18087_v53 = vld [vmem:[%s24669_s9 + $0x69] sm:$0xff] }
  0x22   : > { %30824 = vst [vmem:[#allocation11_spill] sm:$0xff] %v24688_v19  ;;  %30825 = vst [vmem:[#allocation12_spill] sm:$0xff] %v24690_v20  ;;  %v24703_v29 = vsub.f32 %v7967_v13, %v24688_v19  ;;  %v24706_v30 = vsub.f32 %v7970_v14, %v24690_v20  ;;  %v777_v32 = vand.u32 4294901760, %v776_v22  ;;  %v24711_v33 = vand.u32 4294901760, %v7973_v24  ;;  %v18088_v59 = vld [vmem:[%s24669_s9 + $0x79] sm:$0xff]  ;;  %v18089_v0 = vld [vmem:[%s24669_s9 + $0x81] sm:$0xff] }
  0x23   : > { %v24709_v31 = vsub.f32 %v287_v15, %v24692_v21  ;;  %v24713_v34 = vand.u32 4294901760, %v290_v25  ;;  %v24715_v35 = vand.u32 4294901760, %v7976_v26  ;;  %v24717_v36 = vand.u32 4294901760, %v7979_v27  ;;  %v18090_v1 = vld [vmem:[%s24669_s9 + $0x91] sm:$0xff]  ;;  %v18091_v16 = vld [vmem:[%s24669_s9 + $0x99] sm:$0xff]  ;;  %v18092_v17 = vld [vmem:[%s24669_s9 + $0xa9] sm:$0xff] }
  0x24   : > { %30826 = vst [vmem:[#allocation13_spill] sm:$0xff] %v24703_v29  ;;  %30827 = vst [vmem:[#allocation14_spill] sm:$0xff] %v24706_v30  ;;  %v24720_v37 = vand.u32 4294901760, %v24703_v29  ;;  %v24723_v38 = vand.u32 4294901760, %v24706_v30  ;;  %20081 = vmatprep.subr.mxu1 %v777_v32  ;;  %v7982_v40 = vsel %vm285_vm1, %v18085_v28, 0  ;;  %v24728_v41 = vsub.f32 %v7973_v24, %v24711_v33  ;;  %s17897_s28 = scalar_lea.sflag [#allocation3], %s29561_s12 }
  0x25   : > { %30828 = vst [vmem:[#allocation15_spill] sm:$0xff] %v24711_v33  ;;  %30829 = vst [vmem:[#allocation16_spill] sm:$0xff] %v24715_v35  ;;  %v29828_v39 = vand.u32 4294901760, %v24709_v31  ;;  %v24731_v42 = vsub.f32 %v290_v25, %v24713_v34  ;;  %v24734_v43 = vsub.f32 %v7976_v26, %v24715_v35  ;;  %v24737_v44 = vsub.f32 %v7979_v27, %v24717_v36  ;;  %s24472_s29 = scalar_lea.vmem %s29574_s20, 16  ;;  %s24568_s30 = smov [#allocation2]  }
  0x26   : > { %30830 = vst [vmem:[#allocation17_spill] sm:$0xff] %v24717_v36  ;;  %30831 = vst [vmem:[#allocation18_spill] sm:$0xff] %v24720_v37  ;;  %v8134_v45 = vsub.f32 %v24703_v29, %v24720_v37  ;;  %21383 = vmatprep.mubr.f32.mxu0 %v24720_v37  ;;  %v24745_v47 = vand.u32 4294901760, %v7982_v40  ;;  %v8144_v49 = vsub.f32 %v24706_v30, %v24723_v38  ;;  %v24752_v50 = vand.u32 4294901760, %v24728_v41  ;;  %v18102_v37 = vld [vmem:[%s24669_s9 + $0x121] sm:$0xff]  ;;  %p24473_p12 = scmp.ne.s32.totalorder %s29574_s20, %s24472_s29  ;;  %s24476_s5 = sshll.u32 %s24568_s30, 4  ;;  %s24477_s5 = int_to_ptr.vmem [resolvable:$false] %s24476_s5 }
  0x27   : > { %30832 = vst [vmem:[#allocation19_spill] sm:$0xff] %v24723_v38  ;;  %30833 = vst [vmem:[#allocation20_spill] sm:$0xff] %v24728_v41  ;;  %v455_v46 = vsub.f32 %v24709_v31, %v29828_v39  ;;  %21384 = vmatmul.mubr.f32.vlgmr.msra.gmra.mrb[0].mxu0 %v24723_v38  ;;  %v29827_v51 = vand.u32 4294901760, %v24731_v42  ;;  %v24756_v52 = vand.u32 4294901760, %v24734_v43  ;;  %v24761_v55 = vand.u32 4294901760, %v24737_v44  ;;  %v18096_v39 = vld [vmem:[%s24669_s9 + $0xd9] sm:$0xff]  ;;  %p24479_p1 = scmp.lt.s32.totalorder %s29574_s20, %s24477_s5 }
  0x28   : > { %30834 = vst [vmem:[#allocation21_spill] sm:$0xff] %v24734_v43  ;;  %30835 = vst [vmem:[#allocation22_spill] sm:$0xff] %v24737_v44  ;;  %21432 = vmatpush3.msra.mxu0 %v24673_v8  ;;  %v24764_v56 = vsub.f32 %v7982_v40, %v24745_v47  ;;  %21386 = vmatprep.mubr.f32.mxu0 %v24752_v50  ;;  %v7985_v58 = vsel %vm285_vm1, %v18086_v48, 0  ;;  %v24773_v60 = vand.u32 4294901760, %v8134_v45  ;;  %v7988_v63 = vsel %vm285_vm1, %v18087_v53, 0  ;;  %v18093_v40 = vld [vmem:[%s24669_s9 + $0xb1] sm:$0xff]  ;;  %p24474_p13 = pnand %p24473_p12, %p24633_p5 }
  0x29   : > { %30836 = vst [vmem:[#allocation23_spill] sm:$0xff] %v24745_v47  ;;  %30837 = vst [vmem:[#allocation24_spill] sm:$0xff] %v24752_v50  ;;  %v456_v54 = vand.u32 4294901760, %v455_v46  ;;  %v465_v57 = vsub.f32 %v24731_v42, %v29827_v51  ;;  %21481 = vmatprep.subr.mxu0 %v24651_v3  ;;  %v495_v61 = vsub.f32 %v24728_v41, %v24752_v50  ;;  %v24777_v62 = vand.u32 4294901760, %v7985_v58  ;;  %v18101_v50 = vld [vmem:[%s24669_s9 + $0x111] sm:$0xff]  ;;  %s24478_s6 = scalar_lea.vmem %s24477_s5, 32 }
  0x2a   : > { %30838 = vst [vmem:[#allocation25_spill] sm:$0xff] %v24756_v52  ;;  %30839 = vst [vmem:[#allocation26_spill] sm:$0xff] %v24761_v55  ;;  %v24782_v2 = vand.u32 4294901760, %v8144_v49  ;;  %v24786_v9 = vand.u32 4294901760, %v24764_v56  ;;  %v24788_v10 = vand.u32 4294901760, %v7988_v63  ;;  %v505_v13 = vsub.f32 %v24734_v43, %v24756_v52  ;;  %v18110_v43 = vld [vmem:[%s24669_s9 + $0x181] sm:$0xff]  ;;  %p24475_p0 = pneg %p24474_p13  ;;  %p24480_p2 = scmp.lt.s32.totalorder %s24478_s6, %s24472_s29 }
  0x2b   : > { %30840 = vst [vmem:[#allocation27_spill] sm:$0xff] %v24764_v56  ;;  %20033 = vmatprep.mubr.f32.mxu1 %v456_v54  ;;  %30841 = vst [vmem:[#allocation28_spill] sm:$0xff] %v24773_v60  ;;  %v466_v4 = vand.u32 4294901760, %v465_v57  ;;  %21387 = vmatmul.mubr.f32.gmra.mrb[2].mxu0 %v24756_v52  ;;  %v24792_v11 = vsub.f32 %v7985_v58, %v24777_v62  ;;  %v515_v14 = vsub.f32 %v24737_v44, %v24761_v55 }
  0x2c   : > { %30842 = vst [vmem:[#allocation29_spill] sm:$0xff] %v24777_v62  ;;  %30843 = vst [vmem:[#allocation30_spill] sm:$0xff] %v24782_v2  ;;  %21389 = vmatprep.mubr.f32.mxu0 %v24761_v55  ;;  %v7991_v15 = vsel %vm285_vm1, %v18088_v59, 0  ;;  %v24802_v18 = vsub.f32 %v7988_v63, %v24788_v10  ;;  %v7994_v23 = vsel %vm285_vm1, %v18089_v0, 0  ;;  %v7997_v24 = vsel %vm285_vm1, %v18090_v1, 0  ;;  %v18094_v0 = vld [vmem:[%s24669_s9 + $0xc1] sm:$0xff]  ;;  %p24481_p3 = por %p24480_p2, %p24479_p1 }
  0x2d   : > { %30844 = vst [vmem:[#allocation31_spill] sm:$0xff] %v24786_v9  ;;  %30845 = vst [vmem:[#allocation32_spill] sm:$0xff] %v24788_v10  ;;  %20034 = vmatmul.mubr.f32.vlgmr.msra.gmra.mrb[0].mxu1 %v466_v4  ;;  %v24804_v22 = vand.u32 4294901760, %v7991_v15  ;;  %v24809_v25 = vand.u32 4294901760, %v495_v61  ;;  %v24812_v26 = vand.u32 4294901760, %v24792_v11  ;;  %v24814_v27 = vand.u32 4294901760, %v7994_v23 }
  0x2e   : > { %30846 = vst [vmem:[#allocation33_spill] sm:$0xff] %v24792_v11  ;;  %30847 = vst [vmem:[#allocation34_spill] sm:$0xff] %v24802_v18  ;;  %20082 = vmatpush3.msra.mxu1 %v777_v32  ;;  %20036 = vmatprep.mubr.f32.mxu1 %v24773_v60  ;;  %v24816_v28 = vand.u32 4294901760, %v7997_v24  ;;  %v24821_v45 = vand.u32 4294901760, %v24802_v18  ;;  %v8000_v46 = vsel %vm285_vm1, %v18091_v16, 0  ;;  %v8003_v48 = vsel %vm285_vm1, %v18092_v17, 0  ;;  %p24482_p4 = pnand %p24481_p3, %p24475_p0 }
  0x2f   : > { %30848 = vst [vmem:[#allocation35_spill] sm:$0xff] %v24804_v22  ;;  %30849 = vst [vmem:[#allocation36_spill] sm:$0xff] %v24809_v25  ;;  %21390 = vmatmul.mubr.f32.gmra.mrb[4].mxu0 %v24786_v9  ;;  %v24824_v32 = vsub.f32 %v7991_v15, %v24804_v22  ;;  %20131 = vmatprep.subr.mxu1 %v24664_v7  ;;  %v24830_v49 = vand.u32 4294901760, %v505_v13  ;;  %v24833_v53 = vsub.f32 %v7994_v23, %v24814_v27  ;;  %v18095_v17 = vld [vmem:[%s24669_s9 + $0xc9] sm:$0xff] }
  0x30   : > { %30850 = vst [vmem:[#allocation37_spill] sm:$0xff] %v24812_v26  ;;  %30851 = vst [vmem:[#allocation38_spill] sm:$0xff] %v24814_v27  ;;  %21392 = vmatprep.mubr.f32.mxu0 %v24812_v26  ;;  %v24836_v54 = vsub.f32 %v7997_v24, %v24816_v28  ;;  %v24838_v57 = vand.u32 4294901760, %v8000_v46  ;;  %v525_v59 = vsub.f32 %v24764_v56, %v24786_v9  ;;  %v24846_v61 = vand.u32 4294901760, %v8003_v48  ;;  %v18099_v9 = vld [vmem:[%s24669_s9 + $0xf9] sm:$0xff]  ;;  %v18108_v56 = vld [vmem:[%s24669_s9 + $0x169] sm:$0xff] }
  0x31   : > { %30852 = vst [vmem:[#allocation39_spill] sm:$0xff] %v24816_v28  ;;  %30853 = vst [vmem:[#allocation40_spill] sm:$0xff] %v24821_v45  ;;  %20037 = vmatmul.mubr.f32.gmra.mrb[2].mxu1 %v24782_v2  ;;  %v24842_v58 = vand.u32 4294901760, %v24824_v32  ;;  %v8006_v63 = vsel %vm285_vm1, %v18093_v40, 0  ;;  %v24851_v1 = vand.u32 4294901760, %v515_v14  ;;  %v535_v4 = vsub.f32 %v24792_v11, %v24812_v26 }
  0x32   : > { %30854 = vst [vmem:[#allocation41_spill] sm:$0xff] %v24824_v32  ;;  %30855 = vst [vmem:[#allocation42_spill] sm:$0xff] %v24830_v49  ;;  %20039 = vmatprep.mubr.f32.mxu1 %v24809_v25  ;;  %v24857_v13 = vand.u32 4294901760, %v24833_v53  ;;  %v24860_v15 = vsub.f32 %v8000_v46, %v24838_v57  ;;  %v24862_v16 = vand.u32 4294901760, %v8006_v63  ;;  %v24867_v14 = vand.u32 4294901760, %v24836_v54  ;;  %v18097_v25 = vld [vmem:[%s24669_s9 + $0xe1] sm:$0xff] }
  0x33   : > { %30856 = vst [vmem:[#allocation43_spill] sm:$0xff] %v24833_v53  ;;  %30857 = vst [vmem:[#allocation44_spill] sm:$0xff] %v24836_v54  ;;  %21393 = vmatmul.mubr.f32.gmra.mrb[6].mxu0 %v24821_v45  ;;  %v24870_v23 = vsub.f32 %v8003_v48, %v24846_v61  ;;  %v8009_v24 = vsel %vm285_vm1, %v18094_v0, 0  ;;  %v24874_v40 = vand.u32 4294901760, %v525_v59  ;;  %v545_v46 = vsub.f32 %v24802_v18, %v24821_v45  ;;  %v18106_v18 = vld [vmem:[%s24669_s9 + $0x151] sm:$0xff] }
  0x34   : > { %30858 = vst [vmem:[#allocation45_spill] sm:$0xff] %v24838_v57  ;;  %30859 = vst [vmem:[#allocation46_spill] sm:$0xff] %v24842_v58  ;;  %21395 = vmatprep.mubr.f32.mxu0 %v24842_v58  ;;  %v24878_v51 = vand.u32 4294901760, %v8009_v24  ;;  %v24883_v2 = vand.u32 4294901760, %v535_v4  ;;  %v555_v48 = vsub.f32 %v24824_v32, %v24842_v58  ;;  %v8012_v0 = vsel %vm285_vm1, %v18095_v17, 0 }
  0x35   : > { %30860 = vst [vmem:[#allocation47_spill] sm:$0xff] %v24846_v61  ;;  %30861 = vst [vmem:[#allocation48_spill] sm:$0xff] %v24851_v1  ;;  %20040 = vmatmul.mubr.f32.gmra.mrb[4].mxu1 %v24830_v49  ;;  %v18098_v49 = vld [vmem:[%s24669_s9 + $0xf1] sm:$0xff]  ;;  %v24891_v59 = vand.u32 4294901760, %v24860_v15  ;;  %v24894_v60 = vsub.f32 %v8006_v63, %v24862_v16  ;;  %v24896_v6 = vand.u32 4294901760, %v8012_v0  ;;  %v24900_v4 = vand.u32 4294901760, %v24870_v23 }
  0x36   : > { %30862 = vst [vmem:[#allocation49_spill] sm:$0xff] %v24857_v13  ;;  %30863 = vst [vmem:[#allocation50_spill] sm:$0xff] %v24860_v15  ;;  %20042 = vmatprep.mubr.f32.mxu1 %v24851_v1  ;;  %v24903_v17 = vsub.f32 %v8009_v24, %v24878_v51  ;;  %v8015_v1 = vsel %vm285_vm1, %v18096_v39, 0  ;;  %v8018_v8 = vsel %vm285_vm1, %v18097_v25, 0  ;;  %v24908_v58 = vand.u32 4294901760, %v545_v46  ;;  %v18100_v25 = vld [vmem:[%s24669_s9 + $0x109] sm:$0xff] }
  0x37   : > { %30864 = vst [vmem:[#allocation51_spill] sm:$0xff] %v24862_v16  ;;  %30865 = vst [vmem:[#allocation52_spill] sm:$0xff] %v24867_v14  ;;  %21396 = vmatmul.mubr.f32.gmra.mrb[8].mxu0 %v24857_v13  ;;  %v565_v63 = vsub.f32 %v24833_v53, %v24857_v13  ;;  %v24912_v45 = vand.u32 4294901760, %v8015_v1  ;;  %v8021_v26 = vsel %vm285_vm1, %v18098_v49, 0  ;;  %v24917_v24 = vand.u32 4294901760, %v555_v48  ;;  %v18104_v53 = vld [vmem:[%s24669_s9 + $0x139] sm:$0xff] }
  0x38   : > { %30866 = vst [vmem:[#allocation53_spill] sm:$0xff] %v24870_v23  ;;  %30867 = vst [vmem:[#allocation54_spill] sm:$0xff] %v24874_v40  ;;  %21398 = vmatprep.mubr.f32.mxu0 %v24867_v14  ;;  %v575_v39 = vsub.f32 %v24836_v54, %v24867_v14  ;;  %v24924_v46 = vand.u32 4294901760, %v24894_v60  ;;  %v24929_v49 = vand.u32 4294901760, %v8018_v8  ;;  %v24933_v48 = vand.u32 4294901760, %v24903_v17 }
  0x39   : > { %30868 = vst [vmem:[#allocation55_spill] sm:$0xff] %v24878_v51  ;;  %30869 = vst [vmem:[#allocation56_spill] sm:$0xff] %v24883_v2  ;;  %20043 = vmatmul.mubr.f32.gmra.mrb[6].mxu1 %v24874_v40  ;;  %v24927_v40 = vsub.f32 %v8012_v0, %v24896_v6  ;;  %v24938_v14 = vand.u32 4294901760, %v8021_v26  ;;  %v8024_v13 = vsel %vm285_vm1, %v18099_v9, 0  ;;  %v24942_v55 = vand.u32 4294901760, %v565_v63 }
  0x3a   : > { %30870 = vst [vmem:[#allocation57_spill] sm:$0xff] %v24891_v59  ;;  %30871 = vst [vmem:[#allocation58_spill] sm:$0xff] %v24894_v60  ;;  %20045 = vmatprep.mubr.f32.mxu1 %v24883_v2  ;;  %v24936_v2 = vsub.f32 %v8015_v1, %v24912_v45  ;;  %v585_v0 = vsub.f32 %v24860_v15, %v24891_v59  ;;  %v8027_v52 = vsel %vm285_vm1, %v18100_v25, 0  ;;  %v24949_v38 = vand.u32 4294901760, %v575_v39  ;;  %v18103_v15 = vld [vmem:[%s24669_s9 + $0x129] sm:$0xff] }
  0x3b   : > { %30872 = vst [vmem:[#allocation59_spill] sm:$0xff] %v24896_v6  ;;  %30873 = vst [vmem:[#allocation60_spill] sm:$0xff] %v24900_v4  ;;  %21399 = vmatmul.mubr.f32.gmra.mrb[10].mxu0 %v24891_v59  ;;  %v595_v1 = vsub.f32 %v24870_v23, %v24900_v4  ;;  %v24956_v9 = vand.u32 4294901760, %v24927_v40  ;;  %v24959_v63 = vsub.f32 %v8018_v8, %v24929_v49  ;;  %v24961_v25 = vand.u32 4294901760, %v8024_v13 }
  0x3c   : > { %30874 = vst [vmem:[#allocation61_spill] sm:$0xff] %v24903_v17  ;;  %30875 = vst [vmem:[#allocation62_spill] sm:$0xff] %v24908_v58  ;;  %21401 = vmatprep.mubr.f32.mxu0 %v24900_v4  ;;  %v24965_v39 = vand.u32 4294901760, %v24936_v2  ;;  %v8030_v4 = vsel %vm285_vm1, %v18101_v50, 0  ;;  %v24974_v59 = vand.u32 4294901760, %v585_v0  ;;  %v605_v8 = vsub.f32 %v24894_v60, %v24924_v46  ;;  %v18105_v60 = vld [vmem:[%s24669_s9 + $0x141] sm:$0xff] }
  0x3d   : > { %30876 = vst [vmem:[#allocation63_spill] sm:$0xff] %v24912_v45  ;;  %30877 = vst [vmem:[#allocation64_spill] sm:$0xff] %v24917_v24  ;;  %20046 = vmatmul.mubr.f32.gmra.mrb[8].mxu1 %v24908_v58  ;;  %v24970_v58 = vand.u32 4294901760, %v8027_v52  ;;  %v8033_v23 = vsel %vm285_vm1, %v18102_v37, 0  ;;  %v24981_v54 = vand.u32 4294901760, %v595_v1  ;;  %v24988_v50 = vand.u32 4294901760, %v24959_v63 }
  0x3e   : > { %30878 = vst [vmem:[#allocation65_spill] sm:$0xff] %v24924_v46  ;;  %30879 = vst [vmem:[#allocation66_spill] sm:$0xff] %v24927_v40  ;;  %20048 = vmatprep.mubr.f32.mxu1 %v24917_v24  ;;  %v24968_v24 = vsub.f32 %v8021_v26, %v24938_v14  ;;  %v615_v26 = vsub.f32 %v24903_v17, %v24933_v48  ;;  %v24991_v0 = vsub.f32 %v8024_v13, %v24961_v25 }
  0x3f   : > { %30880 = vst [vmem:[#allocation67_spill] sm:$0xff] %v24929_v49  ;;  %30881 = vst [vmem:[#allocation68_spill] sm:$0xff] %v24933_v48  ;;  %21402 = vmatmul.mubr.f32.gmra.mrb[12].mxu0 %v24924_v46  ;;  %v24993_v37 = vand.u32 4294901760, %v8030_v4  ;;  %v25006_v46 = vand.u32 4294901760, %v605_v8  ;;  %v625_v13 = vsub.f32 %v24927_v40, %v24956_v9  ;;  %v8039_v17 = vsel %vm285_vm1, %v18104_v53, 0  ;;  %v18107_v40 = vld [vmem:[%s24669_s9 + $0x159] sm:$0xff] }
  0x40   : > { %30882 = vst [vmem:[#allocation69_spill] sm:$0xff] %v24936_v2  ;;  %30883 = vst [vmem:[#allocation70_spill] sm:$0xff] %v24938_v14  ;;  %21404 = vmatprep.mubr.f32.mxu0 %v24933_v48  ;;  %v24997_v1 = vand.u32 4294901760, %v24968_v24  ;;  %v8036_v48 = vsel %vm285_vm1, %v18103_v15, 0  ;;  %v25013_v32 = vand.u32 4294901760, %v615_v26  ;;  %v25020_v15 = vand.u32 4294901760, %v24991_v0 }
  0x41   : > { %30884 = vst [vmem:[#allocation71_spill] sm:$0xff] %v24942_v55  ;;  %30885 = vst [vmem:[#allocation72_spill] sm:$0xff] %v24949_v38  ;;  %20049 = vmatmul.mubr.f32.gmra.mrb[10].mxu1 %v24942_v55  ;;  %v25002_v55 = vand.u32 4294901760, %v8033_v23  ;;  %v25023_v8 = vsub.f32 %v8030_v4, %v24993_v37  ;;  %v25025_v53 = vand.u32 4294901760, %v8036_v48  ;;  %v645_v4 = vsub.f32 %v24959_v63, %v24988_v50 }
  0x42   : > { %30886 = vst [vmem:[#allocation73_spill] sm:$0xff] %v24956_v9  ;;  %30887 = vst [vmem:[#allocation74_spill] sm:$0xff] %v24959_v63  ;;  %20051 = vmatprep.mubr.f32.mxu1 %v24949_v38  ;;  %v25000_v38 = vsub.f32 %v8027_v52, %v24970_v58  ;;  %v635_v52 = vsub.f32 %v24936_v2, %v24965_v39  ;;  %v8045_v2 = vsel %vm285_vm1, %v18106_v18, 0  ;;  %v18109_v63 = vld [vmem:[%s24669_s9 + $0x171] sm:$0xff] }
  0x43   : > { %30888 = vst [vmem:[#allocation75_spill] sm:$0xff] %v24961_v25  ;;  %30889 = vst [vmem:[#allocation76_spill] sm:$0xff] %v24965_v39  ;;  %21405 = vmatmul.mubr.f32.gmra.mrb[14].mxu0 %v24956_v9  ;;  %v25038_v9 = vand.u32 4294901760, %v625_v13  ;;  %v25055_v13 = vsub.f32 %v8036_v48, %v25025_v53  ;;  %v665_v48 = vsub.f32 %v24991_v0, %v25020_v15 }
  0x44   : > { %30890 = vst [vmem:[#allocation77_spill] sm:$0xff] %v24968_v24  ;;  %30891 = vst [vmem:[#allocation78_spill] sm:$0xff] %v24970_v58  ;;  %21407 = vmatprep.mubr.f32.mxu0 %v24965_v39  ;;  %v25029_v26 = vand.u32 4294901760, %v25000_v38  ;;  %v8042_v39 = vsel %vm285_vm1, %v18105_v60, 0  ;;  %v25045_v11 = vand.u32 4294901760, %v635_v52  ;;  %v25052_v60 = vand.u32 4294901760, %v25023_v8 }
  0x45   : > { %30892 = vst [vmem:[#allocation79_spill] sm:$0xff] %v24974_v59  ;;  %30893 = vst [vmem:[#allocation80_spill] sm:$0xff] %v24981_v54  ;;  %20052 = vmatmul.mubr.f32.gmra.mrb[12].mxu1 %v24974_v59  ;;  %v25034_v59 = vand.u32 4294901760, %v8039_v17  ;;  %v25057_v18 = vand.u32 4294901760, %v8042_v39 }
  0x46   : > { %30894 = vst [vmem:[#allocation81_spill] sm:$0xff] %v24988_v50  ;;  %30895 = vst [vmem:[#allocation82_spill] sm:$0xff] %v24991_v0  ;;  %20054 = vmatprep.mubr.f32.mxu1 %v24981_v54  ;;  %v25032_v54 = vsub.f32 %v8033_v23, %v25002_v55  ;;  %v655_v23 = vsub.f32 %v24968_v24, %v24997_v1  ;;  %v8051_v24 = vsel %vm285_vm1, %v18108_v56, 0  ;;  %v18111_v0 = vld [vmem:[%s24669_s9 + $0x189] sm:$0xff] }
  0x47   : > { %30896 = vst [vmem:[#allocation83_spill] sm:$0xff] %v24993_v37  ;;  %30897 = vst [vmem:[#allocation84_spill] sm:$0xff] %v24997_v1  ;;  %21408 = vmatmul.mubr.f32.gmra.mrb[16].mxu0 %v24988_v50  ;;  %v25070_v50 = vand.u32 4294901760, %v645_v4  ;;  %v25087_v4 = vsub.f32 %v8042_v39, %v25057_v18  ;;  %v685_v39 = vsub.f32 %v25023_v8, %v25052_v60 }
  0x48   : > { %30898 = vst [vmem:[#allocation85_spill] sm:$0xff] %v25000_v38  ;;  %30899 = vst [vmem:[#allocation86_spill] sm:$0xff] %v25002_v55  ;;  %21410 = vmatprep.mubr.f32.mxu0 %v24997_v1  ;;  %v25061_v52 = vand.u32 4294901760, %v25032_v54  ;;  %v8048_v1 = vsel %vm285_vm1, %v18107_v40, 0  ;;  %v25077_v44 = vand.u32 4294901760, %v655_v23  ;;  %v25084_v40 = vand.u32 4294901760, %v25055_v13 }
  0x49   : > { %30900 = vst [vmem:[#allocation87_spill] sm:$0xff] %v25006_v46  ;;  %30901 = vst [vmem:[#allocation88_spill] sm:$0xff] %v25013_v32  ;;  %20055 = vmatmul.mubr.f32.gmra.mrb[14].mxu1 %v25006_v46  ;;  %v25066_v46 = vand.u32 4294901760, %v8045_v2 }
  0x4a   : > { %30902 = vst [vmem:[#allocation89_spill] sm:$0xff] %v25020_v15  ;;  %30903 = vst [vmem:[#allocation90_spill] sm:$0xff] %v25023_v8  ;;  %20057 = vmatprep.mubr.f32.mxu1 %v25013_v32  ;;  %v25064_v32 = vsub.f32 %v8039_v17, %v25034_v59  ;;  %v675_v17 = vsub.f32 %v25000_v38, %v25029_v26  ;;  %v8057_v38 = vsel %vm285_vm1, %v18110_v43, 0 }
  0x4b   : > { %30904 = vst [vmem:[#allocation91_spill] sm:$0xff] %v25025_v53  ;;  %30905 = vst [vmem:[#allocation92_spill] sm:$0xff] %v25029_v26  ;;  %21411 = vmatmul.mubr.f32.gmra.mrb[18].mxu0 %v25020_v15  ;;  %v25096_v23 = vsub.f32 %v8045_v2, %v25066_v46  ;;  %v25102_v15 = vand.u32 4294901760, %v665_v48  ;;  %v695_v2 = vsub.f32 %v25032_v54, %v25061_v52 }
  0x4c   : > { %30906 = vst [vmem:[#allocation93_spill] sm:$0xff] %v25032_v54  ;;  %30907 = vst [vmem:[#allocation94_spill] sm:$0xff] %v25034_v59  ;;  %21413 = vmatprep.mubr.f32.mxu0 %v25029_v26  ;;  %v25093_v56 = vand.u32 4294901760, %v25064_v32  ;;  %v8054_v26 = vsel %vm285_vm1, %v18109_v63, 0  ;;  %v25109_v41 = vand.u32 4294901760, %v675_v17  ;;  %v25115_v63 = vand.u32 4294901760, %v25087_v4 }
  0x4d   : > { %30908 = vst [vmem:[#allocation95_spill] sm:$0xff] %v25038_v9  ;;  %30909 = vst [vmem:[#allocation96_spill] sm:$0xff] %v25045_v11  ;;  %20058 = vmatmul.mubr.f32.gmra.mrb[16].mxu1 %v25038_v9  ;;  %v25089_v9 = vand.u32 4294901760, %v8048_v1  ;;  %v25124_v43 = vand.u32 4294901760, %v25096_v23  ;;  %v25138_v54 = vand.u32 4294901760, %v695_v2 }
  0x4e   : > { %30910 = vst [vmem:[#allocation97_spill] sm:$0xff] %v25052_v60  ;;  %30911 = vst [vmem:[#allocation98_spill] sm:$0xff] %v25055_v13  ;;  %20060 = vmatprep.mubr.f32.mxu1 %v25045_v11  ;;  %v25098_v11 = vand.u32 4294901760, %v8051_v24  ;;  %v715_v8 = vsub.f32 %v25064_v32, %v25093_v56 }
  0x4f   : > { %30912 = vst [vmem:[#allocation99_spill] sm:$0xff] %v25057_v18  ;;  %30913 = vst [vmem:[#allocation100_spill] sm:$0xff] %v25061_v52  ;;  %21414 = vmatmul.mubr.f32.gmra.mrb[20].mxu0 %v25052_v60  ;;  %v25118_v48 = vsub.f32 %v8048_v1, %v25089_v9  ;;  %v25133_v60 = vand.u32 4294901760, %v685_v39  ;;  %v705_v1 = vsub.f32 %v25055_v13, %v25084_v40 }
  0x50   : > { %30914 = vst [vmem:[#allocation101_spill] sm:$0xff] %v25064_v32  ;;  %30915 = vst [vmem:[#allocation102_spill] sm:$0xff] %v25066_v46  ;;  %21416 = vmatprep.mubr.f32.mxu0 %v25061_v52  ;;  %v25127_v17 = vsub.f32 %v8051_v24, %v25098_v11  ;;  %v8060_v52 = vsel %vm285_vm1, %v18111_v0, 0 }
  0x51   : > { %30916 = vst [vmem:[#allocation103_spill] sm:$0xff] %v25070_v50  ;;  %30917 = vst [vmem:[#allocation104_spill] sm:$0xff] %v25077_v44  ;;  %20061 = vmatmul.mubr.f32.gmra.mrb[18].mxu1 %v25070_v50  ;;  %v25120_v50 = vand.u32 4294901760, %v8054_v26  ;;  %v25144_v24 = vand.u32 4294901760, %v25118_v48  ;;  %v25149_v39 = vand.u32 4294901760, %v8060_v52 }
  0x52   : > { %30918 = vst [vmem:[#allocation105_spill] sm:$0xff] %v25084_v40  ;;  %30919 = vst [vmem:[#allocation106_spill] sm:$0xff] %v25087_v4  ;;  %20063 = vmatprep.mubr.f32.mxu1 %v25077_v44  ;;  %v25129_v44 = vand.u32 4294901760, %v8057_v38 }
  0x53   : > { %30920 = vst [vmem:[#allocation107_spill] sm:$0xff] %v25089_v9  ;;  %30921 = vst [vmem:[#allocation108_spill] sm:$0xff] %v25093_v56  ;;  %21417 = vmatmul.mubr.f32.gmra.mrb[22].mxu0 %v25084_v40  ;;  %v25147_v0 = vsub.f32 %v8054_v26, %v25120_v50  ;;  %v25164_v26 = vand.u32 4294901760, %v715_v8  ;;  %v735_v40 = vsub.f32 %v25096_v23, %v25124_v43 }
  0x54   : > { %30922 = vst [vmem:[#allocation109_spill] sm:$0xff] %v25096_v23  ;;  %30923 = vst [vmem:[#allocation110_spill] sm:$0xff] %v25098_v11  ;;  %21419 = vmatprep.mubr.f32.mxu0 %v25093_v56  ;;  %v25156_v2 = vsub.f32 %v8057_v38, %v25129_v44  ;;  %v725_v56 = vsub.f32 %v25087_v4, %v25115_v63  ;;  %v25173_v38 = vsub.f32 %v8060_v52, %v25149_v39 }
  0x55   : > { %30924 = vst [vmem:[#allocation111_spill] sm:$0xff] %v25102_v15  ;;  %30925 = vst [vmem:[#allocation112_spill] sm:$0xff] %v25109_v41  ;;  %20064 = vmatmul.mubr.f32.gmra.mrb[20].mxu1 %v25102_v15  ;;  %v25153_v15 = vand.u32 4294901760, %v25127_v17  ;;  %v25170_v32 = vand.u32 4294901760, %v25147_v0  ;;  %v745_v8 = vsub.f32 %v25118_v48, %v25144_v24 }
  0x56   : > { %30926 = vst [vmem:[#allocation113_spill] sm:$0xff] %v25118_v48  ;;  %30927 = vst [vmem:[#allocation114_spill] sm:$0xff] %v25120_v50  ;;  %20066 = vmatprep.mubr.f32.mxu1 %v25109_v41  ;;  %v25159_v41 = vand.u32 4294901760, %v705_v1  ;;  %v18145_v1 = vld [vmem:[%s29823_s1 + $0x14] sm:$0xf] }
  0x57   : > { %30928 = vst [vmem:[#allocation115_spill] sm:$0xff] %v25124_v43  ;;  %30929 = vst [vmem:[#allocation116_spill] sm:$0xff] %v25127_v17  ;;  %21420 = vmatmul.mubr.f32.gmra.mrb[24].mxu0 %v25115_v63  ;;  %v10007_v52 = vsel %vm382_vm0, %v18145_v1, 0 }
  0x58   : > { %30930 = vst [vmem:[#allocation117_spill] sm:$0xff] %v25129_v44  ;;  %30931 = vst [vmem:[#allocation118_spill] sm:$0xff] %v25133_v60  ;;  %21422 = vmatprep.mubr.f32.mxu0 %v25124_v43  ;;  %v755_v43 = vsub.f32 %v25127_v17, %v25153_v15 }
  0x59   : > { %30932 = vst [vmem:[#allocation119_spill] sm:$0xff] %v25138_v54  ;;  %30933 = vst [vmem:[#allocation120_spill] sm:$0xff] %v25147_v0  ;;  %20067 = vmatmul.mubr.f32.gmra.mrb[22].mxu1 %v25133_v60  ;;  %v25183_v60 = vand.u32 4294901760, %v735_v40  ;;  %v765_v40 = vsub.f32 %v25147_v0, %v25170_v32 }
  0x5a   : > { %30934 = vst [vmem:[#allocation121_spill] sm:$0xff] %v25149_v39  ;;  %30935 = vst [vmem:[#allocation122_spill] sm:$0xff] %v25153_v15  ;;  %20069 = vmatprep.mubr.f32.mxu1 %v25138_v54  ;;  %v25178_v54 = vand.u32 4294901760, %v725_v56  ;;  %v30942_v56 = vand.u32 4294901760, %v25156_v2 }
  0x5b   : > { %30936 = vst [vmem:[#allocation123_spill] sm:$0xff] %v25156_v2  ;;  %30937 = vst [vmem:[#allocation124_spill] sm:$0xff] %v25159_v41  ;;  %21423 = vmatmul.mubr.f32.gmra.mrb[26].mxu0 %v25144_v24  ;;  %v18116_v2 = vld [vmem:[%s24669_s9 + $0x3a] sm:$0xff] }
  0x5c   : > { %30938 = vst [vmem:[#allocation125_spill] sm:$0xff] %v25164_v26  ;;  %30939 = vst [vmem:[#allocation126_spill] sm:$0xff] %v25173_v38  ;;  %21425 = vmatprep.mubr.f32.mxu0 %v25153_v15  ;;  %v30945_v15 = vand.u32 4294901760, %v25173_v38  ;;  %v30962_v38 = vld [vmem:[#allocation69_spill] sm:$0xff] }
  0x5d   : > { %20070 = vmatmul.mubr.f32.gmra.mrb[24].mxu1 %v25159_v41  ;;  %30940 = vst [vmem:[#allocation127_spill] sm:$0xff] %v25178_v54  ;;  %30941 = vst [vmem:[#allocation128_spill] sm:$0xff] %v25183_v60  ;;  %v25195_v41 = vand.u32 4294901760, %v745_v8  ;;  %v25209_v8 = vand.u32 4294901760, %v10007_v52 }
  0x5e   : > { %20072 = vmatprep.mubr.f32.mxu1 %v25164_v26  ;;  %v25200_v26 = vand.u32 4294901760, %v755_v43 }
  0x5f   : > { %21426 = vmatmul.mubr.f32.gmra.mrb[28].mxu0 %v25170_v32  ;;  %30943 = vst [vmem:[#allocation129_spill] sm:$0xff] %v25195_v41 }
  0x60   : > { %21428 = vmatprep.mubr.f32.mxu0 %v30942_v56  ;;  %30944 = vst [vmem:[#allocation130_spill] sm:$0xff] %v25200_v26  ;;  %v25207_v56 = vand.u32 4294901760, %v765_v40  ;;  %v30949_v40 = vld [vmem:[#allocation21_spill] sm:$0xff] }
  0x61   : > { %20073 = vmatmul.mubr.f32.gmra.mrb[26].mxu1 %v25178_v54 }
  0x62   : > { %20075 = vmatprep.mubr.f32.mxu1 %v25183_v60  ;;  %30946 = vst [vmem:[#allocation131_spill] sm:$0xff] %v25207_v56  ;;  %v30963_v60 = vld [vmem:[#allocation74_spill] sm:$0xff] }
  0x63   : > { %21429 = vmatmul.mubr.f32.gmra.mrb[30].mxu0 %v30945_v15 }
  0x64   : > { %21433 = vmatprep.mubr.f32.mxu0 %v24688_v19 }
  0x65   : > { %20076 = vmatmul.mubr.f32.gmra.mrb[28].mxu1 %v25195_v41 }
  0x66   : > { %20078 = vmatprep.mubr.f32.mxu1 %v25200_v26  ;;  %v30961_v26 = vld [vmem:[#allocation66_spill] sm:$0xff] }
  0x67   : > { %21434 = vmatmul.mubr.f32.vlgmr.msra.gmra.mrb[0].mxu0 %v24690_v20 }
  0x68   : > { %21436 = vmatprep.mubr.f32.mxu0 %v24711_v33  ;;  %21482 = vmatpush3.msra.mxu0 %v24651_v3 }
  0x69   : > { %20079 = vmatmul.mubr.f32.gmra.mrb[30].mxu1 %v25207_v56  ;;  %21531 = vmatprep.subr.mxu0 %v25209_v8  ;;  %v30952_v56 = vld [vmem:[#allocation33_spill] sm:$0xff] }
  0x6a   : > { %20083 = vmatprep.mubr.f32.mxu1 %v24692_v21 }
  0x6b   : > { %21437 = vmatmul.mubr.f32.gmra.mrb[2].mxu0 %v24715_v35 }
  0x6c   : > { %21439 = vmatprep.mubr.f32.mxu0 %v24717_v36 }
  0x6d   : > { %20084 = vmatmul.mubr.f32.vlgmr.msra.gmra.mrb[0].mxu1 %v24713_v34 }
  0x6e   : > { %20132 = vmatpush3.msra.mxu1 %v24664_v7  ;;  %20086 = vmatprep.mubr.f32.mxu1 %v24688_v19  ;;  %v25268_v7 = vsub.f32 %v10007_v52, %v25209_v8  ;;  %v30948_v52 = vld [vmem:[#allocation20_spill] sm:$0xff] }
  0x6f   : > { %21440 = vmatmul.mubr.f32.gmra.mrb[4].mxu0 %v24745_v47  ;;  %20181 = vmatprep.subr.mxu1 %v24655_v5 }
  0x70   : > { %21442 = vmatprep.mubr.f32.mxu0 %v24777_v62  ;;  %v25275_v15 = vand.u32 4294901760, %v25268_v7 }
  0x71   : > { %20087 = vmatmul.mubr.f32.gmra.mrb[2].mxu1 %v24690_v20 }
  0x72   : > { %20089 = vmatprep.mubr.f32.mxu1 %v24711_v33  ;;  %30947 = vst [vmem:[#allocation132_spill] sm:$0xff] %v25275_v15  ;;  %v10399_v43 = vsub.f32 %v25268_v7, %v25275_v15  ;;  %v30966_v15 = vld [vmem:[#allocation82_spill] sm:$0xff] }
  0x73   : > { %21443 = vmatmul.mubr.f32.gmra.mrb[6].mxu0 %v24788_v10 }
  0x74   : > { %21445 = vmatprep.mubr.f32.mxu0 %v24804_v22  ;;  %v25287_v1 = vand.u32 4294901760, %v10399_v43  ;;  %v30950_v43 = vld [vmem:[#allocation22_spill] sm:$0xff] }
  0x75   : > { %20090 = vmatmul.mubr.f32.gmra.mrb[4].mxu1 %v24715_v35 }
  0x76   : > { %20092 = vmatprep.mubr.f32.mxu1 %v24717_v36 }
  0x77   : > { %21446 = vmatmul.mubr.f32.gmra.mrb[8].mxu0 %v24814_v27 }
  0x78   : > { %21448 = vmatprep.mubr.f32.mxu0 %v24816_v28 }
  0x79   : > { %20093 = vmatmul.mubr.f32.gmra.mrb[6].mxu1 %v24745_v47 }
  0x7a   : > { %20095 = vmatprep.mubr.f32.mxu1 %v24777_v62 }
  0x7b   : > { %21449 = vmatmul.mubr.f32.gmra.mrb[10].mxu0 %v24838_v57 }
  0x7c   : > { %21451 = vmatprep.mubr.f32.mxu0 %v24846_v61 }
  0x7d   : > { %20096 = vmatmul.mubr.f32.gmra.mrb[8].mxu1 %v24788_v10 }
  0x7e   : > { %20098 = vmatprep.mubr.f32.mxu1 %v24804_v22 }
  0x7f   : > { %21452 = vmatmul.mubr.f32.gmra.mrb[12].mxu0 %v24862_v16 }
  0x80   : > { %21454 = vmatprep.mubr.f32.mxu0 %v24878_v51 }
  0x81   : > { %20099 = vmatmul.mubr.f32.gmra.mrb[10].mxu1 %v24814_v27 }
  0x82   : > { %20101 = vmatprep.mubr.f32.mxu1 %v24816_v28 }
  0x83   : > { %21455 = vmatmul.mubr.f32.gmra.mrb[14].mxu0 %v24896_v6 }
  0x84   : > { %21457 = vmatprep.mubr.f32.mxu0 %v24912_v45 }
  0x85   : > { %20102 = vmatmul.mubr.f32.gmra.mrb[12].mxu1 %v24838_v57 }
  0x86   : > { %20104 = vmatprep.mubr.f32.mxu1 %v24846_v61 }
  0x87   : > { %21458 = vmatmul.mubr.f32.gmra.mrb[16].mxu0 %v24929_v49 }
  0x88   : > { %21460 = vmatprep.mubr.f32.mxu0 %v24938_v14 }
  0x89   : > { %20105 = vmatmul.mubr.f32.gmra.mrb[14].mxu1 %v24862_v16 }
  0x8a   : > { %20107 = vmatprep.mubr.f32.mxu1 %v24878_v51 }
  0x8b   : > { %21461 = vmatmul.mubr.f32.gmra.mrb[18].mxu0 %v24961_v25 }
  0x8c   : > { %21463 = vmatprep.mubr.f32.mxu0 %v24970_v58 }
  0x8d   : > { %20108 = vmatmul.mubr.f32.gmra.mrb[16].mxu1 %v24896_v6 }
  0x8e   : > { %20110 = vmatprep.mubr.f32.mxu1 %v24912_v45 }
  0x8f   : > { %21464 = vmatmul.mubr.f32.gmra.mrb[20].mxu0 %v24993_v37 }
  0x90   : > { %21466 = vmatprep.mubr.f32.mxu0 %v25002_v55 }
  0x91   : > { %20111 = vmatmul.mubr.f32.gmra.mrb[18].mxu1 %v24929_v49 }
  0x92   : > { %20113 = vmatprep.mubr.f32.mxu1 %v24938_v14 }
  0x93   : > { %21467 = vmatmul.mubr.f32.gmra.mrb[22].mxu0 %v25025_v53 }
  0x94   : > { %21469 = vmatprep.mubr.f32.mxu0 %v25034_v59 }
  0x95   : > { %20114 = vmatmul.mubr.f32.gmra.mrb[20].mxu1 %v24961_v25 }
  0x96   : > { %20116 = vmatprep.mubr.f32.mxu1 %v24970_v58 }
  0x97   : > { %21470 = vmatmul.mubr.f32.gmra.mrb[24].mxu0 %v25057_v18 }
  0x98   : > { %21472 = vmatprep.mubr.f32.mxu0 %v25066_v46 }
  0x99   : > { %20117 = vmatmul.mubr.f32.gmra.mrb[22].mxu1 %v24993_v37 }
  0x9a   : > { %20119 = vmatprep.mubr.f32.mxu1 %v25002_v55 }
  0x9b   : > { %21473 = vmatmul.mubr.f32.gmra.mrb[26].mxu0 %v25089_v9 }
  0x9c   : > { %21475 = vmatprep.mubr.f32.mxu0 %v25098_v11 }
  0x9d   : > { %20120 = vmatmul.mubr.f32.gmra.mrb[24].mxu1 %v25025_v53 }
  0x9e   : > { %20122 = vmatprep.mubr.f32.mxu1 %v25034_v59 }
  0x9f   : > { %21476 = vmatmul.mubr.f32.gmra.mrb[28].mxu0 %v25120_v50 }
  0xa0   : > { %21478 = vmatprep.mubr.f32.mxu0 %v25129_v44 }
  0xa1   : > { %20123 = vmatmul.mubr.f32.gmra.mrb[26].mxu1 %v25057_v18 }
  0xa2   : > { %20125 = vmatprep.mubr.f32.mxu1 %v25066_v46 }
  0xa3   : > { %21479 = vmatmul.mubr.f32.gmra.mrb[30].mxu0 %v25149_v39 }
  0xa4   : > { %21483 = vmatprep.mubr.f32.mxu0 %v24688_v19 }
  0xa5   : > { %20126 = vmatmul.mubr.f32.gmra.mrb[28].mxu1 %v25089_v9 }
  0xa6   : > { %20128 = vmatprep.mubr.f32.mxu1 %v25098_v11 }
  0xa7   : > { %21484 = vmatmul.mubr.f32.vlgmr.msra.gmra.mrb[0].mxu0 %v24690_v20 }
  0xa8   : > { %21486 = vmatprep.mubr.f32.mxu0 %v24711_v33  ;;  %21532 = vmatpush3.msra.mxu0 %v25209_v8 }
  0xa9   : > { %20129 = vmatmul.mubr.f32.gmra.mrb[30].mxu1 %v25120_v50  ;;  %21581 = vmatprep.subr.mxu0 %v25287_v1 }
  0xaa   : > { %20133 = vmatprep.mubr.f32.mxu1 %v24709_v31 }
  0xab   : > { %21487 = vmatmul.mubr.f32.gmra.mrb[2].mxu0 %v24715_v35 }
  0xac   : > { %21489 = vmatprep.mubr.f32.mxu0 %v24717_v36 }
  0xad   : > { %20134 = vmatmul.mubr.f32.vlgmr.msra.gmra.mrb[0].mxu1 %v24731_v42 }
  0xae   : > { %20182 = vmatpush3.msra.mxu1 %v24655_v5  ;;  %20136 = vmatprep.mubr.f32.mxu1 %v24703_v29  ;;  %v30951_v29 = vld [vmem:[#allocation27_spill] sm:$0xff] }
  0xaf   : > { %21490 = vmatmul.mubr.f32.gmra.mrb[4].mxu0 %v24745_v47  ;;  %20231 = vmatprep.subr.mxu1 %v24679_v12 }
  0xb0   : > { %21492 = vmatprep.mubr.f32.mxu0 %v24777_v62 }
  0xb1   : > { %20137 = vmatmul.mubr.f32.gmra.mrb[2].mxu1 %v24706_v30  ;;  %v30954_v30 = vld [vmem:[#allocation41_spill] sm:$0xff] }
  0xb2   : > { %20139 = vmatprep.mubr.f32.mxu1 %v30948_v52  ;;  %v30953_v52 = vld [vmem:[#allocation34_spill] sm:$0xff] }
  0xb3   : > { %21493 = vmatmul.mubr.f32.gmra.mrb[6].mxu0 %v24788_v10 }
  0xb4   : > { %21495 = vmatprep.mubr.f32.mxu0 %v24804_v22 }
  0xb5   : > { %20140 = vmatmul.mubr.f32.gmra.mrb[4].mxu1 %v30949_v40  ;;  %v30956_v40 = vld [vmem:[#allocation44_spill] sm:$0xff] }
  0xb6   : > { %20142 = vmatprep.mubr.f32.mxu1 %v30950_v43  ;;  %v30955_v43 = vld [vmem:[#allocation43_spill] sm:$0xff] }
  0xb7   : > { %21496 = vmatmul.mubr.f32.gmra.mrb[8].mxu0 %v24814_v27 }
  0xb8   : > { %21498 = vmatprep.mubr.f32.mxu0 %v24816_v28 }
  0xb9   : > { %20143 = vmatmul.mubr.f32.gmra.mrb[6].mxu1 %v30951_v29  ;;  %v30958_v29 = vld [vmem:[#allocation53_spill] sm:$0xff] }
  0xba   : > { %20145 = vmatprep.mubr.f32.mxu1 %v30952_v56  ;;  %v30957_v56 = vld [vmem:[#allocation50_spill] sm:$0xff] }
  0xbb   : > { %21499 = vmatmul.mubr.f32.gmra.mrb[10].mxu0 %v24838_v57 }
  0xbc   : > { %21501 = vmatprep.mubr.f32.mxu0 %v24846_v61 }
  0xbd   : > { %20146 = vmatmul.mubr.f32.gmra.mrb[8].mxu1 %v30953_v52  ;;  %v18113_v52 = vld [vmem:[%s24669_s9 + $0x1a] sm:$0xff] }
  0xbe   : > { %20148 = vmatprep.mubr.f32.mxu1 %v30954_v30  ;;  %v30959_v30 = vld [vmem:[#allocation58_spill] sm:$0xff] }
  0xbf   : > { %21502 = vmatmul.mubr.f32.gmra.mrb[12].mxu0 %v24862_v16 }
  0xc0   : > { %21504 = vmatprep.mubr.f32.mxu0 %v24878_v51  ;;  %v31021_v51 = vld [vmem:[#allocation25_spill] sm:$0xff] }
  0xc1   : > { %20149 = vmatmul.mubr.f32.gmra.mrb[10].mxu1 %v30955_v43  ;;  %v30960_v43 = vld [vmem:[#allocation61_spill] sm:$0xff] }
  0xc2   : > { %20151 = vmatprep.mubr.f32.mxu1 %v30956_v40  ;;  %v9911_v40 = vsel %vm285_vm1, %v18113_v52, 0  ;;  %v18117_v52 = vld [vmem:[%s24669_s9 + $0x4a] sm:$0xff] }
  0xc3   : > { %21505 = vmatmul.mubr.f32.gmra.mrb[14].mxu0 %v24896_v6 }
  0xc4   : > { %21507 = vmatprep.mubr.f32.mxu0 %v24912_v45  ;;  %v18124_v45 = vld [vmem:[%s24669_s9 + $0x9a] sm:$0xff] }
  0xc5   : > { %20152 = vmatmul.mubr.f32.gmra.mrb[12].mxu1 %v30957_v56  ;;  %v18114_v56 = vld [vmem:[%s24669_s9 + $0x22] sm:$0xff] }
  0xc6   : > { %20154 = vmatprep.mubr.f32.mxu1 %v30958_v29  ;;  %v18115_v29 = vld [vmem:[%s24669_s9 + $0x32] sm:$0xff]  ;;  %v9914_v41 = vsel %vm285_vm1, %v18114_v56, 0  ;;  %v9920_v56 = vsel %vm285_vm1, %v18116_v2, 0 }
  0xc7   : > { %21508 = vmatmul.mubr.f32.gmra.mrb[16].mxu0 %v24929_v49  ;;  %v25348_v54 = vand.u32 4294901760, %v9914_v41  ;;  %v30979_v49 = vld [vmem:[#allocation101_spill] sm:$0xff] }
  0xc8   : > { %21510 = vmatprep.mubr.f32.mxu0 %v24938_v14  ;;  %v18123_v14 = vld [vmem:[%s24669_s9 + $0x92] sm:$0xff] }
  0xc9   : > { %20155 = vmatmul.mubr.f32.gmra.mrb[14].mxu1 %v30959_v30  ;;  %v25339_v30 = vand.u32 4294901760, %v9911_v40 }
  0xca   : > { %20157 = vmatprep.mubr.f32.mxu1 %v30960_v43  ;;  %v9917_v43 = vsel %vm285_vm1, %v18115_v29, 0  ;;  %v9923_v29 = vsel %vm285_vm1, %v18117_v52, 0 }
  0xcb   : > { %21511 = vmatmul.mubr.f32.gmra.mrb[18].mxu0 %v24961_v25  ;;  %v25354_v3 = vand.u32 4294901760, %v9917_v43  ;;  %v25373_v52 = vand.u32 4294901760, %v9923_v29  ;;  %v18121_v25 = vld [vmem:[%s24669_s9 + $0x7a] sm:$0xff] }
  0xcc   : > { %21513 = vmatprep.mubr.f32.mxu0 %v24970_v58  ;;  %v30973_v58 = vld [vmem:[#allocation93_spill] sm:$0xff]  ;;  %v9935_v2 = vsel %vm285_vm1, %v18121_v25, 0 }
  0xcd   : > { %20158 = vmatmul.mubr.f32.gmra.mrb[16].mxu1 %v30961_v26  ;;  %v30964_v26 = vld [vmem:[#allocation77_spill] sm:$0xff]  ;;  %30971 = vst [vmem:[#allocation137_spill] sm:$0xff] %v25373_v52 }
  0xce   : > { %20160 = vmatprep.mubr.f32.mxu1 %v30962_v38  ;;  %v25352_v38 = vsub.f32 %v9911_v40, %v25339_v30  ;;  %v25365_v40 = vand.u32 4294901760, %v9920_v56 }
  0xcf   : > { %21514 = vmatmul.mubr.f32.gmra.mrb[20].mxu0 %v24993_v37 }
  0xd0   : > { %21516 = vmatprep.mubr.f32.mxu0 %v25002_v55  ;;  %30965 = vst [vmem:[#allocation133_spill] sm:$0xff] %v25352_v38  ;;  %v25363_v55 = vsub.f32 %v9914_v41, %v25348_v54  ;;  %30969 = vst [vmem:[#allocation135_spill] sm:$0xff] %v25365_v40  ;;  %v30972_v41 = vld [vmem:[#allocation90_spill] sm:$0xff] }
  0xd1   : > { %20161 = vmatmul.mubr.f32.gmra.mrb[18].mxu1 %v30963_v60  ;;  %v18118_v60 = vld [vmem:[%s24669_s9 + $0x52] sm:$0xff] }
  0xd2   : > { %20163 = vmatprep.mubr.f32.mxu1 %v30964_v26  ;;  %v30967_v26 = vld [vmem:[#allocation85_spill] sm:$0xff]  ;;  %30968 = vst [vmem:[#allocation134_spill] sm:$0xff] %v25363_v55 }
  0xd3   : > { %21517 = vmatmul.mubr.f32.gmra.mrb[22].mxu0 %v25025_v53  ;;  %v18119_v53 = vld [vmem:[%s24669_s9 + $0x62] sm:$0xff] }
  0xd4   : > { %21519 = vmatprep.mubr.f32.mxu0 %v25034_v59  ;;  %v25371_v59 = vsub.f32 %v9917_v43, %v25354_v3  ;;  %v9929_v37 = vsel %vm285_vm1, %v18119_v53, 0  ;;  %v25383_v43 = vsub.f32 %v9920_v56, %v25365_v40  ;;  %v25394_v53 = vsub.f32 %v9923_v29, %v25373_v52 }
  0xd5   : > { %20164 = vmatmul.mubr.f32.gmra.mrb[20].mxu1 %v30966_v15  ;;  %v9926_v15 = vsel %vm285_vm1, %v18118_v60, 0  ;;  %v30976_v60 = vand.u32 4294901760, %v25352_v38  ;;  %v25398_v56 = vand.u32 4294901760, %v9929_v37 }
  0xd6   : > { %20166 = vmatprep.mubr.f32.mxu1 %v30967_v26  ;;  %30970 = vst [vmem:[#allocation136_spill] sm:$0xff] %v25371_v59  ;;  %v18120_v26 = vld [vmem:[%s24669_s9 + $0x6a] sm:$0xff]  ;;  %30974 = vst [vmem:[#allocation138_spill] sm:$0xff] %v25383_v43 }
  0xd7   : > { %21520 = vmatmul.mubr.f32.gmra.mrb[24].mxu0 %v25057_v18  ;;  %v25385_v18 = vand.u32 4294901760, %v9926_v15  ;;  %30977 = vst [vmem:[#allocation140_spill] sm:$0xff] %v25394_v53  ;;  %30978 = vst [vmem:[#allocation141_spill] sm:$0xff] %v25398_v56 }
  0xd8   : > { %21522 = vmatprep.mubr.f32.mxu0 %v25066_v46 }
  0xd9   : > { %20167 = vmatmul.mubr.f32.gmra.mrb[22].mxu1 %v30972_v41  ;;  %30975 = vst [vmem:[#allocation139_spill] sm:$0xff] %v25385_v18  ;;  %v10078_v41 = vsub.f32 %v25352_v38, %v30976_v60  ;;  %v25407_v29 = vsub.f32 %v9926_v15, %v25385_v18  ;;  %v25421_v15 = vsub.f32 %v9929_v37, %v25398_v56  ;;  %v25423_v60 = vand.u32 4294901760, %v9935_v2 }
  0xda   : > { %20169 = vmatprep.mubr.f32.mxu1 %v30973_v58  ;;  %v9932_v58 = vsel %vm285_vm1, %v18120_v26, 0 }
  0xdb   : > { %21523 = vmatmul.mubr.f32.gmra.mrb[26].mxu0 %v25089_v9  ;;  %v18122_v9 = vld [vmem:[%s24669_s9 + $0x82] sm:$0xff]  ;;  %30980 = vst [vmem:[#allocation142_spill] sm:$0xff] %v25407_v29  ;;  %v25409_v46 = vand.u32 4294901760, %v9932_v58  ;;  %v10079_v26 = vand.u32 4294901760, %v10078_v41  ;;  %30984 = vst [vmem:[#allocation144_spill] sm:$0xff] %v25421_v15  ;;  %v9941_v41 = vsel %vm285_vm1, %v18123_v14, 0 }
  0xdc   : > { %21525 = vmatprep.mubr.f32.mxu0 %v25098_v11  ;;  %v30983_v11 = vand.u32 4294901760, %v25371_v59  ;;  %30985 = vst [vmem:[#allocation145_spill] sm:$0xff] %v25423_v60 }
  0xdd   : > { %20170 = vmatmul.mubr.f32.gmra.mrb[24].mxu1 %v25055_v13  ;;  %30981 = vst [vmem:[#allocation143_spill] sm:$0xff] %v25409_v46  ;;  %v30982_v13 = vand.u32 4294901760, %v25363_v55 }
  0xde   : > { %20172 = vmatprep.mubr.f32.mxu1 %v30979_v49  ;;  %v10098_v38 = vsub.f32 %v25371_v59, %v30983_v11  ;;  %v30986_v11 = vand.u32 4294901760, %v25383_v43  ;;  %v25435_v49 = vsub.f32 %v9932_v58, %v25409_v46  ;;  %v25449_v58 = vsub.f32 %v9935_v2, %v25423_v60 }
  0xdf   : > { %21526 = vmatmul.mubr.f32.gmra.mrb[28].mxu0 %v25120_v50  ;;  %v10088_v25 = vsub.f32 %v25363_v55, %v30982_v13  ;;  %v9938_v50 = vsel %vm285_vm1, %v18122_v9, 0  ;;  %v30990_v55 = vand.u32 4294901760, %v25394_v53 }
  0xe0   : > { %21528 = vmatprep.mubr.f32.mxu0 %v25129_v44  ;;  %v10108_v13 = vsub.f32 %v25383_v43, %v30986_v11  ;;  %30987 = vst [vmem:[#allocation146_spill] sm:$0xff] %v25435_v49  ;;  %v18125_v44 = vld [vmem:[%s24669_s9 + $0xaa] sm:$0xff]  ;;  %v25439_v9 = vand.u32 4294901760, %v9938_v50  ;;  %v10099_v59 = vand.u32 4294901760, %v10098_v38  ;;  %30991 = vst [vmem:[#allocation149_spill] sm:$0xff] %v25449_v58  ;;  %v18126_v43 = vld [vmem:[%s24669_s9 + $0xb2] sm:$0xff] }
  0xe1   : > { %20173 = vmatmul.mubr.f32.gmra.mrb[26].mxu1 %v25087_v4  ;;  %v10089_v14 = vand.u32 4294901760, %v10088_v25  ;;  %v25441_v4 = vand.u32 4294901760, %v9941_v41  ;;  %v10118_v11 = vsub.f32 %v25394_v53, %v30990_v55  ;;  %v9947_v25 = vsel %vm285_vm1, %v18125_v44, 0 }
  0xe2   : > { %20175 = vmatprep.mubr.f32.mxu1 %v25096_v23  ;;  %30988 = vst [vmem:[#allocation147_spill] sm:$0xff] %v25439_v9  ;;  %v9944_v23 = vsel %vm285_vm1, %v18124_v45, 0  ;;  %v10109_v45 = vand.u32 4294901760, %v10108_v13  ;;  %v30992_v38 = vand.u32 4294901760, %v25407_v29  ;;  %v25463_v2 = vsub.f32 %v9938_v50, %v25439_v9 }
  0xe3   : > { %21529 = vmatmul.mubr.f32.gmra.mrb[30].mxu0 %v25149_v39  ;;  %30989 = vst [vmem:[#allocation148_spill] sm:$0xff] %v25441_v4  ;;  %v18127_v39 = vld [vmem:[%s24669_s9 + $0xc2] sm:$0xff]  ;;  %v25460_v37 = vand.u32 4294901760, %v9944_v23  ;;  %v9950_v44 = vsel %vm285_vm1, %v18126_v43, 0  ;;  %v30996_v55 = vand.u32 4294901760, %v25421_v15  ;;  %v25475_v50 = vand.u32 4294901760, %v9947_v25 }
  0xe4   : > { %21533 = vmatprep.mubr.f32.mxu0 %v10079_v26  ;;  %v10128_v26 = vsub.f32 %v25407_v29, %v30992_v38  ;;  %30994 = vst [vmem:[#allocation151_spill] sm:$0xff] %v25463_v2  ;;  %v9953_v13 = vsel %vm285_vm1, %v18127_v39, 0  ;;  %v10119_v38 = vand.u32 4294901760, %v10118_v11  ;;  %v18128_v29 = vld [vmem:[%s24669_s9 + $0xca] sm:$0xff]  ;;  %v30998_v43 = vand.u32 4294901760, %v24709_v31  ;;  %v18129_v11 = vld [vmem:[%s24669_s9 + $0xda] sm:$0xff] }
  0xe5   : > { %20176 = vmatmul.mubr.f32.gmra.mrb[28].mxu1 %v25118_v48  ;;  %30993 = vst [vmem:[#allocation150_spill] sm:$0xff] %v25460_v37  ;;  %v25466_v48 = vsub.f32 %v9941_v41, %v25441_v4  ;;  %30997 = vst [vmem:[#allocation153_spill] sm:$0xff] %v25475_v50  ;;  %v25483_v39 = vsub.f32 %v9944_v23, %v25460_v37  ;;  %v25487_v41 = vand.u32 4294901760, %v9953_v13  ;;  %v31006_v31 = vld [vmem:[#allocation18_spill] sm:$0xff] }
  0xe6   : > { %20178 = vmatprep.mubr.f32.mxu1 %v25127_v17  ;;  %v10138_v17 = vsub.f32 %v25421_v15, %v30996_v55  ;;  %v31002_v55 = vand.u32 4294901760, %v25435_v49  ;;  %v25500_v53 = vsub.f32 %v9947_v25, %v25475_v50 }
  0xe7   : > { %21534 = vmatmul.mubr.f32.vlgmr.msra.gmra.mrb[0].mxu0 %v10089_v14  ;;  %30995 = vst [vmem:[#allocation152_spill] sm:$0xff] %v25466_v48  ;;  %30999 = vst [vmem:[#allocation154_spill] sm:$0xff] %v25483_v39 }
  0xe8   : > { %21536 = vmatprep.mubr.f32.mxu0 %v10099_v59  ;;  %21582 = vmatpush3.msra.mxu0 %v25287_v1  ;;  %v10129_v59 = vand.u32 4294901760, %v10128_v26  ;;  %v25485_v1 = vand.u32 4294901760, %v9950_v44  ;;  %31001 = vst [vmem:[#allocation156_spill] sm:$0xff] %v25487_v41  ;;  %v10148_v14 = vsub.f32 %v25435_v49, %v31002_v55  ;;  %v9956_v26 = vsel %vm285_vm1, %v18128_v29, 0  ;;  %31004 = vst [vmem:[#allocation157_spill] sm:$0xff] %v25500_v53 }
  0xe9   : > { %20179 = vmatmul.mubr.f32.gmra.mrb[30].mxu1 %v25147_v0  ;;  %21631 = vmatprep.subr.mxu0 %v25268_v7  ;;  %v10139_v23 = vand.u32 4294901760, %v10138_v17  ;;  %v9959_v55 = vsel %vm285_vm1, %v18129_v11, 0  ;;  %v18130_v0 = vld [vmem:[%s24669_s9 + $0xe2] sm:$0xff]  ;;  %v25515_v25 = vand.u32 4294901760, %v9956_v26  ;;  %v31010_v11 = vand.u32 4294901760, %v25463_v2 }
  0xea   : > { %20183 = vmatprep.mubr.f32.mxu1 %v30998_v43  ;;  %31000 = vst [vmem:[#allocation155_spill] sm:$0xff] %v25485_v1  ;;  %v31003_v43 = vand.u32 4294901760, %v25449_v58  ;;  %v25510_v17 = vsub.f32 %v9950_v44, %v25485_v1  ;;  %v25526_v29 = vand.u32 4294901760, %v9959_v55 }
  0xeb   : > { %21537 = vmatmul.mubr.f32.gmra.mrb[2].mxu0 %v10109_v45  ;;  %v31005_v45 = vand.u32 4294901760, %v24731_v42  ;;  %31009 = vst [vmem:[#allocation159_spill] sm:$0xff] %v25515_v25  ;;  %v18131_v42 = vld [vmem:[%s24669_s9 + $0xf2] sm:$0xff] }
  0xec   : > { %21539 = vmatprep.mubr.f32.mxu0 %v10119_v38  ;;  %v10158_v15 = vsub.f32 %v25449_v58, %v31003_v43  ;;  %31007 = vst [vmem:[#allocation18_spill] sm:$0xff] %v25510_v17  ;;  %v25513_v38 = vsub.f32 %v9953_v13, %v25487_v41  ;;  %v10149_v43 = vand.u32 4294901760, %v10148_v14  ;;  %31012 = vst [vmem:[#allocation160_spill] sm:$0xff] %v25526_v29  ;;  %v31013_v14 = vld [vmem:[#allocation19_spill] sm:$0xff]  ;;  %v9965_v58 = vsel %vm285_vm1, %v18131_v42, 0 }
  0xed   : > { %20184 = vmatmul.mubr.f32.vlgmr.msra.gmra.mrb[0].mxu1 %v31005_v45 }
  0xee   : > { %20232 = vmatpush3.msra.mxu1 %v24679_v12  ;;  %20186 = vmatprep.mubr.f32.mxu1 %v31006_v31  ;;  %31008 = vst [vmem:[#allocation158_spill] sm:$0xff] %v25513_v38  ;;  %v10168_v12 = vsub.f32 %v25463_v2, %v31010_v11  ;;  %v31011_v31 = vand.u32 4294901760, %v25466_v48  ;;  %v10159_v44 = vand.u32 4294901760, %v10158_v15  ;;  %v18132_v11 = vld [vmem:[%s24669_s9 + $0xfa] sm:$0xff]  ;;  %v31014_v2 = vld [vmem:[#allocation24_spill] sm:$0xff]  ;;  %v25550_v15 = vand.u32 4294901760, %v9965_v58 }
  0xef   : > { %21540 = vmatmul.mubr.f32.gmra.mrb[4].mxu0 %v10129_v59  ;;  %20281 = vmatprep.subr.mxu1 %v24655_v5  ;;  %v9962_v59 = vsel %vm285_vm1, %v18130_v0, 0  ;;  %v18133_v0 = vld [vmem:[%s24669_s9 + $0x10a] sm:$0xff]  ;;  %v9968_v13 = vsel %vm285_vm1, %v18132_v11, 0 }
  0xf0   : > { %v10178_v45 = vsub.f32 %v25466_v48, %v31011_v31  ;;  %21542 = vmatprep.mubr.f32.mxu0 %v10139_v23  ;;  %v31015_v31 = vand.u32 4294901760, %v25483_v39  ;;  %v25539_v48 = vsub.f32 %v9956_v26, %v25515_v25  ;;  %v25542_v49 = vand.u32 4294901760, %v9962_v59  ;;  %31020 = vst [vmem:[#allocation162_spill] sm:$0xff] %v25550_v15  ;;  %v18134_v26 = vld [vmem:[%s24669_s9 + $0x112] sm:$0xff]  ;;  %v18136_v11 = vld [vmem:[%s24669_s9 + $0x12a] sm:$0xff] }
  0xf1   : > { %20187 = vmatmul.mubr.f32.gmra.mrb[2].mxu1 %v31013_v14  ;;  %v10169_v14 = vand.u32 4294901760, %v10168_v12  ;;  %v31022_v12 = vld [vmem:[#allocation26_spill] sm:$0xff] }
  0xf2   : > { %20189 = vmatprep.mubr.f32.mxu1 %v31014_v2  ;;  %v10188_v23 = vsub.f32 %v25483_v39, %v31015_v31  ;;  %31016 = vst [vmem:[#allocation19_spill] sm:$0xff] %v25539_v48  ;;  %v10179_v42 = vand.u32 4294901760, %v10178_v45  ;;  %31017 = vst [vmem:[#allocation24_spill] sm:$0xff] %v25542_v49  ;;  %v31018_v2 = vand.u32 4294901760, %v25500_v53  ;;  %v25548_v31 = vsub.f32 %v9959_v55, %v25526_v29  ;;  %v18135_v39 = vld [vmem:[%s24669_s9 + $0x122] sm:$0xff] }
  0xf3   : > { %21543 = vmatmul.mubr.f32.gmra.mrb[6].mxu0 %v10149_v43  ;;  %v9971_v43 = vsel %vm285_vm1, %v18133_v0, 0  ;;  %v25568_v0 = vand.u32 4294901760, %v9968_v13 }
  0xf4   : > { %21545 = vmatprep.mubr.f32.mxu0 %v10159_v44  ;;  %v10198_v6 = vsub.f32 %v25500_v53, %v31018_v2  ;;  %31019 = vst [vmem:[#allocation161_spill] sm:$0xff] %v25548_v31  ;;  %v10189_v45 = vand.u32 4294901760, %v10188_v23  ;;  %v31023_v44 = vand.u32 4294901760, %v25510_v17  ;;  %v31024_v2 = vand.u32 4294901760, %v25513_v38 }
  0xf5   : > { %20190 = vmatmul.mubr.f32.gmra.mrb[4].mxu1 %v31021_v51  ;;  %v25566_v51 = vsub.f32 %v9962_v59, %v25542_v49  ;;  %31026 = vst [vmem:[#allocation26_spill] sm:$0xff] %v25568_v0  ;;  %v9977_v23 = vsel %vm285_vm1, %v18135_v39, 0  ;;  %v18137_v59 = vld [vmem:[%s24669_s9 + $0x13a] sm:$0xff] }
  0xf6   : > { %20192 = vmatprep.mubr.f32.mxu1 %v31022_v12  ;;  %v10208_v55 = vsub.f32 %v25510_v17, %v31023_v44  ;;  %v10218_v53 = vsub.f32 %v25513_v38, %v31024_v2  ;;  %v9974_v12 = vsel %vm285_vm1, %v18134_v26, 0  ;;  %v10199_v16 = vand.u32 4294901760, %v10198_v6  ;;  %v31030_v38 = vld [vmem:[#allocation37_spill] sm:$0xff] }
  0xf7   : > { %21546 = vmatmul.mubr.f32.gmra.mrb[8].mxu0 %v10169_v14  ;;  %31025 = vst [vmem:[#allocation25_spill] sm:$0xff] %v25566_v51  ;;  %v30023_v44 = vand.u32 4294901760, %v25548_v31  ;;  %v25574_v17 = vsub.f32 %v9965_v58, %v25550_v15  ;;  %v25576_v2 = vand.u32 4294901760, %v9971_v43  ;;  %v31029_v14 = vld [vmem:[#allocation31_spill] sm:$0xff]  ;;  %v25582_v61 = vand.u32 4294901760, %v9974_v12 }
  0xf8   : > { %21548 = vmatprep.mubr.f32.mxu0 %v10179_v42  ;;  %v10209_v49 = vand.u32 4294901760, %v10208_v55  ;;  %v10219_v26 = vand.u32 4294901760, %v10218_v53  ;;  %v25584_v39 = vand.u32 4294901760, %v9977_v23  ;;  %v31033_v6 = vand.u32 4294901760, %v25539_v48  ;;  %v18138_v42 = vld [vmem:[%s24669_s9 + $0x142] sm:$0xff] }
  0xf9   : > { %31027 = vst [vmem:[#allocation163_spill] sm:$0xff] %v25574_v17  ;;  %31028 = vst [vmem:[#allocation164_spill] sm:$0xff] %v25576_v2  ;;  %20193 = vmatmul.mubr.f32.gmra.mrb[6].mxu1 %v31029_v14  ;;  %v25591_v14 = vsub.f32 %v9968_v13, %v25568_v0  ;;  %v10238_v53 = vsub.f32 %v25548_v31, %v30023_v44  ;;  %v9983_v15 = vsel %vm285_vm1, %v18137_v59, 0  ;;  %v18139_v44 = vld [vmem:[%s24669_s9 + $0x152] sm:$0xff]  ;;  %v31041_v55 = vand.u32 4294901760, %v25566_v51 }
  0xfa   : > { %20195 = vmatprep.mubr.f32.mxu1 %v31030_v38  ;;  %31031 = vst [vmem:[#allocation31_spill] sm:$0xff] %v25582_v61  ;;  %31032 = vst [vmem:[#allocation37_spill] sm:$0xff] %v25584_v39  ;;  %v10228_v58 = vsub.f32 %v25539_v48, %v31033_v6  ;;  %v9980_v38 = vsel %vm285_vm1, %v18136_v11, 0  ;;  %v31036_v6 = vld [vmem:[#allocation40_spill] sm:$0xff]  ;;  %v31037_v48 = vld [vmem:[#allocation46_spill] sm:$0xff]  ;;  %v25606_v13 = vsub.f32 %v9974_v12, %v25582_v61  ;;  %v31043_v31 = vand.u32 4294901760, %v25574_v17 }
  0xfb   : > { %21549 = vmatmul.mubr.f32.gmra.mrb[10].mxu0 %v10189_v45  ;;  %31034 = vst [vmem:[#allocation165_spill] sm:$0xff] %v25591_v14  ;;  %v25599_v45 = vsub.f32 %v9971_v43, %v25576_v2  ;;  %v25611_v11 = vand.u32 4294901760, %v9980_v38  ;;  %v10248_v59 = vsub.f32 %v25566_v51, %v31041_v55  ;;  %v10239_v12 = vand.u32 4294901760, %v10238_v53  ;;  %v18140_v2 = vld [vmem:[%s24669_s9 + $0x15a] sm:$0xff]  ;;  %v31045_v55 = vld [vmem:[#allocation52_spill] sm:$0xff] }
  0xfc   : > { %21551 = vmatprep.mubr.f32.mxu0 %v10199_v16  ;;  %31038 = vst [vmem:[#allocation40_spill] sm:$0xff] %v25606_v13  ;;  %v25609_v16 = vsub.f32 %v9977_v23, %v25584_v39  ;;  %v10229_v43 = vand.u32 4294901760, %v10228_v58  ;;  %v10258_v23 = vsub.f32 %v25574_v17, %v31043_v31  ;;  %v31044_v58 = vld [vmem:[#allocation49_spill] sm:$0xff]  ;;  %v9989_v61 = vsel %vm285_vm1, %v18139_v44, 0 }
  0xfd   : > { %31035 = vst [vmem:[#allocation166_spill] sm:$0xff] %v25599_v45  ;;  %20196 = vmatmul.mubr.f32.gmra.mrb[8].mxu1 %v31036_v6  ;;  %31040 = vst [vmem:[#allocation167_spill] sm:$0xff] %v25611_v11  ;;  %v25632_v53 = vsub.f32 %v9980_v38, %v25611_v11  ;;  %v18141_v31 = vld [vmem:[%s24669_s9 + $0x16a] sm:$0xff]  ;;  %v10249_v39 = vand.u32 4294901760, %v10248_v59  ;;  %v25646_v17 = vand.u32 4294901760, %v9989_v61 }
  0xfe   : > { %20198 = vmatprep.mubr.f32.mxu1 %v31037_v48  ;;  %31039 = vst [vmem:[#allocation46_spill] sm:$0xff] %v25609_v16  ;;  %v25618_v48 = vand.u32 4294901760, %v9983_v15  ;;  %v10259_v6 = vand.u32 4294901760, %v10258_v23  ;;  %v31052_v59 = vld [vmem:[#allocation57_spill] sm:$0xff]  ;;  %v9995_v51 = vsel %vm285_vm1, %v18141_v31, 0  ;;  %v31055_v23 = vand.u32 4294901760, %v25609_v16 }
  0xff   : > { %21552 = vmatmul.mubr.f32.gmra.mrb[12].mxu0 %v10209_v49  ;;  %v9986_v49 = vsel %vm285_vm1, %v18138_v42, 0  ;;  %31046 = vst [vmem:[#allocation49_spill] sm:$0xff] %v25632_v53  ;;  %v31047_v42 = vand.u32 4294901760, %v25591_v14  ;;  %31051 = vst [vmem:[#allocation170_spill] sm:$0xff] %v25646_v17 }
 0x100   : > { %31042 = vst [vmem:[#allocation168_spill] sm:$0xff] %v25618_v48  ;;  %21554 = vmatprep.mubr.f32.mxu0 %v10219_v26  ;;  %v25639_v44 = vsub.f32 %v9983_v15, %v25618_v48  ;;  %v31050_v26 = vand.u32 4294901760, %v25599_v45  ;;  %v31054_v15 = vand.u32 4294901760, %v25606_v13  ;;  %v18143_v48 = vld [vmem:[%s24669_s9 + $0x182] sm:$0xff] }
 0x101   : > { %20199 = vmatmul.mubr.f32.gmra.mrb[10].mxu1 %v31044_v58  ;;  %v10268_v58 = vsub.f32 %v25591_v14, %v31047_v42  ;;  %v18142_v42 = vld [vmem:[%s24669_s9 + $0x172] sm:$0xff]  ;;  %v31053_v14 = vld [vmem:[#allocation60_spill] sm:$0xff] }
 0x102   : > { %20201 = vmatprep.mubr.f32.mxu1 %v31045_v55  ;;  %31048 = vst [vmem:[#allocation52_spill] sm:$0xff] %v25639_v44  ;;  %v25641_v55 = vand.u32 4294901760, %v9986_v49  ;;  %v10278_v38 = vsub.f32 %v25599_v45, %v31050_v26  ;;  %v10298_v26 = vsub.f32 %v25609_v16, %v31055_v23  ;;  %v9998_v23 = vsel %vm285_vm1, %v18142_v42, 0  ;;  %v31059_v45 = vld [vmem:[#allocation65_spill] sm:$0xff] }
 0x103   : > { %21555 = vmatmul.mubr.f32.gmra.mrb[14].mxu0 %v10229_v43  ;;  %v9992_v43 = vsel %vm285_vm1, %v18140_v2, 0  ;;  %v10269_v2 = vand.u32 4294901760, %v10268_v58  ;;  %v18144_v58 = vld [vmem:[%s24669_s9 + $0x18a] sm:$0xff] }
 0x104   : > { %31049 = vst [vmem:[#allocation169_spill] sm:$0xff] %v25641_v55  ;;  %21557 = vmatprep.mubr.f32.mxu0 %v10239_v12  ;;  %v10288_v12 = vsub.f32 %v25606_v13, %v31054_v15  ;;  %v25663_v31 = vsub.f32 %v9986_v49, %v25641_v55  ;;  %v10279_v11 = vand.u32 4294901760, %v10278_v38  ;;  %v25668_v15 = vsub.f32 %v9989_v61, %v25646_v17 }
 0x105   : > { %20202 = vmatmul.mubr.f32.gmra.mrb[12].mxu1 %v31052_v59  ;;  %v25670_v13 = vand.u32 4294901760, %v9995_v51  ;;  %v31060_v59 = vld [vmem:[#allocation68_spill] sm:$0xff]  ;;  %v10299_v16 = vand.u32 4294901760, %v10298_v26  ;;  %v31061_v55 = vand.u32 4294901760, %v25632_v53  ;;  %v31062_v61 = vand.u32 4294901760, %v25639_v44 }
 0x106   : > { %20204 = vmatprep.mubr.f32.mxu1 %v31053_v14  ;;  %31056 = vst [vmem:[#allocation57_spill] sm:$0xff] %v25663_v31  ;;  %v25665_v14 = vand.u32 4294901760, %v9992_v43  ;;  %v10289_v49 = vand.u32 4294901760, %v10288_v12 }
 0x107   : > { %21558 = vmatmul.mubr.f32.gmra.mrb[16].mxu0 %v10249_v39  ;;  %31058 = vst [vmem:[#allocation171_spill] sm:$0xff] %v25670_v13  ;;  %v10001_v39 = vsel %vm285_vm1, %v18143_v48, 0  ;;  %v10318_v38 = vsub.f32 %v25639_v44, %v31062_v61  ;;  %v25687_v48 = vand.u32 4294901760, %v9998_v23  ;;  %v25691_v26 = vsub.f32 %v9995_v51, %v25670_v13  ;;  %v31067_v61 = vld [vmem:[#allocation76_spill] sm:$0xff] }
 0x108   : > { %31057 = vst [vmem:[#allocation60_spill] sm:$0xff] %v25665_v14  ;;  %21560 = vmatprep.mubr.f32.mxu0 %v10259_v6  ;;  %v10308_v6 = vsub.f32 %v25632_v53, %v31061_v55  ;;  %v10004_v55 = vsel %vm285_vm1, %v18144_v58, 0  ;;  %v31070_v58 = vand.u32 4294901760, %v25668_v15 }
 0x109   : > { %20205 = vmatmul.mubr.f32.gmra.mrb[14].mxu1 %v31059_v45  ;;  %v25685_v45 = vsub.f32 %v9992_v43, %v25665_v14  ;;  %31063 = vst [vmem:[#allocation65_spill] sm:$0xff] %v25687_v48  ;;  %31064 = vst [vmem:[#allocation68_spill] sm:$0xff] %v25691_v26  ;;  %v31068_v43 = vand.u32 4294901760, %v25663_v31  ;;  %v25703_v12 = vsub.f32 %v9998_v23, %v25687_v48  ;;  %v25705_v51 = vand.u32 4294901760, %v10004_v55 }
 0x10a   : > { %20207 = vmatprep.mubr.f32.mxu1 %v31060_v59  ;;  %v25693_v59 = vand.u32 4294901760, %v10001_v39  ;;  %v10309_v42 = vand.u32 4294901760, %v10308_v6  ;;  %v10319_v53 = vand.u32 4294901760, %v10318_v38  ;;  %v30057_v6 = vand.u32 4294901760, %v25691_v26 }
 0x10b   : > { %21561 = vmatmul.mubr.f32.gmra.mrb[18].mxu0 %v10269_v2  ;;  %v31066_v2 = vld [vmem:[#allocation73_spill] sm:$0xff]  ;;  %v10328_v44 = vsub.f32 %v25663_v31, %v31068_v43  ;;  %v31072_v43 = vld [vmem:[#allocation84_spill] sm:$0xff]  ;;  %v30062_v38 = vand.u32 4294901760, %v25703_v12  ;;  %v25721_v31 = vsub.f32 %v10004_v55, %v25705_v51 }
 0x10c   : > { %21563 = vmatprep.mubr.f32.mxu0 %v10279_v11  ;;  %31065 = vst [vmem:[#allocation172_spill] sm:$0xff] %v25693_v59  ;;  %v30056_v11 = vand.u32 4294901760, %v25685_v45  ;;  %31069 = vst [vmem:[#allocation73_spill] sm:$0xff] %v25705_v51 }
 0x10d   : > { %20208 = vmatmul.mubr.f32.gmra.mrb[16].mxu1 %v31066_v2  ;;  %v10338_v2 = vsub.f32 %v25668_v15, %v31070_v58  ;;  %v10329_v23 = vand.u32 4294901760, %v10328_v44  ;;  %v31074_v44 = vld [vmem:[#allocation92_spill] sm:$0xff]  ;;  %v30060_v55 = vand.u32 4294901760, %v25721_v31 }
 0x10e   : > { %20210 = vmatprep.mubr.f32.mxu1 %v31067_v61  ;;  %v31071_v61 = vld [vmem:[#allocation81_spill] sm:$0xff] }
 0x10f   : > { %21564 = vmatmul.mubr.f32.gmra.mrb[20].mxu0 %v10289_v49  ;;  %v25712_v49 = vsub.f32 %v10001_v39, %v25693_v59  ;;  %v10339_v58 = vand.u32 4294901760, %v10338_v2  ;;  %v10358_v39 = vsub.f32 %v25691_v26, %v30057_v6  ;;  %v31075_v6 = vld [vmem:[#allocation97_spill] sm:$0xff]  ;;  %v31076_v26 = vld [vmem:[#allocation100_spill] sm:$0xff] }
 0x110   : > { %21566 = vmatprep.mubr.f32.mxu0 %v10299_v16  ;;  %v10348_v16 = vsub.f32 %v25685_v45, %v30056_v11  ;;  %v10368_v11 = vsub.f32 %v25703_v12, %v30062_v38  ;;  %v31099_v38 = vld [vmem:[#allocation83_spill] sm:$0xff] }
 0x111   : > { %20211 = vmatmul.mubr.f32.gmra.mrb[18].mxu1 %v31071_v61  ;;  %v30061_v61 = vand.u32 4294901760, %v25712_v49 }
 0x112   : > { %20213 = vmatprep.mubr.f32.mxu1 %v31072_v43  ;;  %v31073_v43 = vld [vmem:[#allocation89_spill] sm:$0xff] }
 0x113   : > { %21567 = vmatmul.mubr.f32.gmra.mrb[22].mxu0 %v10309_v42  ;;  %v10349_v42 = vand.u32 4294901760, %v10348_v16  ;;  %v10378_v2 = vsub.f32 %v25712_v49, %v30061_v61  ;;  %v31098_v61 = vld [vmem:[#allocation169_spill] sm:$0xff] }
 0x114   : > { %21569 = vmatprep.mubr.f32.mxu0 %v10319_v53  ;;  %v10359_v53 = vand.u32 4294901760, %v10358_v39 }
 0x115   : > { %20214 = vmatmul.mubr.f32.gmra.mrb[20].mxu1 %v31073_v43  ;;  %v10369_v43 = vand.u32 4294901760, %v10368_v11  ;;  %v10379_v16 = vand.u32 4294901760, %v10378_v2  ;;  %v31080_v11 = vld [vmem:[#allocation122_spill] sm:$0xff]  ;;  %v31087_v2 = vld [vmem:[#allocation164_spill] sm:$0xff] }
 0x116   : > { %20216 = vmatprep.mubr.f32.mxu1 %v31074_v44  ;;  %v31077_v44 = vld [vmem:[#allocation105_spill] sm:$0xff] }
 0x117   : > { %21570 = vmatmul.mubr.f32.gmra.mrb[24].mxu0 %v10329_v23  ;;  %v10388_v23 = vsub.f32 %v25721_v31, %v30060_v55  ;;  %v31097_v55 = vld [vmem:[#allocation78_spill] sm:$0xff] }
 0x118   : > { %21572 = vmatprep.mubr.f32.mxu0 %v10339_v58  ;;  %v31078_v58 = vld [vmem:[#allocation108_spill] sm:$0xff] }
 0x119   : > { %20217 = vmatmul.mubr.f32.gmra.mrb[22].mxu1 %v31075_v6  ;;  %v10389_v39 = vand.u32 4294901760, %v10388_v23  ;;  %v31079_v6 = vld [vmem:[#allocation115_spill] sm:$0xff] }
 0x11a   : > { %20219 = vmatprep.mubr.f32.mxu1 %v31076_v26  ;;  %v250_v26 = vld [vmem:[%s29823_s1] sm:$0xf] }
 0x11b   : > { %21573 = vmatmul.mubr.f32.gmra.mrb[26].mxu0 %v10349_v42  ;;  %v31085_v42 = vld [vmem:[#allocation51_spill] sm:$0xff] }
 0x11c   : > { %21575 = vmatprep.mubr.f32.mxu0 %v10359_v53  ;;  %v31086_v53 = vld [vmem:[#allocation55_spill] sm:$0xff] }
 0x11d   : > { %20220 = vmatmul.mubr.f32.gmra.mrb[24].mxu1 %v31077_v44  ;;  %v31089_v23 = vld [vmem:[#allocation63_spill] sm:$0xff]  ;;  %v31091_v44 = vld [vmem:[#allocation37_spill] sm:$0xff] }
 0x11e   : > { %20222 = vmatprep.mubr.f32.mxu1 %v31078_v58  ;;  %v31092_v58 = vld [vmem:[#allocation67_spill] sm:$0xff] }
 0x11f   : > { %21576 = vmatmul.mubr.f32.gmra.mrb[28].mxu0 %v10369_v43  ;;  %v31088_v43 = vld [vmem:[#allocation59_spill] sm:$0xff] }
 0x120   : > { %21578 = vmatprep.mubr.f32.mxu0 %v10379_v16  ;;  %v31090_v16 = vld [vmem:[#allocation31_spill] sm:$0xff] }
 0x121   : > { %20223 = vmatmul.mubr.f32.gmra.mrb[26].mxu1 %v25115_v63  ;;  %v2262_v63 = vsel %vm382_vm0, %v250_v26, 0  ;;  %v31095_v26 = vld [vmem:[#allocation168_spill] sm:$0xff] }
 0x122   : > { %20225 = vmatprep.mubr.f32.mxu1 %v31079_v6  ;;  %v31094_v6 = vld [vmem:[#allocation167_spill] sm:$0xff] }
 0x123   : > { %21579 = vmatmul.mubr.f32.gmra.mrb[30].mxu0 %v10389_v39  ;;  %v31093_v39 = vld [vmem:[#allocation70_spill] sm:$0xff] }
 0x124   : > { %21583 = vmatprep.mubr.f32.mxu0 %v25339_v30 }
 0x125   : > { %20226 = vmatmul.mubr.f32.gmra.mrb[28].mxu1 %v25144_v24  ;;  %v25759_v24 = vand.u32 4294901760, %v2262_v63 }
 0x126   : > { %20228 = vmatprep.mubr.f32.mxu1 %v31080_v11  ;;  %v31096_v11 = vld [vmem:[#allocation75_spill] sm:$0xff] }
 0x127   : > { %21584 = vmatmul.mubr.f32.vlgmr.msra.gmra.mrb[0].mxu0 %v25348_v54  ;;  %31081 = vst [vmem:[#allocation76_spill] sm:$0xff] %v25759_v24 }
 0x128   : > { %21586 = vmatprep.mubr.f32.mxu0 %v25354_v3  ;;  %21632 = vmatpush3.msra.mxu0 %v25268_v7  ;;  %v31084_v7 = vld [vmem:[#allocation162_spill] sm:$0xff] }
 0x129   : > { %20229 = vmatmul.mubr.f32.gmra.mrb[30].mxu1 %v25170_v32  ;;  %21681 = vmatprep.subr.mxu0 %v25209_v8  ;;  %v31083_v32 = vld [vmem:[#allocation24_spill] sm:$0xff] }
 0x12a   : > { %20233 = vmatprep.mubr.f32.mxu1 %v24692_v21 }
 0x12b   : > { %21587 = vmatmul.mubr.f32.gmra.mrb[2].mxu0 %v25365_v40 }
 0x12c   : > { %21589 = vmatprep.mubr.f32.mxu0 %v25373_v52  ;;  %v225_v52 = vld [vmem:[%s24669_s9 + $0x50] sm:$0xff] }
 0x12d   : > { %20234 = vmatmul.mubr.f32.vlgmr.msra.gmra.mrb[0].mxu1 %v24713_v34  ;;  %v2187_v40 = vsel %vm285_vm1, %v225_v52, 0 }
 0x12e   : > { %20282 = vmatpush3.msra.mxu1 %v24655_v5  ;;  %20236 = vmatprep.mubr.f32.mxu1 %v24688_v19  ;;  %v31082_v5 = vld [vmem:[#allocation47_spill] sm:$0xff]  ;;  %v25958_v52 = vand.u32 4294901760, %v2187_v40 }
 0x12f   : > { %21590 = vmatmul.mubr.f32.gmra.mrb[4].mxu0 %v25385_v18  ;;  %20331 = vmatprep.subr.mxu1 %v25759_v24 }
 0x130   : > { %21592 = vmatprep.mubr.f32.mxu0 %v25398_v56  ;;  %v31140_v56 = vld [vmem:[#allocation68_spill] sm:$0xff] }
 0x131   : > { %20237 = vmatmul.mubr.f32.gmra.mrb[2].mxu1 %v24690_v20 }
 0x132   : > { %20239 = vmatprep.mubr.f32.mxu1 %v24711_v33 }
 0x133   : > { %21593 = vmatmul.mubr.f32.gmra.mrb[6].mxu0 %v25409_v46 }
 0x134   : > { %21595 = vmatprep.mubr.f32.mxu0 %v25423_v60 }
 0x135   : > { %20240 = vmatmul.mubr.f32.gmra.mrb[4].mxu1 %v24715_v35 }
 0x136   : > { %20242 = vmatprep.mubr.f32.mxu1 %v24717_v36 }
 0x137   : > { %21596 = vmatmul.mubr.f32.gmra.mrb[8].mxu0 %v25439_v9  ;;  %v31136_v9 = vld [vmem:[#allocation57_spill] sm:$0xff] }
 0x138   : > { %21598 = vmatprep.mubr.f32.mxu0 %v25441_v4 }
 0x139   : > { %20243 = vmatmul.mubr.f32.gmra.mrb[6].mxu1 %v24745_v47 }
 0x13a   : > { %20245 = vmatprep.mubr.f32.mxu1 %v24777_v62 }
 0x13b   : > { %21599 = vmatmul.mubr.f32.gmra.mrb[10].mxu0 %v25460_v37  ;;  %v220_v37 = vld [vmem:[%s24669_s9 + $0x18] sm:$0xff] }
 0x13c   : > { %21601 = vmatprep.mubr.f32.mxu0 %v25475_v50  ;;  %v31133_v50 = vld [vmem:[#allocation49_spill] sm:$0xff] }
 0x13d   : > { %20246 = vmatmul.mubr.f32.gmra.mrb[8].mxu1 %v24788_v10 }
 0x13e   : > { %20248 = vmatprep.mubr.f32.mxu1 %v24804_v22 }
 0x13f   : > { %21602 = vmatmul.mubr.f32.gmra.mrb[12].mxu0 %v25485_v1  ;;  %v31121_v1 = vld [vmem:[#allocation154_spill] sm:$0xff] }
 0x140   : > { %21604 = vmatprep.mubr.f32.mxu0 %v25487_v41  ;;  %v31116_v41 = vld [vmem:[#allocation144_spill] sm:$0xff] }
 0x141   : > { %20249 = vmatmul.mubr.f32.gmra.mrb[10].mxu1 %v24814_v27 }
 0x142   : > { %20251 = vmatprep.mubr.f32.mxu1 %v24816_v28 }
 0x143   : > { %21605 = vmatmul.mubr.f32.gmra.mrb[14].mxu0 %v25515_v25  ;;  %v31114_v25 = vld [vmem:[#allocation140_spill] sm:$0xff] }
 0x144   : > { %21607 = vmatprep.mubr.f32.mxu0 %v25526_v29 }
 0x145   : > { %20252 = vmatmul.mubr.f32.gmra.mrb[12].mxu1 %v24838_v57 }
 0x146   : > { %20254 = vmatprep.mubr.f32.mxu1 %v31082_v5 }
 0x147   : > { %21608 = vmatmul.mubr.f32.gmra.mrb[16].mxu0 %v31083_v32  ;;  %v31113_v32 = vld [vmem:[#allocation138_spill] sm:$0xff] }
 0x148   : > { %21610 = vmatprep.mubr.f32.mxu0 %v31084_v7  ;;  %v31111_v7 = vld [vmem:[#allocation114_spill] sm:$0xff] }
 0x149   : > { %20255 = vmatmul.mubr.f32.gmra.mrb[14].mxu1 %v31085_v42 }
 0x14a   : > { %20257 = vmatprep.mubr.f32.mxu1 %v31086_v53 }
 0x14b   : > { %21611 = vmatmul.mubr.f32.gmra.mrb[18].mxu0 %v25568_v0  ;;  %v31108_v0 = vld [vmem:[#allocation110_spill] sm:$0xff] }
 0x14c   : > { %21613 = vmatprep.mubr.f32.mxu0 %v31087_v2  ;;  %v31107_v2 = vld [vmem:[#allocation107_spill] sm:$0xff] }
 0x14d   : > { %20258 = vmatmul.mubr.f32.gmra.mrb[16].mxu1 %v31088_v43 }
 0x14e   : > { %20260 = vmatprep.mubr.f32.mxu1 %v31089_v23 }
 0x14f   : > { %21614 = vmatmul.mubr.f32.gmra.mrb[20].mxu0 %v31090_v16  ;;  %v31100_v16 = vld [vmem:[#allocation86_spill] sm:$0xff] }
 0x150   : > { %21616 = vmatprep.mubr.f32.mxu0 %v31091_v44  ;;  %v31101_v44 = vld [vmem:[#allocation91_spill] sm:$0xff] }
 0x151   : > { %20261 = vmatmul.mubr.f32.gmra.mrb[18].mxu1 %v31092_v58 }
 0x152   : > { %20263 = vmatprep.mubr.f32.mxu1 %v31093_v39 }
 0x153   : > { %21617 = vmatmul.mubr.f32.gmra.mrb[22].mxu0 %v31094_v6  ;;  %v31102_v6 = vld [vmem:[#allocation94_spill] sm:$0xff] }
 0x154   : > { %21619 = vmatprep.mubr.f32.mxu0 %v31095_v26  ;;  %v25816_v26 = vsub.f32 %v2262_v63, %v25759_v24 }
 0x155   : > { %20264 = vmatmul.mubr.f32.gmra.mrb[20].mxu1 %v31096_v11 }
 0x156   : > { %20266 = vmatprep.mubr.f32.mxu1 %v31097_v55 }
 0x157   : > { %21620 = vmatmul.mubr.f32.gmra.mrb[24].mxu0 %v31098_v61  ;;  %v31104_v61 = vld [vmem:[#allocation102_spill] sm:$0xff] }
 0x158   : > { %21622 = vmatprep.mubr.f32.mxu0 %v25646_v17  ;;  %v31103_v17 = vld [vmem:[#allocation99_spill] sm:$0xff] }
 0x159   : > { %20267 = vmatmul.mubr.f32.gmra.mrb[22].mxu1 %v31099_v38 }
 0x15a   : > { %20269 = vmatprep.mubr.f32.mxu1 %v31100_v16 }
 0x15b   : > { %21623 = vmatmul.mubr.f32.gmra.mrb[26].mxu0 %v25665_v14  ;;  %v25823_v14 = vand.u32 4294901760, %v25816_v26 }
 0x15c   : > { %21625 = vmatprep.mubr.f32.mxu0 %v25670_v13  ;;  %v31106_v13 = vld [vmem:[#allocation133_spill] sm:$0xff] }
 0x15d   : > { %20270 = vmatmul.mubr.f32.gmra.mrb[24].mxu1 %v31101_v44  ;;  %31105 = vst [vmem:[#allocation81_spill] sm:$0xff] %v25823_v14  ;;  %v2654_v63 = vsub.f32 %v25816_v26, %v25823_v14  ;;  %v31115_v14 = vld [vmem:[#allocation142_spill] sm:$0xff] }
 0x15e   : > { %20272 = vmatprep.mubr.f32.mxu1 %v31102_v6 }
 0x15f   : > { %21626 = vmatmul.mubr.f32.gmra.mrb[28].mxu0 %v25687_v48  ;;  %v31109_v48 = vld [vmem:[#allocation134_spill] sm:$0xff]  ;;  %v25837_v29 = vand.u32 4294901760, %v2654_v63  ;;  %v31118_v63 = vld [vmem:[#allocation149_spill] sm:$0xff] }
 0x160   : > { %21628 = vmatprep.mubr.f32.mxu0 %v25693_v59  ;;  %v31110_v59 = vld [vmem:[#allocation136_spill] sm:$0xff] }
 0x161   : > { %20273 = vmatmul.mubr.f32.gmra.mrb[26].mxu1 %v31103_v17 }
 0x162   : > { %20275 = vmatprep.mubr.f32.mxu1 %v31104_v61 }
 0x163   : > { %21629 = vmatmul.mubr.f32.gmra.mrb[30].mxu0 %v25705_v51  ;;  %v31112_v51 = vld [vmem:[#allocation132_spill] sm:$0xff] }
 0x164   : > { %21633 = vmatprep.mubr.f32.mxu0 %v31106_v13  ;;  %31151 = vst [vmem:[#allocation132_spill] sm:$0xff] %v25958_v52 }
 0x165   : > { %20276 = vmatmul.mubr.f32.gmra.mrb[28].mxu1 %v31107_v2 }
 0x166   : > { %20278 = vmatprep.mubr.f32.mxu1 %v31108_v0 }
 0x167   : > { %21634 = vmatmul.mubr.f32.vlgmr.msra.gmra.mrb[0].mxu0 %v31109_v48 }
 0x168   : > { %21636 = vmatprep.mubr.f32.mxu0 %v31110_v59  ;;  %21682 = vmatpush3.msra.mxu0 %v25209_v8 }
 0x169   : > { %20279 = vmatmul.mubr.f32.gmra.mrb[30].mxu1 %v31111_v7  ;;  %21731 = vmatprep.subr.mxu0 %v31112_v51 }
 0x16a   : > { %20283 = vmatprep.mubr.f32.mxu1 %v24692_v21  ;;  %v31117_v21 = vld [vmem:[#allocation146_spill] sm:$0xff] }
 0x16b   : > { %21637 = vmatmul.mubr.f32.gmra.mrb[2].mxu0 %v31113_v32 }
 0x16c   : > { %21639 = vmatprep.mubr.f32.mxu0 %v31114_v25 }
 0x16d   : > { %20284 = vmatmul.mubr.f32.vlgmr.msra.gmra.mrb[0].mxu1 %v24713_v34  ;;  %v31119_v34 = vld [vmem:[#allocation151_spill] sm:$0xff] }
 0x16e   : > { %20332 = vmatpush3.msra.mxu1 %v25759_v24  ;;  %20286 = vmatprep.mubr.f32.mxu1 %v24688_v19  ;;  %v31120_v19 = vld [vmem:[#allocation152_spill] sm:$0xff] }
 0x16f   : > { %21640 = vmatmul.mubr.f32.gmra.mrb[4].mxu0 %v31115_v14  ;;  %20381 = vmatprep.subr.mxu1 %v25837_v29 }
 0x170   : > { %21642 = vmatprep.mubr.f32.mxu0 %v31116_v41 }
 0x171   : > { %20287 = vmatmul.mubr.f32.gmra.mrb[2].mxu1 %v24690_v20  ;;  %v31122_v20 = vld [vmem:[#allocation157_spill] sm:$0xff] }
 0x172   : > { %20289 = vmatprep.mubr.f32.mxu1 %v24711_v33  ;;  %v31123_v33 = vld [vmem:[#allocation18_spill] sm:$0xff] }
 0x173   : > { %21643 = vmatmul.mubr.f32.gmra.mrb[6].mxu0 %v31117_v21 }
 0x174   : > { %21645 = vmatprep.mubr.f32.mxu0 %v31118_v63 }
 0x175   : > { %20290 = vmatmul.mubr.f32.gmra.mrb[4].mxu1 %v24715_v35  ;;  %v31124_v35 = vld [vmem:[#allocation158_spill] sm:$0xff] }
 0x176   : > { %20292 = vmatprep.mubr.f32.mxu1 %v24717_v36  ;;  %v31132_v36 = vld [vmem:[#allocation46_spill] sm:$0xff] }
 0x177   : > { %21646 = vmatmul.mubr.f32.gmra.mrb[8].mxu0 %v31119_v34 }
 0x178   : > { %21648 = vmatprep.mubr.f32.mxu0 %v31120_v19 }
 0x179   : > { %20293 = vmatmul.mubr.f32.gmra.mrb[6].mxu1 %v24745_v47  ;;  %v31125_v47 = vld [vmem:[#allocation19_spill] sm:$0xff] }
 0x17a   : > { %20295 = vmatprep.mubr.f32.mxu1 %v24777_v62  ;;  %v31126_v62 = vld [vmem:[#allocation161_spill] sm:$0xff] }
 0x17b   : > { %21649 = vmatmul.mubr.f32.gmra.mrb[10].mxu0 %v31121_v1 }
 0x17c   : > { %21651 = vmatprep.mubr.f32.mxu0 %v31122_v20 }
 0x17d   : > { %20296 = vmatmul.mubr.f32.gmra.mrb[8].mxu1 %v24788_v10  ;;  %v31127_v10 = vld [vmem:[#allocation25_spill] sm:$0xff] }
 0x17e   : > { %20298 = vmatprep.mubr.f32.mxu1 %v24804_v22  ;;  %v31128_v22 = vld [vmem:[#allocation163_spill] sm:$0xff] }
 0x17f   : > { %21652 = vmatmul.mubr.f32.gmra.mrb[12].mxu0 %v31123_v33 }
 0x180   : > { %21654 = vmatprep.mubr.f32.mxu0 %v31124_v35 }
 0x181   : > { %20299 = vmatmul.mubr.f32.gmra.mrb[10].mxu1 %v24814_v27  ;;  %v31129_v27 = vld [vmem:[#allocation165_spill] sm:$0xff] }
 0x182   : > { %20301 = vmatprep.mubr.f32.mxu1 %v24816_v28  ;;  %v31130_v28 = vld [vmem:[#allocation166_spill] sm:$0xff] }
 0x183   : > { %21655 = vmatmul.mubr.f32.gmra.mrb[14].mxu0 %v31125_v47 }
 0x184   : > { %21657 = vmatprep.mubr.f32.mxu0 %v31126_v62 }
 0x185   : > { %20302 = vmatmul.mubr.f32.gmra.mrb[12].mxu1 %v24838_v57  ;;  %v31131_v57 = vld [vmem:[#allocation40_spill] sm:$0xff] }
 0x186   : > { %20304 = vmatprep.mubr.f32.mxu1 %v31082_v5  ;;  %v218_v5 = vld [vmem:[%s24669_s9] sm:$0xff] }
 0x187   : > { %21658 = vmatmul.mubr.f32.gmra.mrb[16].mxu0 %v31127_v10 }
 0x188   : > { %21660 = vmatprep.mubr.f32.mxu0 %v31128_v22 }
 0x189   : > { %20305 = vmatmul.mubr.f32.gmra.mrb[14].mxu1 %v31085_v42  ;;  %v219_v42 = vld [vmem:[%s24669_s9 + $0x8] sm:$0xff] }
 0x18a   : > { %20307 = vmatprep.mubr.f32.mxu1 %v31086_v53  ;;  %v2166_v53 = vsel %vm285_vm1, %v218_v5, 0  ;;  %v2169_v4 = vsel %vm285_vm1, %v219_v42, 0  ;;  %v222_v5 = vld [vmem:[%s24669_s9 + $0x30] sm:$0xff] }
 0x18b   : > { %21661 = vmatmul.mubr.f32.gmra.mrb[18].mxu0 %v31129_v27  ;;  %v25896_v60 = vand.u32 4294901760, %v2169_v4 }
 0x18c   : > { %21663 = vmatprep.mubr.f32.mxu0 %v31130_v28 }
 0x18d   : > { %20308 = vmatmul.mubr.f32.gmra.mrb[16].mxu1 %v31088_v43  ;;  %v31134_v43 = vld [vmem:[#allocation52_spill] sm:$0xff]  ;;  %31137 = vst [vmem:[#allocation89_spill] sm:$0xff] %v25896_v60  ;;  %v25911_v24 = vsub.f32 %v2169_v4, %v25896_v60 }
 0x18e   : > { %20310 = vmatprep.mubr.f32.mxu1 %v31089_v23  ;;  %v25887_v23 = vand.u32 4294901760, %v2166_v53 }
 0x18f   : > { %21664 = vmatmul.mubr.f32.gmra.mrb[20].mxu0 %v31131_v57  ;;  %31141 = vst [vmem:[#allocation100_spill] sm:$0xff] %v25911_v24 }
 0x190   : > { %21666 = vmatprep.mubr.f32.mxu0 %v31132_v36  ;;  %31135 = vst [vmem:[#allocation84_spill] sm:$0xff] %v25887_v23 }
 0x191   : > { %20311 = vmatmul.mubr.f32.gmra.mrb[18].mxu1 %v31092_v58  ;;  %v2172_v58 = vsel %vm285_vm1, %v220_v37, 0  ;;  %v2178_v37 = vsel %vm285_vm1, %v222_v5, 0 }
 0x192   : > { %20313 = vmatprep.mubr.f32.mxu1 %v31093_v39  ;;  %v221_v39 = vld [vmem:[%s24669_s9 + $0x20] sm:$0xff]  ;;  %v25902_v46 = vand.u32 4294901760, %v2172_v58  ;;  %v25921_v5 = vand.u32 4294901760, %v2178_v37 }
 0x193   : > { %21667 = vmatmul.mubr.f32.gmra.mrb[22].mxu0 %v31133_v50  ;;  %v2175_v42 = vsel %vm285_vm1, %v221_v39, 0 }
 0x194   : > { %21669 = vmatprep.mubr.f32.mxu0 %v31134_v43  ;;  %31139 = vst [vmem:[#allocation97_spill] sm:$0xff] %v25902_v46  ;;  %31144 = vst [vmem:[#allocation115_spill] sm:$0xff] %v25921_v5 }
 0x195   : > { %20314 = vmatmul.mubr.f32.gmra.mrb[20].mxu1 %v31096_v11  ;;  %v25900_v11 = vsub.f32 %v2166_v53, %v25887_v23  ;;  %v25913_v53 = vand.u32 4294901760, %v2175_v42 }
 0x196   : > { %20316 = vmatprep.mubr.f32.mxu1 %v31097_v55  ;;  %v223_v55 = vld [vmem:[%s24669_s9 + $0x38] sm:$0xff] }
 0x197   : > { %21670 = vmatmul.mubr.f32.gmra.mrb[24].mxu0 %v31136_v9  ;;  %31138 = vst [vmem:[#allocation92_spill] sm:$0xff] %v25900_v11  ;;  %31142 = vst [vmem:[#allocation105_spill] sm:$0xff] %v25913_v53  ;;  %v2181_v18 = vsel %vm285_vm1, %v223_v55, 0  ;;  %v31147_v55 = vand.u32 4294901760, %v25900_v11 }
 0x198   : > { %21672 = vmatprep.mubr.f32.mxu0 %v25668_v15 }
 0x199   : > { %20317 = vmatmul.mubr.f32.gmra.mrb[22].mxu1 %v31099_v38  ;;  %v224_v38 = vld [vmem:[%s24669_s9 + $0x48] sm:$0xff] }
 0x19a   : > { %20319 = vmatprep.mubr.f32.mxu1 %v31100_v16  ;;  %v25919_v16 = vsub.f32 %v2172_v58, %v25902_v46  ;;  %v2184_v4 = vsel %vm285_vm1, %v224_v38, 0  ;;  %v25931_v58 = vsub.f32 %v2175_v42, %v25913_v53  ;;  %v226_v46 = vld [vmem:[%s24669_s9 + $0x60] sm:$0xff]  ;;  %v25942_v38 = vsub.f32 %v2178_v37, %v25921_v5  ;;  %v228_v53 = vld [vmem:[%s24669_s9 + $0x78] sm:$0xff] }
 0x19b   : > { %21673 = vmatmul.mubr.f32.gmra.mrb[26].mxu0 %v25685_v45  ;;  %v25946_v42 = vand.u32 4294901760, %v2184_v4  ;;  %v2190_v39 = vsel %vm285_vm1, %v226_v46, 0 }
 0x19c   : > { %21675 = vmatprep.mubr.f32.mxu0 %v31140_v56  ;;  %31143 = vst [vmem:[#allocation108_spill] sm:$0xff] %v25919_v16  ;;  %31145 = vst [vmem:[#allocation122_spill] sm:$0xff] %v25931_v58  ;;  %v31153_v5 = vand.u32 4294901760, %v25919_v16  ;;  %v25974_v60 = vand.u32 4294901760, %v2190_v39 }
 0x19d   : > { %20320 = vmatmul.mubr.f32.gmra.mrb[24].mxu1 %v31101_v44  ;;  %v25933_v44 = vand.u32 4294901760, %v2181_v18  ;;  %31148 = vst [vmem:[#allocation134_spill] sm:$0xff] %v25942_v38  ;;  %31149 = vst [vmem:[#allocation136_spill] sm:$0xff] %v25946_v42 }
 0x19e   : > { %20322 = vmatprep.mubr.f32.mxu1 %v31102_v6  ;;  %v2333_v6 = vsub.f32 %v25900_v11, %v31147_v55  ;;  %v31150_v55 = vand.u32 4294901760, %v31106_v13  ;;  %v31152_v11 = vand.u32 4294901760, %v25911_v24  ;;  %v2353_v13 = vsub.f32 %v25919_v16, %v31153_v5  ;;  %31156 = vst [vmem:[#allocation142_spill] sm:$0xff] %v25974_v60 }
 0x19f   : > { %21676 = vmatmul.mubr.f32.gmra.mrb[28].mxu0 %v25703_v12  ;;  %31146 = vst [vmem:[#allocation133_spill] sm:$0xff] %v25933_v44  ;;  %v25956_v37 = vsub.f32 %v2181_v18, %v25933_v44  ;;  %v25972_v18 = vsub.f32 %v2184_v4, %v25946_v42  ;;  %v229_v44 = vld [vmem:[%s24669_s9 + $0x80] sm:$0xff]  ;;  %v31158_v5 = vand.u32 4294901760, %v31110_v59 }
 0x1a0   : > { %21678 = vmatprep.mubr.f32.mxu0 %v25712_v49  ;;  %v2343_v46 = vsub.f32 %v25911_v24, %v31152_v11  ;;  %v31157_v11 = vand.u32 4294901760, %v31109_v48  ;;  %v31166_v24 = vand.u32 4294901760, %v31113_v32 }
 0x1a1   : > { %20323 = vmatmul.mubr.f32.gmra.mrb[26].mxu1 %v31103_v17  ;;  %v227_v17 = vld [vmem:[%s24669_s9 + $0x68] sm:$0xff]  ;;  %31155 = vst [vmem:[#allocation140_spill] sm:$0xff] %v25972_v18  ;;  %v25988_v16 = vand.u32 4294901760, %v25956_v37 }
 0x1a2   : > { %20325 = vmatprep.mubr.f32.mxu1 %v31104_v61  ;;  %v2334_v61 = vand.u32 4294901760, %v2333_v6  ;;  %v2193_v6 = vsel %vm285_vm1, %v227_v17, 0  ;;  %v25991_v17 = vsub.f32 %v2187_v40, %v25958_v52  ;;  %v2344_v48 = vand.u32 4294901760, %v2343_v46  ;;  %v231_v46 = vld [vmem:[%s24669_s9 + $0x98] sm:$0xff] }
 0x1a3   : > { %21679 = vmatmul.mubr.f32.gmra.mrb[30].mxu0 %v25721_v31  ;;  %31160 = vst [vmem:[#allocation144_spill] sm:$0xff] %v25988_v16  ;;  %v25995_v59 = vand.u32 4294901760, %v2193_v6  ;;  %v26004_v40 = vand.u32 4294901760, %v25972_v18  ;;  %v31167_v52 = vand.u32 4294901760, %v31114_v25  ;;  %v2205_v25 = vsel %vm285_vm1, %v231_v46, 0 }
 0x1a4   : > { %21683 = vmatprep.mubr.f32.mxu0 %v31150_v55  ;;  %v25968_v55 = vand.u32 4294901760, %v25942_v38  ;;  %31161 = vst [vmem:[#allocation146_spill] sm:$0xff] %v25991_v17 }
 0x1a5   : > { %20326 = vmatmul.mubr.f32.gmra.mrb[28].mxu1 %v31107_v2  ;;  %v2196_v2 = vsel %vm285_vm1, %v228_v53, 0  ;;  %v230_v53 = vld [vmem:[%s24669_s9 + $0x90] sm:$0xff]  ;;  %31162 = vst [vmem:[#allocation149_spill] sm:$0xff] %v25995_v59  ;;  %31164 = vst [vmem:[#allocation152_spill] sm:$0xff] %v26004_v40 }
 0x1a6   : > { %31154 = vst [vmem:[#allocation138_spill] sm:$0xff] %v25968_v55  ;;  %20328 = vmatprep.mubr.f32.mxu1 %v31108_v0  ;;  %v31159_v0 = vand.u32 4294901760, %v25931_v58 }
 0x1a7   : > { %21684 = vmatmul.mubr.f32.vlgmr.msra.gmra.mrb[0].mxu0 %v31157_v11  ;;  %v25997_v11 = vand.u32 4294901760, %v2196_v2 }
 0x1a8   : > { %21686 = vmatprep.mubr.f32.mxu0 %v31158_v5  ;;  %21732 = vmatpush3.msra.mxu0 %v31112_v51  ;;  %v2363_v4 = vsub.f32 %v25931_v58, %v31159_v0  ;;  %v2199_v51 = vsel %vm285_vm1, %v229_v44, 0  ;;  %v2354_v0 = vand.u32 4294901760, %v2353_v13  ;;  %v2373_v5 = vsub.f32 %v25942_v38, %v25968_v55 }
 0x1a9   : > { %20329 = vmatmul.mubr.f32.gmra.mrb[30].mxu1 %v31111_v7  ;;  %31163 = vst [vmem:[#allocation151_spill] sm:$0xff] %v25997_v11  ;;  %21781 = vmatprep.subr.mxu0 %v25209_v8  ;;  %v26007_v58 = vsub.f32 %v2190_v39, %v25974_v60  ;;  %v232_v7 = vld [vmem:[%s24669_s9 + $0xa8] sm:$0xff]  ;;  %v2202_v44 = vsel %vm285_vm1, %v230_v53, 0  ;;  %v2383_v13 = vsub.f32 %v25956_v37, %v25988_v16  ;;  %v26019_v55 = vand.u32 4294901760, %v25991_v17 }
 0x1aa   : > { %20333 = vmatprep.mubr.f32.mxu1 %v2334_v61  ;;  %v2364_v61 = vand.u32 4294901760, %v2363_v4  ;;  %v26021_v39 = vand.u32 4294901760, %v2199_v51  ;;  %v26024_v38 = vsub.f32 %v2193_v6, %v25995_v59  ;;  %v2208_v32 = vsel %vm285_vm1, %v232_v7, 0 }
 0x1ab   : > { %31165 = vst [vmem:[#allocation154_spill] sm:$0xff] %v26007_v58  ;;  %21687 = vmatmul.mubr.f32.gmra.mrb[2].mxu0 %v31166_v24  ;;  %31168 = vst [vmem:[#allocation157_spill] sm:$0xff] %v26019_v55  ;;  %v26027_v24 = vsub.f32 %v2196_v2, %v25997_v11  ;;  %v2393_v4 = vsub.f32 %v25972_v18, %v26004_v40  ;;  %v26037_v53 = vand.u32 4294901760, %v26007_v58  ;;  %v26039_v6 = vand.u32 4294901760, %v2202_v44  ;;  %v233_v2 = vld [vmem:[%s24669_s9 + $0xb0] sm:$0xff]  ;;  %v234_v40 = vld [vmem:[%s24669_s9 + $0xc0] sm:$0xff] }
 0x1ac   : > { %21689 = vmatprep.mubr.f32.mxu0 %v31167_v52  ;;  %31169 = vst [vmem:[#allocation18_spill] sm:$0xff] %v26021_v39  ;;  %31170 = vst [vmem:[#allocation158_spill] sm:$0xff] %v26024_v38  ;;  %v26032_v52 = vand.u32 4294901760, %v2373_v5  ;;  %v31176_v7 = vand.u32 4294901760, %v31116_v41  ;;  %v26052_v5 = vand.u32 4294901760, %v2205_v25  ;;  %v26054_v46 = vand.u32 4294901760, %v2208_v32 }
 0x1ad   : > { %20334 = vmatmul.mubr.f32.vlgmr.msra.gmra.mrb[0].mxu1 %v2344_v48  ;;  %31171 = vst [vmem:[#allocation19_spill] sm:$0xff] %v26027_v24  ;;  %31173 = vst [vmem:[#allocation25_spill] sm:$0xff] %v26037_v53  ;;  %v31175_v48 = vand.u32 4294901760, %v31115_v14  ;;  %v2403_v14 = vsub.f32 %v25991_v17, %v26019_v55  ;;  %v26063_v41 = vand.u32 4294901760, %v26027_v24  ;;  %v31184_v55 = vand.u32 4294901760, %v31117_v21  ;;  %v235_v17 = vld [vmem:[%s24669_s9 + $0xc8] sm:$0xff] }
 0x1ae   : > { %20382 = vmatpush3.msra.mxu1 %v25837_v29  ;;  %20336 = vmatprep.mubr.f32.mxu1 %v2354_v0  ;;  %31172 = vst [vmem:[#allocation161_spill] sm:$0xff] %v26032_v52  ;;  %31174 = vst [vmem:[#allocation163_spill] sm:$0xff] %v26039_v6  ;;  %v26047_v29 = vand.u32 4294901760, %v2383_v13  ;;  %v26050_v0 = vsub.f32 %v2199_v51, %v26021_v39  ;;  %v2211_v13 = vsel %vm285_vm1, %v233_v2, 0  ;;  %v26067_v51 = vand.u32 4294901760, %v2393_v4  ;;  %v236_v21 = vld [vmem:[%s24669_s9 + $0xd8] sm:$0xff] }
 0x1af   : > { %21690 = vmatmul.mubr.f32.gmra.mrb[4].mxu0 %v31175_v48  ;;  %20431 = vmatprep.subr.mxu1 %v25816_v26  ;;  %31179 = vst [vmem:[#allocation40_spill] sm:$0xff] %v26052_v5  ;;  %31180 = vst [vmem:[#allocation46_spill] sm:$0xff] %v26054_v46  ;;  %v26060_v48 = vand.u32 4294901760, %v26024_v38  ;;  %v2214_v16 = vsel %vm285_vm1, %v234_v40, 0  ;;  %v31185_v18 = vand.u32 4294901760, %v31118_v63  ;;  %v26084_v4 = vsub.f32 %v2205_v25, %v26052_v5 }
 0x1b0   : > { %21692 = vmatprep.mubr.f32.mxu0 %v31176_v7  ;;  %31177 = vst [vmem:[#allocation165_spill] sm:$0xff] %v26047_v29  ;;  %31178 = vst [vmem:[#allocation166_spill] sm:$0xff] %v26050_v0  ;;  %v2413_v7 = vsub.f32 %v26007_v58, %v26037_v53  ;;  %v26081_v2 = vand.u32 4294901760, %v26050_v0  ;;  %v26087_v53 = vsub.f32 %v2208_v32, %v26054_v46  ;;  %v26105_v32 = vand.u32 4294901760, %v2214_v16 }
 0x1b1   : > { %20337 = vmatmul.mubr.f32.gmra.mrb[2].mxu1 %v2364_v61  ;;  %31181 = vst [vmem:[#allocation49_spill] sm:$0xff] %v26060_v48  ;;  %31182 = vst [vmem:[#allocation52_spill] sm:$0xff] %v26063_v41  ;;  %v26072_v61 = vsub.f32 %v2202_v44, %v26039_v6  ;;  %v26089_v44 = vand.u32 4294901760, %v2211_v13  ;;  %v2423_v63 = vsub.f32 %v26024_v38, %v26060_v48  ;;  %v237_v48 = vld [vmem:[%s24669_s9 + $0xe0] sm:$0xff]  ;;  %v31195_v38 = vand.u32 4294901760, %v31120_v19 }
 0x1b2   : > { %20339 = vmatprep.mubr.f32.mxu1 %v26032_v52  ;;  %31183 = vst [vmem:[#allocation57_spill] sm:$0xff] %v26067_v51  ;;  %31186 = vst [vmem:[#allocation68_spill] sm:$0xff] %v26081_v2  ;;  %v26100_v40 = vand.u32 4294901760, %v2413_v7  ;;  %v2220_v52 = vsel %vm285_vm1, %v236_v21, 0  ;;  %v2443_v7 = vsub.f32 %v26050_v0, %v26081_v2  ;;  %v26137_v2 = vsub.f32 %v2214_v16, %v26105_v32 }
 0x1b3   : > { %21693 = vmatmul.mubr.f32.gmra.mrb[6].mxu0 %v31184_v55  ;;  %31187 = vst [vmem:[#allocation173_spill] sm:$0xff] %v26084_v4  ;;  %31188 = vst [vmem:[#allocation174_spill] sm:$0xff] %v26087_v53  ;;  %v26093_v55 = vand.u32 4294901760, %v2403_v14  ;;  %v26103_v25 = vand.u32 4294901760, %v26072_v61  ;;  %v31194_v14 = vand.u32 4294901760, %v31119_v34  ;;  %v26123_v34 = vsub.f32 %v2211_v13, %v26089_v44 }
 0x1b4   : > { %21695 = vmatprep.mubr.f32.mxu0 %v31185_v18  ;;  %31189 = vst [vmem:[#allocation175_spill] sm:$0xff] %v26089_v44  ;;  %v2433_v18 = vsub.f32 %v26027_v24, %v26063_v41  ;;  %31191 = vst [vmem:[#allocation177_spill] sm:$0xff] %v26100_v40  ;;  %v26117_v41 = vand.u32 4294901760, %v26084_v4  ;;  %v26127_v21 = vand.u32 4294901760, %v2423_v63  ;;  %v26139_v0 = vand.u32 4294901760, %v2220_v52  ;;  %v239_v24 = vld [vmem:[%s24669_s9 + $0xf8] sm:$0xff] }
 0x1b5   : > { %20340 = vmatmul.mubr.f32.gmra.mrb[4].mxu1 %v26047_v29  ;;  %31190 = vst [vmem:[#allocation176_spill] sm:$0xff] %v26093_v55  ;;  %31192 = vst [vmem:[#allocation178_spill] sm:$0xff] %v26103_v25  ;;  %v2217_v29 = vsel %vm285_vm1, %v235_v17, 0  ;;  %v238_v17 = vld [vmem:[%s24669_s9 + $0xf0] sm:$0xff]  ;;  %v2223_v13 = vsel %vm285_vm1, %v237_v48, 0  ;;  %v31204_v63 = vand.u32 4294901760, %v31121_v1 }
 0x1b6   : > { %20342 = vmatprep.mubr.f32.mxu1 %v26067_v51  ;;  %31193 = vst [vmem:[#allocation179_spill] sm:$0xff] %v26105_v32  ;;  %31196 = vst [vmem:[#allocation180_spill] sm:$0xff] %v26117_v41  ;;  %v26120_v51 = vand.u32 4294901760, %v26087_v53  ;;  %v26129_v19 = vand.u32 4294901760, %v2433_v18  ;;  %v2226_v18 = vsel %vm285_vm1, %v238_v17, 0  ;;  %v31205_v58 = vand.u32 4294901760, %v31122_v20 }
 0x1b7   : > { %21696 = vmatmul.mubr.f32.gmra.mrb[8].mxu0 %v31194_v14  ;;  %31198 = vst [vmem:[#allocation182_spill] sm:$0xff] %v26123_v34  ;;  %31199 = vst [vmem:[#allocation183_spill] sm:$0xff] %v26127_v21  ;;  %v2453_v14 = vsub.f32 %v26072_v61, %v26103_v25  ;;  %v2463_v16 = vsub.f32 %v26084_v4, %v26117_v41  ;;  %v26156_v25 = vand.u32 4294901760, %v26123_v34  ;;  %v26162_v20 = vand.u32 4294901760, %v2223_v13 }
 0x1b8   : > { %21698 = vmatprep.mubr.f32.mxu0 %v31195_v38  ;;  %31197 = vst [vmem:[#allocation181_spill] sm:$0xff] %v26120_v51  ;;  %31200 = vst [vmem:[#allocation184_spill] sm:$0xff] %v26129_v19  ;;  %v26131_v38 = vand.u32 4294901760, %v2217_v29  ;;  %v2473_v48 = vsub.f32 %v26087_v53, %v26120_v51  ;;  %v26173_v51 = vsub.f32 %v2220_v52, %v26139_v0  ;;  %v26175_v41 = vand.u32 4294901760, %v2226_v18  ;;  %v242_v53 = vld [vmem:[%s24669_s9 + $0x120] sm:$0xff] }
 0x1b9   : > { %20343 = vmatmul.mubr.f32.gmra.mrb[6].mxu1 %v26093_v55  ;;  %31202 = vst [vmem:[#allocation186_spill] sm:$0xff] %v26137_v2  ;;  %31203 = vst [vmem:[#allocation187_spill] sm:$0xff] %v26139_v0  ;;  %v240_v55 = vld [vmem:[%s24669_s9 + $0x108] sm:$0xff]  ;;  %v26167_v17 = vand.u32 4294901760, %v2453_v14 }
 0x1ba   : > { %31201 = vst [vmem:[#allocation185_spill] sm:$0xff] %v26131_v38  ;;  %20345 = vmatprep.mubr.f32.mxu1 %v26100_v40  ;;  %v26149_v40 = vand.u32 4294901760, %v2443_v7  ;;  %31207 = vst [vmem:[#allocation189_spill] sm:$0xff] %v26156_v25  ;;  %v26160_v1 = vsub.f32 %v2217_v29, %v26131_v38  ;;  %v2232_v7 = vsel %vm285_vm1, %v240_v55, 0  ;;  %v241_v29 = vld [vmem:[%s24669_s9 + $0x110] sm:$0xff]  ;;  %v26183_v55 = vand.u32 4294901760, %v2463_v16 }
 0x1bb   : > { %21699 = vmatmul.mubr.f32.gmra.mrb[10].mxu0 %v31204_v63  ;;  %31209 = vst [vmem:[#allocation191_spill] sm:$0xff] %v26162_v20  ;;  %31210 = vst [vmem:[#allocation192_spill] sm:$0xff] %v26167_v17  ;;  %v26170_v63 = vand.u32 4294901760, %v26137_v2  ;;  %v26185_v14 = vand.u32 4294901760, %v2473_v48  ;;  %v26189_v4 = vand.u32 4294901760, %v2232_v7  ;;  %v26205_v48 = vand.u32 4294901760, %v26173_v51 }
 0x1bc   : > { %21701 = vmatprep.mubr.f32.mxu0 %v31205_v58  ;;  %31206 = vst [vmem:[#allocation188_spill] sm:$0xff] %v26149_v40  ;;  %31208 = vst [vmem:[#allocation190_spill] sm:$0xff] %v26160_v1  ;;  %v2229_v58 = vsel %vm285_vm1, %v239_v24, 0  ;;  %v31215_v24 = vand.u32 4294901760, %v31124_v35  ;;  %v26195_v52 = vand.u32 4294901760, %v26160_v1  ;;  %v26198_v35 = vsub.f32 %v2223_v13, %v26162_v20  ;;  %v243_v13 = vld [vmem:[%s24669_s9 + $0x128] sm:$0xff] }
 0x1bd   : > { %20346 = vmatmul.mubr.f32.gmra.mrb[8].mxu1 %v26127_v21  ;;  %31211 = vst [vmem:[#allocation193_spill] sm:$0xff] %v26170_v63  ;;  %31212 = vst [vmem:[#allocation194_spill] sm:$0xff] %v26173_v51  ;;  %v31214_v21 = vand.u32 4294901760, %v31123_v33  ;;  %v2483_v33 = vsub.f32 %v26123_v34, %v26156_v25  ;;  %v2493_v16 = vsub.f32 %v26137_v2, %v26170_v63  ;;  %v2238_v25 = vsel %vm285_vm1, %v242_v53, 0 }
 0x1be   : > { %20348 = vmatprep.mubr.f32.mxu1 %v26129_v19  ;;  %31213 = vst [vmem:[#allocation195_spill] sm:$0xff] %v26175_v41  ;;  %31216 = vst [vmem:[#allocation196_spill] sm:$0xff] %v26183_v55  ;;  %v26187_v19 = vand.u32 4294901760, %v2229_v58  ;;  %v31225_v34 = vand.u32 4294901760, %v31126_v62  ;;  %v26220_v63 = vsub.f32 %v2232_v7, %v26189_v4  ;;  %v26231_v62 = vand.u32 4294901760, %v26198_v35 }
 0x1bf   : > { %21702 = vmatmul.mubr.f32.gmra.mrb[12].mxu0 %v31214_v21  ;;  %31217 = vst [vmem:[#allocation197_spill] sm:$0xff] %v26185_v14  ;;  %31219 = vst [vmem:[#allocation199_spill] sm:$0xff] %v26189_v4  ;;  %v2235_v21 = vsel %vm285_vm1, %v241_v29, 0  ;;  %v26226_v53 = vand.u32 4294901760, %v2483_v33  ;;  %v2241_v33 = vsel %vm285_vm1, %v243_v13, 0  ;;  %v31235_v2 = vand.u32 4294901760, %v31128_v22 }
 0x1c0   : > { %21704 = vmatprep.mubr.f32.mxu0 %v31215_v24  ;;  %31218 = vst [vmem:[#allocation198_spill] sm:$0xff] %v26187_v19  ;;  %31220 = vst [vmem:[#allocation200_spill] sm:$0xff] %v26195_v52  ;;  %v26208_v24 = vsub.f32 %v2226_v18, %v26175_v41  ;;  %v26217_v29 = vsub.f32 %v2229_v58, %v26187_v19  ;;  %v244_v18 = vld [vmem:[%s24669_s9 + $0x138] sm:$0xff]  ;;  %v2513_v58 = vsub.f32 %v26173_v51, %v26205_v48  ;;  %v246_v13 = vld [vmem:[%s24669_s9 + $0x150] sm:$0xff] }
 0x1c1   : > { %20349 = vmatmul.mubr.f32.gmra.mrb[10].mxu1 %v26149_v40  ;;  %31221 = vst [vmem:[#allocation201_spill] sm:$0xff] %v26198_v35  ;;  %31222 = vst [vmem:[#allocation202_spill] sm:$0xff] %v26205_v48  ;;  %v31224_v40 = vand.u32 4294901760, %v31125_v47  ;;  %v2503_v47 = vsub.f32 %v26160_v1, %v26195_v52  ;;  %v2244_v52 = vsel %vm285_vm1, %v244_v18, 0  ;;  %v245_v1 = vld [vmem:[%s24669_s9 + $0x140] sm:$0xff]  ;;  %v26254_v48 = vand.u32 4294901760, %v26220_v63 }
 0x1c2   : > { %20351 = vmatprep.mubr.f32.mxu1 %v26167_v17  ;;  %31223 = vst [vmem:[#allocation203_spill] sm:$0xff] %v26208_v24  ;;  %31226 = vst [vmem:[#allocation204_spill] sm:$0xff] %v26217_v29  ;;  %v26222_v17 = vand.u32 4294901760, %v2235_v21  ;;  %v26241_v7 = vand.u32 4294901760, %v26208_v24  ;;  %v2523_v22 = vsub.f32 %v26198_v35, %v26231_v62  ;;  %v26271_v18 = vand.u32 4294901760, %v2513_v58 }
 0x1c3   : > { %21705 = vmatmul.mubr.f32.gmra.mrb[14].mxu0 %v31224_v40  ;;  %31227 = vst [vmem:[#allocation205_spill] sm:$0xff] %v26220_v63  ;;  %31229 = vst [vmem:[#allocation207_spill] sm:$0xff] %v26226_v53  ;;  %v26233_v40 = vand.u32 4294901760, %v2238_v25  ;;  %v26275_v51 = vand.u32 4294901760, %v2244_v52  ;;  %v31242_v35 = vand.u32 4294901760, %v31130_v28 }
 0x1c4   : > { %21707 = vmatprep.mubr.f32.mxu0 %v31225_v34  ;;  %31228 = vst [vmem:[#allocation206_spill] sm:$0xff] %v26222_v17  ;;  %31230 = vst [vmem:[#allocation208_spill] sm:$0xff] %v26231_v62  ;;  %v26236_v34 = vand.u32 4294901760, %v2493_v16  ;;  %v26251_v16 = vand.u32 4294901760, %v26217_v29  ;;  %v2250_v62 = vsel %vm285_vm1, %v246_v13, 0 }
 0x1c5   : > { %20352 = vmatmul.mubr.f32.gmra.mrb[12].mxu1 %v26183_v55  ;;  %31231 = vst [vmem:[#allocation209_spill] sm:$0xff] %v26233_v40  ;;  %31233 = vst [vmem:[#allocation211_spill] sm:$0xff] %v26241_v7  ;;  %v31234_v55 = vand.u32 4294901760, %v31127_v10  ;;  %v26261_v10 = vand.u32 4294901760, %v2503_v47  ;;  %v2247_v47 = vsel %vm285_vm1, %v245_v1, 0  ;;  %v248_v1 = vld [vmem:[%s24669_s9 + $0x168] sm:$0xff] }
 0x1c6   : > { %20354 = vmatprep.mubr.f32.mxu1 %v26185_v14  ;;  %31232 = vst [vmem:[#allocation210_spill] sm:$0xff] %v26236_v34  ;;  %31236 = vst [vmem:[#allocation212_spill] sm:$0xff] %v26251_v16  ;;  %v26257_v14 = vsub.f32 %v2235_v21, %v26222_v17  ;;  %v2533_v21 = vsub.f32 %v26208_v24, %v26241_v7  ;;  %v2543_v58 = vsub.f32 %v26217_v29, %v26251_v16 }
 0x1c7   : > { %21708 = vmatmul.mubr.f32.gmra.mrb[16].mxu0 %v31234_v55  ;;  %31237 = vst [vmem:[#allocation213_spill] sm:$0xff] %v26254_v48  ;;  %31238 = vst [vmem:[#allocation214_spill] sm:$0xff] %v26261_v10  ;;  %v26268_v55 = vand.u32 4294901760, %v2241_v33  ;;  %v2553_v7 = vsub.f32 %v26220_v63, %v26254_v48  ;;  %v26307_v48 = vsub.f32 %v2244_v52, %v26275_v51  ;;  %v26309_v16 = vand.u32 4294901760, %v2250_v62 }
 0x1c8   : > { %21710 = vmatprep.mubr.f32.mxu0 %v31235_v2  ;;  %v26266_v2 = vsub.f32 %v2238_v25, %v26233_v40  ;;  %31240 = vst [vmem:[#allocation216_spill] sm:$0xff] %v26275_v51  ;;  %v247_v25 = vld [vmem:[%s24669_s9 + $0x158] sm:$0xff]  ;;  %v26304_v13 = vand.u32 4294901760, %v2533_v21  ;;  %v2256_v63 = vsel %vm285_vm1, %v248_v1, 0  ;;  %v31250_v29 = vand.u32 4294901760, %v31132_v36 }
 0x1c9   : > { %20355 = vmatmul.mubr.f32.gmra.mrb[14].mxu1 %v26226_v53  ;;  %31239 = vst [vmem:[#allocation215_spill] sm:$0xff] %v26268_v55  ;;  %v31241_v53 = vand.u32 4294901760, %v31129_v27  ;;  %v26293_v27 = vand.u32 4294901760, %v2523_v22  ;;  %v26299_v28 = vsub.f32 %v2241_v33, %v26268_v55  ;;  %31248 = vst [vmem:[#allocation222_spill] sm:$0xff] %v26309_v16  ;;  %v2253_v22 = vsel %vm285_vm1, %v247_v25, 0  ;;  %v249_v33 = vld [vmem:[%s24669_s9 + $0x170] sm:$0xff] }
 0x1ca   : > { %20357 = vmatprep.mubr.f32.mxu1 %v26236_v34  ;;  %v26289_v34 = vand.u32 4294901760, %v26257_v14  ;;  %31247 = vst [vmem:[#allocation221_spill] sm:$0xff] %v26304_v13  ;;  %v26318_v24 = vand.u32 4294901760, %v2543_v58  ;;  %v26320_v21 = vand.u32 4294901760, %v2553_v7  ;;  %v26333_v36 = vand.u32 4294901760, %v2253_v22 }
 0x1cb   : > { %21711 = vmatmul.mubr.f32.gmra.mrb[18].mxu0 %v31241_v53  ;;  %31244 = vst [vmem:[#allocation218_spill] sm:$0xff] %v26293_v27  ;;  %v26296_v53 = vand.u32 4294901760, %v26266_v2  ;;  %v26340_v7 = vsub.f32 %v2250_v62, %v26309_v16  ;;  %v26342_v58 = vand.u32 4294901760, %v2256_v63  ;;  %v2259_v1 = vsel %vm285_vm1, %v249_v33, 0 }
 0x1cc   : > { %21713 = vmatprep.mubr.f32.mxu0 %v31242_v35  ;;  %31243 = vst [vmem:[#allocation217_spill] sm:$0xff] %v26289_v34  ;;  %v26301_v35 = vand.u32 4294901760, %v2247_v47  ;;  %31251 = vst [vmem:[#allocation223_spill] sm:$0xff] %v26320_v21  ;;  %v2563_v52 = vsub.f32 %v26257_v14, %v26289_v34  ;;  %v26360_v33 = vand.u32 4294901760, %v2259_v1 }
 0x1cd   : > { %20358 = vmatmul.mubr.f32.gmra.mrb[16].mxu1 %v26261_v10  ;;  %31245 = vst [vmem:[#allocation219_spill] sm:$0xff] %v26296_v53  ;;  %v31249_v10 = vand.u32 4294901760, %v31131_v57  ;;  %v2573_v25 = vsub.f32 %v26266_v2, %v26296_v53  ;;  %v26328_v57 = vand.u32 4294901760, %v26299_v28  ;;  %31253 = vst [vmem:[#allocation225_spill] sm:$0xff] %v26333_v36  ;;  %v31256_v53 = vand.u32 4294901760, %v31133_v50 }
 0x1ce   : > { %31246 = vst [vmem:[#allocation220_spill] sm:$0xff] %v26301_v35  ;;  %20360 = vmatprep.mubr.f32.mxu1 %v26271_v18  ;;  %31255 = vst [vmem:[#allocation227_spill] sm:$0xff] %v26342_v58  ;;  %v26349_v34 = vand.u32 4294901760, %v2563_v52  ;;  %v26371_v52 = vsub.f32 %v2256_v63, %v26342_v58 }
 0x1cf   : > { %21714 = vmatmul.mubr.f32.gmra.mrb[20].mxu0 %v31249_v10  ;;  %31252 = vst [vmem:[#allocation224_spill] sm:$0xff] %v26328_v57  ;;  %v26331_v10 = vsub.f32 %v2247_v47, %v26301_v35  ;;  %v31257_v47 = vand.u32 4294901760, %v31134_v43  ;;  %31260 = vst [vmem:[#allocation230_spill] sm:$0xff] %v26360_v33  ;;  %v26363_v50 = vand.u32 4294901760, %v2573_v25 }
 0x1d0   : > { %21716 = vmatprep.mubr.f32.mxu0 %v31250_v29  ;;  %v26337_v29 = vand.u32 4294901760, %v26307_v48  ;;  %31262 = vst [vmem:[#allocation232_spill] sm:$0xff] %v26371_v52  ;;  %v26394_v63 = vand.u32 4294901760, %v26371_v52 }
 0x1d1   : > { %20361 = vmatmul.mubr.f32.gmra.mrb[18].mxu1 %v26293_v27  ;;  %v26355_v62 = vand.u32 4294901760, %v26331_v10  ;;  %v26358_v27 = vsub.f32 %v2253_v22, %v26333_v36  ;;  %v31264_v22 = vand.u32 4294901760, %v25668_v15 }
 0x1d2   : > { %20363 = vmatprep.mubr.f32.mxu1 %v26304_v13  ;;  %31254 = vst [vmem:[#allocation226_spill] sm:$0xff] %v26337_v29  ;;  %v2583_v13 = vsub.f32 %v26299_v28, %v26328_v57  ;;  %v2593_v43 = vsub.f32 %v26307_v48, %v26337_v29  ;;  %31267 = vst [vmem:[#allocation235_spill] sm:$0xff] %v26394_v63 }
 0x1d3   : > { %21717 = vmatmul.mubr.f32.gmra.mrb[22].mxu0 %v31256_v53  ;;  %31258 = vst [vmem:[#allocation228_spill] sm:$0xff] %v26355_v62  ;;  %31259 = vst [vmem:[#allocation229_spill] sm:$0xff] %v26358_v27  ;;  %v26368_v53 = vand.u32 4294901760, %v26340_v7  ;;  %v2603_v25 = vsub.f32 %v26331_v10, %v26355_v62  ;;  %v26383_v29 = vand.u32 4294901760, %v26358_v27  ;;  %v31287_v62 = vld [vmem:[#allocation145_spill] sm:$0xff] }
 0x1d4   : > { %21719 = vmatprep.mubr.f32.mxu0 %v31257_v47  ;;  %v31263_v47 = vand.u32 4294901760, %v31136_v9  ;;  %v26378_v57 = vand.u32 4294901760, %v2583_v13  ;;  %v26389_v9 = vand.u32 4294901760, %v2593_v43  ;;  %v31268_v13 = vand.u32 4294901760, %v25685_v45 }
 0x1d5   : > { %20364 = vmatmul.mubr.f32.gmra.mrb[20].mxu1 %v26318_v24  ;;  %31261 = vst [vmem:[#allocation231_spill] sm:$0xff] %v26368_v53  ;;  %31265 = vst [vmem:[#allocation233_spill] sm:$0xff] %v26383_v29  ;;  %v2613_v15 = vsub.f32 %v26340_v7, %v26368_v53  ;;  %v2623_v43 = vsub.f32 %v26358_v27, %v26383_v29  ;;  %v2633_v45 = vsub.f32 %v26371_v52, %v26394_v63  ;;  %v31285_v29 = vld [vmem:[#allocation115_spill] sm:$0xff] }
 0x1d6   : > { %20366 = vmatprep.mubr.f32.mxu1 %v26320_v21  ;;  %v26386_v21 = vsub.f32 %v2259_v1, %v26360_v33  ;;  %v26401_v1 = vand.u32 4294901760, %v2603_v25  ;;  %v18178_v25 = vld [vmem:[%s29823_s1 + $0x18] sm:$0xf] }
 0x1d7   : > { %21720 = vmatmul.mubr.f32.gmra.mrb[24].mxu0 %v31263_v47  ;;  %v31269_v47 = vand.u32 4294901760, %v31140_v56  ;;  %v26409_v53 = vand.u32 4294901760, %v2613_v15  ;;  %v31271_v56 = vand.u32 4294901760, %v25703_v12  ;;  %v26426_v63 = vand.u32 4294901760, %v2633_v45  ;;  %v31278_v45 = vld [vmem:[#allocation137_spill] sm:$0xff] }
 0x1d8   : > { %21722 = vmatprep.mubr.f32.mxu0 %v31264_v22  ;;  %31266 = vst [vmem:[#allocation234_spill] sm:$0xff] %v26386_v21  ;;  %v26406_v22 = vand.u32 4294901760, %v26386_v21  ;;  %v11952_v12 = vsel %vm382_vm0, %v18178_v25, 0  ;;  %v31279_v25 = vld [vmem:[#allocation89_spill] sm:$0xff] }
 0x1d9   : > { %20367 = vmatmul.mubr.f32.gmra.mrb[22].mxu1 %v26349_v34  ;;  %31274 = vst [vmem:[#allocation238_spill] sm:$0xff] %v26426_v63 }
 0x1da   : > { %20369 = vmatprep.mubr.f32.mxu1 %v26363_v50  ;;  %31270 = vst [vmem:[#allocation236_spill] sm:$0xff] %v26406_v22  ;;  %v2643_v15 = vsub.f32 %v26386_v21, %v26406_v22  ;;  %v31284_v22 = vld [vmem:[#allocation105_spill] sm:$0xff] }
 0x1db   : > { %21723 = vmatmul.mubr.f32.gmra.mrb[26].mxu0 %v31268_v13  ;;  %v31272_v13 = vand.u32 4294901760, %v25712_v49 }
 0x1dc   : > { %21725 = vmatprep.mubr.f32.mxu0 %v31269_v47  ;;  %v26421_v47 = vand.u32 4294901760, %v2623_v43  ;;  %v26433_v49 = vand.u32 4294901760, %v2643_v15  ;;  %v26435_v43 = vand.u32 4294901760, %v11952_v12  ;;  %v31281_v15 = vld [vmem:[#allocation139_spill] sm:$0xff] }
 0x1dd   : > { %20370 = vmatmul.mubr.f32.gmra.mrb[24].mxu1 %v26378_v57 }
 0x1de   : > { %20372 = vmatprep.mubr.f32.mxu1 %v26389_v9  ;;  %31273 = vst [vmem:[#allocation237_spill] sm:$0xff] %v26421_v47  ;;  %31276 = vst [vmem:[#allocation239_spill] sm:$0xff] %v26433_v49 }
 0x1df   : > { %21726 = vmatmul.mubr.f32.gmra.mrb[28].mxu0 %v31271_v56  ;;  %v31275_v56 = vand.u32 4294901760, %v25721_v31  ;;  %v31277_v31 = vld [vmem:[#allocation135_spill] sm:$0xff] }
 0x1e0   : > { %21728 = vmatprep.mubr.f32.mxu0 %v31272_v13  ;;  %v31280_v13 = vld [vmem:[#allocation97_spill] sm:$0xff] }
 0x1e1   : > { %20373 = vmatmul.mubr.f32.gmra.mrb[26].mxu1 %v26401_v1 }
 0x1e2   : > { %20375 = vmatprep.mubr.f32.mxu1 %v26409_v53 }
 0x1e3   : > { %21729 = vmatmul.mubr.f32.gmra.mrb[30].mxu0 %v31275_v56  ;;  %v31282_v56 = vld [vmem:[#allocation76_spill] sm:$0xff] }
 0x1e4   : > { %21733 = vmatprep.mubr.f32.mxu0 %v25339_v30 }
 0x1e5   : > { %20376 = vmatmul.mubr.f32.gmra.mrb[28].mxu1 %v26421_v47  ;;  %v31312_v47 = vld [vmem:[#allocation172_spill] sm:$0xff] }
 0x1e6   : > { %20378 = vmatprep.mubr.f32.mxu1 %v26426_v63  ;;  %v31292_v63 = vld [vmem:[#allocation150_spill] sm:$0xff] }
 0x1e7   : > { %21734 = vmatmul.mubr.f32.vlgmr.msra.gmra.mrb[0].mxu0 %v25348_v54 }
 0x1e8   : > { %21736 = vmatprep.mubr.f32.mxu0 %v25354_v3  ;;  %21782 = vmatpush3.msra.mxu0 %v25209_v8  ;;  %v31283_v8 = vld [vmem:[#allocation141_spill] sm:$0xff] }
 0x1e9   : > { %20379 = vmatmul.mubr.f32.gmra.mrb[30].mxu1 %v26433_v49  ;;  %21831 = vmatprep.subr.mxu0 %v26435_v43  ;;  %v31288_v49 = vld [vmem:[#allocation133_spill] sm:$0xff] }
 0x1ea   : > { %20383 = vmatprep.mubr.f32.mxu1 %v25887_v23  ;;  %v31286_v23 = vld [vmem:[#allocation143_spill] sm:$0xff] }
 0x1eb   : > { %21737 = vmatmul.mubr.f32.gmra.mrb[2].mxu0 %v31277_v31 }
 0x1ec   : > { %21739 = vmatprep.mubr.f32.mxu0 %v31278_v45 }
 0x1ed   : > { %20384 = vmatmul.mubr.f32.vlgmr.msra.gmra.mrb[0].mxu1 %v31279_v25  ;;  %v31291_v25 = vld [vmem:[#allocation132_spill] sm:$0xff] }
 0x1ee   : > { %20432 = vmatpush3.msra.mxu1 %v25816_v26  ;;  %20386 = vmatprep.mubr.f32.mxu1 %v31280_v13  ;;  %v31289_v26 = vld [vmem:[#allocation147_spill] sm:$0xff]  ;;  %v31290_v13 = vld [vmem:[#allocation148_spill] sm:$0xff] }
 0x1ef   : > { %21740 = vmatmul.mubr.f32.gmra.mrb[4].mxu0 %v31281_v15  ;;  %20481 = vmatprep.subr.mxu1 %v31282_v56 }
 0x1f0   : > { %21742 = vmatprep.mubr.f32.mxu0 %v31283_v8 }
 0x1f1   : > { %20387 = vmatmul.mubr.f32.gmra.mrb[2].mxu1 %v31284_v22  ;;  %v31293_v22 = vld [vmem:[#allocation153_spill] sm:$0xff] }
 0x1f2   : > { %20389 = vmatprep.mubr.f32.mxu1 %v31285_v29  ;;  %v31294_v29 = vld [vmem:[#allocation155_spill] sm:$0xff] }
 0x1f3   : > { %21743 = vmatmul.mubr.f32.gmra.mrb[6].mxu0 %v31286_v23 }
 0x1f4   : > { %21745 = vmatprep.mubr.f32.mxu0 %v31287_v62 }
 0x1f5   : > { %20390 = vmatmul.mubr.f32.gmra.mrb[4].mxu1 %v31288_v49  ;;  %v31295_v49 = vld [vmem:[#allocation156_spill] sm:$0xff] }
 0x1f6   : > { %20392 = vmatprep.mubr.f32.mxu1 %v25946_v42  ;;  %v31296_v42 = vld [vmem:[#allocation159_spill] sm:$0xff] }
 0x1f7   : > { %21746 = vmatmul.mubr.f32.gmra.mrb[8].mxu0 %v31289_v26 }
 0x1f8   : > { %21748 = vmatprep.mubr.f32.mxu0 %v31290_v13 }
 0x1f9   : > { %20393 = vmatmul.mubr.f32.gmra.mrb[6].mxu1 %v31291_v25  ;;  %v31297_v25 = vld [vmem:[#allocation160_spill] sm:$0xff] }
 0x1fa   : > { %20395 = vmatprep.mubr.f32.mxu1 %v25974_v60  ;;  %v31298_v60 = vld [vmem:[#allocation24_spill] sm:$0xff] }
 0x1fb   : > { %21749 = vmatmul.mubr.f32.gmra.mrb[10].mxu0 %v31292_v63 }
 0x1fc   : > { %21751 = vmatprep.mubr.f32.mxu0 %v31293_v22 }
 0x1fd   : > { %20396 = vmatmul.mubr.f32.gmra.mrb[8].mxu1 %v25995_v59  ;;  %v31299_v59 = vld [vmem:[#allocation162_spill] sm:$0xff] }
 0x1fe   : > { %20398 = vmatprep.mubr.f32.mxu1 %v25997_v11  ;;  %v31300_v11 = vld [vmem:[#allocation26_spill] sm:$0xff] }
 0x1ff   : > { %21752 = vmatmul.mubr.f32.gmra.mrb[12].mxu0 %v31294_v29 }
 0x200   : > { %21754 = vmatprep.mubr.f32.mxu0 %v31295_v49 }
 0x201   : > { %20399 = vmatmul.mubr.f32.gmra.mrb[10].mxu1 %v26021_v39  ;;  %v31301_v39 = vld [vmem:[#allocation164_spill] sm:$0xff] }
 0x202   : > { %20401 = vmatprep.mubr.f32.mxu1 %v26039_v6  ;;  %v31302_v6 = vld [vmem:[#allocation31_spill] sm:$0xff] }
 0x203   : > { %21755 = vmatmul.mubr.f32.gmra.mrb[14].mxu0 %v31296_v42 }
 0x204   : > { %21757 = vmatprep.mubr.f32.mxu0 %v31297_v25 }
 0x205   : > { %20402 = vmatmul.mubr.f32.gmra.mrb[12].mxu1 %v26052_v5  ;;  %v31303_v5 = vld [vmem:[#allocation37_spill] sm:$0xff] }
 0x206   : > { %20404 = vmatprep.mubr.f32.mxu1 %v26054_v46  ;;  %v31304_v46 = vld [vmem:[#allocation167_spill] sm:$0xff] }
 0x207   : > { %21758 = vmatmul.mubr.f32.gmra.mrb[16].mxu0 %v31298_v60 }
 0x208   : > { %21760 = vmatprep.mubr.f32.mxu0 %v31299_v59 }
 0x209   : > { %20405 = vmatmul.mubr.f32.gmra.mrb[14].mxu1 %v26089_v44  ;;  %v31305_v44 = vld [vmem:[#allocation168_spill] sm:$0xff] }
 0x20a   : > { %20407 = vmatprep.mubr.f32.mxu1 %v26105_v32  ;;  %v31306_v32 = vld [vmem:[#allocation169_spill] sm:$0xff] }
 0x20b   : > { %21761 = vmatmul.mubr.f32.gmra.mrb[18].mxu0 %v31300_v11 }
 0x20c   : > { %21763 = vmatprep.mubr.f32.mxu0 %v31301_v39 }
 0x20d   : > { %20408 = vmatmul.mubr.f32.gmra.mrb[16].mxu1 %v26131_v38  ;;  %v31307_v38 = vld [vmem:[#allocation170_spill] sm:$0xff] }
 0x20e   : > { %20410 = vmatprep.mubr.f32.mxu1 %v26139_v0  ;;  %v26494_v0 = vsub.f32 %v11952_v12, %v26435_v43 }
 0x20f   : > { %21764 = vmatmul.mubr.f32.gmra.mrb[20].mxu0 %v31302_v6 }
 0x210   : > { %21766 = vmatprep.mubr.f32.mxu0 %v31303_v5 }
 0x211   : > { %20411 = vmatmul.mubr.f32.gmra.mrb[18].mxu1 %v26162_v20  ;;  %v31309_v20 = vld [vmem:[#allocation171_spill] sm:$0xff] }
 0x212   : > { %20413 = vmatprep.mubr.f32.mxu1 %v26175_v41  ;;  %v31308_v41 = vld [vmem:[#allocation60_spill] sm:$0xff] }
 0x213   : > { %21767 = vmatmul.mubr.f32.gmra.mrb[22].mxu0 %v31304_v46 }
 0x214   : > { %21769 = vmatprep.mubr.f32.mxu0 %v31305_v44 }
 0x215   : > { %20414 = vmatmul.mubr.f32.gmra.mrb[20].mxu1 %v26187_v19  ;;  %v26501_v19 = vand.u32 4294901760, %v26494_v0 }
 0x216   : > { %20416 = vmatprep.mubr.f32.mxu1 %v26189_v4  ;;  %v31311_v4 = vld [vmem:[#allocation65_spill] sm:$0xff] }
 0x217   : > { %21770 = vmatmul.mubr.f32.gmra.mrb[24].mxu0 %v31306_v32  ;;  %31310 = vst [vmem:[#allocation135_spill] sm:$0xff] %v26501_v19  ;;  %v12344_v12 = vsub.f32 %v26494_v0, %v26501_v19  ;;  %v31314_v19 = vld [vmem:[#allocation92_spill] sm:$0xff] }
 0x218   : > { %21772 = vmatprep.mubr.f32.mxu0 %v31307_v38 }
 0x219   : > { %20417 = vmatmul.mubr.f32.gmra.mrb[22].mxu1 %v26222_v17 }
 0x21a   : > { %20419 = vmatprep.mubr.f32.mxu1 %v26233_v40  ;;  %v31313_v40 = vld [vmem:[#allocation73_spill] sm:$0xff] }
 0x21b   : > { %21773 = vmatmul.mubr.f32.gmra.mrb[26].mxu0 %v31308_v41 }
 0x21c   : > { %21775 = vmatprep.mubr.f32.mxu0 %v31309_v20 }
 0x21d   : > { %20420 = vmatmul.mubr.f32.gmra.mrb[24].mxu1 %v26268_v55  ;;  %v26513_v55 = vand.u32 4294901760, %v12344_v12  ;;  %v31316_v12 = vld [vmem:[#allocation108_spill] sm:$0xff] }
 0x21e   : > { %20422 = vmatprep.mubr.f32.mxu1 %v26275_v51 }
 0x21f   : > { %21776 = vmatmul.mubr.f32.gmra.mrb[28].mxu0 %v31311_v4 }
 0x220   : > { %21778 = vmatprep.mubr.f32.mxu0 %v31312_v47 }
 0x221   : > { %20423 = vmatmul.mubr.f32.gmra.mrb[26].mxu1 %v26301_v35 }
 0x222   : > { %20425 = vmatprep.mubr.f32.mxu1 %v26309_v16 }
 0x223   : > { %21779 = vmatmul.mubr.f32.gmra.mrb[30].mxu0 %v31313_v40 }
 0x224   : > { %21783 = vmatprep.mubr.f32.mxu0 %v25339_v30  ;;  %v31315_v30 = vld [vmem:[#allocation100_spill] sm:$0xff] }
 0x225   : > { %20426 = vmatmul.mubr.f32.gmra.mrb[28].mxu1 %v26333_v36 }
 0x226   : > { %20428 = vmatprep.mubr.f32.mxu1 %v26342_v58 }
 0x227   : > { %21784 = vmatmul.mubr.f32.vlgmr.msra.gmra.mrb[0].mxu0 %v25348_v54  ;;  %v31318_v54 = vld [vmem:[#allocation122_spill] sm:$0xff] }
 0x228   : > { %21786 = vmatprep.mubr.f32.mxu0 %v25354_v3  ;;  %21832 = vmatpush3.msra.mxu0 %v26435_v43  ;;  %v31317_v3 = vld [vmem:[#allocation81_spill] sm:$0xff] }
 0x229   : > { %20429 = vmatmul.mubr.f32.gmra.mrb[30].mxu1 %v26360_v33  ;;  %21881 = vmatprep.subr.mxu0 %v26513_v55  ;;  %v31319_v33 = vld [vmem:[#allocation134_spill] sm:$0xff] }
 0x22a   : > { %20433 = vmatprep.mubr.f32.mxu1 %v31314_v19 }
 0x22b   : > { %21787 = vmatmul.mubr.f32.gmra.mrb[2].mxu0 %v31277_v31  ;;  %v31320_v31 = vld [vmem:[#allocation140_spill] sm:$0xff] }
 0x22c   : > { %21789 = vmatprep.mubr.f32.mxu0 %v31278_v45  ;;  %v31321_v45 = vld [vmem:[#allocation146_spill] sm:$0xff] }
 0x22d   : > { %20434 = vmatmul.mubr.f32.vlgmr.msra.gmra.mrb[0].mxu1 %v31315_v30 }
 0x22e   : > { %20482 = vmatpush3.msra.mxu1 %v31282_v56  ;;  %20436 = vmatprep.mubr.f32.mxu1 %v31316_v12 }
 0x22f   : > { %21790 = vmatmul.mubr.f32.gmra.mrb[4].mxu0 %v31281_v15  ;;  %20531 = vmatprep.subr.mxu1 %v31317_v3  ;;  %v31322_v15 = vld [vmem:[#allocation154_spill] sm:$0xff] }
 0x230   : > { %21792 = vmatprep.mubr.f32.mxu0 %v31283_v8  ;;  %v31323_v8 = vld [vmem:[#allocation158_spill] sm:$0xff] }
 0x231   : > { %20437 = vmatmul.mubr.f32.gmra.mrb[2].mxu1 %v31318_v54 }
 0x232   : > { %20439 = vmatprep.mubr.f32.mxu1 %v31319_v33 }
 0x233   : > { %21793 = vmatmul.mubr.f32.gmra.mrb[6].mxu0 %v31286_v23  ;;  %v31324_v23 = vld [vmem:[#allocation19_spill] sm:$0xff] }
 0x234   : > { %21795 = vmatprep.mubr.f32.mxu0 %v31287_v62  ;;  %v31325_v62 = vld [vmem:[#allocation166_spill] sm:$0xff] }
 0x235   : > { %20440 = vmatmul.mubr.f32.gmra.mrb[4].mxu1 %v25956_v37 }
 0x236   : > { %20442 = vmatprep.mubr.f32.mxu1 %v31320_v31 }
 0x237   : > { %21796 = vmatmul.mubr.f32.gmra.mrb[8].mxu0 %v31289_v26  ;;  %v31350_v26 = vld [vmem:[#allocation144_spill] sm:$0xff] }
 0x238   : > { %21798 = vmatprep.mubr.f32.mxu0 %v31290_v13  ;;  %v31326_v13 = vld [vmem:[#allocation173_spill] sm:$0xff] }
 0x239   : > { %20443 = vmatmul.mubr.f32.gmra.mrb[6].mxu1 %v31321_v45 }
 0x23a   : > { %20445 = vmatprep.mubr.f32.mxu1 %v31322_v15 }
 0x23b   : > { %21799 = vmatmul.mubr.f32.gmra.mrb[10].mxu0 %v31292_v63  ;;  %v31327_v63 = vld [vmem:[#allocation174_spill] sm:$0xff] }
 0x23c   : > { %21801 = vmatprep.mubr.f32.mxu0 %v31293_v22  ;;  %v31328_v22 = vld [vmem:[#allocation182_spill] sm:$0xff] }
 0x23d   : > { %20446 = vmatmul.mubr.f32.gmra.mrb[8].mxu1 %v31323_v8 }
 0x23e   : > { %20448 = vmatprep.mubr.f32.mxu1 %v31324_v23 }
 0x23f   : > { %21802 = vmatmul.mubr.f32.gmra.mrb[12].mxu0 %v31294_v29  ;;  %v31329_v29 = vld [vmem:[#allocation186_spill] sm:$0xff] }
 0x240   : > { %21804 = vmatprep.mubr.f32.mxu0 %v31295_v49  ;;  %v31330_v49 = vld [vmem:[#allocation190_spill] sm:$0xff] }
 0x241   : > { %20449 = vmatmul.mubr.f32.gmra.mrb[10].mxu1 %v31325_v62 }
 0x242   : > { %20451 = vmatprep.mubr.f32.mxu1 %v26072_v61 }
 0x243   : > { %21805 = vmatmul.mubr.f32.gmra.mrb[14].mxu0 %v31296_v42  ;;  %v31331_v42 = vld [vmem:[#allocation194_spill] sm:$0xff] }
 0x244   : > { %21807 = vmatprep.mubr.f32.mxu0 %v31297_v25  ;;  %v31332_v25 = vld [vmem:[#allocation201_spill] sm:$0xff] }
 0x245   : > { %20452 = vmatmul.mubr.f32.gmra.mrb[12].mxu1 %v31326_v13 }
 0x246   : > { %20454 = vmatprep.mubr.f32.mxu1 %v31327_v63 }
 0x247   : > { %21808 = vmatmul.mubr.f32.gmra.mrb[16].mxu0 %v31298_v60  ;;  %v31333_v60 = vld [vmem:[#allocation203_spill] sm:$0xff] }
 0x248   : > { %21810 = vmatprep.mubr.f32.mxu0 %v31299_v59  ;;  %v31334_v59 = vld [vmem:[#allocation204_spill] sm:$0xff] }
 0x249   : > { %20455 = vmatmul.mubr.f32.gmra.mrb[14].mxu1 %v31328_v22 }
 0x24a   : > { %20457 = vmatprep.mubr.f32.mxu1 %v31329_v29 }
 0x24b   : > { %21811 = vmatmul.mubr.f32.gmra.mrb[18].mxu0 %v31300_v11  ;;  %v31335_v11 = vld [vmem:[#allocation205_spill] sm:$0xff] }
 0x24c   : > { %21813 = vmatprep.mubr.f32.mxu0 %v31301_v39  ;;  %v31336_v39 = vld [vmem:[#allocation161_spill] sm:$0xff] }
 0x24d   : > { %20458 = vmatmul.mubr.f32.gmra.mrb[16].mxu1 %v31330_v49 }
 0x24e   : > { %20460 = vmatprep.mubr.f32.mxu1 %v31331_v42 }
 0x24f   : > { %21814 = vmatmul.mubr.f32.gmra.mrb[20].mxu0 %v31302_v6  ;;  %v31337_v6 = vld [vmem:[#allocation165_spill] sm:$0xff] }
 0x250   : > { %21816 = vmatprep.mubr.f32.mxu0 %v31303_v5  ;;  %v31338_v5 = vld [vmem:[#allocation57_spill] sm:$0xff] }
 0x251   : > { %20461 = vmatmul.mubr.f32.gmra.mrb[18].mxu1 %v31332_v25 }
 0x252   : > { %20463 = vmatprep.mubr.f32.mxu1 %v31333_v60 }
 0x253   : > { %21817 = vmatmul.mubr.f32.gmra.mrb[22].mxu0 %v31304_v46  ;;  %v31339_v46 = vand.u32 4294901760, %v31314_v19  ;;  %v31346_v19 = vand.u32 4294901760, %v31318_v54  ;;  %v31355_v54 = vld [vmem:[#allocation25_spill] sm:$0xff] }
 0x254   : > { %21819 = vmatprep.mubr.f32.mxu0 %v31305_v44  ;;  %v31342_v44 = vand.u32 4294901760, %v31315_v30  ;;  %v31351_v30 = vld [vmem:[#allocation152_spill] sm:$0xff] }
 0x255   : > { %20464 = vmatmul.mubr.f32.gmra.mrb[20].mxu1 %v31334_v59 }
 0x256   : > { %20466 = vmatprep.mubr.f32.mxu1 %v31335_v11 }
 0x257   : > { %21820 = vmatmul.mubr.f32.gmra.mrb[24].mxu0 %v31306_v32  ;;  %v31343_v32 = vand.u32 4294901760, %v31316_v12  ;;  %v31352_v12 = vld [vmem:[#allocation196_spill] sm:$0xff] }
 0x258   : > { %21822 = vmatprep.mubr.f32.mxu0 %v31307_v38  ;;  %v31344_v38 = vld [vmem:[#allocation183_spill] sm:$0xff] }
 0x259   : > { %20467 = vmatmul.mubr.f32.gmra.mrb[22].mxu1 %v26257_v14 }
 0x25a   : > { %20469 = vmatprep.mubr.f32.mxu1 %v26266_v2 }
 0x25b   : > { %21823 = vmatmul.mubr.f32.gmra.mrb[26].mxu0 %v31308_v41  ;;  %v31340_v41 = vld [vmem:[#allocation176_spill] sm:$0xff] }
 0x25c   : > { %21825 = vmatprep.mubr.f32.mxu0 %v31309_v20  ;;  %v31345_v20 = vld [vmem:[#allocation184_spill] sm:$0xff] }
 0x25d   : > { %20470 = vmatmul.mubr.f32.gmra.mrb[24].mxu1 %v26299_v28 }
 0x25e   : > { %20472 = vmatprep.mubr.f32.mxu1 %v26307_v48 }
 0x25f   : > { %21826 = vmatmul.mubr.f32.gmra.mrb[28].mxu0 %v31311_v4  ;;  %v31341_v4 = vld [vmem:[#allocation177_spill] sm:$0xff] }
 0x260   : > { %21828 = vmatprep.mubr.f32.mxu0 %v31312_v47  ;;  %v31349_v47 = vld [vmem:[#allocation192_spill] sm:$0xff] }
 0x261   : > { %20473 = vmatmul.mubr.f32.gmra.mrb[26].mxu1 %v26331_v10 }
 0x262   : > { %20475 = vmatprep.mubr.f32.mxu1 %v26340_v7 }
 0x263   : > { %21829 = vmatmul.mubr.f32.gmra.mrb[30].mxu0 %v31313_v40  ;;  %v31347_v40 = vld [vmem:[#allocation138_spill] sm:$0xff] }
 0x264   : > { %21833 = vmatprep.mubr.f32.mxu0 %v31336_v39  ;;  %v31354_v39 = vld [vmem:[#allocation157_spill] sm:$0xff] }
 0x265   : > { %20476 = vmatmul.mubr.f32.gmra.mrb[28].mxu1 %v26358_v27  ;;  %v31421_v27 = vld [vmem:[#allocation230_spill] sm:$0xff] }
 0x266   : > { %20478 = vmatprep.mubr.f32.mxu1 %v26371_v52  ;;  %v31420_v52 = vld [vmem:[#allocation215_spill] sm:$0xff] }
 0x267   : > { %21834 = vmatmul.mubr.f32.vlgmr.msra.gmra.mrb[0].mxu0 %v31337_v6  ;;  %v31356_v6 = vld [vmem:[#allocation207_spill] sm:$0xff] }
 0x268   : > { %21836 = vmatprep.mubr.f32.mxu0 %v31338_v5  ;;  %21882 = vmatpush3.msra.mxu0 %v26513_v55  ;;  %v31348_v55 = vld [vmem:[#allocation188_spill] sm:$0xff]  ;;  %v31357_v5 = vld [vmem:[#allocation210_spill] sm:$0xff] }
 0x269   : > { %20479 = vmatmul.mubr.f32.gmra.mrb[30].mxu1 %v26386_v21  ;;  %21931 = vmatprep.subr.mxu0 %v26494_v0  ;;  %v31419_v21 = vld [vmem:[#allocation209_spill] sm:$0xff] }
 0x26a   : > { %20483 = vmatprep.mubr.f32.mxu1 %v31339_v46  ;;  %v31358_v46 = vld [vmem:[#allocation49_spill] sm:$0xff] }
 0x26b   : > { %21837 = vmatmul.mubr.f32.gmra.mrb[2].mxu0 %v31340_v41  ;;  %v31359_v41 = vld [vmem:[#allocation52_spill] sm:$0xff] }
 0x26c   : > { %21839 = vmatprep.mubr.f32.mxu0 %v31341_v4  ;;  %v31360_v4 = vld [vmem:[#allocation214_spill] sm:$0xff] }
 0x26d   : > { %20484 = vmatmul.mubr.f32.vlgmr.msra.gmra.mrb[0].mxu1 %v31342_v44  ;;  %v31361_v44 = vld [vmem:[#allocation68_spill] sm:$0xff] }
 0x26e   : > { %20532 = vmatpush3.msra.mxu1 %v31317_v3  ;;  %20486 = vmatprep.mubr.f32.mxu1 %v31343_v32  ;;  %v31353_v3 = vld [vmem:[#allocation197_spill] sm:$0xff]  ;;  %v31362_v32 = vld [vmem:[#allocation178_spill] sm:$0xff] }
 0x26f   : > { %21840 = vmatmul.mubr.f32.gmra.mrb[4].mxu0 %v31344_v38  ;;  %20581 = vmatprep.subr.mxu1 %v31282_v56  ;;  %v18174_v38 = vld [vmem:[%s24669_s9 + $0x180] sm:$0xff] }
 0x270   : > { %21842 = vmatprep.mubr.f32.mxu0 %v31345_v20  ;;  %v31363_v20 = vld [vmem:[#allocation218_spill] sm:$0xff] }
 0x271   : > { %20487 = vmatmul.mubr.f32.gmra.mrb[2].mxu1 %v31346_v19  ;;  %v31364_v19 = vld [vmem:[#allocation221_spill] sm:$0xff] }
 0x272   : > { %20489 = vmatprep.mubr.f32.mxu1 %v31347_v40  ;;  %v31414_v40 = vld [vmem:[#allocation187_spill] sm:$0xff] }
 0x273   : > { %21843 = vmatmul.mubr.f32.gmra.mrb[6].mxu0 %v31348_v55  ;;  %v31365_v55 = vld [vmem:[#allocation180_spill] sm:$0xff] }
 0x274   : > { %21845 = vmatprep.mubr.f32.mxu0 %v31349_v47  ;;  %v11940_v47 = vsel %vm285_vm1, %v18174_v38, 0 }
 0x275   : > { %20490 = vmatmul.mubr.f32.gmra.mrb[4].mxu1 %v31350_v26  ;;  %v31413_v26 = vld [vmem:[#allocation185_spill] sm:$0xff] }
 0x276   : > { %20492 = vmatprep.mubr.f32.mxu1 %v31351_v30  ;;  %v31412_v30 = vld [vmem:[#allocation179_spill] sm:$0xff] }
 0x277   : > { %21846 = vmatmul.mubr.f32.gmra.mrb[8].mxu0 %v31352_v12  ;;  %v18175_v12 = vld [vmem:[%s24669_s9 + $0x188] sm:$0xff] }
 0x278   : > { %21848 = vmatprep.mubr.f32.mxu0 %v31353_v3  ;;  %v31366_v3 = vld [vmem:[#allocation181_spill] sm:$0xff] }
 0x279   : > { %20493 = vmatmul.mubr.f32.gmra.mrb[6].mxu1 %v31354_v39  ;;  %v31411_v39 = vld [vmem:[#allocation175_spill] sm:$0xff] }
 0x27a   : > { %20495 = vmatprep.mubr.f32.mxu1 %v31355_v54  ;;  %v31410_v54 = vld [vmem:[#allocation46_spill] sm:$0xff] }
 0x27b   : > { %21849 = vmatmul.mubr.f32.gmra.mrb[10].mxu0 %v31356_v6  ;;  %v18176_v6 = vld [vmem:[%s24669_s9 + $0x198] sm:$0xff] }
 0x27c   : > { %21851 = vmatprep.mubr.f32.mxu0 %v31357_v5  ;;  %v26630_v5 = vand.u32 4294901760, %v11940_v47 }
 0x27d   : > { %20496 = vmatmul.mubr.f32.gmra.mrb[8].mxu1 %v31358_v46  ;;  %v31389_v46 = vld [vmem:[#allocation224_spill] sm:$0xff] }
 0x27e   : > { %20498 = vmatprep.mubr.f32.mxu1 %v31359_v41  ;;  %31368 = vst [vmem:[#allocation137_spill] sm:$0xff] %v26630_v5 }
 0x27f   : > { %21852 = vmatmul.mubr.f32.gmra.mrb[12].mxu0 %v31360_v4  ;;  %v11943_v4 = vsel %vm285_vm1, %v18175_v12, 0 }
 0x280   : > { %21854 = vmatprep.mubr.f32.mxu0 %v26271_v18  ;;  %v31367_v18 = vld [vmem:[#allocation223_spill] sm:$0xff]  ;;  %v26638_v38 = vand.u32 4294901760, %v11943_v4 }
 0x281   : > { %20499 = vmatmul.mubr.f32.gmra.mrb[10].mxu1 %v31361_v44  ;;  %v31386_v44 = vld [vmem:[#allocation217_spill] sm:$0xff] }
 0x282   : > { %20501 = vmatprep.mubr.f32.mxu1 %v31362_v32  ;;  %v31369_v32 = vld [vmem:[#allocation189_spill] sm:$0xff]  ;;  %31371 = vst [vmem:[#allocation139_spill] sm:$0xff] %v26638_v38 }
 0x283   : > { %21855 = vmatmul.mubr.f32.gmra.mrb[14].mxu0 %v31363_v20  ;;  %v11946_v20 = vsel %vm285_vm1, %v18176_v6, 0  ;;  %v26651_v6 = vsub.f32 %v11943_v4, %v26638_v38 }
 0x284   : > { %21857 = vmatprep.mubr.f32.mxu0 %v31364_v19  ;;  %v18177_v19 = vld [vmem:[%s24669_s9 + $0x1a0] sm:$0xff] }
 0x285   : > { %20502 = vmatmul.mubr.f32.gmra.mrb[12].mxu1 %v31365_v55  ;;  %v31370_v55 = vld [vmem:[#allocation193_spill] sm:$0xff]  ;;  %v11949_v12 = vsel %vm285_vm1, %v18177_v19, 0  ;;  %31376 = vst [vmem:[#allocation143_spill] sm:$0xff] %v26651_v6  ;;  %v31380_v19 = vld [vmem:[#allocation211_spill] sm:$0xff] }
 0x286   : > { %20504 = vmatprep.mubr.f32.mxu1 %v31366_v3  ;;  %v31374_v3 = vld [vmem:[#allocation200_spill] sm:$0xff] }
 0x287   : > { %21858 = vmatmul.mubr.f32.gmra.mrb[16].mxu0 %v26318_v24  ;;  %v26642_v24 = vsub.f32 %v11940_v47, %v26630_v5 }
 0x288   : > { %21860 = vmatprep.mubr.f32.mxu0 %v31367_v18  ;;  %v26644_v18 = vand.u32 4294901760, %v11946_v20 }
 0x289   : > { %20505 = vmatmul.mubr.f32.gmra.mrb[14].mxu1 %v31369_v32  ;;  %31372 = vst [vmem:[#allocation76_spill] sm:$0xff] %v26642_v24  ;;  %v31375_v32 = vld [vmem:[#allocation202_spill] sm:$0xff] }
 0x28a   : > { %20507 = vmatprep.mubr.f32.mxu1 %v31370_v55  ;;  %31373 = vst [vmem:[#allocation141_spill] sm:$0xff] %v26644_v18  ;;  %v26658_v47 = vsub.f32 %v11946_v20, %v26644_v18  ;;  %v31379_v55 = vld [vmem:[#allocation208_spill] sm:$0xff] }
 0x28b   : > { %21861 = vmatmul.mubr.f32.gmra.mrb[18].mxu0 %v26349_v34  ;;  %v26653_v34 = vand.u32 4294901760, %v11949_v12 }
 0x28c   : > { %21863 = vmatprep.mubr.f32.mxu0 %v26363_v50  ;;  %v30311_v50 = vand.u32 4294901760, %v26642_v24  ;;  %31378 = vst [vmem:[#allocation147_spill] sm:$0xff] %v26658_v47  ;;  %v30313_v20 = vand.u32 4294901760, %v26658_v47 }
 0x28d   : > { %20508 = vmatmul.mubr.f32.gmra.mrb[16].mxu1 %v31374_v3  ;;  %31377 = vst [vmem:[#allocation145_spill] sm:$0xff] %v26653_v34  ;;  %v26665_v4 = vsub.f32 %v11949_v12, %v26653_v34  ;;  %v31385_v3 = vld [vmem:[#allocation238_spill] sm:$0xff] }
 0x28e   : > { %20510 = vmatprep.mubr.f32.mxu1 %v31375_v32  ;;  %v31382_v32 = vld [vmem:[#allocation212_spill] sm:$0xff] }
 0x28f   : > { %21864 = vmatmul.mubr.f32.gmra.mrb[20].mxu0 %v26378_v57  ;;  %v30312_v57 = vand.u32 4294901760, %v26651_v6  ;;  %31381 = vst [vmem:[#allocation148_spill] sm:$0xff] %v26665_v4  ;;  %v30314_v12 = vand.u32 4294901760, %v26665_v4 }
 0x290   : > { %21866 = vmatprep.mubr.f32.mxu0 %v26389_v9  ;;  %v12303_v9 = vsub.f32 %v26642_v24, %v30311_v50  ;;  %v12323_v50 = vsub.f32 %v26658_v47, %v30313_v20  ;;  %v31391_v20 = vld [vmem:[#allocation228_spill] sm:$0xff]  ;;  %v31416_v47 = vld [vmem:[#allocation195_spill] sm:$0xff] }
 0x291   : > { %20511 = vmatmul.mubr.f32.gmra.mrb[18].mxu1 %v31379_v55  ;;  %v31383_v55 = vld [vmem:[#allocation213_spill] sm:$0xff]  ;;  %v31418_v24 = vld [vmem:[#allocation199_spill] sm:$0xff] }
 0x292   : > { %20513 = vmatprep.mubr.f32.mxu1 %v31380_v19  ;;  %v31384_v19 = vld [vmem:[#allocation237_spill] sm:$0xff]  ;;  %v12324_v41 = vand.u32 4294901760, %v12323_v50  ;;  %v18046_v50 = vld [vmem:[%s29823_s1 + $0x8] sm:$0xf] }
 0x293   : > { %21867 = vmatmul.mubr.f32.gmra.mrb[22].mxu0 %v26401_v1  ;;  %v12313_v1 = vsub.f32 %v26651_v6, %v30312_v57  ;;  %v12333_v57 = vsub.f32 %v26665_v4, %v30314_v12  ;;  %v31396_v12 = vld [vmem:[#allocation133_spill] sm:$0xff]  ;;  %v31415_v4 = vld [vmem:[#allocation191_spill] sm:$0xff]  ;;  %v31417_v6 = vld [vmem:[#allocation198_spill] sm:$0xff] }
 0x294   : > { %21869 = vmatprep.mubr.f32.mxu0 %v26409_v53  ;;  %v12304_v53 = vand.u32 4294901760, %v12303_v9 }
 0x295   : > { %20514 = vmatmul.mubr.f32.gmra.mrb[20].mxu1 %v31382_v32  ;;  %v31387_v32 = vld [vmem:[#allocation219_spill] sm:$0xff]  ;;  %v12334_v9 = vand.u32 4294901760, %v12333_v57  ;;  %v31398_v57 = vld [vmem:[#allocation236_spill] sm:$0xff] }
 0x296   : > { %20516 = vmatprep.mubr.f32.mxu1 %v31383_v55  ;;  %v31388_v55 = vld [vmem:[#allocation239_spill] sm:$0xff] }
 0x297   : > { %21870 = vmatmul.mubr.f32.gmra.mrb[24].mxu0 %v31384_v19  ;;  %v12314_v19 = vand.u32 4294901760, %v12313_v1  ;;  %v31394_v1 = vld [vmem:[#allocation233_spill] sm:$0xff] }
 0x298   : > { %21872 = vmatprep.mubr.f32.mxu0 %v31385_v3  ;;  %v31390_v3 = vld [vmem:[#allocation226_spill] sm:$0xff] }
 0x299   : > { %20517 = vmatmul.mubr.f32.gmra.mrb[22].mxu1 %v31386_v44  ;;  %v31392_v44 = vld [vmem:[#allocation231_spill] sm:$0xff] }
 0x29a   : > { %20519 = vmatprep.mubr.f32.mxu1 %v31387_v32  ;;  %v31408_v32 = vld [vmem:[#allocation163_spill] sm:$0xff] }
 0x29b   : > { %21873 = vmatmul.mubr.f32.gmra.mrb[26].mxu0 %v31388_v55  ;;  %v31393_v55 = vld [vmem:[#allocation115_spill] sm:$0xff] }
 0x29c   : > { %21875 = vmatprep.mubr.f32.mxu0 %v12304_v53  ;;  %v31395_v53 = vld [vmem:[#allocation235_spill] sm:$0xff] }
 0x29d   : > { %20520 = vmatmul.mubr.f32.gmra.mrb[24].mxu1 %v31389_v46  ;;  %v31407_v46 = vld [vmem:[#allocation18_spill] sm:$0xff] }
 0x29e   : > { %20522 = vmatprep.mubr.f32.mxu1 %v31390_v3  ;;  %v31403_v3 = vld [vmem:[#allocation97_spill] sm:$0xff] }
 0x29f   : > { %21876 = vmatmul.mubr.f32.gmra.mrb[28].mxu0 %v12314_v19  ;;  %v31397_v19 = vld [vmem:[#allocation136_spill] sm:$0xff] }
 0x2a0   : > { %21878 = vmatprep.mubr.f32.mxu0 %v12324_v41  ;;  %v4174_v41 = vsel %vm382_vm0, %v18046_v50, 0  ;;  %v31405_v50 = vld [vmem:[#allocation151_spill] sm:$0xff] }
 0x2a1   : > { %20523 = vmatmul.mubr.f32.gmra.mrb[26].mxu1 %v31391_v20  ;;  %v31401_v20 = vld [vmem:[#allocation142_spill] sm:$0xff] }
 0x2a2   : > { %20525 = vmatprep.mubr.f32.mxu1 %v31392_v44  ;;  %v26707_v44 = vand.u32 4294901760, %v4174_v41 }
 0x2a3   : > { %21879 = vmatmul.mubr.f32.gmra.mrb[30].mxu0 %v12334_v9  ;;  %v31399_v9 = vld [vmem:[#allocation84_spill] sm:$0xff] }
 0x2a4   : > { %21883 = vmatprep.mubr.f32.mxu0 %v31393_v55 }
 0x2a5   : > { %20526 = vmatmul.mubr.f32.gmra.mrb[28].mxu1 %v31394_v1  ;;  %v31400_v1 = vld [vmem:[#allocation132_spill] sm:$0xff] }
 0x2a6   : > { %20528 = vmatprep.mubr.f32.mxu1 %v31395_v53  ;;  %v31402_v53 = vld [vmem:[#allocation89_spill] sm:$0xff] }
 0x2a7   : > { %21884 = vmatmul.mubr.f32.vlgmr.msra.gmra.mrb[0].mxu0 %v31396_v12 }
 0x2a8   : > { %21886 = vmatprep.mubr.f32.mxu0 %v31397_v19  ;;  %21932 = vmatpush3.msra.mxu0 %v26494_v0  ;;  %v31404_v0 = vld [vmem:[#allocation149_spill] sm:$0xff] }
 0x2a9   : > { %20529 = vmatmul.mubr.f32.gmra.mrb[30].mxu1 %v31398_v57  ;;  %21981 = vmatprep.subr.mxu0 %v26435_v43  ;;  %v31406_v57 = vld [vmem:[#allocation105_spill] sm:$0xff] }
 0x2aa   : > { %20533 = vmatprep.mubr.f32.mxu1 %v31399_v9 }
 0x2ab   : > { %21887 = vmatmul.mubr.f32.gmra.mrb[2].mxu0 %v31400_v1 }
 0x2ac   : > { %21889 = vmatprep.mubr.f32.mxu0 %v31401_v20 }
 0x2ad   : > { %20534 = vmatmul.mubr.f32.vlgmr.msra.gmra.mrb[0].mxu1 %v31402_v53 }
 0x2ae   : > { %20582 = vmatpush3.msra.mxu1 %v31282_v56  ;;  %20536 = vmatprep.mubr.f32.mxu1 %v31403_v3  ;;  %v31409_v56 = vld [vmem:[#allocation40_spill] sm:$0xff] }
 0x2af   : > { %21890 = vmatmul.mubr.f32.gmra.mrb[4].mxu0 %v31404_v0  ;;  %20631 = vmatprep.subr.mxu1 %v26707_v44 }
 0x2b0   : > { %21892 = vmatprep.mubr.f32.mxu0 %v31405_v50 }
 0x2b1   : > { %20537 = vmatmul.mubr.f32.gmra.mrb[2].mxu1 %v31406_v57 }
 0x2b2   : > { %20539 = vmatprep.mubr.f32.mxu1 %v31393_v55 }
 0x2b3   : > { %21893 = vmatmul.mubr.f32.gmra.mrb[6].mxu0 %v31407_v46 }
 0x2b4   : > { %21895 = vmatprep.mubr.f32.mxu0 %v31408_v32 }
 0x2b5   : > { %20540 = vmatmul.mubr.f32.gmra.mrb[4].mxu1 %v31396_v12 }
 0x2b6   : > { %20542 = vmatprep.mubr.f32.mxu1 %v31397_v19 }
 0x2b7   : > { %21896 = vmatmul.mubr.f32.gmra.mrb[8].mxu0 %v31409_v56 }
 0x2b8   : > { %21898 = vmatprep.mubr.f32.mxu0 %v31410_v54 }
 0x2b9   : > { %20543 = vmatmul.mubr.f32.gmra.mrb[6].mxu1 %v31400_v1 }
 0x2ba   : > { %20545 = vmatprep.mubr.f32.mxu1 %v31401_v20 }
 0x2bb   : > { %21899 = vmatmul.mubr.f32.gmra.mrb[10].mxu0 %v31411_v39 }
 0x2bc   : > { %21901 = vmatprep.mubr.f32.mxu0 %v31412_v30 }
 0x2bd   : > { %20546 = vmatmul.mubr.f32.gmra.mrb[8].mxu1 %v31404_v0 }
 0x2be   : > { %20548 = vmatprep.mubr.f32.mxu1 %v31405_v50 }
 0x2bf   : > { %21902 = vmatmul.mubr.f32.gmra.mrb[12].mxu0 %v31413_v26 }
 0x2c0   : > { %21904 = vmatprep.mubr.f32.mxu0 %v31414_v40 }
 0x2c1   : > { %20549 = vmatmul.mubr.f32.gmra.mrb[10].mxu1 %v31407_v46 }
 0x2c2   : > { %20551 = vmatprep.mubr.f32.mxu1 %v31408_v32 }
 0x2c3   : > { %21905 = vmatmul.mubr.f32.gmra.mrb[14].mxu0 %v31415_v4 }
 0x2c4   : > { %21907 = vmatprep.mubr.f32.mxu0 %v31416_v47 }
 0x2c5   : > { %20552 = vmatmul.mubr.f32.gmra.mrb[12].mxu1 %v31409_v56 }
 0x2c6   : > { %20554 = vmatprep.mubr.f32.mxu1 %v31410_v54 }
 0x2c7   : > { %21908 = vmatmul.mubr.f32.gmra.mrb[16].mxu0 %v31417_v6 }
 0x2c8   : > { %21910 = vmatprep.mubr.f32.mxu0 %v31418_v24 }
 0x2c9   : > { %20555 = vmatmul.mubr.f32.gmra.mrb[14].mxu1 %v31411_v39 }
 0x2ca   : > { %20557 = vmatprep.mubr.f32.mxu1 %v31412_v30 }
 0x2cb   : > { %21911 = vmatmul.mubr.f32.gmra.mrb[18].mxu0 %v26222_v17 }
 0x2cc   : > { %21913 = vmatprep.mubr.f32.mxu0 %v31419_v21 }
 0x2cd   : > { %20558 = vmatmul.mubr.f32.gmra.mrb[16].mxu1 %v31413_v26 }
 0x2ce   : > { %20560 = vmatprep.mubr.f32.mxu1 %v31414_v40 }
 0x2cf   : > { %21914 = vmatmul.mubr.f32.gmra.mrb[20].mxu0 %v31420_v52 }
 0x2d0   : > { %21916 = vmatprep.mubr.f32.mxu0 %v26275_v51 }
 0x2d1   : > { %20561 = vmatmul.mubr.f32.gmra.mrb[18].mxu1 %v31415_v4 }
 0x2d2   : > { %20563 = vmatprep.mubr.f32.mxu1 %v31416_v47 }
 0x2d3   : > { %21917 = vmatmul.mubr.f32.gmra.mrb[22].mxu0 %v26301_v35 }
 0x2d4   : > { %21919 = vmatprep.mubr.f32.mxu0 %v26309_v16 }
 0x2d5   : > { %20564 = vmatmul.mubr.f32.gmra.mrb[20].mxu1 %v31417_v6 }
 0x2d6   : > { %20566 = vmatprep.mubr.f32.mxu1 %v31418_v24  ;;  %v26764_v24 = vsub.f32 %v4174_v41, %v26707_v44 }
 0x2d7   : > { %21920 = vmatmul.mubr.f32.gmra.mrb[24].mxu0 %v26333_v36 }
 0x2d8   : > { %21922 = vmatprep.mubr.f32.mxu0 %v26342_v58 }
 0x2d9   : > { %20567 = vmatmul.mubr.f32.gmra.mrb[22].mxu1 %v26222_v17 }
 0x2da   : > { %20569 = vmatprep.mubr.f32.mxu1 %v31419_v21  ;;  %v26771_v21 = vand.u32 4294901760, %v26764_v24 }
 0x2db   : > { %21923 = vmatmul.mubr.f32.gmra.mrb[26].mxu0 %v31421_v27 }
 0x2dc   : > { %21925 = vmatprep.mubr.f32.mxu0 %v26630_v5  ;;  %31422 = vst [vmem:[#allocation150_spill] sm:$0xff] %v26771_v21  ;;  %v4566_v41 = vsub.f32 %v26764_v24, %v26771_v21  ;;  %v4053_v21 = vld [vmem:[%s24669_s9 + $0x7a] sm:$0xff] }
 0x2dd   : > { %20570 = vmatmul.mubr.f32.gmra.mrb[24].mxu1 %v31420_v52 }
 0x2de   : > { %20572 = vmatprep.mubr.f32.mxu1 %v26275_v51 }
 0x2df   : > { %21926 = vmatmul.mubr.f32.gmra.mrb[28].mxu0 %v26638_v38 }
 0x2e0   : > { %21928 = vmatprep.mubr.f32.mxu0 %v26644_v18  ;;  %v31445_v18 = vld [vmem:[#allocation138_spill] sm:$0xff] }
 0x2e1   : > { %20573 = vmatmul.mubr.f32.gmra.mrb[26].mxu1 %v26301_v35 }
 0x2e2   : > { %20575 = vmatprep.mubr.f32.mxu1 %v26309_v16 }
 0x2e3   : > { %21929 = vmatmul.mubr.f32.gmra.mrb[30].mxu0 %v26653_v34  ;;  %v31423_v34 = vld [vmem:[#allocation135_spill] sm:$0xff] }
 0x2e4   : > { %21933 = vmatprep.mubr.f32.mxu0 %v31319_v33  ;;  %v26785_v33 = vand.u32 4294901760, %v4566_v41  ;;  %v4050_v41 = vld [vmem:[%s24669_s9 + $0x52] sm:$0xff] }
 0x2e5   : > { %20576 = vmatmul.mubr.f32.gmra.mrb[28].mxu1 %v26333_v36 }
 0x2e6   : > { %20578 = vmatprep.mubr.f32.mxu1 %v26342_v58 }
 0x2e7   : > { %21934 = vmatmul.mubr.f32.vlgmr.msra.gmra.mrb[0].mxu0 %v25956_v37  ;;  %v4043_v37 = vld [vmem:[%s24669_s9 + $0x2] sm:$0xff] }
 0x2e8   : > { %21936 = vmatprep.mubr.f32.mxu0 %v31320_v31  ;;  %21982 = vmatpush3.msra.mxu0 %v26435_v43 }
 0x2e9   : > { %20579 = vmatmul.mubr.f32.gmra.mrb[30].mxu1 %v31421_v27  ;;  %22031 = vmatprep.subr.mxu0 %v31423_v34 }
 0x2ea   : > { %20583 = vmatprep.mubr.f32.mxu1 %v31399_v9 }
 0x2eb   : > { %21937 = vmatmul.mubr.f32.gmra.mrb[2].mxu0 %v31321_v45 }
 0x2ec   : > { %21939 = vmatprep.mubr.f32.mxu0 %v31322_v15  ;;  %v4046_v15 = vld [vmem:[%s24669_s9 + $0x22] sm:$0xff] }
 0x2ed   : > { %20584 = vmatmul.mubr.f32.vlgmr.msra.gmra.mrb[0].mxu1 %v31402_v53 }
 0x2ee   : > { %20632 = vmatpush3.msra.mxu1 %v26707_v44  ;;  %20586 = vmatprep.mubr.f32.mxu1 %v31403_v3 }
 0x2ef   : > { %21940 = vmatmul.mubr.f32.gmra.mrb[4].mxu0 %v31323_v8  ;;  %20681 = vmatprep.subr.mxu1 %v26785_v33  ;;  %v31426_v8 = vld [vmem:[#allocation229_spill] sm:$0xff] }
 0x2f0   : > { %21942 = vmatprep.mubr.f32.mxu0 %v31324_v23  ;;  %v4047_v23 = vld [vmem:[%s24669_s9 + $0x32] sm:$0xff] }
 0x2f1   : > { %20587 = vmatmul.mubr.f32.gmra.mrb[2].mxu1 %v31406_v57 }
 0x2f2   : > { %20589 = vmatprep.mubr.f32.mxu1 %v31393_v55 }
 0x2f3   : > { %21943 = vmatmul.mubr.f32.gmra.mrb[6].mxu0 %v31325_v62 }
 0x2f4   : > { %21945 = vmatprep.mubr.f32.mxu0 %v26072_v61  ;;  %v4078_v61 = vsel %vm285_vm1, %v4043_v37, 0  ;;  %v31438_v37 = vld [vmem:[#allocation143_spill] sm:$0xff] }
 0x2f5   : > { %20590 = vmatmul.mubr.f32.gmra.mrb[4].mxu1 %v31396_v12 }
 0x2f6   : > { %20592 = vmatprep.mubr.f32.mxu1 %v31397_v19 }
 0x2f7   : > { %21946 = vmatmul.mubr.f32.gmra.mrb[8].mxu0 %v31326_v13 }
 0x2f8   : > { %21948 = vmatprep.mubr.f32.mxu0 %v31327_v63  ;;  %v4087_v63 = vsel %vm285_vm1, %v4046_v15, 0  ;;  %v4051_v15 = vld [vmem:[%s24669_s9 + $0x62] sm:$0xff] }
 0x2f9   : > { %20593 = vmatmul.mubr.f32.gmra.mrb[6].mxu1 %v31400_v1 }
 0x2fa   : > { %20595 = vmatprep.mubr.f32.mxu1 %v31401_v20 }
 0x2fb   : > { %21949 = vmatmul.mubr.f32.gmra.mrb[10].mxu0 %v31328_v22  ;;  %v31431_v22 = vld [vmem:[#allocation209_spill] sm:$0xff] }
 0x2fc   : > { %21951 = vmatprep.mubr.f32.mxu0 %v31329_v29  ;;  %v4090_v29 = vsel %vm285_vm1, %v4047_v23, 0 }
 0x2fd   : > { %20596 = vmatmul.mubr.f32.gmra.mrb[8].mxu1 %v31404_v0  ;;  %v26869_v57 = vand.u32 4294901760, %v4090_v29 }
 0x2fe   : > { %20598 = vmatprep.mubr.f32.mxu1 %v31405_v50 }
 0x2ff   : > { %21952 = vmatmul.mubr.f32.gmra.mrb[12].mxu0 %v31330_v49  ;;  %v4048_v49 = vld [vmem:[%s24669_s9 + $0x3a] sm:$0xff]  ;;  %31437 = vst [vmem:[#allocation26_spill] sm:$0xff] %v26869_v57 }
 0x300   : > { %21954 = vmatprep.mubr.f32.mxu0 %v31331_v42  ;;  %v31432_v42 = vld [vmem:[#allocation234_spill] sm:$0xff]  ;;  %v4093_v9 = vsel %vm285_vm1, %v4048_v49, 0  ;;  %v4099_v49 = vsel %vm285_vm1, %v4050_v41, 0 }
 0x301   : > { %20599 = vmatmul.mubr.f32.gmra.mrb[10].mxu1 %v31407_v46  ;;  %v26905_v23 = vand.u32 4294901760, %v4099_v49 }
 0x302   : > { %20601 = vmatprep.mubr.f32.mxu1 %v31408_v32 }
 0x303   : > { %21955 = vmatmul.mubr.f32.gmra.mrb[14].mxu0 %v31332_v25  ;;  %v31433_v25 = vld [vmem:[#allocation76_spill] sm:$0xff]  ;;  %31447 = vst [vmem:[#allocation169_spill] sm:$0xff] %v26905_v23 }
 0x304   : > { %21957 = vmatprep.mubr.f32.mxu0 %v31333_v60 }
 0x305   : > { %20602 = vmatmul.mubr.f32.gmra.mrb[12].mxu1 %v31409_v56 }
 0x306   : > { %20604 = vmatprep.mubr.f32.mxu1 %v31410_v54 }
 0x307   : > { %21958 = vmatmul.mubr.f32.gmra.mrb[16].mxu0 %v31334_v59  ;;  %v26861_v59 = vand.u32 4294901760, %v4087_v63 }
 0x308   : > { %21960 = vmatprep.mubr.f32.mxu0 %v31335_v11  ;;  %v4049_v11 = vld [vmem:[%s24669_s9 + $0x4a] sm:$0xff] }
 0x309   : > { %20605 = vmatmul.mubr.f32.gmra.mrb[14].mxu1 %v31411_v39  ;;  %31435 = vst [vmem:[#allocation24_spill] sm:$0xff] %v26861_v59 }
 0x30a   : > { %20607 = vmatprep.mubr.f32.mxu1 %v31412_v30 }
 0x30b   : > { %21961 = vmatmul.mubr.f32.gmra.mrb[18].mxu0 %v26257_v14  ;;  %v4044_v14 = vld [vmem:[%s24669_s9 + $0xa] sm:$0xff] }
 0x30c   : > { %21963 = vmatprep.mubr.f32.mxu0 %v26266_v2  ;;  %v4045_v2 = vld [vmem:[%s24669_s9 + $0x1a] sm:$0xff]  ;;  %v4081_v31 = vsel %vm285_vm1, %v4044_v14, 0 }
 0x30d   : > { %20608 = vmatmul.mubr.f32.gmra.mrb[16].mxu1 %v31413_v26  ;;  %v4084_v45 = vsel %vm285_vm1, %v4045_v2, 0  ;;  %v26844_v62 = vand.u32 4294901760, %v4081_v31  ;;  %v31439_v14 = vld [vmem:[#allocation147_spill] sm:$0xff]  ;;  %v4052_v2 = vld [vmem:[%s24669_s9 + $0x6a] sm:$0xff] }
 0x30e   : > { %20610 = vmatprep.mubr.f32.mxu1 %v31414_v40  ;;  %v26850_v13 = vand.u32 4294901760, %v4084_v45 }
 0x30f   : > { %21964 = vmatmul.mubr.f32.gmra.mrb[20].mxu0 %v26299_v28  ;;  %v26835_v28 = vand.u32 4294901760, %v4078_v61  ;;  %31428 = vst [vmem:[#allocation155_spill] sm:$0xff] %v26844_v62  ;;  %v26859_v60 = vsub.f32 %v4081_v31, %v26844_v62  ;;  %v26879_v31 = vsub.f32 %v4087_v63, %v26861_v59 }
 0x310   : > { %21966 = vmatprep.mubr.f32.mxu0 %v26307_v48  ;;  %v31425_v48 = vld [vmem:[#allocation199_spill] sm:$0xff]  ;;  %31430 = vst [vmem:[#allocation159_spill] sm:$0xff] %v26850_v13  ;;  %v26867_v53 = vsub.f32 %v4084_v45, %v26850_v13  ;;  %v26881_v45 = vand.u32 4294901760, %v4093_v9 }
 0x311   : > { %20611 = vmatmul.mubr.f32.gmra.mrb[18].mxu1 %v31415_v4  ;;  %31424 = vst [vmem:[#allocation153_spill] sm:$0xff] %v26835_v28  ;;  %31434 = vst [vmem:[#allocation160_spill] sm:$0xff] %v26859_v60 }
 0x312   : > { %20613 = vmatprep.mubr.f32.mxu1 %v31416_v47  ;;  %31436 = vst [vmem:[#allocation162_spill] sm:$0xff] %v26867_v53  ;;  %31440 = vst [vmem:[#allocation164_spill] sm:$0xff] %v26879_v31  ;;  %v31449_v38 = vand.u32 4294901760, %v26867_v53 }
 0x313   : > { %21967 = vmatmul.mubr.f32.gmra.mrb[22].mxu0 %v26331_v10  ;;  %v31427_v10 = vld [vmem:[#allocation232_spill] sm:$0xff]  ;;  %31441 = vst [vmem:[#allocation31_spill] sm:$0xff] %v26881_v45 }
 0x314   : > { %21969 = vmatprep.mubr.f32.mxu0 %v26340_v7  ;;  %v26848_v7 = vsub.f32 %v4078_v61, %v26835_v28  ;;  %v4096_v61 = vsel %vm285_vm1, %v4049_v11, 0  ;;  %v4102_v11 = vsel %vm285_vm1, %v4051_v15, 0  ;;  %v4265_v5 = vsub.f32 %v26867_v53, %v31449_v38 }
 0x315   : > { %20614 = vmatmul.mubr.f32.gmra.mrb[20].mxu1 %v31417_v6  ;;  %v26894_v63 = vand.u32 4294901760, %v4096_v61  ;;  %v31454_v38 = vand.u32 4294901760, %v26879_v31  ;;  %v26932_v53 = vsub.f32 %v4099_v49, %v26905_v23  ;;  %v31483_v6 = vld [vmem:[#allocation180_spill] sm:$0xff] }
 0x316   : > { %20616 = vmatprep.mubr.f32.mxu1 %v31425_v48  ;;  %31429 = vst [vmem:[#allocation156_spill] sm:$0xff] %v26848_v7  ;;  %v30334_v3 = vand.u32 4294901760, %v26848_v7  ;;  %v31477_v48 = vld [vmem:[#allocation178_spill] sm:$0xff] }
 0x317   : > { %21970 = vmatmul.mubr.f32.gmra.mrb[24].mxu0 %v31426_v8  ;;  %31443 = vst [vmem:[#allocation167_spill] sm:$0xff] %v26894_v63  ;;  %31455 = vst [vmem:[#allocation171_spill] sm:$0xff] %v26932_v53 }
 0x318   : > { %21972 = vmatprep.mubr.f32.mxu0 %v31427_v10  ;;  %v4245_v8 = vsub.f32 %v26848_v7, %v30334_v3  ;;  %v26890_v10 = vsub.f32 %v4090_v29, %v26869_v57  ;;  %v26903_v29 = vsub.f32 %v4093_v9, %v26881_v45  ;;  %v31448_v7 = vand.u32 4294901760, %v26859_v60 }
 0x319   : > { %20617 = vmatmul.mubr.f32.gmra.mrb[22].mxu1 %v26222_v17  ;;  %v26917_v9 = vsub.f32 %v4096_v61, %v26894_v63  ;;  %v26919_v3 = vand.u32 4294901760, %v4102_v11 }
 0x31a   : > { %20619 = vmatprep.mubr.f32.mxu1 %v31431_v22  ;;  %31442 = vst [vmem:[#allocation37_spill] sm:$0xff] %v26890_v10  ;;  %31446 = vst [vmem:[#allocation168_spill] sm:$0xff] %v26903_v29  ;;  %v4246_v41 = vand.u32 4294901760, %v4245_v8  ;;  %v4255_v15 = vsub.f32 %v26859_v60, %v31448_v7  ;;  %v4105_v8 = vsel %vm285_vm1, %v4052_v2, 0  ;;  %v31453_v7 = vld [vmem:[#allocation152_spill] sm:$0xff]  ;;  %v4055_v2 = vld [vmem:[%s24669_s9 + $0x92] sm:$0xff] }
 0x31b   : > { %21973 = vmatmul.mubr.f32.gmra.mrb[26].mxu0 %v31432_v42  ;;  %v31444_v42 = vld [vmem:[#allocation148_spill] sm:$0xff]  ;;  %31450 = vst [vmem:[#allocation170_spill] sm:$0xff] %v26917_v9  ;;  %31451 = vst [vmem:[#allocation60_spill] sm:$0xff] %v26919_v3  ;;  %v26947_v60 = vsub.f32 %v4102_v11, %v26919_v3 }
 0x31c   : > { %21975 = vmatprep.mubr.f32.mxu0 %v31433_v25 }
 0x31d   : > { %20620 = vmatmul.mubr.f32.gmra.mrb[24].mxu1 %v31420_v52  ;;  %31459 = vst [vmem:[#allocation73_spill] sm:$0xff] %v26947_v60 }
 0x31e   : > { %20622 = vmatprep.mubr.f32.mxu1 %v26275_v51  ;;  %v4114_v51 = vsel %vm285_vm1, %v4055_v2, 0 }
 0x31f   : > { %21976 = vmatmul.mubr.f32.gmra.mrb[28].mxu0 %v31438_v37 }
 0x320   : > { %21978 = vmatprep.mubr.f32.mxu0 %v31439_v14 }
 0x321   : > { %20623 = vmatmul.mubr.f32.gmra.mrb[26].mxu1 %v26301_v35  ;;  %v31452_v35 = vld [vmem:[#allocation144_spill] sm:$0xff] }
 0x322   : > { %20625 = vmatprep.mubr.f32.mxu1 %v26309_v16  ;;  %v4054_v16 = vld [vmem:[%s24669_s9 + $0x82] sm:$0xff] }
 0x323   : > { %21979 = vmatmul.mubr.f32.gmra.mrb[30].mxu0 %v31444_v42 }
 0x324   : > { %21983 = vmatprep.mubr.f32.mxu0 %v31445_v18  ;;  %v4275_v18 = vsub.f32 %v26879_v31, %v31454_v38  ;;  %v4266_v38 = vand.u32 4294901760, %v4265_v5  ;;  %v31458_v31 = vand.u32 4294901760, %v26890_v10  ;;  %v31462_v5 = vand.u32 4294901760, %v26903_v29 }
 0x325   : > { %20626 = vmatmul.mubr.f32.gmra.mrb[28].mxu1 %v26333_v36  ;;  %v4108_v36 = vsel %vm285_vm1, %v4053_v21, 0  ;;  %v4256_v21 = vand.u32 4294901760, %v4255_v15  ;;  %v4056_v15 = vld [vmem:[%s24669_s9 + $0x9a] sm:$0xff] }
 0x326   : > { %20628 = vmatprep.mubr.f32.mxu1 %v26342_v58  ;;  %v4285_v61 = vsub.f32 %v26890_v10, %v31458_v31  ;;  %v31460_v58 = vld [vmem:[#allocation157_spill] sm:$0xff]  ;;  %v4295_v52 = vsub.f32 %v26903_v29, %v31462_v5  ;;  %v4117_v2 = vsel %vm285_vm1, %v4056_v15, 0  ;;  %v31466_v5 = vand.u32 4294901760, %v26917_v9  ;;  %v31469_v15 = vld [vmem:[#allocation52_spill] sm:$0xff] }
 0x327   : > { %21984 = vmatmul.mubr.f32.vlgmr.msra.gmra.mrb[0].mxu0 %v31452_v35  ;;  %v26936_v35 = vand.u32 4294901760, %v4105_v8  ;;  %v4058_v29 = vld [vmem:[%s24669_s9 + $0xb2] sm:$0xff]  ;;  %v31474_v10 = vand.u32 4294901760, %v26947_v60 }
 0x328   : > { %21986 = vmatprep.mubr.f32.mxu0 %v31453_v7  ;;  %22032 = vmatpush3.msra.mxu0 %v31423_v34  ;;  %v26938_v7 = vand.u32 4294901760, %v4108_v36  ;;  %v4111_v34 = vsel %vm285_vm1, %v4054_v16, 0  ;;  %v31461_v16 = vld [vmem:[#allocation25_spill] sm:$0xff]  ;;  %v4305_v31 = vsub.f32 %v26917_v9, %v31466_v5  ;;  %v4059_v5 = vld [vmem:[%s24669_s9 + $0xc2] sm:$0xff] }
 0x329   : > { %20629 = vmatmul.mubr.f32.gmra.mrb[30].mxu1 %v31421_v27  ;;  %31456 = vst [vmem:[#allocation65_spill] sm:$0xff] %v26936_v35  ;;  %22081 = vmatprep.subr.mxu0 %v26435_v43  ;;  %v4057_v27 = vld [vmem:[%s24669_s9 + $0xaa] sm:$0xff]  ;;  %v26958_v49 = vand.u32 4294901760, %v4111_v34  ;;  %v26961_v11 = vsub.f32 %v4105_v8, %v26936_v35  ;;  %v26973_v8 = vand.u32 4294901760, %v4114_v51  ;;  %v4325_v22 = vsub.f32 %v26947_v60, %v31474_v10 }
 0x32a   : > { %31457 = vst [vmem:[#allocation172_spill] sm:$0xff] %v26938_v7  ;;  %20633 = vmatprep.mubr.f32.mxu1 %v4246_v41  ;;  %v4276_v41 = vand.u32 4294901760, %v4275_v18  ;;  %v4120_v18 = vsel %vm285_vm1, %v4057_v27, 0  ;;  %v4296_v27 = vand.u32 4294901760, %v4295_v52  ;;  %v4123_v52 = vsel %vm285_vm1, %v4058_v29, 0 }
 0x32b   : > { %21987 = vmatmul.mubr.f32.gmra.mrb[2].mxu0 %v31460_v58  ;;  %31463 = vst [vmem:[#allocation92_spill] sm:$0xff] %v26958_v49  ;;  %31464 = vst [vmem:[#allocation100_spill] sm:$0xff] %v26961_v11  ;;  %v26964_v58 = vsub.f32 %v4108_v36, %v26938_v7  ;;  %v31468_v36 = vld [vmem:[#allocation49_spill] sm:$0xff]  ;;  %v26997_v17 = vsub.f32 %v4114_v51, %v26973_v8  ;;  %v27010_v10 = vand.u32 4294901760, %v4123_v52  ;;  %v4061_v51 = vld [vmem:[%s24669_s9 + $0xda] sm:$0xff] }
 0x32c   : > { %21989 = vmatprep.mubr.f32.mxu0 %v31461_v16  ;;  %v4286_v16 = vand.u32 4294901760, %v4285_v61  ;;  %31467 = vst [vmem:[#allocation81_spill] sm:$0xff] %v26973_v8  ;;  %v26982_v61 = vand.u32 4294901760, %v4117_v2 }
 0x32d   : > { %20634 = vmatmul.mubr.f32.vlgmr.msra.gmra.mrb[0].mxu1 %v4256_v21  ;;  %31465 = vst [vmem:[#allocation108_spill] sm:$0xff] %v26964_v58  ;;  %v31473_v21 = vand.u32 4294901760, %v26932_v53  ;;  %31475 = vst [vmem:[#allocation146_spill] sm:$0xff] %v26997_v17 }
 0x32e   : > { %20682 = vmatpush3.msra.mxu1 %v26785_v33  ;;  %20636 = vmatprep.mubr.f32.mxu1 %v4266_v38  ;;  %v26980_v33 = vsub.f32 %v4111_v34, %v26958_v49  ;;  %31471 = vst [vmem:[#allocation134_spill] sm:$0xff] %v26982_v61  ;;  %v26984_v38 = vand.u32 4294901760, %v4120_v18  ;;  %v4306_v34 = vand.u32 4294901760, %v4305_v31  ;;  %v27005_v29 = vsub.f32 %v4117_v2, %v26982_v61 }
 0x32f   : > { %21990 = vmatmul.mubr.f32.gmra.mrb[4].mxu0 %v31468_v36  ;;  %20731 = vmatprep.subr.mxu1 %v26764_v24  ;;  %v4315_v9 = vsub.f32 %v26932_v53, %v31473_v21  ;;  %v30374_v36 = vand.u32 4294901760, %v26961_v11  ;;  %v4126_v21 = vsel %vm285_vm1, %v4059_v5, 0  ;;  %v4060_v53 = vld [vmem:[%s24669_s9 + $0xca] sm:$0xff]  ;;  %31480 = vst [vmem:[#allocation19_spill] sm:$0xff] %v27010_v10  ;;  %v4326_v2 = vand.u32 4294901760, %v4325_v22 }
 0x330   : > { %21992 = vmatprep.mubr.f32.mxu0 %v31469_v15  ;;  %31470 = vst [vmem:[#allocation122_spill] sm:$0xff] %v26980_v33  ;;  %31472 = vst [vmem:[#allocation140_spill] sm:$0xff] %v26984_v38  ;;  %v27008_v31 = vsub.f32 %v4120_v18, %v26984_v38  ;;  %v27020_v18 = vand.u32 4294901760, %v4126_v21  ;;  %v4129_v60 = vsel %vm285_vm1, %v4060_v53, 0  ;;  %v31484_v38 = vld [vmem:[#allocation181_spill] sm:$0xff]  ;;  %v27033_v15 = vsub.f32 %v4123_v52, %v27010_v10  ;;  %v4064_v52 = vld [vmem:[%s24669_s9 + $0xfa] sm:$0xff] }
 0x331   : > { %20637 = vmatmul.mubr.f32.gmra.mrb[2].mxu1 %v4276_v41  ;;  %v31476_v41 = vld [vmem:[#allocation68_spill] sm:$0xff]  ;;  %31478 = vst [vmem:[#allocation154_spill] sm:$0xff] %v27005_v29  ;;  %v4335_v5 = vsub.f32 %v26961_v11, %v30374_v36  ;;  %v31485_v36 = vand.u32 4294901760, %v26980_v33  ;;  %v4063_v53 = vld [vmem:[%s24669_s9 + $0xf2] sm:$0xff] }
 0x332   : > { %20639 = vmatprep.mubr.f32.mxu1 %v4286_v16  ;;  %31479 = vst [vmem:[#allocation158_spill] sm:$0xff] %v27008_v31  ;;  %v4316_v16 = vand.u32 4294901760, %v4315_v9  ;;  %31482 = vst [vmem:[#allocation166_spill] sm:$0xff] %v27020_v18  ;;  %v4132_v9 = vsel %vm285_vm1, %v4061_v51, 0  ;;  %v31491_v10 = vld [vmem:[#allocation189_spill] sm:$0xff] }
 0x333   : > { %21993 = vmatmul.mubr.f32.gmra.mrb[6].mxu0 %v31476_v41  ;;  %31486 = vst [vmem:[#allocation173_spill] sm:$0xff] %v27033_v15  ;;  %v27044_v22 = vand.u32 4294901760, %v4132_v9 }
 0x334   : > { %21995 = vmatprep.mubr.f32.mxu0 %v31477_v48  ;;  %v31481_v48 = vand.u32 4294901760, %v26964_v58 }
 0x335   : > { %20640 = vmatmul.mubr.f32.gmra.mrb[4].mxu1 %v4296_v27  ;;  %v4062_v27 = vld [vmem:[%s24669_s9 + $0xe2] sm:$0xff]  ;;  %31490 = vst [vmem:[#allocation186_spill] sm:$0xff] %v27044_v22 }
 0x336   : > { %v4345_v41 = vsub.f32 %v26964_v58, %v31481_v48  ;;  %20642 = vmatprep.mubr.f32.mxu1 %v4306_v34  ;;  %v4355_v34 = vsub.f32 %v26980_v33, %v31485_v36  ;;  %v27036_v58 = vand.u32 4294901760, %v4129_v60  ;;  %v27042_v36 = vsub.f32 %v4126_v21, %v27020_v18  ;;  %v4065_v33 = vld [vmem:[%s24669_s9 + $0x10a] sm:$0xff] }
 0x337   : > { %21996 = vmatmul.mubr.f32.gmra.mrb[8].mxu0 %v31483_v6  ;;  %v4336_v6 = vand.u32 4294901760, %v4335_v5  ;;  %v4135_v48 = vsel %vm285_vm1, %v4062_v27, 0  ;;  %v31492_v5 = vld [vmem:[#allocation193_spill] sm:$0xff] }
 0x338   : > { %21998 = vmatprep.mubr.f32.mxu0 %v31484_v38  ;;  %v4346_v51 = vand.u32 4294901760, %v4345_v41  ;;  %31487 = vst [vmem:[#allocation174_spill] sm:$0xff] %v27036_v58  ;;  %v31488_v38 = vand.u32 4294901760, %v26997_v17  ;;  %31489 = vst [vmem:[#allocation182_spill] sm:$0xff] %v27042_v36  ;;  %v4356_v41 = vand.u32 4294901760, %v4355_v34  ;;  %v4144_v34 = vsel %vm285_vm1, %v4065_v33, 0 }
 0x339   : > { %20643 = vmatmul.mubr.f32.gmra.mrb[6].mxu1 %v4316_v16  ;;  %v4138_v16 = vsel %vm285_vm1, %v4063_v53, 0  ;;  %v27062_v53 = vand.u32 4294901760, %v4135_v48  ;;  %v4066_v27 = vld [vmem:[%s24669_s9 + $0x112] sm:$0xff]  ;;  %v27078_v33 = vand.u32 4294901760, %v4144_v34 }
 0x33a   : > { %20645 = vmatprep.mubr.f32.mxu1 %v4326_v2  ;;  %v4365_v11 = vsub.f32 %v26997_v17, %v31488_v38  ;;  %v31493_v2 = vand.u32 4294901760, %v27005_v29  ;;  %v31494_v38 = vand.u32 4294901760, %v27008_v31 }
 0x33b   : > { %21999 = vmatmul.mubr.f32.gmra.mrb[10].mxu0 %v31491_v10  ;;  %v27060_v10 = vsub.f32 %v4129_v60, %v27036_v58  ;;  %31496 = vst [vmem:[#allocation194_spill] sm:$0xff] %v27062_v53  ;;  %v4067_v60 = vld [vmem:[%s24669_s9 + $0x122] sm:$0xff]  ;;  %31502 = vst [vmem:[#allocation205_spill] sm:$0xff] %v27078_v33 }
 0x33c   : > { %22001 = vmatprep.mubr.f32.mxu0 %v31492_v5  ;;  %v4375_v21 = vsub.f32 %v27005_v29, %v31493_v2  ;;  %v4385_v17 = vsub.f32 %v27008_v31, %v31494_v38  ;;  %v4141_v5 = vsel %vm285_vm1, %v4064_v52, 0  ;;  %v4366_v18 = vand.u32 4294901760, %v4365_v11  ;;  %v31500_v31 = vld [vmem:[#allocation202_spill] sm:$0xff] }
 0x33d   : > { %20646 = vmatmul.mubr.f32.gmra.mrb[8].mxu1 %v4336_v6  ;;  %31495 = vst [vmem:[#allocation190_spill] sm:$0xff] %v27060_v10  ;;  %v30399_v2 = vand.u32 4294901760, %v27042_v36  ;;  %v27068_v29 = vsub.f32 %v4132_v9, %v27044_v22  ;;  %v27070_v38 = vand.u32 4294901760, %v4138_v16  ;;  %v31499_v6 = vld [vmem:[#allocation200_spill] sm:$0xff]  ;;  %v27076_v61 = vand.u32 4294901760, %v4141_v5 }
 0x33e   : > { %20648 = vmatprep.mubr.f32.mxu1 %v4346_v51  ;;  %v4376_v58 = vand.u32 4294901760, %v4375_v21  ;;  %v4386_v52 = vand.u32 4294901760, %v4385_v17  ;;  %v31503_v11 = vand.u32 4294901760, %v27033_v15  ;;  %v4150_v22 = vsel %vm285_vm1, %v4067_v60, 0  ;;  %v4068_v51 = vld [vmem:[%s24669_s9 + $0x12a] sm:$0xff] }
 0x33f   : > { %31497 = vst [vmem:[#allocation201_spill] sm:$0xff] %v27068_v29  ;;  %31498 = vst [vmem:[#allocation203_spill] sm:$0xff] %v27070_v38  ;;  %22002 = vmatmul.mubr.f32.gmra.mrb[12].mxu0 %v31499_v6  ;;  %v27085_v6 = vsub.f32 %v4135_v48, %v27062_v53  ;;  %v4405_v17 = vsub.f32 %v27042_v36, %v30399_v2  ;;  %v27100_v48 = vsub.f32 %v4141_v5, %v27076_v61  ;;  %v4069_v2 = vld [vmem:[%s24669_s9 + $0x13a] sm:$0xff] }
 0x340   : > { %22004 = vmatprep.mubr.f32.mxu0 %v31500_v31  ;;  %31501 = vst [vmem:[#allocation204_spill] sm:$0xff] %v27076_v61  ;;  %v4395_v9 = vsub.f32 %v27033_v15, %v31503_v11  ;;  %v4147_v31 = vsel %vm285_vm1, %v4066_v27, 0  ;;  %v31506_v11 = vld [vmem:[#allocation208_spill] sm:$0xff]  ;;  %v31507_v15 = vld [vmem:[#allocation211_spill] sm:$0xff]  ;;  %v31511_v21 = vand.u32 4294901760, %v27060_v10  ;;  %v31513_v36 = vand.u32 4294901760, %v27068_v29 }
 0x341   : > { %20649 = vmatmul.mubr.f32.gmra.mrb[10].mxu1 %v4356_v41  ;;  %31504 = vst [vmem:[#allocation161_spill] sm:$0xff] %v27085_v6  ;;  %v27093_v41 = vsub.f32 %v4138_v16, %v27070_v38  ;;  %31508 = vst [vmem:[#allocation57_spill] sm:$0xff] %v27100_v48  ;;  %v27105_v27 = vand.u32 4294901760, %v4147_v31  ;;  %v4406_v5 = vand.u32 4294901760, %v4405_v17  ;;  %v4156_v61 = vsel %vm285_vm1, %v4069_v2, 0  ;;  %v4070_v38 = vld [vmem:[%s24669_s9 + $0x142] sm:$0xff] }
 0x342   : > { %20651 = vmatprep.mubr.f32.mxu1 %v4366_v18  ;;  %v27103_v18 = vsub.f32 %v4144_v34, %v27078_v33  ;;  %v4396_v16 = vand.u32 4294901760, %v4395_v9  ;;  %v4415_v60 = vsub.f32 %v27060_v10, %v31511_v21  ;;  %v4425_v34 = vsub.f32 %v27068_v29, %v31513_v36  ;;  %v31514_v9 = vld [vmem:[#allocation212_spill] sm:$0xff]  ;;  %v31515_v21 = vld [vmem:[#allocation213_spill] sm:$0xff] }
 0x343   : > { %31505 = vst [vmem:[#allocation165_spill] sm:$0xff] %v27093_v41  ;;  %22005 = vmatmul.mubr.f32.gmra.mrb[14].mxu0 %v31506_v11  ;;  %31510 = vst [vmem:[#allocation177_spill] sm:$0xff] %v27105_v27  ;;  %v27126_v17 = vsub.f32 %v4147_v31, %v27105_v27  ;;  %v4071_v36 = vld [vmem:[%s24669_s9 + $0x152] sm:$0xff]  ;;  %v27140_v29 = vand.u32 4294901760, %v4156_v61 }
 0x344   : > { %22007 = vmatprep.mubr.f32.mxu0 %v31507_v15  ;;  %31509 = vst [vmem:[#allocation176_spill] sm:$0xff] %v27103_v18  ;;  %v27112_v15 = vand.u32 4294901760, %v4150_v22  ;;  %v4416_v33 = vand.u32 4294901760, %v4415_v60  ;;  %v4426_v11 = vand.u32 4294901760, %v4425_v34  ;;  %v31522_v60 = vld [vmem:[#allocation217_spill] sm:$0xff]  ;;  %v4162_v10 = vsel %vm285_vm1, %v4071_v36, 0 }
 0x345   : > { %20652 = vmatmul.mubr.f32.gmra.mrb[12].mxu1 %v4376_v58  ;;  %v4153_v58 = vsel %vm285_vm1, %v4068_v51, 0  ;;  %31516 = vst [vmem:[#allocation184_spill] sm:$0xff] %v27126_v17  ;;  %v31517_v51 = vand.u32 4294901760, %v27085_v6  ;;  %31521 = vst [vmem:[#allocation196_spill] sm:$0xff] %v27140_v29  ;;  %v31525_v34 = vand.u32 4294901760, %v27103_v18 }
 0x346   : > { %31512 = vst [vmem:[#allocation183_spill] sm:$0xff] %v27112_v15  ;;  %20654 = vmatprep.mubr.f32.mxu1 %v4386_v52  ;;  %v27133_v2 = vsub.f32 %v4150_v22, %v27112_v15  ;;  %v31520_v52 = vand.u32 4294901760, %v27093_v41  ;;  %v31524_v22 = vand.u32 4294901760, %v27100_v48  ;;  %v4073_v15 = vld [vmem:[%s24669_s9 + $0x16a] sm:$0xff] }
 0x347   : > { %22008 = vmatmul.mubr.f32.gmra.mrb[16].mxu0 %v31514_v9  ;;  %v4435_v9 = vsub.f32 %v27085_v6, %v31517_v51  ;;  %v4072_v51 = vld [vmem:[%s24669_s9 + $0x15a] sm:$0xff] }
 0x348   : > { %22010 = vmatprep.mubr.f32.mxu0 %v31515_v21  ;;  %31518 = vst [vmem:[#allocation188_spill] sm:$0xff] %v27133_v2  ;;  %v27135_v21 = vand.u32 4294901760, %v4153_v58  ;;  %v4445_v31 = vsub.f32 %v27093_v41, %v31520_v52  ;;  %v31523_v6 = vld [vmem:[#allocation219_spill] sm:$0xff]  ;;  %v4465_v52 = vsub.f32 %v27103_v18, %v31525_v34  ;;  %v4165_v34 = vsel %vm285_vm1, %v4072_v51, 0  ;;  %v31529_v41 = vld [vmem:[#allocation224_spill] sm:$0xff] }
 0x349   : > { %20655 = vmatmul.mubr.f32.gmra.mrb[14].mxu1 %v4396_v16  ;;  %v4159_v16 = vsel %vm285_vm1, %v4070_v38, 0  ;;  %v4436_v38 = vand.u32 4294901760, %v4435_v9  ;;  %v4074_v9 = vld [vmem:[%s24669_s9 + $0x172] sm:$0xff] }
 0x34a   : > { %31519 = vst [vmem:[#allocation192_spill] sm:$0xff] %v27135_v21  ;;  %20657 = vmatprep.mubr.f32.mxu1 %v4406_v5  ;;  %v4455_v5 = vsub.f32 %v27100_v48, %v31524_v22  ;;  %v27157_v36 = vsub.f32 %v4153_v58, %v27135_v21  ;;  %v4446_v27 = vand.u32 4294901760, %v4445_v31  ;;  %v27162_v22 = vsub.f32 %v4156_v61, %v27140_v29 }
 0x34b   : > { %22011 = vmatmul.mubr.f32.gmra.mrb[18].mxu0 %v31522_v60  ;;  %v27164_v48 = vand.u32 4294901760, %v4162_v10  ;;  %v31530_v60 = vld [vmem:[#allocation226_spill] sm:$0xff]  ;;  %v4466_v18 = vand.u32 4294901760, %v4465_v52  ;;  %v31531_v21 = vand.u32 4294901760, %v27126_v17  ;;  %v31532_v61 = vand.u32 4294901760, %v27133_v2 }
 0x34c   : > { %22013 = vmatprep.mubr.f32.mxu0 %v31523_v6  ;;  %31526 = vst [vmem:[#allocation197_spill] sm:$0xff] %v27157_v36  ;;  %v27159_v6 = vand.u32 4294901760, %v4159_v16  ;;  %v4456_v58 = vand.u32 4294901760, %v4455_v5 }
 0x34d   : > { %20658 = vmatmul.mubr.f32.gmra.mrb[16].mxu1 %v4416_v33  ;;  %31528 = vst [vmem:[#allocation210_spill] sm:$0xff] %v27164_v48  ;;  %v4168_v33 = vsel %vm285_vm1, %v4073_v15, 0  ;;  %v4485_v31 = vsub.f32 %v27133_v2, %v31532_v61  ;;  %v27181_v15 = vand.u32 4294901760, %v4165_v34  ;;  %v27185_v52 = vsub.f32 %v4162_v10, %v27164_v48  ;;  %v31536_v61 = vld [vmem:[#allocation231_spill] sm:$0xff] }
 0x34e   : > { %31527 = vst [vmem:[#allocation207_spill] sm:$0xff] %v27159_v6  ;;  %20660 = vmatprep.mubr.f32.mxu1 %v4426_v11  ;;  %v4475_v11 = vsub.f32 %v27126_v17, %v31531_v21  ;;  %v4171_v21 = vsel %vm285_vm1, %v4074_v9, 0  ;;  %v31539_v9 = vand.u32 4294901760, %v27162_v22 }
 0x34f   : > { %22014 = vmatmul.mubr.f32.gmra.mrb[20].mxu0 %v31529_v41  ;;  %v27179_v41 = vsub.f32 %v4159_v16, %v27159_v6  ;;  %31533 = vst [vmem:[#allocation214_spill] sm:$0xff] %v27181_v15  ;;  %v31537_v16 = vand.u32 4294901760, %v27157_v36  ;;  %v27197_v5 = vsub.f32 %v4165_v34, %v27181_v15  ;;  %v27199_v10 = vand.u32 4294901760, %v4171_v21 }
 0x350   : > { %22016 = vmatprep.mubr.f32.mxu0 %v31530_v60  ;;  %v27187_v60 = vand.u32 4294901760, %v4168_v33  ;;  %v4476_v51 = vand.u32 4294901760, %v4475_v11  ;;  %v4486_v17 = vand.u32 4294901760, %v4485_v31  ;;  %v30432_v11 = vand.u32 4294901760, %v27185_v52 }
 0x351   : > { %20661 = vmatmul.mubr.f32.gmra.mrb[18].mxu1 %v4436_v38  ;;  %v31535_v38 = vld [vmem:[#allocation228_spill] sm:$0xff]  ;;  %v4495_v2 = vsub.f32 %v27157_v36, %v31537_v16  ;;  %31538 = vst [vmem:[#allocation221_spill] sm:$0xff] %v27199_v10  ;;  %v31541_v16 = vld [vmem:[#allocation235_spill] sm:$0xff]  ;;  %v30436_v31 = vand.u32 4294901760, %v27197_v5  ;;  %v27215_v36 = vsub.f32 %v4171_v21, %v27199_v10 }
 0x352   : > { %20663 = vmatprep.mubr.f32.mxu1 %v4446_v27  ;;  %31534 = vst [vmem:[#allocation218_spill] sm:$0xff] %v27187_v60  ;;  %v30433_v27 = vand.u32 4294901760, %v27179_v41 }
 0x353   : > { %22017 = vmatmul.mubr.f32.gmra.mrb[22].mxu0 %v31535_v38  ;;  %v4505_v38 = vsub.f32 %v27162_v22, %v31539_v9  ;;  %v4496_v34 = vand.u32 4294901760, %v4495_v2  ;;  %v31543_v2 = vand.u32 4294901760, %v31433_v25  ;;  %v4535_v21 = vsub.f32 %v27197_v5, %v30436_v31  ;;  %v18211_v25 = vld [vmem:[%s29823_s1 + $0x1c] sm:$0xf]  ;;  %v31565_v31 = vld [vmem:[#allocation225_spill] sm:$0xff] }
 0x354   : > { %22019 = vmatprep.mubr.f32.mxu0 %v31536_v61  ;;  %v31540_v61 = vld [vmem:[#allocation233_spill] sm:$0xff] }
 0x355   : > { %20664 = vmatmul.mubr.f32.gmra.mrb[20].mxu1 %v4456_v58  ;;  %v27206_v58 = vsub.f32 %v4168_v33, %v27187_v60  ;;  %v4506_v9 = vand.u32 4294901760, %v4505_v38  ;;  %v4525_v33 = vsub.f32 %v27185_v52, %v30432_v11 }
 0x356   : > { %20666 = vmatprep.mubr.f32.mxu1 %v4466_v18  ;;  %v4515_v18 = vsub.f32 %v27179_v41, %v30433_v27  ;;  %v31544_v27 = vand.u32 4294901760, %v31438_v37  ;;  %v31546_v37 = vand.u32 4294901760, %v31444_v42  ;;  %v31551_v42 = vld [vmem:[#allocation199_spill] sm:$0xff] }
 0x357   : > { %22020 = vmatmul.mubr.f32.gmra.mrb[24].mxu0 %v31540_v61  ;;  %v30435_v61 = vand.u32 4294901760, %v27206_v58  ;;  %v4526_v38 = vand.u32 4294901760, %v4525_v33 }
 0x358   : > { %22022 = vmatprep.mubr.f32.mxu0 %v31541_v16  ;;  %v31542_v16 = vld [vmem:[#allocation236_spill] sm:$0xff] }
 0x359   : > { %20667 = vmatmul.mubr.f32.gmra.mrb[22].mxu1 %v4476_v51  ;;  %v4516_v51 = vand.u32 4294901760, %v4515_v18  ;;  %v4545_v11 = vsub.f32 %v27206_v58, %v30435_v61  ;;  %v4536_v18 = vand.u32 4294901760, %v4535_v21  ;;  %v31554_v21 = vld [vmem:[#allocation206_spill] sm:$0xff]  ;;  %v31564_v61 = vld [vmem:[#allocation205_spill] sm:$0xff] }
 0x35a   : > { %20669 = vmatprep.mubr.f32.mxu1 %v4486_v17  ;;  %v30434_v17 = vand.u32 4294901760, %v27215_v36 }
 0x35b   : > { %22023 = vmatmul.mubr.f32.gmra.mrb[26].mxu0 %v31542_v16  ;;  %v4546_v33 = vand.u32 4294901760, %v4545_v11  ;;  %v13896_v16 = vsel %vm382_vm0, %v18211_v25, 0  ;;  %v31552_v11 = vld [vmem:[#allocation19_spill] sm:$0xff]  ;;  %v31556_v25 = vld [vmem:[#allocation174_spill] sm:$0xff] }
 0x35c   : > { %22025 = vmatprep.mubr.f32.mxu0 %v31543_v2  ;;  %v27245_v2 = vand.u32 4294901760, %v13896_v16 }
 0x35d   : > { %20670 = vmatmul.mubr.f32.gmra.mrb[24].mxu1 %v4496_v34  ;;  %v31545_v34 = vand.u32 4294901760, %v31439_v14  ;;  %v31550_v14 = vld [vmem:[#allocation198_spill] sm:$0xff] }
 0x35e   : > { %20672 = vmatprep.mubr.f32.mxu1 %v4506_v9  ;;  %v4555_v9 = vsub.f32 %v27215_v36, %v30434_v17  ;;  %31547 = vst [vmem:[#allocation223_spill] sm:$0xff] %v27245_v2  ;;  %v31563_v17 = vld [vmem:[#allocation204_spill] sm:$0xff] }
 0x35f   : > { %22026 = vmatmul.mubr.f32.gmra.mrb[28].mxu0 %v31544_v27 }
 0x360   : > { %22028 = vmatprep.mubr.f32.mxu0 %v31545_v34  ;;  %v4556_v27 = vand.u32 4294901760, %v4555_v9  ;;  %v31557_v34 = vld [vmem:[#allocation186_spill] sm:$0xff]  ;;  %v31559_v9 = vld [vmem:[#allocation216_spill] sm:$0xff] }
 0x361   : > { %20673 = vmatmul.mubr.f32.gmra.mrb[26].mxu1 %v4516_v51  ;;  %v31553_v51 = vld [vmem:[#allocation166_spill] sm:$0xff] }
 0x362   : > { %20675 = vmatprep.mubr.f32.mxu1 %v4526_v38  ;;  %v31555_v38 = vld [vmem:[#allocation209_spill] sm:$0xff] }
 0x363   : > { %22029 = vmatmul.mubr.f32.gmra.mrb[30].mxu0 %v31546_v37  ;;  %v31561_v37 = vld [vmem:[#allocation220_spill] sm:$0xff] }
 0x364   : > { %22033 = vmatprep.mubr.f32.mxu0 %v31393_v55 }
 0x365   : > { %20676 = vmatmul.mubr.f32.gmra.mrb[28].mxu1 %v4536_v18  ;;  %v31558_v18 = vld [vmem:[#allocation215_spill] sm:$0xff] }
 0x366   : > { %20678 = vmatprep.mubr.f32.mxu1 %v4546_v33  ;;  %v31560_v33 = vld [vmem:[#allocation203_spill] sm:$0xff] }
 0x367   : > { %22034 = vmatmul.mubr.f32.vlgmr.msra.gmra.mrb[0].mxu0 %v31396_v12 }
 0x368   : > { %22036 = vmatprep.mubr.f32.mxu0 %v31397_v19  ;;  %22082 = vmatpush3.msra.mxu0 %v26435_v43  ;;  %v31548_v43 = vld [vmem:[#allocation134_spill] sm:$0xff] }
 0x369   : > { %20679 = vmatmul.mubr.f32.gmra.mrb[30].mxu1 %v4556_v27  ;;  %22131 = vmatprep.subr.mxu0 %v27245_v2  ;;  %v31562_v27 = vld [vmem:[#allocation222_spill] sm:$0xff] }
 0x36a   : > { %20683 = vmatprep.mubr.f32.mxu1 %v26835_v28  ;;  %v18189_v28 = vld [vmem:[%s24669_s9 + $0xa9] sm:$0xff] }
 0x36b   : > { %22037 = vmatmul.mubr.f32.gmra.mrb[2].mxu0 %v31400_v1 }
 0x36c   : > { %22039 = vmatprep.mubr.f32.mxu0 %v31401_v20 }
 0x36d   : > { %20684 = vmatmul.mubr.f32.vlgmr.msra.gmra.mrb[0].mxu1 %v26844_v62 }
 0x36e   : > { %20732 = vmatpush3.msra.mxu1 %v26764_v24  ;;  %20686 = vmatprep.mubr.f32.mxu1 %v26850_v13  ;;  %v31549_v24 = vld [vmem:[#allocation140_spill] sm:$0xff] }
 0x36f   : > { %22040 = vmatmul.mubr.f32.gmra.mrb[4].mxu0 %v31404_v0  ;;  %20781 = vmatprep.subr.mxu1 %v26707_v44 }
 0x370   : > { %22042 = vmatprep.mubr.f32.mxu0 %v31405_v50 }
 0x371   : > { %20687 = vmatmul.mubr.f32.gmra.mrb[2].mxu1 %v26861_v59  ;;  %v18187_v59 = vld [vmem:[%s24669_s9 + $0x91] sm:$0xff] }
 0x372   : > { %20689 = vmatprep.mubr.f32.mxu1 %v26869_v57  ;;  %v31607_v57 = vld [vmem:[#allocation188_spill] sm:$0xff] }
 0x373   : > { %22043 = vmatmul.mubr.f32.gmra.mrb[6].mxu0 %v31407_v46 }
 0x374   : > { %22045 = vmatprep.mubr.f32.mxu0 %v31408_v32 }
 0x375   : > { %20690 = vmatmul.mubr.f32.gmra.mrb[4].mxu1 %v26881_v45 }
 0x376   : > { %20692 = vmatprep.mubr.f32.mxu1 %v26894_v63  ;;  %v18186_v63 = vld [vmem:[%s24669_s9 + $0x81] sm:$0xff] }
 0x377   : > { %22046 = vmatmul.mubr.f32.gmra.mrb[8].mxu0 %v31409_v56  ;;  %v13821_v62 = vsel %vm285_vm1, %v18186_v63, 0 }
 0x378   : > { %22048 = vmatprep.mubr.f32.mxu0 %v31410_v54  ;;  %v27443_v13 = vand.u32 4294901760, %v13821_v62 }
 0x379   : > { %20693 = vmatmul.mubr.f32.gmra.mrb[6].mxu1 %v26905_v23 }
 0x37a   : > { %20695 = vmatprep.mubr.f32.mxu1 %v26919_v3  ;;  %31615 = vst [vmem:[#allocation151_spill] sm:$0xff] %v27443_v13 }
 0x37b   : > { %22049 = vmatmul.mubr.f32.gmra.mrb[10].mxu0 %v31411_v39 }
 0x37c   : > { %22051 = vmatprep.mubr.f32.mxu0 %v31412_v30 }
 0x37d   : > { %20696 = vmatmul.mubr.f32.gmra.mrb[8].mxu1 %v26936_v35  ;;  %v31601_v35 = vld [vmem:[#allocation176_spill] sm:$0xff] }
 0x37e   : > { %20698 = vmatprep.mubr.f32.mxu1 %v26938_v7  ;;  %v31600_v7 = vld [vmem:[#allocation57_spill] sm:$0xff] }
 0x37f   : > { %22052 = vmatmul.mubr.f32.gmra.mrb[12].mxu0 %v31413_v26 }
 0x380   : > { %22054 = vmatprep.mubr.f32.mxu0 %v31414_v40 }
 0x381   : > { %20699 = vmatmul.mubr.f32.gmra.mrb[10].mxu1 %v26958_v49 }
 0x382   : > { %20701 = vmatprep.mubr.f32.mxu1 %v26973_v8 }
 0x383   : > { %22055 = vmatmul.mubr.f32.gmra.mrb[14].mxu0 %v31415_v4 }
 0x384   : > { %22057 = vmatprep.mubr.f32.mxu0 %v31416_v47 }
 0x385   : > { %20702 = vmatmul.mubr.f32.gmra.mrb[12].mxu1 %v31548_v43  ;;  %v31574_v43 = vld [vmem:[#allocation141_spill] sm:$0xff] }
 0x386   : > { %20704 = vmatprep.mubr.f32.mxu1 %v31549_v24  ;;  %v31571_v24 = vld [vmem:[#allocation192_spill] sm:$0xff] }
 0x387   : > { %22058 = vmatmul.mubr.f32.gmra.mrb[16].mxu0 %v31550_v14 }
 0x388   : > { %22060 = vmatprep.mubr.f32.mxu0 %v31551_v42 }
 0x389   : > { %20705 = vmatmul.mubr.f32.gmra.mrb[14].mxu1 %v31552_v11  ;;  %v31570_v11 = vld [vmem:[#allocation137_spill] sm:$0xff] }
 0x38a   : > { %20707 = vmatprep.mubr.f32.mxu1 %v31553_v51  ;;  %v27302_v51 = vsub.f32 %v13896_v16, %v27245_v2 }
 0x38b   : > { %22061 = vmatmul.mubr.f32.gmra.mrb[18].mxu0 %v31554_v21 }
 0x38c   : > { %22063 = vmatprep.mubr.f32.mxu0 %v31555_v38 }
 0x38d   : > { %20708 = vmatmul.mubr.f32.gmra.mrb[16].mxu1 %v31556_v25  ;;  %v31566_v25 = vld [vmem:[#allocation227_spill] sm:$0xff] }
 0x38e   : > { %20710 = vmatprep.mubr.f32.mxu1 %v31557_v34  ;;  %v31567_v34 = vld [vmem:[#allocation177_spill] sm:$0xff] }
 0x38f   : > { %22064 = vmatmul.mubr.f32.gmra.mrb[20].mxu0 %v31558_v18 }
 0x390   : > { %22066 = vmatprep.mubr.f32.mxu0 %v31559_v9 }
 0x391   : > { %20711 = vmatmul.mubr.f32.gmra.mrb[18].mxu1 %v27062_v53  ;;  %v31568_v53 = vld [vmem:[#allocation183_spill] sm:$0xff] }
 0x392   : > { %20713 = vmatprep.mubr.f32.mxu1 %v31560_v33  ;;  %v31569_v33 = vld [vmem:[#allocation230_spill] sm:$0xff] }
 0x393   : > { %22067 = vmatmul.mubr.f32.gmra.mrb[22].mxu0 %v31561_v37 }
 0x394   : > { %22069 = vmatprep.mubr.f32.mxu0 %v31562_v27 }
 0x395   : > { %20714 = vmatmul.mubr.f32.gmra.mrb[20].mxu1 %v31563_v17  ;;  %v27309_v17 = vand.u32 4294901760, %v27302_v51 }
 0x396   : > { %20716 = vmatprep.mubr.f32.mxu1 %v31564_v61  ;;  %v31573_v61 = vld [vmem:[#allocation139_spill] sm:$0xff] }
 0x397   : > { %22070 = vmatmul.mubr.f32.gmra.mrb[24].mxu0 %v31565_v31  ;;  %31572 = vst [vmem:[#allocation237_spill] sm:$0xff] %v27309_v17  ;;  %v14288_v16 = vsub.f32 %v27302_v51, %v27309_v17  ;;  %v31576_v17 = vld [vmem:[#allocation156_spill] sm:$0xff] }
 0x398   : > { %22072 = vmatprep.mubr.f32.mxu0 %v31566_v25 }
 0x399   : > { %20717 = vmatmul.mubr.f32.gmra.mrb[22].mxu1 %v31567_v34  ;;  %v31597_v34 = vld [vmem:[#allocation165_spill] sm:$0xff] }
 0x39a   : > { %20719 = vmatprep.mubr.f32.mxu1 %v31568_v53  ;;  %v31575_v53 = vld [vmem:[#allocation145_spill] sm:$0xff] }
 0x39b   : > { %22073 = vmatmul.mubr.f32.gmra.mrb[26].mxu0 %v31569_v33 }
 0x39c   : > { %22075 = vmatprep.mubr.f32.mxu0 %v31570_v11 }
 0x39d   : > { %20720 = vmatmul.mubr.f32.gmra.mrb[24].mxu1 %v31571_v24  ;;  %v27321_v24 = vand.u32 4294901760, %v14288_v16  ;;  %v31578_v16 = vld [vmem:[#allocation162_spill] sm:$0xff] }
 0x39e   : > { %20722 = vmatprep.mubr.f32.mxu1 %v27140_v29  ;;  %v31596_v29 = vld [vmem:[#allocation161_spill] sm:$0xff] }
 0x39f   : > { %22076 = vmatmul.mubr.f32.gmra.mrb[28].mxu0 %v31573_v61 }
 0x3a0   : > { %22078 = vmatprep.mubr.f32.mxu0 %v31574_v43 }
 0x3a1   : > { %20723 = vmatmul.mubr.f32.gmra.mrb[26].mxu1 %v27159_v6 }
 0x3a2   : > { %20725 = vmatprep.mubr.f32.mxu1 %v27164_v48  ;;  %v18181_v48 = vld [vmem:[%s24669_s9 + $0x49] sm:$0xff] }
 0x3a3   : > { %22079 = vmatmul.mubr.f32.gmra.mrb[30].mxu0 %v31575_v53 }
 0x3a4   : > { %22083 = vmatprep.mubr.f32.mxu0 %v31393_v55  ;;  %v31577_v55 = vld [vmem:[#allocation160_spill] sm:$0xff] }
 0x3a5   : > { %20726 = vmatmul.mubr.f32.gmra.mrb[28].mxu1 %v27181_v15  ;;  %v31594_v15 = vld [vmem:[#allocation190_spill] sm:$0xff] }
 0x3a6   : > { %20728 = vmatprep.mubr.f32.mxu1 %v27187_v60  ;;  %v31585_v60 = vld [vmem:[#allocation73_spill] sm:$0xff] }
 0x3a7   : > { %22084 = vmatmul.mubr.f32.vlgmr.msra.gmra.mrb[0].mxu0 %v31396_v12  ;;  %v31579_v12 = vld [vmem:[#allocation150_spill] sm:$0xff] }
 0x3a8   : > { %22086 = vmatprep.mubr.f32.mxu0 %v31397_v19  ;;  %22132 = vmatpush3.msra.mxu0 %v27245_v2  ;;  %v31580_v19 = vld [vmem:[#allocation164_spill] sm:$0xff] }
 0x3a9   : > { %20729 = vmatmul.mubr.f32.gmra.mrb[30].mxu1 %v27199_v10  ;;  %22181 = vmatprep.subr.mxu0 %v27321_v24  ;;  %v31581_v10 = vld [vmem:[#allocation37_spill] sm:$0xff]  ;;  %v18191_v2 = vld [vmem:[%s24669_s9 + $0xc1] sm:$0xff] }
 0x3aa   : > { %20733 = vmatprep.mubr.f32.mxu1 %v31576_v17 }
 0x3ab   : > { %22087 = vmatmul.mubr.f32.gmra.mrb[2].mxu0 %v31400_v1  ;;  %v31583_v1 = vld [vmem:[#allocation170_spill] sm:$0xff] }
 0x3ac   : > { %22089 = vmatprep.mubr.f32.mxu0 %v31401_v20  ;;  %v31582_v20 = vld [vmem:[#allocation168_spill] sm:$0xff] }
 0x3ad   : > { %20734 = vmatmul.mubr.f32.vlgmr.msra.gmra.mrb[0].mxu1 %v31577_v55 }
 0x3ae   : > { %20782 = vmatpush3.msra.mxu1 %v26707_v44  ;;  %20736 = vmatprep.mubr.f32.mxu1 %v31578_v16 }
 0x3af   : > { %22090 = vmatmul.mubr.f32.gmra.mrb[4].mxu0 %v31404_v0  ;;  %20831 = vmatprep.subr.mxu1 %v31579_v12  ;;  %v31584_v0 = vld [vmem:[#allocation171_spill] sm:$0xff] }
 0x3b0   : > { %22092 = vmatprep.mubr.f32.mxu0 %v31405_v50  ;;  %v31588_v50 = vld [vmem:[#allocation122_spill] sm:$0xff] }
 0x3b1   : > { %20737 = vmatmul.mubr.f32.gmra.mrb[2].mxu1 %v31580_v19 }
 0x3b2   : > { %20739 = vmatprep.mubr.f32.mxu1 %v31581_v10 }
 0x3b3   : > { %22093 = vmatmul.mubr.f32.gmra.mrb[6].mxu0 %v31407_v46  ;;  %v31586_v46 = vld [vmem:[#allocation100_spill] sm:$0xff] }
 0x3b4   : > { %22095 = vmatprep.mubr.f32.mxu0 %v31408_v32  ;;  %v31587_v32 = vld [vmem:[#allocation108_spill] sm:$0xff] }
 0x3b5   : > { %20740 = vmatmul.mubr.f32.gmra.mrb[4].mxu1 %v31582_v20 }
 0x3b6   : > { %20742 = vmatprep.mubr.f32.mxu1 %v31583_v1 }
 0x3b7   : > { %22096 = vmatmul.mubr.f32.gmra.mrb[8].mxu0 %v31409_v56  ;;  %v31593_v56 = vld [vmem:[#allocation182_spill] sm:$0xff] }
 0x3b8   : > { %22098 = vmatprep.mubr.f32.mxu0 %v31410_v54  ;;  %v31589_v54 = vld [vmem:[#allocation146_spill] sm:$0xff] }
 0x3b9   : > { %20743 = vmatmul.mubr.f32.gmra.mrb[6].mxu1 %v31584_v0 }
 0x3ba   : > { %20745 = vmatprep.mubr.f32.mxu1 %v31585_v60 }
 0x3bb   : > { %22099 = vmatmul.mubr.f32.gmra.mrb[10].mxu0 %v31411_v39  ;;  %v31590_v39 = vld [vmem:[#allocation154_spill] sm:$0xff] }
 0x3bc   : > { %22101 = vmatprep.mubr.f32.mxu0 %v31412_v30  ;;  %v31591_v30 = vld [vmem:[#allocation158_spill] sm:$0xff] }
 0x3bd   : > { %20746 = vmatmul.mubr.f32.gmra.mrb[8].mxu1 %v31586_v46 }
 0x3be   : > { %20748 = vmatprep.mubr.f32.mxu1 %v31587_v32 }
 0x3bf   : > { %22102 = vmatmul.mubr.f32.gmra.mrb[12].mxu0 %v31413_v26  ;;  %v31592_v26 = vld [vmem:[#allocation173_spill] sm:$0xff] }
 0x3c0   : > { %22104 = vmatprep.mubr.f32.mxu0 %v31414_v40  ;;  %v18179_v40 = vld [vmem:[%s24669_s9 + $0x31] sm:$0xff] }
 0x3c1   : > { %20749 = vmatmul.mubr.f32.gmra.mrb[10].mxu1 %v31588_v50 }
 0x3c2   : > { %20751 = vmatprep.mubr.f32.mxu1 %v31589_v54 }
 0x3c3   : > { %22105 = vmatmul.mubr.f32.gmra.mrb[14].mxu0 %v31415_v4  ;;  %v18180_v4 = vld [vmem:[%s24669_s9 + $0x39] sm:$0xff] }
 0x3c4   : > { %22107 = vmatprep.mubr.f32.mxu0 %v31416_v47  ;;  %v13800_v47 = vsel %vm285_vm1, %v18179_v40, 0  ;;  %v13803_v6 = vsel %vm285_vm1, %v18180_v4, 0  ;;  %v18183_v40 = vld [vmem:[%s24669_s9 + $0x61] sm:$0xff]  ;;  %v18184_v4 = vld [vmem:[%s24669_s9 + $0x69] sm:$0xff] }
 0x3c5   : > { %20752 = vmatmul.mubr.f32.gmra.mrb[12].mxu1 %v31590_v39  ;;  %v27382_v8 = vand.u32 4294901760, %v13803_v6  ;;  %v13815_v23 = vsel %vm285_vm1, %v18184_v4, 0 }
 0x3c6   : > { %20754 = vmatprep.mubr.f32.mxu1 %v31591_v30 }
 0x3c7   : > { %22108 = vmatmul.mubr.f32.gmra.mrb[16].mxu0 %v31550_v14  ;;  %v31595_v14 = vld [vmem:[#allocation201_spill] sm:$0xff]  ;;  %v27397_v3 = vsub.f32 %v13803_v6, %v27382_v8  ;;  %v31606_v6 = vld [vmem:[#allocation184_spill] sm:$0xff] }
 0x3c8   : > { %22110 = vmatprep.mubr.f32.mxu0 %v31551_v42  ;;  %v27373_v42 = vand.u32 4294901760, %v13800_v47 }
 0x3c9   : > { %20755 = vmatmul.mubr.f32.gmra.mrb[14].mxu1 %v31592_v26  ;;  %31602 = vst [vmem:[#allocation115_spill] sm:$0xff] %v27397_v3 }
 0x3ca   : > { %20757 = vmatprep.mubr.f32.mxu1 %v31593_v56 }
 0x3cb   : > { %22111 = vmatmul.mubr.f32.gmra.mrb[18].mxu0 %v31554_v21  ;;  %v13806_v21 = vsel %vm285_vm1, %v18181_v48, 0  ;;  %v13812_v48 = vsel %vm285_vm1, %v18183_v40, 0 }
 0x3cc   : > { %22113 = vmatprep.mubr.f32.mxu0 %v31555_v38  ;;  %v18182_v38 = vld [vmem:[%s24669_s9 + $0x51] sm:$0xff]  ;;  %v27388_v49 = vand.u32 4294901760, %v13806_v21  ;;  %v27407_v40 = vand.u32 4294901760, %v13812_v48 }
 0x3cd   : > { %20758 = vmatmul.mubr.f32.gmra.mrb[16].mxu1 %v31594_v15 }
 0x3ce   : > { %20760 = vmatprep.mubr.f32.mxu1 %v31595_v14  ;;  %31599 = vst [vmem:[#allocation239_spill] sm:$0xff] %v27388_v49  ;;  %31605 = vst [vmem:[#allocation84_spill] sm:$0xff] %v27407_v40 }
 0x3cf   : > { %22114 = vmatmul.mubr.f32.gmra.mrb[20].mxu0 %v31558_v18  ;;  %v27386_v18 = vsub.f32 %v13800_v47, %v27373_v42  ;;  %v18185_v47 = vld [vmem:[%s24669_s9 + $0x79] sm:$0xff] }
 0x3d0   : > { %22116 = vmatprep.mubr.f32.mxu0 %v31559_v9  ;;  %v13809_v9 = vsel %vm285_vm1, %v18182_v38, 0  ;;  %v13818_v45 = vsel %vm285_vm1, %v18185_v47, 0  ;;  %v27419_v38 = vand.u32 4294901760, %v13815_v23  ;;  %v27428_v47 = vsub.f32 %v13812_v48, %v27407_v40 }
 0x3d1   : > { %20761 = vmatmul.mubr.f32.gmra.mrb[18].mxu1 %v31596_v29  ;;  %31598 = vst [vmem:[#allocation238_spill] sm:$0xff] %v27386_v18 }
 0x3d2   : > { %20763 = vmatprep.mubr.f32.mxu1 %v31597_v34  ;;  %31609 = vst [vmem:[#allocation142_spill] sm:$0xff] %v27419_v38  ;;  %31611 = vst [vmem:[#allocation89_spill] sm:$0xff] %v27428_v47  ;;  %v27441_v48 = vsub.f32 %v13815_v23, %v27419_v38  ;;  %v18190_v38 = vld [vmem:[%s24669_s9 + $0xb1] sm:$0xff] }
 0x3d3   : > { %22117 = vmatmul.mubr.f32.gmra.mrb[22].mxu0 %v31561_v37  ;;  %v27399_v37 = vand.u32 4294901760, %v13809_v9 }
 0x3d4   : > { %22119 = vmatprep.mubr.f32.mxu0 %v31562_v27  ;;  %v27405_v27 = vsub.f32 %v13806_v21, %v27388_v49  ;;  %31614 = vst [vmem:[#allocation149_spill] sm:$0xff] %v27441_v48  ;;  %v31623_v49 = vand.u32 4294901760, %v27428_v47 }
 0x3d5   : > { %20764 = vmatmul.mubr.f32.gmra.mrb[20].mxu1 %v31600_v7  ;;  %31603 = vst [vmem:[#allocation133_spill] sm:$0xff] %v27399_v37  ;;  %v27417_v21 = vsub.f32 %v13809_v9, %v27399_v37  ;;  %v27432_v9 = vand.u32 4294901760, %v13818_v45  ;;  %v13824_v37 = vsel %vm285_vm1, %v18187_v59, 0 }
 0x3d6   : > { %20766 = vmatprep.mubr.f32.mxu1 %v31601_v35  ;;  %31604 = vst [vmem:[#allocation136_spill] sm:$0xff] %v27405_v27 }
 0x3d7   : > { %22120 = vmatmul.mubr.f32.gmra.mrb[24].mxu0 %v31565_v31  ;;  %31608 = vst [vmem:[#allocation132_spill] sm:$0xff] %v27417_v21  ;;  %31612 = vst [vmem:[#allocation97_spill] sm:$0xff] %v27432_v9  ;;  %v31613_v31 = vld [vmem:[#allocation197_spill] sm:$0xff]  ;;  %v27455_v23 = vsub.f32 %v13818_v45, %v27432_v9 }
 0x3d8   : > { %22122 = vmatprep.mubr.f32.mxu0 %v31566_v25  ;;  %v31610_v25 = vand.u32 4294901760, %v27386_v18 }
 0x3d9   : > { %20767 = vmatmul.mubr.f32.gmra.mrb[22].mxu1 %v31606_v6  ;;  %31618 = vst [vmem:[#allocation105_spill] sm:$0xff] %v27455_v23 }
 0x3da   : > { %20769 = vmatprep.mubr.f32.mxu1 %v31607_v57  ;;  %v13967_v4 = vsub.f32 %v27386_v18, %v31610_v25  ;;  %v31617_v18 = vand.u32 4294901760, %v27405_v27  ;;  %v27457_v25 = vand.u32 4294901760, %v13824_v37 }
 0x3db   : > { %22123 = vmatmul.mubr.f32.gmra.mrb[26].mxu0 %v31569_v33  ;;  %v18188_v33 = vld [vmem:[%s24669_s9 + $0x99] sm:$0xff] }
 0x3dc   : > { %22125 = vmatprep.mubr.f32.mxu0 %v31570_v11  ;;  %v13968_v63 = vand.u32 4294901760, %v13967_v4  ;;  %v31616_v11 = vand.u32 4294901760, %v27397_v3  ;;  %v13987_v40 = vsub.f32 %v27405_v27, %v31617_v18  ;;  %31619 = vst [vmem:[#allocation18_spill] sm:$0xff] %v27457_v25  ;;  %v13830_v4 = vsel %vm285_vm1, %v18189_v28, 0 }
 0x3dd   : > { %20770 = vmatmul.mubr.f32.gmra.mrb[24].mxu1 %v31613_v31  ;;  %v31620_v18 = vand.u32 4294901760, %v27417_v21  ;;  %v27475_v27 = vand.u32 4294901760, %v13830_v4 }
 0x3de   : > { %20772 = vmatprep.mubr.f32.mxu1 %v27162_v22  ;;  %v13977_v59 = vsub.f32 %v27397_v3, %v31616_v11  ;;  %v27469_v11 = vsub.f32 %v13821_v62, %v27443_v13  ;;  %v13833_v3 = vsel %vm285_vm1, %v18190_v38, 0  ;;  %v13988_v9 = vand.u32 4294901760, %v13987_v40 }
 0x3df   : > { %22126 = vmatmul.mubr.f32.gmra.mrb[28].mxu0 %v31573_v61  ;;  %v13827_v61 = vsel %vm285_vm1, %v18188_v33, 0  ;;  %31622 = vst [vmem:[#allocation40_spill] sm:$0xff] %v27475_v27  ;;  %v27483_v62 = vsub.f32 %v13824_v37, %v27457_v25  ;;  %v31625_v40 = vand.u32 4294901760, %v27441_v48  ;;  %v27494_v45 = vand.u32 4294901760, %v13833_v3 }
 0x3e0   : > { %22128 = vmatprep.mubr.f32.mxu0 %v31574_v43  ;;  %v13997_v43 = vsub.f32 %v27417_v21, %v31620_v18  ;;  %v13978_v28 = vand.u32 4294901760, %v13977_v59  ;;  %v27473_v33 = vand.u32 4294901760, %v13827_v61  ;;  %v14007_v18 = vsub.f32 %v27428_v47, %v31623_v49  ;;  %v18192_v21 = vld [vmem:[%s24669_s9 + $0xc9] sm:$0xff] }
 0x3e1   : > { %20773 = vmatmul.mubr.f32.gmra.mrb[26].mxu1 %v27179_v41  ;;  %31624 = vst [vmem:[#allocation46_spill] sm:$0xff] %v27483_v62  ;;  %v13836_v59 = vsel %vm285_vm1, %v18191_v2, 0  ;;  %31626 = vst [vmem:[#allocation175_spill] sm:$0xff] %v27494_v45  ;;  %v27500_v47 = vsub.f32 %v13830_v4, %v27475_v27  ;;  %v13839_v2 = vsel %vm285_vm1, %v18192_v21, 0  ;;  %v31629_v49 = vand.u32 4294901760, %v27455_v23 }
 0x3e2   : > { %20775 = vmatprep.mubr.f32.mxu1 %v27185_v52  ;;  %31621 = vst [vmem:[#allocation163_spill] sm:$0xff] %v27473_v33  ;;  %v13998_v38 = vand.u32 4294901760, %v13997_v43  ;;  %v27497_v37 = vsub.f32 %v13827_v61, %v27473_v33  ;;  %v27509_v61 = vand.u32 4294901760, %v13836_v59  ;;  %v18194_v33 = vld [vmem:[%s24669_s9 + $0xe1] sm:$0xff]  ;;  %v31631_v21 = vand.u32 4294901760, %v31576_v17 }
 0x3e3   : > { %22129 = vmatmul.mubr.f32.gmra.mrb[30].mxu0 %v31575_v53  ;;  %v18193_v53 = vld [vmem:[%s24669_s9 + $0xd9] sm:$0xff]  ;;  %31628 = vst [vmem:[#allocation185_spill] sm:$0xff] %v27500_v47  ;;  %v27519_v4 = vand.u32 4294901760, %v13839_v2  ;;  %v31639_v17 = vand.u32 4294901760, %v31578_v16  ;;  %v31644_v16 = vand.u32 4294901760, %v27500_v47 }
 0x3e4   : > { %22133 = vmatprep.mubr.f32.mxu0 %v13968_v63  ;;  %v14017_v63 = vsub.f32 %v27441_v48, %v31625_v40  ;;  %31627 = vst [vmem:[#allocation179_spill] sm:$0xff] %v27497_v37  ;;  %v13842_v43 = vsel %vm285_vm1, %v18193_v53, 0  ;;  %v14008_v40 = vand.u32 4294901760, %v14007_v18  ;;  %v14027_v48 = vsub.f32 %v27455_v23, %v31629_v49  ;;  %31630 = vst [vmem:[#allocation187_spill] sm:$0xff] %v27509_v61  ;;  %v18195_v53 = vld [vmem:[%s24669_s9 + $0xf1] sm:$0xff]  ;;  %v18196_v23 = vld [vmem:[%s24669_s9 + $0xf9] sm:$0xff] }
 0x3e5   : > { %20776 = vmatmul.mubr.f32.gmra.mrb[28].mxu1 %v27197_v5  ;;  %31633 = vst [vmem:[#allocation195_spill] sm:$0xff] %v27519_v4  ;;  %v27521_v18 = vand.u32 4294901760, %v13842_v43  ;;  %v31635_v49 = vand.u32 4294901760, %v27469_v11  ;;  %v27534_v27 = vsub.f32 %v13836_v59, %v27509_v61 }
 0x3e6   : > { %20778 = vmatprep.mubr.f32.mxu1 %v27206_v58 }
 0x3e7   : > { %22134 = vmatmul.mubr.f32.vlgmr.msra.gmra.mrb[0].mxu0 %v13978_v28  ;;  %31634 = vst [vmem:[#allocation135_spill] sm:$0xff] %v27521_v18  ;;  %v14037_v28 = vsub.f32 %v27469_v11, %v31635_v49  ;;  %31637 = vst [vmem:[#allocation229_spill] sm:$0xff] %v27534_v27  ;;  %v13848_v49 = vsel %vm285_vm1, %v18195_v53, 0  ;;  %v27548_v59 = vsub.f32 %v13842_v43, %v27521_v18 }
 0x3e8   : > { %22136 = vmatprep.mubr.f32.mxu0 %v13988_v9  ;;  %22182 = vmatpush3.msra.mxu0 %v27321_v24  ;;  %v14018_v9 = vand.u32 4294901760, %v14017_v63  ;;  %v27517_v24 = vsub.f32 %v13833_v3, %v27494_v45  ;;  %v13845_v63 = vsel %vm285_vm1, %v18194_v33, 0  ;;  %v14028_v3 = vand.u32 4294901760, %v14027_v48  ;;  %v18198_v48 = vld [vmem:[%s24669_s9 + $0x111] sm:$0xff] }
 0x3e9   : > { %20779 = vmatmul.mubr.f32.gmra.mrb[30].mxu1 %v27215_v36  ;;  %22231 = vmatprep.subr.mxu0 %v27302_v51  ;;  %v27545_v33 = vsub.f32 %v13839_v2, %v27519_v4  ;;  %31641 = vst [vmem:[#allocation234_spill] sm:$0xff] %v27548_v59  ;;  %v14038_v53 = vand.u32 4294901760, %v14037_v28  ;;  %v31646_v28 = vand.u32 4294901760, %v31580_v19  ;;  %v18199_v19 = vld [vmem:[%s24669_s9 + $0x121] sm:$0xff]  ;;  %v13857_v43 = vsel %vm285_vm1, %v18198_v48, 0 }
 0x3ea   : > { %20783 = vmatprep.mubr.f32.mxu1 %v31631_v21  ;;  %31632 = vst [vmem:[#allocation191_spill] sm:$0xff] %v27517_v24  ;;  %v31636_v21 = vand.u32 4294901760, %v27483_v62 }
 0x3eb   : > { %22137 = vmatmul.mubr.f32.gmra.mrb[2].mxu0 %v13998_v38  ;;  %v31638_v38 = vand.u32 4294901760, %v31577_v55  ;;  %31640 = vst [vmem:[#allocation232_spill] sm:$0xff] %v27545_v33  ;;  %v18197_v55 = vld [vmem:[%s24669_s9 + $0x109] sm:$0xff] }
 0x3ec   : > { %22139 = vmatprep.mubr.f32.mxu0 %v14008_v40  ;;  %v14047_v45 = vsub.f32 %v27483_v62, %v31636_v21  ;;  %v27550_v40 = vand.u32 4294901760, %v13845_v63  ;;  %v31643_v21 = vand.u32 4294901760, %v27497_v37  ;;  %v18202_v62 = vld [vmem:[%s24669_s9 + $0x141] sm:$0xff] }
 0x3ed   : > { %20784 = vmatmul.mubr.f32.vlgmr.msra.gmra.mrb[0].mxu1 %v31638_v38  ;;  %v27561_v38 = vand.u32 4294901760, %v13848_v49 }
 0x3ee   : > { %20832 = vmatpush3.msra.mxu1 %v31579_v12  ;;  %20786 = vmatprep.mubr.f32.mxu1 %v31639_v17  ;;  %31642 = vst [vmem:[#allocation76_spill] sm:$0xff] %v27550_v40  ;;  %v14057_v12 = vsub.f32 %v27497_v37, %v31643_v21  ;;  %v14067_v17 = vsub.f32 %v27500_v47, %v31644_v16  ;;  %v14048_v2 = vand.u32 4294901760, %v14047_v45  ;;  %v13854_v21 = vsel %vm285_vm1, %v18197_v55, 0 }
 0x3ef   : > { %22140 = vmatmul.mubr.f32.gmra.mrb[4].mxu0 %v14018_v9  ;;  %20881 = vmatprep.subr.mxu1 %v26707_v44  ;;  %31645 = vst [vmem:[#allocation143_spill] sm:$0xff] %v27561_v38  ;;  %v13851_v9 = vsel %vm285_vm1, %v18196_v23, 0  ;;  %v31647_v37 = vand.u32 4294901760, %v31581_v10  ;;  %v31648_v16 = vand.u32 4294901760, %v27517_v24  ;;  %v27576_v23 = vsub.f32 %v13845_v63, %v27550_v40  ;;  %v18200_v63 = vld [vmem:[%s24669_s9 + $0x129] sm:$0xff] }
 0x3f0   : > { %22142 = vmatprep.mubr.f32.mxu0 %v14028_v3  ;;  %v14058_v55 = vand.u32 4294901760, %v14057_v12  ;;  %v27579_v47 = vand.u32 4294901760, %v13851_v9  ;;  %v31651_v10 = vand.u32 4294901760, %v27534_v27  ;;  %v27587_v3 = vand.u32 4294901760, %v13854_v21 }
 0x3f1   : > { %20787 = vmatmul.mubr.f32.gmra.mrb[2].mxu1 %v31646_v28  ;;  %v14077_v45 = vsub.f32 %v27517_v24, %v31648_v16  ;;  %31649 = vst [vmem:[#allocation147_spill] sm:$0xff] %v27576_v23  ;;  %v14068_v28 = vand.u32 4294901760, %v14067_v17  ;;  %v27585_v16 = vsub.f32 %v13848_v49, %v27561_v38  ;;  %v18201_v24 = vld [vmem:[%s24669_s9 + $0x139] sm:$0xff]  ;;  %v13860_v12 = vsel %vm285_vm1, %v18199_v19, 0 }
 0x3f2   : > { %20789 = vmatprep.mubr.f32.mxu1 %v31647_v37  ;;  %31650 = vst [vmem:[#allocation148_spill] sm:$0xff] %v27579_v47  ;;  %v14087_v37 = vsub.f32 %v27534_v27, %v31651_v10  ;;  %31653 = vst [vmem:[#allocation144_spill] sm:$0xff] %v27587_v3  ;;  %v31655_v17 = vand.u32 4294901760, %v31583_v1  ;;  %v31656_v10 = vand.u32 4294901760, %v27545_v33  ;;  %v31657_v27 = vand.u32 4294901760, %v27548_v59 }
 0x3f3   : > { %22143 = vmatmul.mubr.f32.gmra.mrb[6].mxu0 %v14038_v53  ;;  %31652 = vst [vmem:[#allocation138_spill] sm:$0xff] %v27585_v16  ;;  %v31654_v53 = vand.u32 4294901760, %v31582_v20  ;;  %v27605_v20 = vsub.f32 %v13851_v9, %v27579_v47  ;;  %v27607_v19 = vand.u32 4294901760, %v13857_v43  ;;  %v13863_v1 = vsel %vm285_vm1, %v18200_v63, 0  ;;  %v18203_v9 = vld [vmem:[%s24669_s9 + $0x151] sm:$0xff] }
 0x3f4   : > { %22145 = vmatprep.mubr.f32.mxu0 %v14048_v2  ;;  %v14078_v2 = vand.u32 4294901760, %v14077_v45  ;;  %v14097_v49 = vsub.f32 %v27545_v33, %v31656_v10  ;;  %v14107_v48 = vsub.f32 %v27548_v59, %v31657_v27  ;;  %v13866_v45 = vsel %vm285_vm1, %v18201_v24, 0 }
 0x3f5   : > { %20790 = vmatmul.mubr.f32.gmra.mrb[4].mxu1 %v31654_v53  ;;  %31658 = vst [vmem:[#allocation152_spill] sm:$0xff] %v27607_v19  ;;  %v14088_v53 = vand.u32 4294901760, %v14087_v37  ;;  %v27613_v10 = vsub.f32 %v13854_v21, %v27587_v3  ;;  %v27615_v27 = vand.u32 4294901760, %v13860_v12  ;;  %v31662_v59 = vand.u32 4294901760, %v31585_v60 }
 0x3f6   : > { %20792 = vmatprep.mubr.f32.mxu1 %v31655_v17  ;;  %v14098_v63 = vand.u32 4294901760, %v14097_v49  ;;  %v14108_v24 = vand.u32 4294901760, %v14107_v48  ;;  %v27625_v37 = vand.u32 4294901760, %v13866_v45  ;;  %v31665_v21 = vand.u32 4294901760, %v27576_v23 }
 0x3f7   : > { %22146 = vmatmul.mubr.f32.gmra.mrb[8].mxu0 %v14058_v55  ;;  %31659 = vst [vmem:[#allocation157_spill] sm:$0xff] %v27613_v10  ;;  %31660 = vst [vmem:[#allocation25_spill] sm:$0xff] %v27615_v27  ;;  %v31661_v55 = vand.u32 4294901760, %v31584_v0  ;;  %v13869_v60 = vsel %vm285_vm1, %v18202_v62, 0  ;;  %v13872_v33 = vsel %vm285_vm1, %v18203_v9, 0  ;;  %v18204_v0 = vld [vmem:[%s24669_s9 + $0x159] sm:$0xff] }
 0x3f8   : > { %22148 = vmatprep.mubr.f32.mxu0 %v14068_v28  ;;  %v27623_v28 = vand.u32 4294901760, %v13863_v1  ;;  %31664 = vst [vmem:[#allocation52_spill] sm:$0xff] %v27625_v37  ;;  %v14117_v17 = vsub.f32 %v27576_v23, %v31665_v21  ;;  %v31669_v21 = vand.u32 4294901760, %v31586_v46  ;;  %v31674_v9 = vand.u32 4294901760, %v27605_v20 }
 0x3f9   : > { %20793 = vmatmul.mubr.f32.gmra.mrb[6].mxu1 %v31661_v55  ;;  %v27632_v55 = vsub.f32 %v13857_v43, %v27607_v19  ;;  %v31670_v43 = vand.u32 4294901760, %v31587_v32  ;;  %v31678_v32 = vand.u32 4294901760, %v31589_v54 }
 0x3fa   : > { %20795 = vmatprep.mubr.f32.mxu1 %v31662_v59  ;;  %31663 = vst [vmem:[#allocation49_spill] sm:$0xff] %v27623_v28  ;;  %v31667_v59 = vand.u32 4294901760, %v27585_v16  ;;  %v27649_v62 = vsub.f32 %v13863_v1, %v27623_v28  ;;  %v14118_v48 = vand.u32 4294901760, %v14117_v17  ;;  %v14137_v46 = vsub.f32 %v27605_v20, %v31674_v9  ;;  %v18206_v9 = vld [vmem:[%s24669_s9 + $0x171] sm:$0xff] }
 0x3fb   : > { %22149 = vmatmul.mubr.f32.gmra.mrb[10].mxu0 %v14078_v2  ;;  %31666 = vst [vmem:[#allocation68_spill] sm:$0xff] %v27632_v55  ;;  %v27640_v2 = vsub.f32 %v13860_v12, %v27615_v27  ;;  %v18205_v12 = vld [vmem:[%s24669_s9 + $0x169] sm:$0xff]  ;;  %v31677_v17 = vand.u32 4294901760, %v31588_v50  ;;  %v31679_v50 = vand.u32 4294901760, %v27632_v55 }
 0x3fc   : > { %22151 = vmatprep.mubr.f32.mxu0 %v14088_v53  ;;  %v14127_v49 = vsub.f32 %v27585_v16, %v31667_v59  ;;  %31671 = vst [vmem:[#allocation180_spill] sm:$0xff] %v27649_v62  ;;  %v27652_v53 = vsub.f32 %v13866_v45, %v27625_v37  ;;  %v27654_v59 = vand.u32 4294901760, %v13869_v60  ;;  %v13878_v23 = vsel %vm285_vm1, %v18205_v12, 0  ;;  %v18207_v16 = vld [vmem:[%s24669_s9 + $0x181] sm:$0xff] }
 0x3fd   : > { %31668 = vst [vmem:[#allocation178_spill] sm:$0xff] %v27640_v2  ;;  %20796 = vmatmul.mubr.f32.gmra.mrb[8].mxu1 %v31669_v21  ;;  %v27661_v21 = vand.u32 4294901760, %v13872_v33  ;;  %v14157_v12 = vsub.f32 %v27632_v55, %v31679_v50  ;;  %v13884_v50 = vsel %vm285_vm1, %v18207_v16, 0  ;;  %v18208_v55 = vld [vmem:[%s24669_s9 + $0x189] sm:$0xff] }
 0x3fe   : > { %20798 = vmatprep.mubr.f32.mxu1 %v31670_v43  ;;  %31672 = vst [vmem:[#allocation181_spill] sm:$0xff] %v27652_v53  ;;  %31673 = vst [vmem:[#allocation189_spill] sm:$0xff] %v27654_v59  ;;  %v14128_v1 = vand.u32 4294901760, %v14127_v49  ;;  %v31676_v43 = vand.u32 4294901760, %v27613_v10  ;;  %v31681_v49 = vand.u32 4294901760, %v27640_v2 }
 0x3ff   : > { %22152 = vmatmul.mubr.f32.gmra.mrb[12].mxu0 %v14098_v63  ;;  %31675 = vst [vmem:[#allocation193_spill] sm:$0xff] %v27661_v21  ;;  %v13875_v63 = vsel %vm285_vm1, %v18204_v0, 0  ;;  %v14138_v0 = vand.u32 4294901760, %v14137_v46  ;;  %v31683_v46 = vand.u32 4294901760, %v31590_v39  ;;  %v14158_v39 = vand.u32 4294901760, %v14157_v12  ;;  %v18210_v12 = vld [vmem:[%s24669_s9 + $0x1a1] sm:$0xff] }
 0x400   : > { %22154 = vmatprep.mubr.f32.mxu0 %v14108_v24  ;;  %v14147_v45 = vsub.f32 %v27613_v10, %v31676_v43  ;;  %v27677_v43 = vsub.f32 %v13869_v60, %v27654_v59  ;;  %v27686_v54 = vand.u32 4294901760, %v13875_v63  ;;  %v14167_v60 = vsub.f32 %v27640_v2, %v31681_v49  ;;  %v18209_v2 = vld [vmem:[%s24669_s9 + $0x199] sm:$0xff] }
 0x401   : > { %20799 = vmatmul.mubr.f32.gmra.mrb[10].mxu1 %v31677_v17  ;;  %v27684_v17 = vsub.f32 %v13872_v33, %v27661_v21  ;;  %v27691_v24 = vand.u32 4294901760, %v13878_v23  ;;  %v31684_v33 = vand.u32 4294901760, %v31591_v30  ;;  %v31686_v10 = vand.u32 4294901760, %v27652_v53 }
 0x402   : > { %20801 = vmatprep.mubr.f32.mxu1 %v31678_v32  ;;  %31680 = vst [vmem:[#allocation200_spill] sm:$0xff] %v27686_v54  ;;  %v14148_v32 = vand.u32 4294901760, %v14147_v45 }
 0x403   : > { %22155 = vmatmul.mubr.f32.gmra.mrb[14].mxu0 %v14118_v48  ;;  %31682 = vst [vmem:[#allocation202_spill] sm:$0xff] %v27691_v24  ;;  %v13881_v48 = vsel %vm285_vm1, %v18206_v9, 0  ;;  %v14187_v49 = vsub.f32 %v27652_v53, %v31686_v10  ;;  %v13887_v10 = vsel %vm285_vm1, %v18208_v55, 0  ;;  %v31689_v9 = vand.u32 4294901760, %v31592_v26 }
 0x404   : > { %22157 = vmatprep.mubr.f32.mxu0 %v14128_v1  ;;  %v31685_v1 = vand.u32 4294901760, %v27649_v62  ;;  %v27712_v30 = vand.u32 4294901760, %v13881_v48 }
 0x405   : > { %20802 = vmatmul.mubr.f32.gmra.mrb[12].mxu1 %v31683_v46  ;;  %v27710_v46 = vsub.f32 %v13875_v63, %v27686_v54  ;;  %v31690_v63 = vand.u32 4294901760, %v31593_v56  ;;  %v14188_v53 = vand.u32 4294901760, %v14187_v49 }
 0x406   : > { %20804 = vmatprep.mubr.f32.mxu1 %v31684_v33  ;;  %v14177_v45 = vsub.f32 %v27649_v62, %v31685_v1  ;;  %31687 = vst [vmem:[#allocation208_spill] sm:$0xff] %v27712_v30  ;;  %v14168_v33 = vand.u32 4294901760, %v14167_v60  ;;  %v27715_v1 = vsub.f32 %v13878_v23, %v27691_v24  ;;  %v27717_v62 = vand.u32 4294901760, %v13884_v50 }
 0x407   : > { %22158 = vmatmul.mubr.f32.gmra.mrb[16].mxu0 %v14138_v0  ;;  %v13890_v0 = vsel %vm285_vm1, %v18209_v2, 0  ;;  %v31692_v60 = vand.u32 4294901760, %v27684_v17  ;;  %v30544_v26 = vand.u32 4294901760, %v27710_v46  ;;  %v27736_v2 = vand.u32 4294901760, %v13887_v10 }
 0x408   : > { %22160 = vmatprep.mubr.f32.mxu0 %v14148_v32  ;;  %31688 = vst [vmem:[#allocation211_spill] sm:$0xff] %v27717_v62  ;;  %v14178_v16 = vand.u32 4294901760, %v14177_v45  ;;  %v31691_v32 = vand.u32 4294901760, %v27677_v43  ;;  %v27740_v45 = vsub.f32 %v13884_v50, %v27717_v62  ;;  %v27742_v49 = vand.u32 4294901760, %v13890_v0 }
 0x409   : > { %20805 = vmatmul.mubr.f32.gmra.mrb[14].mxu1 %v31689_v9  ;;  %v14207_v55 = vsub.f32 %v27684_v17, %v31692_v60  ;;  %v27734_v9 = vsub.f32 %v13881_v48, %v27712_v30  ;;  %31693 = vst [vmem:[#allocation212_spill] sm:$0xff] %v27736_v2  ;;  %v27754_v50 = vsub.f32 %v13887_v10, %v27736_v2 }
 0x40a   : > { %20807 = vmatprep.mubr.f32.mxu1 %v31690_v63  ;;  %v14197_v23 = vsub.f32 %v27677_v43, %v31691_v32  ;;  %31694 = vst [vmem:[#allocation213_spill] sm:$0xff] %v27742_v49  ;;  %v31695_v63 = vand.u32 4294901760, %v31594_v15  ;;  %v31696_v32 = vand.u32 4294901760, %v31595_v14  ;;  %v31698_v15 = vand.u32 4294901760, %v27715_v1 }
 0x40b   : > { %22161 = vmatmul.mubr.f32.gmra.mrb[18].mxu0 %v14158_v39  ;;  %v13893_v39 = vsel %vm285_vm1, %v18210_v12, 0  ;;  %v30543_v60 = vand.u32 4294901760, %v27734_v9  ;;  %v14208_v12 = vand.u32 4294901760, %v14207_v55  ;;  %v30541_v55 = vand.u32 4294901760, %v27754_v50 }
 0x40c   : > { %22163 = vmatprep.mubr.f32.mxu0 %v14168_v33  ;;  %v14198_v48 = vand.u32 4294901760, %v14197_v23  ;;  %v14217_v33 = vsub.f32 %v27710_v46, %v30544_v26  ;;  %v27756_v56 = vand.u32 4294901760, %v13893_v39  ;;  %v14227_v14 = vsub.f32 %v27715_v1, %v31698_v15  ;;  %v31739_v26 = vld [vmem:[#allocation174_spill] sm:$0xff] }
 0x40d   : > { %20808 = vmatmul.mubr.f32.gmra.mrb[16].mxu1 %v31695_v63  ;;  %v30542_v23 = vand.u32 4294901760, %v27740_v45  ;;  %v31699_v63 = vand.u32 4294901760, %v31596_v29 }
 0x40e   : > { %20810 = vmatprep.mubr.f32.mxu1 %v31696_v32  ;;  %31697 = vst [vmem:[#allocation217_spill] sm:$0xff] %v27756_v56  ;;  %v31700_v32 = vand.u32 4294901760, %v31597_v34  ;;  %v14218_v10 = vand.u32 4294901760, %v14217_v33  ;;  %v27774_v15 = vsub.f32 %v13893_v39, %v27756_v56  ;;  %v31702_v33 = vand.u32 4294901760, %v31601_v35 }
 0x40f   : > { %22164 = vmatmul.mubr.f32.gmra.mrb[20].mxu0 %v14178_v16  ;;  %v27763_v16 = vsub.f32 %v13890_v0, %v27742_v49  ;;  %v14228_v0 = vand.u32 4294901760, %v14227_v14  ;;  %v14247_v29 = vsub.f32 %v27740_v45, %v30542_v23  ;;  %v14257_v39 = vsub.f32 %v27754_v50, %v30541_v55  ;;  %v31736_v55 = vld [vmem:[#allocation140_spill] sm:$0xff]  ;;  %v31737_v23 = vld [vmem:[#allocation19_spill] sm:$0xff] }
 0x410   : > { %22166 = vmatprep.mubr.f32.mxu0 %v14188_v53  ;;  %v14237_v53 = vsub.f32 %v27734_v9, %v30543_v60  ;;  %v31704_v35 = vand.u32 4294901760, %v31607_v57  ;;  %v31707_v57 = vand.u32 4294901760, %v27179_v41  ;;  %v31711_v41 = vld [vmem:[#allocation239_spill] sm:$0xff]  ;;  %v31738_v60 = vld [vmem:[#allocation166_spill] sm:$0xff] }
 0x411   : > { %20811 = vmatmul.mubr.f32.gmra.mrb[18].mxu1 %v31699_v63  ;;  %v30540_v34 = vand.u32 4294901760, %v27763_v16  ;;  %v14248_v14 = vand.u32 4294901760, %v14247_v29  ;;  %v31706_v29 = vand.u32 4294901760, %v27162_v22  ;;  %v18079_v22 = vld [vmem:[%s29823_s1 + $0xc] sm:$0xf] }
 0x412   : > { %20813 = vmatprep.mubr.f32.mxu1 %v31700_v32  ;;  %v14238_v63 = vand.u32 4294901760, %v14237_v53 }
 0x413   : > { %22167 = vmatmul.mubr.f32.gmra.mrb[22].mxu0 %v14198_v48  ;;  %v31701_v48 = vand.u32 4294901760, %v31600_v7  ;;  %v14267_v32 = vsub.f32 %v27763_v16, %v30540_v34  ;;  %v31703_v7 = vand.u32 4294901760, %v31606_v6  ;;  %v31735_v34 = vld [vmem:[#allocation134_spill] sm:$0xff] }
 0x414   : > { %22169 = vmatprep.mubr.f32.mxu0 %v14208_v12  ;;  %v30539_v12 = vand.u32 4294901760, %v27774_v15 }
 0x415   : > { %20814 = vmatmul.mubr.f32.gmra.mrb[20].mxu1 %v31701_v48  ;;  %v14268_v48 = vand.u32 4294901760, %v14267_v32  ;;  %v31715_v32 = vld [vmem:[#allocation133_spill] sm:$0xff] }
 0x416   : > { %20816 = vmatprep.mubr.f32.mxu1 %v31702_v33  ;;  %v14277_v53 = vsub.f32 %v27774_v15, %v30539_v12  ;;  %v31708_v33 = vand.u32 4294901760, %v27185_v52  ;;  %v6119_v52 = vsel %vm382_vm0, %v18079_v22, 0  ;;  %v31731_v22 = vld [vmem:[#allocation65_spill] sm:$0xff] }
 0x417   : > { %22170 = vmatmul.mubr.f32.gmra.mrb[24].mxu0 %v14218_v10  ;;  %v14258_v10 = vand.u32 4294901760, %v14257_v39  ;;  %v31712_v39 = vand.u32 4294901760, %v27215_v36  ;;  %v31721_v36 = vld [vmem:[#allocation97_spill] sm:$0xff] }
 0x418   : > { %22172 = vmatprep.mubr.f32.mxu0 %v14228_v0  ;;  %v31705_v0 = vand.u32 4294901760, %v31613_v31  ;;  %v14278_v6 = vand.u32 4294901760, %v14277_v53  ;;  %v31710_v31 = vand.u32 4294901760, %v27206_v58  ;;  %v31717_v58 = vld [vmem:[#allocation84_spill] sm:$0xff]  ;;  %v31734_v12 = vld [vmem:[#allocation81_spill] sm:$0xff] }
 0x419   : > { %20817 = vmatmul.mubr.f32.gmra.mrb[22].mxu1 %v31703_v7  ;;  %v27823_v7 = vand.u32 4294901760, %v6119_v52  ;;  %v31722_v53 = vld [vmem:[#allocation24_spill] sm:$0xff] }
 0x41a   : > { %20819 = vmatprep.mubr.f32.mxu1 %v31704_v35  ;;  %v31718_v35 = vld [vmem:[#allocation155_spill] sm:$0xff] }
 0x41b   : > { %22173 = vmatmul.mubr.f32.gmra.mrb[26].mxu0 %v14238_v63  ;;  %v31709_v63 = vand.u32 4294901760, %v27197_v5  ;;  %v31713_v5 = vld [vmem:[#allocation223_spill] sm:$0xff]  ;;  %31716 = vst [vmem:[#allocation219_spill] sm:$0xff] %v27823_v7 }
 0x41c   : > { %22175 = vmatprep.mubr.f32.mxu0 %v14248_v14  ;;  %v31714_v14 = vld [vmem:[#allocation153_spill] sm:$0xff] }
 0x41d   : > { %20820 = vmatmul.mubr.f32.gmra.mrb[24].mxu1 %v31705_v0  ;;  %v31724_v0 = vld [vmem:[#allocation31_spill] sm:$0xff] }
 0x41e   : > { %20822 = vmatprep.mubr.f32.mxu1 %v31706_v29  ;;  %v31725_v29 = vld [vmem:[#allocation167_spill] sm:$0xff] }
 0x41f   : > { %22176 = vmatmul.mubr.f32.gmra.mrb[28].mxu0 %v14258_v10  ;;  %v31720_v10 = vld [vmem:[#allocation142_spill] sm:$0xff] }
 0x420   : > { %22178 = vmatprep.mubr.f32.mxu0 %v14268_v48  ;;  %v31723_v48 = vld [vmem:[#allocation26_spill] sm:$0xff] }
 0x421   : > { %20823 = vmatmul.mubr.f32.gmra.mrb[26].mxu1 %v31707_v57  ;;  %v31728_v57 = vld [vmem:[#allocation169_spill] sm:$0xff] }
 0x422   : > { %20825 = vmatprep.mubr.f32.mxu1 %v31708_v33  ;;  %v31729_v33 = vld [vmem:[#allocation60_spill] sm:$0xff] }
 0x423   : > { %22179 = vmatmul.mubr.f32.gmra.mrb[30].mxu0 %v14278_v6  ;;  %v31727_v6 = vld [vmem:[#allocation40_spill] sm:$0xff] }
 0x424   : > { %22183 = vmatprep.mubr.f32.mxu0 %v27373_v42 }
 0x425   : > { %20826 = vmatmul.mubr.f32.gmra.mrb[28].mxu1 %v31709_v63  ;;  %v31730_v63 = vld [vmem:[#allocation175_spill] sm:$0xff] }
 0x426   : > { %20828 = vmatprep.mubr.f32.mxu1 %v31710_v31  ;;  %v31732_v31 = vld [vmem:[#allocation172_spill] sm:$0xff] }
 0x427   : > { %22184 = vmatmul.mubr.f32.vlgmr.msra.gmra.mrb[0].mxu0 %v27382_v8 }
 0x428   : > { %22186 = vmatprep.mubr.f32.mxu0 %v31711_v41  ;;  %22232 = vmatpush3.msra.mxu0 %v27302_v51  ;;  %v31719_v51 = vld [vmem:[#allocation159_spill] sm:$0xff] }
 0x429   : > { %20829 = vmatmul.mubr.f32.gmra.mrb[30].mxu1 %v31712_v39  ;;  %22281 = vmatprep.subr.mxu0 %v31713_v5  ;;  %v31733_v39 = vld [vmem:[#allocation92_spill] sm:$0xff] }
 0x42a   : > { %20833 = vmatprep.mubr.f32.mxu1 %v31714_v14 }
 0x42b   : > { %22187 = vmatmul.mubr.f32.gmra.mrb[2].mxu0 %v31715_v32 }
 0x42c   : > { %22189 = vmatprep.mubr.f32.mxu0 %v31717_v58  ;;  %v18054_v58 = vld [vmem:[%s24669_s9 + $0x68] sm:$0xff] }
 0x42d   : > { %20834 = vmatmul.mubr.f32.vlgmr.msra.gmra.mrb[0].mxu1 %v31718_v35  ;;  %v6044_v32 = vsel %vm285_vm1, %v18054_v58, 0 }
 0x42e   : > { %20882 = vmatpush3.msra.mxu1 %v26707_v44  ;;  %20836 = vmatprep.mubr.f32.mxu1 %v31719_v51  ;;  %v31726_v44 = vld [vmem:[#allocation163_spill] sm:$0xff]  ;;  %v28022_v58 = vand.u32 4294901760, %v6044_v32 }
 0x42f   : > { %22190 = vmatmul.mubr.f32.gmra.mrb[4].mxu0 %v31720_v10  ;;  %20931 = vmatprep.subr.mxu1 %v27823_v7 }
 0x430   : > { %22192 = vmatprep.mubr.f32.mxu0 %v31721_v36  ;;  %31791 = vst [vmem:[#allocation220_spill] sm:$0xff] %v28022_v58 }
 0x431   : > { %20837 = vmatmul.mubr.f32.gmra.mrb[2].mxu1 %v31722_v53 }
 0x432   : > { %20839 = vmatprep.mubr.f32.mxu1 %v31723_v48 }
 0x433   : > { %22193 = vmatmul.mubr.f32.gmra.mrb[6].mxu0 %v27443_v13 }
 0x434   : > { %22195 = vmatprep.mubr.f32.mxu0 %v27457_v25  ;;  %v31762_v25 = vld [vmem:[#allocation105_spill] sm:$0xff] }
 0x435   : > { %20840 = vmatmul.mubr.f32.gmra.mrb[4].mxu1 %v31724_v0 }
 0x436   : > { %20842 = vmatprep.mubr.f32.mxu1 %v31725_v29 }
 0x437   : > { %22196 = vmatmul.mubr.f32.gmra.mrb[8].mxu0 %v31726_v44  ;;  %v31760_v44 = vld [vmem:[#allocation89_spill] sm:$0xff] }
 0x438   : > { %22198 = vmatprep.mubr.f32.mxu0 %v31727_v6 }
 0x439   : > { %20843 = vmatmul.mubr.f32.gmra.mrb[6].mxu1 %v31728_v57 }
 0x43a   : > { %20845 = vmatprep.mubr.f32.mxu1 %v31729_v33 }
 0x43b   : > { %22199 = vmatmul.mubr.f32.gmra.mrb[10].mxu0 %v31730_v63  ;;  %v31759_v63 = vld [vmem:[#allocation132_spill] sm:$0xff] }
 0x43c   : > { %22201 = vmatprep.mubr.f32.mxu0 %v27509_v61  ;;  %v31757_v61 = vld [vmem:[#allocation221_spill] sm:$0xff] }
 0x43d   : > { %20846 = vmatmul.mubr.f32.gmra.mrb[8].mxu1 %v31731_v22 }
 0x43e   : > { %20848 = vmatprep.mubr.f32.mxu1 %v31732_v31 }
 0x43f   : > { %22202 = vmatmul.mubr.f32.gmra.mrb[12].mxu0 %v27519_v4  ;;  %v31754_v4 = vld [vmem:[#allocation218_spill] sm:$0xff] }
 0x440   : > { %22204 = vmatprep.mubr.f32.mxu0 %v27521_v18  ;;  %v31753_v18 = vld [vmem:[#allocation214_spill] sm:$0xff] }
 0x441   : > { %20849 = vmatmul.mubr.f32.gmra.mrb[10].mxu1 %v31733_v39 }
 0x442   : > { %20851 = vmatprep.mubr.f32.mxu1 %v31734_v12 }
 0x443   : > { %22205 = vmatmul.mubr.f32.gmra.mrb[14].mxu0 %v27550_v40  ;;  %v31740_v40 = vld [vmem:[#allocation186_spill] sm:$0xff] }
 0x444   : > { %22207 = vmatprep.mubr.f32.mxu0 %v27561_v38  ;;  %v31741_v38 = vld [vmem:[#allocation194_spill] sm:$0xff] }
 0x445   : > { %20852 = vmatmul.mubr.f32.gmra.mrb[12].mxu1 %v31735_v34 }
 0x446   : > { %20854 = vmatprep.mubr.f32.mxu1 %v31736_v55 }
 0x447   : > { %22208 = vmatmul.mubr.f32.gmra.mrb[16].mxu0 %v27579_v47  ;;  %v31742_v47 = vld [vmem:[#allocation203_spill] sm:$0xff] }
 0x448   : > { %22210 = vmatprep.mubr.f32.mxu0 %v27587_v3  ;;  %v31743_v3 = vld [vmem:[#allocation204_spill] sm:$0xff] }
 0x449   : > { %20855 = vmatmul.mubr.f32.gmra.mrb[14].mxu1 %v31737_v23 }
 0x44a   : > { %20857 = vmatprep.mubr.f32.mxu1 %v31738_v60 }
 0x44b   : > { %22211 = vmatmul.mubr.f32.gmra.mrb[18].mxu0 %v27607_v19  ;;  %v31744_v19 = vld [vmem:[#allocation205_spill] sm:$0xff] }
 0x44c   : > { %22213 = vmatprep.mubr.f32.mxu0 %v27615_v27  ;;  %v31745_v27 = vld [vmem:[#allocation177_spill] sm:$0xff] }
 0x44d   : > { %20858 = vmatmul.mubr.f32.gmra.mrb[16].mxu1 %v31739_v26 }
 0x44e   : > { %20860 = vmatprep.mubr.f32.mxu1 %v31740_v40 }
 0x44f   : > { %22214 = vmatmul.mubr.f32.gmra.mrb[20].mxu0 %v27623_v28  ;;  %v31746_v28 = vld [vmem:[#allocation183_spill] sm:$0xff] }
 0x450   : > { %22216 = vmatprep.mubr.f32.mxu0 %v27625_v37  ;;  %v31747_v37 = vld [vmem:[#allocation192_spill] sm:$0xff] }
 0x451   : > { %20861 = vmatmul.mubr.f32.gmra.mrb[18].mxu1 %v31741_v38 }
 0x452   : > { %20863 = vmatprep.mubr.f32.mxu1 %v31742_v47 }
 0x453   : > { %22217 = vmatmul.mubr.f32.gmra.mrb[22].mxu0 %v27654_v59  ;;  %v31748_v59 = vld [vmem:[#allocation196_spill] sm:$0xff] }
 0x454   : > { %22219 = vmatprep.mubr.f32.mxu0 %v27661_v21  ;;  %v27880_v21 = vsub.f32 %v6119_v52, %v27823_v7 }
 0x455   : > { %20864 = vmatmul.mubr.f32.gmra.mrb[20].mxu1 %v31743_v3 }
 0x456   : > { %20866 = vmatprep.mubr.f32.mxu1 %v31744_v19 }
 0x457   : > { %22220 = vmatmul.mubr.f32.gmra.mrb[24].mxu0 %v27686_v54  ;;  %v31750_v54 = vld [vmem:[#allocation210_spill] sm:$0xff] }
 0x458   : > { %22222 = vmatprep.mubr.f32.mxu0 %v27691_v24  ;;  %v31749_v24 = vld [vmem:[#allocation207_spill] sm:$0xff] }
 0x459   : > { %20867 = vmatmul.mubr.f32.gmra.mrb[22].mxu1 %v31745_v27 }
 0x45a   : > { %20869 = vmatprep.mubr.f32.mxu1 %v31746_v28 }
 0x45b   : > { %22223 = vmatmul.mubr.f32.gmra.mrb[26].mxu0 %v27712_v30  ;;  %v27887_v30 = vand.u32 4294901760, %v27880_v21 }
 0x45c   : > { %22225 = vmatprep.mubr.f32.mxu0 %v27717_v62  ;;  %v31752_v62 = vld [vmem:[#allocation238_spill] sm:$0xff] }
 0x45d   : > { %20870 = vmatmul.mubr.f32.gmra.mrb[24].mxu1 %v31747_v37  ;;  %31751 = vst [vmem:[#allocation224_spill] sm:$0xff] %v27887_v30  ;;  %v6511_v52 = vsub.f32 %v27880_v21, %v27887_v30  ;;  %v31761_v30 = vld [vmem:[#allocation149_spill] sm:$0xff] }
 0x45e   : > { %20872 = vmatprep.mubr.f32.mxu1 %v31748_v59 }
 0x45f   : > { %22226 = vmatmul.mubr.f32.gmra.mrb[28].mxu0 %v27736_v2  ;;  %v31755_v2 = vld [vmem:[#allocation115_spill] sm:$0xff]  ;;  %v27901_v6 = vand.u32 4294901760, %v6511_v52 }
 0x460   : > { %22228 = vmatprep.mubr.f32.mxu0 %v27742_v49  ;;  %v31756_v49 = vld [vmem:[#allocation136_spill] sm:$0xff]  ;;  %v31766_v52 = vld [vmem:[#allocation191_spill] sm:$0xff] }
 0x461   : > { %20873 = vmatmul.mubr.f32.gmra.mrb[26].mxu1 %v31749_v24 }
 0x462   : > { %20875 = vmatprep.mubr.f32.mxu1 %v31750_v54 }
 0x463   : > { %22229 = vmatmul.mubr.f32.gmra.mrb[30].mxu0 %v27756_v56  ;;  %v31758_v56 = vld [vmem:[#allocation237_spill] sm:$0xff] }
 0x464   : > { %22233 = vmatprep.mubr.f32.mxu0 %v31752_v62 }
 0x465   : > { %20876 = vmatmul.mubr.f32.gmra.mrb[28].mxu1 %v31753_v18 }
 0x466   : > { %20878 = vmatprep.mubr.f32.mxu1 %v31754_v4 }
 0x467   : > { %22234 = vmatmul.mubr.f32.vlgmr.msra.gmra.mrb[0].mxu0 %v31755_v2 }
 0x468   : > { %22236 = vmatprep.mubr.f32.mxu0 %v31756_v49  ;;  %22282 = vmatpush3.msra.mxu0 %v31713_v5 }
 0x469   : > { %20879 = vmatmul.mubr.f32.gmra.mrb[30].mxu1 %v31757_v61  ;;  %22331 = vmatprep.subr.mxu0 %v31758_v56 }
 0x46a   : > { %20883 = vmatprep.mubr.f32.mxu1 %v31714_v14  ;;  %v31763_v14 = vld [vmem:[#allocation46_spill] sm:$0xff] }
 0x46b   : > { %22237 = vmatmul.mubr.f32.gmra.mrb[2].mxu0 %v31759_v63 }
 0x46c   : > { %22239 = vmatprep.mubr.f32.mxu0 %v31760_v44 }
 0x46d   : > { %20884 = vmatmul.mubr.f32.vlgmr.msra.gmra.mrb[0].mxu1 %v31718_v35  ;;  %v31764_v35 = vld [vmem:[#allocation179_spill] sm:$0xff] }
 0x46e   : > { %20932 = vmatpush3.msra.mxu1 %v27823_v7  ;;  %20886 = vmatprep.mubr.f32.mxu1 %v31719_v51  ;;  %v31765_v51 = vld [vmem:[#allocation185_spill] sm:$0xff] }
 0x46f   : > { %22240 = vmatmul.mubr.f32.gmra.mrb[4].mxu0 %v31761_v30  ;;  %20981 = vmatprep.subr.mxu1 %v27901_v6 }
 0x470   : > { %22242 = vmatprep.mubr.f32.mxu0 %v31762_v25 }
 0x471   : > { %20887 = vmatmul.mubr.f32.gmra.mrb[2].mxu1 %v31722_v53  ;;  %v31767_v53 = vld [vmem:[#allocation229_spill] sm:$0xff] }
 0x472   : > { %20889 = vmatprep.mubr.f32.mxu1 %v31723_v48  ;;  %v31768_v48 = vld [vmem:[#allocation232_spill] sm:$0xff] }
 0x473   : > { %22243 = vmatmul.mubr.f32.gmra.mrb[6].mxu0 %v27469_v11 }
 0x474   : > { %22245 = vmatprep.mubr.f32.mxu0 %v31763_v14 }
 0x475   : > { %20890 = vmatmul.mubr.f32.gmra.mrb[4].mxu1 %v31724_v0  ;;  %v31769_v0 = vld [vmem:[#allocation234_spill] sm:$0xff] }
 0x476   : > { %20892 = vmatprep.mubr.f32.mxu1 %v31725_v29  ;;  %v31770_v29 = vld [vmem:[#allocation147_spill] sm:$0xff] }
 0x477   : > { %22246 = vmatmul.mubr.f32.gmra.mrb[8].mxu0 %v31764_v35 }
 0x478   : > { %22248 = vmatprep.mubr.f32.mxu0 %v31765_v51 }
 0x479   : > { %20893 = vmatmul.mubr.f32.gmra.mrb[6].mxu1 %v31728_v57  ;;  %v31771_v57 = vld [vmem:[#allocation138_spill] sm:$0xff] }
 0x47a   : > { %20895 = vmatprep.mubr.f32.mxu1 %v31729_v33  ;;  %v31772_v33 = vld [vmem:[#allocation157_spill] sm:$0xff] }
 0x47b   : > { %22249 = vmatmul.mubr.f32.gmra.mrb[10].mxu0 %v31766_v52 }
 0x47c   : > { %22251 = vmatprep.mubr.f32.mxu0 %v31767_v53 }
 0x47d   : > { %20896 = vmatmul.mubr.f32.gmra.mrb[8].mxu1 %v31731_v22  ;;  %v31773_v22 = vld [vmem:[#allocation68_spill] sm:$0xff] }
 0x47e   : > { %20898 = vmatprep.mubr.f32.mxu1 %v31732_v31  ;;  %v31776_v31 = vld [vmem:[#allocation181_spill] sm:$0xff] }
 0x47f   : > { %22252 = vmatmul.mubr.f32.gmra.mrb[12].mxu0 %v31768_v48 }
 0x480   : > { %22254 = vmatprep.mubr.f32.mxu0 %v31769_v0 }
 0x481   : > { %20899 = vmatmul.mubr.f32.gmra.mrb[10].mxu1 %v31733_v39  ;;  %v18049_v39 = vld [vmem:[%s24669_s9 + $0x30] sm:$0xff] }
 0x482   : > { %20901 = vmatprep.mubr.f32.mxu1 %v31734_v12  ;;  %v31774_v12 = vld [vmem:[#allocation178_spill] sm:$0xff] }
 0x483   : > { %22255 = vmatmul.mubr.f32.gmra.mrb[14].mxu0 %v31770_v29 }
 0x484   : > { %22257 = vmatprep.mubr.f32.mxu0 %v31771_v57 }
 0x485   : > { %20902 = vmatmul.mubr.f32.gmra.mrb[12].mxu1 %v31735_v34  ;;  %v31775_v34 = vld [vmem:[#allocation180_spill] sm:$0xff] }
 0x486   : > { %20904 = vmatprep.mubr.f32.mxu1 %v31736_v55  ;;  %v18047_v55 = vld [vmem:[%s24669_s9 + $0x18] sm:$0xff] }
 0x487   : > { %22258 = vmatmul.mubr.f32.gmra.mrb[16].mxu0 %v27605_v20 }
 0x488   : > { %22260 = vmatprep.mubr.f32.mxu0 %v31772_v33 }
 0x489   : > { %20905 = vmatmul.mubr.f32.gmra.mrb[14].mxu1 %v31737_v23  ;;  %v18048_v23 = vld [vmem:[%s24669_s9 + $0x20] sm:$0xff] }
 0x48a   : > { %20907 = vmatprep.mubr.f32.mxu1 %v31738_v60  ;;  %v6023_v60 = vsel %vm285_vm1, %v18047_v55, 0  ;;  %v18051_v55 = vld [vmem:[%s24669_s9 + $0x48] sm:$0xff] }
 0x48b   : > { %22261 = vmatmul.mubr.f32.gmra.mrb[18].mxu0 %v31773_v22 }
 0x48c   : > { %22263 = vmatprep.mubr.f32.mxu0 %v31774_v12 }
 0x48d   : > { %20908 = vmatmul.mubr.f32.gmra.mrb[16].mxu1 %v31739_v26  ;;  %v6026_v26 = vsel %vm285_vm1, %v18048_v23, 0  ;;  %v6035_v23 = vsel %vm285_vm1, %v18051_v55, 0 }
 0x48e   : > { %20910 = vmatprep.mubr.f32.mxu1 %v31740_v40  ;;  %v27951_v40 = vand.u32 4294901760, %v6023_v60  ;;  %v27960_v13 = vand.u32 4294901760, %v6026_v26  ;;  %v27985_v55 = vand.u32 4294901760, %v6035_v23 }
 0x48f   : > { %22264 = vmatmul.mubr.f32.gmra.mrb[20].mxu0 %v31775_v34 }
 0x490   : > { %22266 = vmatprep.mubr.f32.mxu0 %v31776_v31  ;;  %31777 = vst [vmem:[#allocation226_spill] sm:$0xff] %v27951_v40  ;;  %31778 = vst [vmem:[#allocation228_spill] sm:$0xff] %v27960_v13  ;;  %v27975_v7 = vsub.f32 %v6026_v26, %v27960_v13 }
 0x491   : > { %20911 = vmatmul.mubr.f32.gmra.mrb[18].mxu1 %v31741_v38  ;;  %v6029_v38 = vsel %vm285_vm1, %v18049_v39, 0  ;;  %v18052_v39 = vld [vmem:[%s24669_s9 + $0x50] sm:$0xff]  ;;  %31784 = vst [vmem:[#allocation199_spill] sm:$0xff] %v27985_v55 }
 0x492   : > { %20913 = vmatprep.mubr.f32.mxu1 %v31742_v47  ;;  %v18050_v47 = vld [vmem:[%s24669_s9 + $0x38] sm:$0xff]  ;;  %v27966_v36 = vand.u32 4294901760, %v6029_v38  ;;  %31781 = vst [vmem:[#allocation235_spill] sm:$0xff] %v27975_v7  ;;  %v6038_v10 = vsel %vm285_vm1, %v18052_v39, 0 }
 0x493   : > { %22267 = vmatmul.mubr.f32.gmra.mrb[22].mxu0 %v27677_v43 }
 0x494   : > { %22269 = vmatprep.mubr.f32.mxu0 %v27684_v17  ;;  %31780 = vst [vmem:[#allocation233_spill] sm:$0xff] %v27966_v36 }
 0x495   : > { %20914 = vmatmul.mubr.f32.gmra.mrb[20].mxu1 %v31743_v3  ;;  %v27964_v3 = vsub.f32 %v6023_v60, %v27951_v40  ;;  %v18053_v60 = vld [vmem:[%s24669_s9 + $0x60] sm:$0xff] }
 0x496   : > { %20916 = vmatprep.mubr.f32.mxu1 %v31744_v19  ;;  %v6032_v19 = vsel %vm285_vm1, %v18050_v47, 0  ;;  %v6041_v26 = vsel %vm285_vm1, %v18053_v60, 0  ;;  %v27997_v47 = vand.u32 4294901760, %v6038_v10  ;;  %v28006_v60 = vsub.f32 %v6035_v23, %v27985_v55 }
 0x497   : > { %22270 = vmatmul.mubr.f32.gmra.mrb[24].mxu0 %v27710_v46  ;;  %31779 = vst [vmem:[#allocation231_spill] sm:$0xff] %v27964_v3 }
 0x498   : > { %22272 = vmatprep.mubr.f32.mxu0 %v27715_v1  ;;  %31786 = vst [vmem:[#allocation209_spill] sm:$0xff] %v27997_v47  ;;  %31788 = vst [vmem:[#allocation215_spill] sm:$0xff] %v28006_v60  ;;  %v28020_v23 = vsub.f32 %v6038_v10, %v27997_v47  ;;  %v18058_v47 = vld [vmem:[%s24669_s9 + $0x98] sm:$0xff] }
 0x499   : > { %20917 = vmatmul.mubr.f32.gmra.mrb[22].mxu1 %v31745_v27  ;;  %v27977_v27 = vand.u32 4294901760, %v6032_v19 }
 0x49a   : > { %20919 = vmatprep.mubr.f32.mxu1 %v31746_v28  ;;  %v27983_v28 = vsub.f32 %v6029_v38, %v27966_v36  ;;  %v18055_v36 = vld [vmem:[%s24669_s9 + $0x78] sm:$0xff] }
 0x49b   : > { %22273 = vmatmul.mubr.f32.gmra.mrb[26].mxu0 %v27734_v9  ;;  %31782 = vst [vmem:[#allocation236_spill] sm:$0xff] %v27977_v27  ;;  %v27995_v38 = vsub.f32 %v6032_v19, %v27977_v27  ;;  %v28010_v19 = vand.u32 4294901760, %v6041_v26  ;;  %v18057_v27 = vld [vmem:[%s24669_s9 + $0x90] sm:$0xff] }
 0x49c   : > { %22275 = vmatprep.mubr.f32.mxu0 %v27740_v45  ;;  %31783 = vst [vmem:[#allocation198_spill] sm:$0xff] %v27983_v28  ;;  %v31793_v55 = vand.u32 4294901760, %v27983_v28 }
 0x49d   : > { %20920 = vmatmul.mubr.f32.gmra.mrb[24].mxu1 %v31747_v37  ;;  %31785 = vst [vmem:[#allocation206_spill] sm:$0xff] %v27995_v38  ;;  %31789 = vst [vmem:[#allocation216_spill] sm:$0xff] %v28010_v19  ;;  %v6047_v37 = vsel %vm285_vm1, %v18055_v36, 0  ;;  %v28034_v10 = vsub.f32 %v6041_v26, %v28010_v19 }
 0x49e   : > { %20922 = vmatprep.mubr.f32.mxu1 %v31748_v59  ;;  %v31787_v59 = vand.u32 4294901760, %v27964_v3  ;;  %v28036_v13 = vand.u32 4294901760, %v6047_v37 }
 0x49f   : > { %22276 = vmatmul.mubr.f32.gmra.mrb[28].mxu0 %v27754_v50  ;;  %31794 = vst [vmem:[#allocation222_spill] sm:$0xff] %v28034_v10 }
 0x4a0   : > { %22278 = vmatprep.mubr.f32.mxu0 %v27763_v16  ;;  %v6190_v39 = vsub.f32 %v27964_v3, %v31787_v59  ;;  %v31790_v59 = vand.u32 4294901760, %v31752_v62  ;;  %v31792_v3 = vand.u32 4294901760, %v27975_v7  ;;  %v6210_v62 = vsub.f32 %v27983_v28, %v31793_v55  ;;  %31795 = vst [vmem:[#allocation225_spill] sm:$0xff] %v28036_v13 }
 0x4a1   : > { %20923 = vmatmul.mubr.f32.gmra.mrb[26].mxu1 %v31749_v24  ;;  %v18056_v24 = vld [vmem:[%s24669_s9 + $0x80] sm:$0xff]  ;;  %v28066_v26 = vsub.f32 %v6047_v37, %v28036_v13  ;;  %v31804_v28 = vand.u32 4294901760, %v31760_v44 }
 0x4a2   : > { %20925 = vmatprep.mubr.f32.mxu1 %v31750_v54  ;;  %v6191_v54 = vand.u32 4294901760, %v6190_v39  ;;  %v6200_v36 = vsub.f32 %v27975_v7, %v31792_v3  ;;  %v6053_v39 = vsel %vm285_vm1, %v18057_v27, 0  ;;  %v31796_v3 = vand.u32 4294901760, %v31755_v2  ;;  %v18059_v27 = vld [vmem:[%s24669_s9 + $0xa8] sm:$0xff] }
 0x4a3   : > { %22279 = vmatmul.mubr.f32.gmra.mrb[30].mxu0 %v27774_v15  ;;  %v31797_v7 = vand.u32 4294901760, %v31756_v49  ;;  %v28057_v49 = vand.u32 4294901760, %v6053_v39  ;;  %31802 = vst [vmem:[#allocation139_spill] sm:$0xff] %v28066_v26 }
 0x4a4   : > { %22283 = vmatprep.mubr.f32.mxu0 %v31790_v59  ;;  %v30611_v59 = vand.u32 4294901760, %v28006_v60  ;;  %v6201_v2 = vand.u32 4294901760, %v6200_v36  ;;  %v18061_v36 = vld [vmem:[%s24669_s9 + $0xc0] sm:$0xff] }
 0x4a5   : > { %20926 = vmatmul.mubr.f32.gmra.mrb[28].mxu1 %v31753_v18  ;;  %v6050_v18 = vsel %vm285_vm1, %v18056_v24, 0  ;;  %v28051_v24 = vsub.f32 %v6044_v32, %v28022_v58  ;;  %31801 = vst [vmem:[#allocation137_spill] sm:$0xff] %v28057_v49 }
 0x4a6   : > { %20928 = vmatprep.mubr.f32.mxu1 %v31754_v4  ;;  %v31798_v4 = vand.u32 4294901760, %v27995_v38 }
 0x4a7   : > { %22284 = vmatmul.mubr.f32.vlgmr.msra.gmra.mrb[0].mxu0 %v31796_v3  ;;  %31799 = vst [vmem:[#allocation227_spill] sm:$0xff] %v28051_v24  ;;  %v28055_v3 = vand.u32 4294901760, %v6050_v18  ;;  %v30616_v32 = vand.u32 4294901760, %v28051_v24 }
 0x4a8   : > { %22286 = vmatprep.mubr.f32.mxu0 %v31797_v7  ;;  %22332 = vmatpush3.msra.mxu0 %v31758_v56  ;;  %v6220_v55 = vsub.f32 %v27995_v38, %v31798_v4  ;;  %v6056_v56 = vsel %vm285_vm1, %v18058_v47, 0  ;;  %v6211_v7 = vand.u32 4294901760, %v6210_v62  ;;  %v6230_v4 = vsub.f32 %v28006_v60, %v30611_v59 }
 0x4a9   : > { %20929 = vmatmul.mubr.f32.gmra.mrb[30].mxu1 %v31757_v61  ;;  %31800 = vst [vmem:[#allocation230_spill] sm:$0xff] %v28055_v3  ;;  %22381 = vmatprep.subr.mxu0 %v31713_v5  ;;  %v18060_v61 = vld [vmem:[%s24669_s9 + $0xb0] sm:$0xff]  ;;  %v31803_v38 = vand.u32 4294901760, %v31759_v63  ;;  %v6059_v47 = vsel %vm285_vm1, %v18059_v27, 0  ;;  %v31805_v62 = vand.u32 4294901760, %v28020_v23  ;;  %v28079_v37 = vand.u32 4294901760, %v6056_v56 }
 0x4aa   : > { %20933 = vmatprep.mubr.f32.mxu1 %v6191_v54  ;;  %v6221_v54 = vand.u32 4294901760, %v6220_v55  ;;  %v28082_v60 = vsub.f32 %v6050_v18, %v28055_v3  ;;  %v28085_v63 = vsub.f32 %v6053_v39, %v28057_v49  ;;  %v6062_v44 = vsel %vm285_vm1, %v18060_v61, 0 }
 0x4ab   : > { %22287 = vmatmul.mubr.f32.gmra.mrb[2].mxu0 %v31803_v38  ;;  %v6240_v59 = vsub.f32 %v28020_v23, %v31805_v62  ;;  %31806 = vst [vmem:[#allocation141_spill] sm:$0xff] %v28079_v37  ;;  %v6231_v38 = vand.u32 4294901760, %v6230_v4  ;;  %v31809_v55 = vand.u32 4294901760, %v28034_v10  ;;  %v28094_v18 = vand.u32 4294901760, %v6059_v47  ;;  %v18062_v62 = vld [vmem:[%s24669_s9 + $0xc8] sm:$0xff] }
 0x4ac   : > { %22289 = vmatprep.mubr.f32.mxu0 %v31804_v28  ;;  %31807 = vst [vmem:[#allocation145_spill] sm:$0xff] %v28082_v60  ;;  %31808 = vst [vmem:[#allocation156_spill] sm:$0xff] %v28085_v63  ;;  %v6065_v28 = vsel %vm285_vm1, %v18061_v36, 0  ;;  %v31811_v39 = vand.u32 4294901760, %v31761_v30  ;;  %v31812_v61 = vand.u32 4294901760, %v31762_v25  ;;  %v28105_v4 = vand.u32 4294901760, %v6062_v44 }
 0x4ad   : > { %20934 = vmatmul.mubr.f32.vlgmr.msra.gmra.mrb[0].mxu1 %v6201_v2  ;;  %v6250_v27 = vsub.f32 %v28034_v10, %v31809_v55  ;;  %v30619_v2 = vand.u32 4294901760, %v28066_v26  ;;  %31810 = vst [vmem:[#allocation160_spill] sm:$0xff] %v28094_v18  ;;  %v28107_v36 = vand.u32 4294901760, %v6065_v28  ;;  %v18063_v55 = vld [vmem:[%s24669_s9 + $0xd8] sm:$0xff]  ;;  %v6260_v30 = vsub.f32 %v28051_v24, %v30616_v32  ;;  %v18064_v24 = vld [vmem:[%s24669_s9 + $0xe0] sm:$0xff] }
 0x4ae   : > { %20982 = vmatpush3.msra.mxu1 %v27901_v6  ;;  %20936 = vmatprep.mubr.f32.mxu1 %v6211_v7  ;;  %v6241_v6 = vand.u32 4294901760, %v6240_v59  ;;  %v28103_v7 = vsub.f32 %v6056_v56, %v28079_v37  ;;  %31814 = vst [vmem:[#allocation150_spill] sm:$0xff] %v28105_v4  ;;  %v30622_v25 = vand.u32 4294901760, %v28085_v63  ;;  %v6068_v59 = vsel %vm285_vm1, %v18062_v62, 0 }
 0x4af   : > { %22290 = vmatmul.mubr.f32.gmra.mrb[4].mxu0 %v31811_v39  ;;  %21031 = vmatprep.subr.mxu1 %v27880_v21  ;;  %31815 = vst [vmem:[#allocation164_spill] sm:$0xff] %v28107_v36  ;;  %v6251_v56 = vand.u32 4294901760, %v6250_v27  ;;  %v28120_v10 = vsub.f32 %v6059_v47, %v28094_v18  ;;  %v6071_v32 = vsel %vm285_vm1, %v18063_v55, 0  ;;  %v31818_v39 = vand.u32 4294901760, %v31763_v14 }
 0x4b0   : > { %22292 = vmatprep.mubr.f32.mxu0 %v31812_v61  ;;  %31813 = vst [vmem:[#allocation162_spill] sm:$0xff] %v28103_v7  ;;  %v6270_v61 = vsub.f32 %v28066_v26, %v30619_v2  ;;  %v28133_v27 = vsub.f32 %v6065_v28, %v28107_v36  ;;  %v28135_v47 = vand.u32 4294901760, %v6068_v59  ;;  %v18065_v2 = vld [vmem:[%s24669_s9 + $0xf0] sm:$0xff]  ;;  %v31822_v55 = vand.u32 4294901760, %v28082_v60  ;;  %v18066_v26 = vld [vmem:[%s24669_s9 + $0xf8] sm:$0xff] }
 0x4b1   : > { %20937 = vmatmul.mubr.f32.gmra.mrb[2].mxu1 %v6221_v54  ;;  %31816 = vst [vmem:[#allocation37_spill] sm:$0xff] %v28120_v10  ;;  %v31817_v54 = vand.u32 4294901760, %v27469_v11  ;;  %v6261_v11 = vand.u32 4294901760, %v6260_v30  ;;  %v28145_v28 = vand.u32 4294901760, %v6071_v32  ;;  %v6074_v62 = vsel %vm285_vm1, %v18064_v24, 0 }
 0x4b2   : > { %20939 = vmatprep.mubr.f32.mxu1 %v6231_v38  ;;  %v28130_v38 = vsub.f32 %v6062_v44, %v28105_v4  ;;  %31820 = vst [vmem:[#allocation170_spill] sm:$0xff] %v28133_v27  ;;  %31821 = vst [vmem:[#allocation171_spill] sm:$0xff] %v28135_v47  ;;  %v6280_v14 = vsub.f32 %v28082_v60, %v31822_v55  ;;  %v6271_v44 = vand.u32 4294901760, %v6270_v61  ;;  %v6077_v30 = vsel %vm285_vm1, %v18065_v2, 0  ;;  %v18070_v60 = vld [vmem:[%s24669_s9 + $0x128] sm:$0xff] }
 0x4b3   : > { %22293 = vmatmul.mubr.f32.gmra.mrb[6].mxu0 %v31817_v54  ;;  %31823 = vst [vmem:[#allocation73_spill] sm:$0xff] %v28145_v28  ;;  %v31825_v55 = vand.u32 4294901760, %v31765_v51  ;;  %v28160_v24 = vsub.f32 %v6068_v59, %v28135_v47  ;;  %v31829_v51 = vand.u32 4294901760, %v28120_v10  ;;  %v28171_v61 = vand.u32 4294901760, %v6077_v30  ;;  %v18068_v59 = vld [vmem:[%s24669_s9 + $0x110] sm:$0xff] }
 0x4b4   : > { %22295 = vmatprep.mubr.f32.mxu0 %v31818_v39  ;;  %31819 = vst [vmem:[#allocation168_spill] sm:$0xff] %v28130_v38  ;;  %v6290_v39 = vsub.f32 %v28085_v63, %v30622_v25  ;;  %v31826_v25 = vand.u32 4294901760, %v28103_v7  ;;  %v6281_v2 = vand.u32 4294901760, %v6280_v14  ;;  %v28163_v63 = vand.u32 4294901760, %v6074_v62 }
 0x4b5   : > { %20940 = vmatmul.mubr.f32.gmra.mrb[4].mxu1 %v6241_v6  ;;  %v31824_v6 = vand.u32 4294901760, %v31764_v35  ;;  %31827 = vst [vmem:[#allocation100_spill] sm:$0xff] %v28160_v24  ;;  %v18067_v35 = vld [vmem:[%s24669_s9 + $0x108] sm:$0xff]  ;;  %31831 = vst [vmem:[#allocation146_spill] sm:$0xff] %v28171_v61  ;;  %v6080_v54 = vsel %vm285_vm1, %v18066_v26, 0 }
 0x4b6   : > { %20942 = vmatprep.mubr.f32.mxu1 %v6251_v56  ;;  %v6300_v56 = vsub.f32 %v28103_v7, %v31826_v25  ;;  %31828 = vst [vmem:[#allocation108_spill] sm:$0xff] %v28163_v63  ;;  %v28169_v25 = vsub.f32 %v6071_v32, %v28145_v28  ;;  %v18069_v7 = vld [vmem:[%s24669_s9 + $0x120] sm:$0xff]  ;;  %v6083_v14 = vsel %vm285_vm1, %v18067_v35, 0  ;;  %v28191_v35 = vand.u32 4294901760, %v6080_v54 }
 0x4b7   : > { %22296 = vmatmul.mubr.f32.gmra.mrb[8].mxu0 %v31824_v6  ;;  %v6291_v6 = vand.u32 4294901760, %v6290_v39  ;;  %v31833_v39 = vand.u32 4294901760, %v31767_v53  ;;  %v6086_v53 = vsel %vm285_vm1, %v18068_v59, 0 }
 0x4b8   : > { %22298 = vmatprep.mubr.f32.mxu0 %v31825_v55  ;;  %v6310_v55 = vsub.f32 %v28120_v10, %v31829_v51  ;;  %31830 = vst [vmem:[#allocation122_spill] sm:$0xff] %v28169_v25  ;;  %v31834_v51 = vand.u32 4294901760, %v28130_v38  ;;  %v31835_v10 = vand.u32 4294901760, %v28133_v27  ;;  %31836 = vst [vmem:[#allocation154_spill] sm:$0xff] %v28191_v35 }
 0x4b9   : > { %20943 = vmatmul.mubr.f32.gmra.mrb[6].mxu1 %v6261_v11  ;;  %v31832_v11 = vand.u32 4294901760, %v31766_v52  ;;  %v28189_v52 = vsub.f32 %v6074_v62, %v28163_v63  ;;  %v18071_v62 = vld [vmem:[%s24669_s9 + $0x138] sm:$0xff] }
 0x4ba   : > { %20945 = vmatprep.mubr.f32.mxu1 %v6271_v44  ;;  %v6301_v44 = vand.u32 4294901760, %v6300_v56  ;;  %v6320_v32 = vsub.f32 %v28130_v38, %v31834_v51  ;;  %v6330_v26 = vsub.f32 %v28133_v27, %v31835_v10  ;;  %v6089_v56 = vsel %vm285_vm1, %v18069_v7, 0 }
 0x4bb   : > { %22299 = vmatmul.mubr.f32.gmra.mrb[10].mxu0 %v31832_v11  ;;  %v6311_v11 = vand.u32 4294901760, %v6310_v55  ;;  %v28197_v51 = vsub.f32 %v6077_v30, %v28171_v61  ;;  %v28199_v10 = vand.u32 4294901760, %v6083_v14  ;;  %v31840_v27 = vand.u32 4294901760, %v31769_v0 }
 0x4bc   : > { %22301 = vmatprep.mubr.f32.mxu0 %v31833_v39  ;;  %v6321_v59 = vand.u32 4294901760, %v6320_v32  ;;  %v6331_v7 = vand.u32 4294901760, %v6330_v26  ;;  %v28209_v55 = vand.u32 4294901760, %v6089_v56  ;;  %v31843_v30 = vand.u32 4294901760, %v28160_v24 }
 0x4bd   : > { %20946 = vmatmul.mubr.f32.gmra.mrb[8].mxu1 %v6281_v2  ;;  %31837 = vst [vmem:[#allocation158_spill] sm:$0xff] %v28197_v51  ;;  %31838 = vst [vmem:[#allocation173_spill] sm:$0xff] %v28199_v10  ;;  %v31839_v2 = vand.u32 4294901760, %v31768_v48  ;;  %v6092_v0 = vsel %vm285_vm1, %v18070_v60, 0  ;;  %v6095_v38 = vsel %vm285_vm1, %v18071_v62, 0  ;;  %v18072_v48 = vld [vmem:[%s24669_s9 + $0x140] sm:$0xff] }
 0x4be   : > { %20948 = vmatprep.mubr.f32.mxu1 %v6291_v6  ;;  %v28207_v6 = vand.u32 4294901760, %v6086_v53  ;;  %31842 = vst [vmem:[#allocation190_spill] sm:$0xff] %v28209_v55  ;;  %v6340_v39 = vsub.f32 %v28160_v24, %v31843_v30  ;;  %v31847_v30 = vand.u32 4294901760, %v31770_v29  ;;  %v31852_v62 = vand.u32 4294901760, %v28189_v52 }
 0x4bf   : > { %22302 = vmatmul.mubr.f32.gmra.mrb[12].mxu0 %v31839_v2  ;;  %v28216_v2 = vsub.f32 %v6080_v54, %v28191_v35  ;;  %v31848_v54 = vand.u32 4294901760, %v31771_v57  ;;  %v31856_v57 = vand.u32 4294901760, %v31772_v33 }
 0x4c0   : > { %22304 = vmatprep.mubr.f32.mxu0 %v31840_v27  ;;  %31841 = vst [vmem:[#allocation182_spill] sm:$0xff] %v28207_v6  ;;  %v31845_v27 = vand.u32 4294901760, %v28169_v25  ;;  %v28233_v60 = vsub.f32 %v6086_v53, %v28207_v6  ;;  %v6341_v26 = vand.u32 4294901760, %v6340_v39  ;;  %v6360_v29 = vsub.f32 %v28189_v52, %v31852_v62  ;;  %v18074_v62 = vld [vmem:[%s24669_s9 + $0x158] sm:$0xff] }
 0x4c1   : > { %20949 = vmatmul.mubr.f32.gmra.mrb[10].mxu1 %v6301_v44  ;;  %31844 = vst [vmem:[#allocation201_spill] sm:$0xff] %v28216_v2  ;;  %v28224_v44 = vsub.f32 %v6083_v14, %v28199_v10  ;;  %v18073_v14 = vld [vmem:[%s24669_s9 + $0x150] sm:$0xff]  ;;  %v31855_v39 = vand.u32 4294901760, %v27605_v20  ;;  %v31857_v20 = vand.u32 4294901760, %v28216_v2 }
 0x4c2   : > { %20951 = vmatprep.mubr.f32.mxu1 %v6311_v11  ;;  %v6350_v32 = vsub.f32 %v28169_v25, %v31845_v27  ;;  %31849 = vst [vmem:[#allocation165_spill] sm:$0xff] %v28233_v60  ;;  %v28236_v11 = vsub.f32 %v6089_v56, %v28209_v55  ;;  %v28238_v27 = vand.u32 4294901760, %v6092_v0  ;;  %v6101_v24 = vsel %vm285_vm1, %v18073_v14, 0  ;;  %v18075_v25 = vld [vmem:[%s24669_s9 + $0x168] sm:$0xff] }
 0x4c3   : > { %31846 = vst [vmem:[#allocation161_spill] sm:$0xff] %v28224_v44  ;;  %22305 = vmatmul.mubr.f32.gmra.mrb[14].mxu0 %v31847_v30  ;;  %v28245_v30 = vand.u32 4294901760, %v6095_v38  ;;  %v6380_v14 = vsub.f32 %v28216_v2, %v31857_v20  ;;  %v6107_v20 = vsel %vm285_vm1, %v18075_v25, 0  ;;  %v18076_v2 = vld [vmem:[%s24669_s9 + $0x170] sm:$0xff] }
 0x4c4   : > { %22307 = vmatprep.mubr.f32.mxu0 %v31848_v54  ;;  %31850 = vst [vmem:[#allocation57_spill] sm:$0xff] %v28236_v11  ;;  %31851 = vst [vmem:[#allocation176_spill] sm:$0xff] %v28238_v27  ;;  %v6351_v53 = vand.u32 4294901760, %v6350_v32  ;;  %v31854_v54 = vand.u32 4294901760, %v28197_v51  ;;  %v31859_v32 = vand.u32 4294901760, %v28224_v44 }
 0x4c5   : > { %20952 = vmatmul.mubr.f32.gmra.mrb[12].mxu1 %v6321_v59  ;;  %31853 = vst [vmem:[#allocation184_spill] sm:$0xff] %v28245_v30  ;;  %v6098_v59 = vsel %vm285_vm1, %v18072_v48, 0  ;;  %v6361_v48 = vand.u32 4294901760, %v6360_v29  ;;  %v31861_v29 = vand.u32 4294901760, %v31773_v22  ;;  %v6381_v22 = vand.u32 4294901760, %v6380_v14  ;;  %v18078_v14 = vld [vmem:[%s24669_s9 + $0x188] sm:$0xff] }
 0x4c6   : > { %20954 = vmatprep.mubr.f32.mxu1 %v6331_v7  ;;  %v6370_v56 = vsub.f32 %v28197_v51, %v31854_v54  ;;  %v28261_v54 = vsub.f32 %v6092_v0, %v28238_v27  ;;  %v28270_v33 = vand.u32 4294901760, %v6098_v59  ;;  %v6390_v0 = vsub.f32 %v28224_v44, %v31859_v32  ;;  %v18077_v44 = vld [vmem:[%s24669_s9 + $0x180] sm:$0xff] }
 0x4c7   : > { %22308 = vmatmul.mubr.f32.gmra.mrb[16].mxu0 %v31855_v39  ;;  %v28268_v39 = vsub.f32 %v6095_v38, %v28245_v30  ;;  %v28275_v7 = vand.u32 4294901760, %v6101_v24  ;;  %v31862_v38 = vand.u32 4294901760, %v31774_v12  ;;  %v31864_v51 = vand.u32 4294901760, %v28236_v11 }
 0x4c8   : > { %22310 = vmatprep.mubr.f32.mxu0 %v31856_v57  ;;  %31858 = vst [vmem:[#allocation188_spill] sm:$0xff] %v28270_v33  ;;  %v6371_v57 = vand.u32 4294901760, %v6370_v56 }
 0x4c9   : > { %20955 = vmatmul.mubr.f32.gmra.mrb[14].mxu1 %v6341_v26  ;;  %31860 = vst [vmem:[#allocation197_spill] sm:$0xff] %v28275_v7  ;;  %v6104_v26 = vsel %vm285_vm1, %v18074_v62, 0  ;;  %v6410_v32 = vsub.f32 %v28236_v11, %v31864_v51  ;;  %v6110_v51 = vsel %vm285_vm1, %v18076_v2, 0  ;;  %v31867_v62 = vand.u32 4294901760, %v31775_v34 }
 0x4ca   : > { %20957 = vmatprep.mubr.f32.mxu1 %v6351_v53  ;;  %v31863_v53 = vand.u32 4294901760, %v28233_v60  ;;  %v28296_v12 = vand.u32 4294901760, %v6104_v26 }
 0x4cb   : > { %22311 = vmatmul.mubr.f32.gmra.mrb[18].mxu0 %v31861_v29  ;;  %v28294_v29 = vsub.f32 %v6098_v59, %v28270_v33  ;;  %v31868_v59 = vand.u32 4294901760, %v31776_v31  ;;  %v6411_v11 = vand.u32 4294901760, %v6410_v32 }
 0x4cc   : > { %22313 = vmatprep.mubr.f32.mxu0 %v31862_v38  ;;  %v6400_v56 = vsub.f32 %v28233_v60, %v31863_v53  ;;  %31865 = vst [vmem:[#allocation239_spill] sm:$0xff] %v28296_v12  ;;  %v6391_v38 = vand.u32 4294901760, %v6390_v0  ;;  %v28299_v53 = vsub.f32 %v6101_v24, %v28275_v7  ;;  %v28301_v60 = vand.u32 4294901760, %v6107_v20 }
 0x4cd   : > { %20958 = vmatmul.mubr.f32.gmra.mrb[16].mxu1 %v6361_v48  ;;  %v6113_v48 = vsel %vm285_vm1, %v18077_v44, 0  ;;  %v31870_v0 = vand.u32 4294901760, %v28268_v39  ;;  %v30654_v34 = vand.u32 4294901760, %v28294_v29  ;;  %v28320_v44 = vand.u32 4294901760, %v6110_v51 }
 0x4ce   : > { %20960 = vmatprep.mubr.f32.mxu1 %v6371_v57  ;;  %31866 = vst [vmem:[#allocation223_spill] sm:$0xff] %v28301_v60  ;;  %v6401_v25 = vand.u32 4294901760, %v6400_v56  ;;  %v31869_v57 = vand.u32 4294901760, %v28261_v54  ;;  %v28324_v56 = vsub.f32 %v6107_v20, %v28301_v60  ;;  %v28326_v32 = vand.u32 4294901760, %v6113_v48 }
 0x4cf   : > { %22314 = vmatmul.mubr.f32.gmra.mrb[20].mxu0 %v31867_v62  ;;  %v6430_v2 = vsub.f32 %v28268_v39, %v31870_v0  ;;  %v28318_v62 = vsub.f32 %v6104_v26, %v28296_v12  ;;  %31871 = vst [vmem:[#allocation153_spill] sm:$0xff] %v28320_v44  ;;  %v28338_v20 = vsub.f32 %v6110_v51, %v28320_v44 }
 0x4d0   : > { %22316 = vmatprep.mubr.f32.mxu0 %v31868_v59  ;;  %v6420_v24 = vsub.f32 %v28261_v54, %v31869_v57  ;;  %31872 = vst [vmem:[#allocation155_spill] sm:$0xff] %v28326_v32  ;;  %v31873_v59 = vand.u32 4294901760, %v27677_v43  ;;  %v31874_v57 = vand.u32 4294901760, %v27684_v17  ;;  %v31876_v43 = vand.u32 4294901760, %v28299_v53 }
 0x4d1   : > { %20961 = vmatmul.mubr.f32.gmra.mrb[18].mxu1 %v6381_v22  ;;  %v6116_v22 = vsel %vm285_vm1, %v18078_v14, 0  ;;  %v30653_v0 = vand.u32 4294901760, %v28318_v62  ;;  %v6431_v14 = vand.u32 4294901760, %v6430_v2  ;;  %v30651_v2 = vand.u32 4294901760, %v28338_v20 }
 0x4d2   : > { %20963 = vmatprep.mubr.f32.mxu1 %v6391_v38  ;;  %v6421_v26 = vand.u32 4294901760, %v6420_v24  ;;  %v6440_v38 = vsub.f32 %v28294_v29, %v30654_v34  ;;  %v28340_v31 = vand.u32 4294901760, %v6116_v22  ;;  %v6450_v17 = vsub.f32 %v28299_v53, %v31876_v43  ;;  %v31905_v34 = vld [vmem:[#allocation148_spill] sm:$0xff] }
 0x4d3   : > { %22317 = vmatmul.mubr.f32.gmra.mrb[22].mxu0 %v31873_v59  ;;  %v30652_v24 = vand.u32 4294901760, %v28324_v56  ;;  %v31877_v59 = vand.u32 4294901760, %v27710_v46 }
 0x4d4   : > { %22319 = vmatprep.mubr.f32.mxu0 %v31874_v57  ;;  %31875 = vst [vmem:[#allocation159_spill] sm:$0xff] %v28340_v31  ;;  %v31878_v57 = vand.u32 4294901760, %v27715_v1  ;;  %v6441_v51 = vand.u32 4294901760, %v6440_v38  ;;  %v28358_v43 = vsub.f32 %v6116_v22, %v28340_v31  ;;  %v31880_v38 = vand.u32 4294901760, %v27740_v45  ;;  %v18244_v45 = vld [vmem:[%s29823_s1 + $0x20] sm:$0xf] }
 0x4d5   : > { %20964 = vmatmul.mubr.f32.gmra.mrb[20].mxu1 %v6401_v25  ;;  %v28347_v25 = vsub.f32 %v6113_v48, %v28326_v32  ;;  %v6451_v48 = vand.u32 4294901760, %v6450_v17  ;;  %v6470_v46 = vsub.f32 %v28324_v56, %v30652_v24  ;;  %v6480_v22 = vsub.f32 %v28338_v20, %v30651_v2  ;;  %v31902_v2 = vld [vmem:[#allocation135_spill] sm:$0xff]  ;;  %v31903_v24 = vld [vmem:[#allocation76_spill] sm:$0xff] }
 0x4d6   : > { %20966 = vmatprep.mubr.f32.mxu1 %v6411_v11  ;;  %v6460_v11 = vsub.f32 %v28318_v62, %v30653_v0  ;;  %v31904_v0 = vld [vmem:[#allocation143_spill] sm:$0xff] }
 0x4d7   : > { %22320 = vmatmul.mubr.f32.gmra.mrb[24].mxu0 %v31877_v59  ;;  %v30650_v1 = vand.u32 4294901760, %v28347_v25  ;;  %v6471_v17 = vand.u32 4294901760, %v6470_v46 }
 0x4d8   : > { %22322 = vmatprep.mubr.f32.mxu0 %v31878_v57  ;;  %v6461_v59 = vand.u32 4294901760, %v6460_v11  ;;  %v6481_v11 = vand.u32 4294901760, %v6480_v22  ;;  %v31888_v22 = vld [vmem:[#allocation233_spill] sm:$0xff] }
 0x4d9   : > { %20967 = vmatmul.mubr.f32.gmra.mrb[22].mxu1 %v6421_v26  ;;  %v31879_v26 = vand.u32 4294901760, %v27734_v9  ;;  %v6490_v57 = vsub.f32 %v28347_v25, %v30650_v1  ;;  %v31881_v9 = vand.u32 4294901760, %v27754_v50  ;;  %v31883_v50 = vand.u32 4294901760, %v27774_v15  ;;  %v31886_v15 = vld [vmem:[#allocation84_spill] sm:$0xff]  ;;  %v31901_v1 = vld [vmem:[#allocation195_spill] sm:$0xff] }
 0x4da   : > { %20969 = vmatprep.mubr.f32.mxu1 %v6431_v14  ;;  %v30649_v14 = vand.u32 4294901760, %v28358_v43 }
 0x4db   : > { %22323 = vmatmul.mubr.f32.gmra.mrb[26].mxu0 %v31879_v26  ;;  %v6491_v46 = vand.u32 4294901760, %v6490_v57  ;;  %v15840_v26 = vsel %vm382_vm0, %v18244_v45, 0  ;;  %v31890_v57 = vld [vmem:[#allocation219_spill] sm:$0xff]  ;;  %v31892_v45 = vld [vmem:[#allocation236_spill] sm:$0xff] }
 0x4dc   : > { %22325 = vmatprep.mubr.f32.mxu0 %v31880_v38 }
 0x4dd   : > { %20970 = vmatmul.mubr.f32.gmra.mrb[24].mxu1 %v6441_v51  ;;  %v31882_v51 = vand.u32 4294901760, %v27763_v16  ;;  %v31885_v16 = vld [vmem:[#allocation133_spill] sm:$0xff] }
 0x4de   : > { %20972 = vmatprep.mubr.f32.mxu1 %v6451_v48  ;;  %v6500_v48 = vsub.f32 %v28358_v43, %v30649_v14  ;;  %v31900_v14 = vld [vmem:[#allocation187_spill] sm:$0xff] }
 0x4df   : > { %22326 = vmatmul.mubr.f32.gmra.mrb[28].mxu0 %v31881_v9  ;;  %v28389_v9 = vand.u32 4294901760, %v15840_v26 }
 0x4e0   : > { %22328 = vmatprep.mubr.f32.mxu0 %v31882_v51  ;;  %v6501_v38 = vand.u32 4294901760, %v6500_v48  ;;  %v31893_v51 = vld [vmem:[#allocation199_spill] sm:$0xff]  ;;  %v31895_v48 = vld [vmem:[#allocation18_spill] sm:$0xff] }
 0x4e1   : > { %20973 = vmatmul.mubr.f32.gmra.mrb[26].mxu1 %v6461_v59  ;;  %31884 = vst [vmem:[#allocation24_spill] sm:$0xff] %v28389_v9  ;;  %v31887_v59 = vld [vmem:[#allocation228_spill] sm:$0xff] }
 0x4e2   : > { %20975 = vmatprep.mubr.f32.mxu1 %v6471_v17  ;;  %v31889_v17 = vld [vmem:[#allocation142_spill] sm:$0xff] }
 0x4e3   : > { %22329 = vmatmul.mubr.f32.gmra.mrb[30].mxu0 %v31883_v50  ;;  %v31898_v50 = vld [vmem:[#allocation40_spill] sm:$0xff] }
 0x4e4   : > { %22333 = vmatprep.mubr.f32.mxu0 %v27373_v42 }
 0x4e5   : > { %20976 = vmatmul.mubr.f32.gmra.mrb[28].mxu1 %v6481_v11  ;;  %v31894_v11 = vld [vmem:[#allocation151_spill] sm:$0xff] }
 0x4e6   : > { %20978 = vmatprep.mubr.f32.mxu1 %v6491_v46  ;;  %v31896_v46 = vld [vmem:[#allocation209_spill] sm:$0xff] }
 0x4e7   : > { %22334 = vmatmul.mubr.f32.vlgmr.msra.gmra.mrb[0].mxu0 %v27382_v8 }
 0x4e8   : > { %22336 = vmatprep.mubr.f32.mxu0 %v31711_v41  ;;  %22382 = vmatpush3.msra.mxu0 %v31713_v5  ;;  %v31891_v5 = vld [vmem:[#allocation97_spill] sm:$0xff] }
 0x4e9   : > { %20979 = vmatmul.mubr.f32.gmra.mrb[30].mxu1 %v6501_v38  ;;  %22431 = vmatprep.subr.mxu0 %v28389_v9  ;;  %v31899_v38 = vld [vmem:[#allocation175_spill] sm:$0xff] }
 0x4ea   : > { %20983 = vmatprep.mubr.f32.mxu1 %v27951_v40 }
 0x4eb   : > { %22337 = vmatmul.mubr.f32.gmra.mrb[2].mxu0 %v31885_v16 }
 0x4ec   : > { %22339 = vmatprep.mubr.f32.mxu0 %v31886_v15 }
 0x4ed   : > { %20984 = vmatmul.mubr.f32.vlgmr.msra.gmra.mrb[0].mxu1 %v31887_v59 }
 0x4ee   : > { %21032 = vmatpush3.msra.mxu1 %v27880_v21  ;;  %20986 = vmatprep.mubr.f32.mxu1 %v31888_v22  ;;  %v31897_v21 = vld [vmem:[#allocation163_spill] sm:$0xff]  ;;  %v18220_v22 = vld [vmem:[%s24669_s9 + $0x92] sm:$0xff] }
 0x4ef   : > { %22340 = vmatmul.mubr.f32.gmra.mrb[4].mxu0 %v31889_v17  ;;  %21081 = vmatprep.subr.mxu1 %v31890_v57 }
 0x4f0   : > { %22342 = vmatprep.mubr.f32.mxu0 %v31891_v5 }
 0x4f1   : > { %20987 = vmatmul.mubr.f32.gmra.mrb[2].mxu1 %v31892_v45  ;;  %v18219_v45 = vld [vmem:[%s24669_s9 + $0x82] sm:$0xff] }
 0x4f2   : > { %20989 = vmatprep.mubr.f32.mxu1 %v31893_v51  ;;  %v15765_v40 = vsel %vm285_vm1, %v18219_v45, 0 }
 0x4f3   : > { %22343 = vmatmul.mubr.f32.gmra.mrb[6].mxu0 %v31894_v11  ;;  %v28587_v59 = vand.u32 4294901760, %v15765_v40 }
 0x4f4   : > { %22345 = vmatprep.mubr.f32.mxu0 %v31895_v48 }
 0x4f5   : > { %20990 = vmatmul.mubr.f32.gmra.mrb[4].mxu1 %v31896_v46 }
 0x4f6   : > { %20992 = vmatprep.mubr.f32.mxu1 %v28010_v19  ;;  %v31944_v19 = vld [vmem:[#allocation57_spill] sm:$0xff] }
 0x4f7   : > { %22346 = vmatmul.mubr.f32.gmra.mrb[8].mxu0 %v31897_v21 }
 0x4f8   : > { %22348 = vmatprep.mubr.f32.mxu0 %v31898_v50 }
 0x4f9   : > { %20993 = vmatmul.mubr.f32.gmra.mrb[6].mxu1 %v28022_v58  ;;  %v31943_v58 = vld [vmem:[#allocation165_spill] sm:$0xff] }
 0x4fa   : > { %20995 = vmatprep.mubr.f32.mxu1 %v28036_v13  ;;  %v31919_v13 = vld [vmem:[#allocation213_spill] sm:$0xff] }
 0x4fb   : > { %22349 = vmatmul.mubr.f32.gmra.mrb[10].mxu0 %v31899_v38 }
 0x4fc   : > { %22351 = vmatprep.mubr.f32.mxu0 %v31900_v14 }
 0x4fd   : > { %20996 = vmatmul.mubr.f32.gmra.mrb[8].mxu1 %v28055_v3  ;;  %v31906_v3 = vld [vmem:[#allocation144_spill] sm:$0xff] }
 0x4fe   : > { %20998 = vmatprep.mubr.f32.mxu1 %v28057_v49  ;;  %v31907_v49 = vld [vmem:[#allocation152_spill] sm:$0xff] }
 0x4ff   : > { %22352 = vmatmul.mubr.f32.gmra.mrb[12].mxu0 %v31901_v1 }
 0x500   : > { %22354 = vmatprep.mubr.f32.mxu0 %v31902_v2 }
 0x501   : > { %20999 = vmatmul.mubr.f32.gmra.mrb[10].mxu1 %v28079_v37  ;;  %v31908_v37 = vld [vmem:[#allocation25_spill] sm:$0xff] }
 0x502   : > { %21001 = vmatprep.mubr.f32.mxu1 %v28094_v18  ;;  %v31909_v18 = vld [vmem:[#allocation49_spill] sm:$0xff] }
 0x503   : > { %22355 = vmatmul.mubr.f32.gmra.mrb[14].mxu0 %v31903_v24 }
 0x504   : > { %22357 = vmatprep.mubr.f32.mxu0 %v31904_v0 }
 0x505   : > { %21002 = vmatmul.mubr.f32.gmra.mrb[12].mxu1 %v28105_v4  ;;  %v31910_v4 = vld [vmem:[#allocation52_spill] sm:$0xff] }
 0x506   : > { %21004 = vmatprep.mubr.f32.mxu1 %v28107_v36  ;;  %v31911_v36 = vld [vmem:[#allocation189_spill] sm:$0xff] }
 0x507   : > { %22358 = vmatmul.mubr.f32.gmra.mrb[16].mxu0 %v31905_v34 }
 0x508   : > { %22360 = vmatprep.mubr.f32.mxu0 %v31906_v3 }
 0x509   : > { %21005 = vmatmul.mubr.f32.gmra.mrb[14].mxu1 %v28135_v47  ;;  %v31912_v47 = vld [vmem:[#allocation193_spill] sm:$0xff] }
 0x50a   : > { %21007 = vmatprep.mubr.f32.mxu1 %v28145_v28  ;;  %v31913_v28 = vld [vmem:[#allocation200_spill] sm:$0xff] }
 0x50b   : > { %22361 = vmatmul.mubr.f32.gmra.mrb[18].mxu0 %v31907_v49 }
 0x50c   : > { %22363 = vmatprep.mubr.f32.mxu0 %v31908_v37 }
 0x50d   : > { %21008 = vmatmul.mubr.f32.gmra.mrb[16].mxu1 %v28163_v63  ;;  %v31914_v63 = vld [vmem:[#allocation202_spill] sm:$0xff] }
 0x50e   : > { %21010 = vmatprep.mubr.f32.mxu1 %v28171_v61  ;;  %v28446_v61 = vsub.f32 %v15840_v26, %v28389_v9 }
 0x50f   : > { %22364 = vmatmul.mubr.f32.gmra.mrb[20].mxu0 %v31909_v18 }
 0x510   : > { %22366 = vmatprep.mubr.f32.mxu0 %v31910_v4 }
 0x511   : > { %21011 = vmatmul.mubr.f32.gmra.mrb[18].mxu1 %v28191_v35  ;;  %v31916_v35 = vld [vmem:[#allocation211_spill] sm:$0xff] }
 0x512   : > { %21013 = vmatprep.mubr.f32.mxu1 %v28199_v10  ;;  %v31915_v10 = vld [vmem:[#allocation208_spill] sm:$0xff] }
 0x513   : > { %22367 = vmatmul.mubr.f32.gmra.mrb[22].mxu0 %v31911_v36 }
 0x514   : > { %22369 = vmatprep.mubr.f32.mxu0 %v31912_v47 }
 0x515   : > { %21014 = vmatmul.mubr.f32.gmra.mrb[20].mxu1 %v28207_v6  ;;  %v28453_v6 = vand.u32 4294901760, %v28446_v61 }
 0x516   : > { %21016 = vmatprep.mubr.f32.mxu1 %v28209_v55  ;;  %v31918_v55 = vld [vmem:[#allocation212_spill] sm:$0xff] }
 0x517   : > { %22370 = vmatmul.mubr.f32.gmra.mrb[24].mxu0 %v31913_v28  ;;  %31917 = vst [vmem:[#allocation26_spill] sm:$0xff] %v28453_v6  ;;  %v16232_v26 = vsub.f32 %v28446_v61, %v28453_v6  ;;  %v31921_v6 = vld [vmem:[#allocation231_spill] sm:$0xff] }
 0x518   : > { %22372 = vmatprep.mubr.f32.mxu0 %v31914_v63 }
 0x519   : > { %21017 = vmatmul.mubr.f32.gmra.mrb[22].mxu1 %v28238_v27 }
 0x51a   : > { %21019 = vmatprep.mubr.f32.mxu1 %v28245_v30  ;;  %v31920_v30 = vld [vmem:[#allocation217_spill] sm:$0xff] }
 0x51b   : > { %22373 = vmatmul.mubr.f32.gmra.mrb[26].mxu0 %v31915_v10 }
 0x51c   : > { %22375 = vmatprep.mubr.f32.mxu0 %v31916_v35 }
 0x51d   : > { %21020 = vmatmul.mubr.f32.gmra.mrb[24].mxu1 %v28270_v33  ;;  %v28465_v33 = vand.u32 4294901760, %v16232_v26  ;;  %v31923_v26 = vld [vmem:[#allocation198_spill] sm:$0xff] }
 0x51e   : > { %21022 = vmatprep.mubr.f32.mxu1 %v28275_v7 }
 0x51f   : > { %22376 = vmatmul.mubr.f32.gmra.mrb[28].mxu0 %v31918_v55 }
 0x520   : > { %22378 = vmatprep.mubr.f32.mxu0 %v31919_v13 }
 0x521   : > { %21023 = vmatmul.mubr.f32.gmra.mrb[26].mxu1 %v28296_v12  ;;  %v31940_v12 = vld [vmem:[#allocation161_spill] sm:$0xff] }
 0x522   : > { %21025 = vmatprep.mubr.f32.mxu1 %v28301_v60  ;;  %v31939_v60 = vld [vmem:[#allocation201_spill] sm:$0xff] }
 0x523   : > { %22379 = vmatmul.mubr.f32.gmra.mrb[30].mxu0 %v31920_v30 }
 0x524   : > { %22383 = vmatprep.mubr.f32.mxu0 %v27373_v42  ;;  %v31922_v42 = vld [vmem:[#allocation235_spill] sm:$0xff] }
 0x525   : > { %21026 = vmatmul.mubr.f32.gmra.mrb[28].mxu1 %v28320_v44 }
 0x526   : > { %21028 = vmatprep.mubr.f32.mxu1 %v28326_v32  ;;  %v18214_v32 = vld [vmem:[%s24669_s9 + $0x4a] sm:$0xff] }
 0x527   : > { %22384 = vmatmul.mubr.f32.vlgmr.msra.gmra.mrb[0].mxu0 %v27382_v8  ;;  %v31924_v8 = vld [vmem:[#allocation224_spill] sm:$0xff] }
 0x528   : > { %22386 = vmatprep.mubr.f32.mxu0 %v31711_v41  ;;  %22432 = vmatpush3.msra.mxu0 %v28389_v9  ;;  %v31925_v41 = vld [vmem:[#allocation206_spill] sm:$0xff]  ;;  %v18224_v9 = vld [vmem:[%s24669_s9 + $0xc2] sm:$0xff] }
 0x529   : > { %21029 = vmatmul.mubr.f32.gmra.mrb[30].mxu1 %v28340_v31  ;;  %22481 = vmatprep.subr.mxu0 %v28465_v33  ;;  %v31926_v31 = vld [vmem:[#allocation215_spill] sm:$0xff] }
 0x52a   : > { %21033 = vmatprep.mubr.f32.mxu1 %v31921_v6 }
 0x52b   : > { %22387 = vmatmul.mubr.f32.gmra.mrb[2].mxu0 %v31885_v16  ;;  %v31927_v16 = vld [vmem:[#allocation222_spill] sm:$0xff] }
 0x52c   : > { %22389 = vmatprep.mubr.f32.mxu0 %v31886_v15  ;;  %v31928_v15 = vld [vmem:[#allocation227_spill] sm:$0xff] }
 0x52d   : > { %21034 = vmatmul.mubr.f32.vlgmr.msra.gmra.mrb[0].mxu1 %v31922_v42 }
 0x52e   : > { %21082 = vmatpush3.msra.mxu1 %v31890_v57  ;;  %21036 = vmatprep.mubr.f32.mxu1 %v31923_v26 }
 0x52f   : > { %22390 = vmatmul.mubr.f32.gmra.mrb[4].mxu0 %v31889_v17  ;;  %21131 = vmatprep.subr.mxu1 %v31924_v8  ;;  %v31929_v17 = vld [vmem:[#allocation139_spill] sm:$0xff] }
 0x530   : > { %22392 = vmatprep.mubr.f32.mxu0 %v31891_v5  ;;  %v31930_v5 = vld [vmem:[#allocation145_spill] sm:$0xff] }
 0x531   : > { %21037 = vmatmul.mubr.f32.gmra.mrb[2].mxu1 %v31925_v41 }
 0x532   : > { %21039 = vmatprep.mubr.f32.mxu1 %v31926_v31 }
 0x533   : > { %22393 = vmatmul.mubr.f32.gmra.mrb[6].mxu0 %v31894_v11  ;;  %v31931_v11 = vld [vmem:[#allocation156_spill] sm:$0xff] }
 0x534   : > { %22395 = vmatprep.mubr.f32.mxu0 %v31895_v48  ;;  %v31932_v48 = vld [vmem:[#allocation162_spill] sm:$0xff] }
 0x535   : > { %21040 = vmatmul.mubr.f32.gmra.mrb[4].mxu1 %v28020_v23 }
 0x536   : > { %21042 = vmatprep.mubr.f32.mxu1 %v31927_v16 }
 0x537   : > { %22396 = vmatmul.mubr.f32.gmra.mrb[8].mxu0 %v31897_v21  ;;  %v31933_v21 = vld [vmem:[#allocation37_spill] sm:$0xff] }
 0x538   : > { %22398 = vmatprep.mubr.f32.mxu0 %v31898_v50  ;;  %v31934_v50 = vld [vmem:[#allocation168_spill] sm:$0xff] }
 0x539   : > { %21043 = vmatmul.mubr.f32.gmra.mrb[6].mxu1 %v31928_v15 }
 0x53a   : > { %21045 = vmatprep.mubr.f32.mxu1 %v31929_v17 }
 0x53b   : > { %22399 = vmatmul.mubr.f32.gmra.mrb[10].mxu0 %v31899_v38  ;;  %v31937_v38 = vld [vmem:[#allocation122_spill] sm:$0xff] }
 0x53c   : > { %22401 = vmatprep.mubr.f32.mxu0 %v31900_v14  ;;  %v31935_v14 = vld [vmem:[#allocation170_spill] sm:$0xff] }
 0x53d   : > { %21046 = vmatmul.mubr.f32.gmra.mrb[8].mxu1 %v31930_v5 }
 0x53e   : > { %21048 = vmatprep.mubr.f32.mxu1 %v31931_v11 }
 0x53f   : > { %22402 = vmatmul.mubr.f32.gmra.mrb[12].mxu0 %v31901_v1  ;;  %v31936_v1 = vld [vmem:[#allocation100_spill] sm:$0xff] }
 0x540   : > { %22404 = vmatprep.mubr.f32.mxu0 %v31902_v2  ;;  %v18212_v2 = vld [vmem:[%s24669_s9 + $0x32] sm:$0xff] }
 0x541   : > { %21049 = vmatmul.mubr.f32.gmra.mrb[10].mxu1 %v31932_v48 }
 0x542   : > { %21051 = vmatprep.mubr.f32.mxu1 %v31933_v21 }
 0x543   : > { %22405 = vmatmul.mubr.f32.gmra.mrb[14].mxu0 %v31903_v24  ;;  %v18213_v24 = vld [vmem:[%s24669_s9 + $0x3a] sm:$0xff] }
 0x544   : > { %22407 = vmatprep.mubr.f32.mxu0 %v31904_v0  ;;  %v15744_v0 = vsel %vm285_vm1, %v18212_v2, 0  ;;  %v15747_v44 = vsel %vm285_vm1, %v18213_v24, 0  ;;  %v18216_v2 = vld [vmem:[%s24669_s9 + $0x62] sm:$0xff]  ;;  %v18217_v24 = vld [vmem:[%s24669_s9 + $0x6a] sm:$0xff] }
 0x545   : > { %21052 = vmatmul.mubr.f32.gmra.mrb[12].mxu1 %v31934_v50  ;;  %v28526_v7 = vand.u32 4294901760, %v15747_v44  ;;  %v15759_v51 = vsel %vm285_vm1, %v18217_v24, 0 }
 0x546   : > { %21054 = vmatprep.mubr.f32.mxu1 %v31935_v14 }
 0x547   : > { %22408 = vmatmul.mubr.f32.gmra.mrb[16].mxu0 %v31905_v34  ;;  %v31938_v34 = vld [vmem:[#allocation158_spill] sm:$0xff]  ;;  %v28541_v46 = vsub.f32 %v15747_v44, %v28526_v7 }
 0x548   : > { %22410 = vmatprep.mubr.f32.mxu0 %v31906_v3  ;;  %v28517_v3 = vand.u32 4294901760, %v15744_v0 }
 0x549   : > { %21055 = vmatmul.mubr.f32.gmra.mrb[14].mxu1 %v31936_v1  ;;  %31945 = vst [vmem:[#allocation169_spill] sm:$0xff] %v28541_v46  ;;  %v31955_v45 = vand.u32 4294901760, %v28541_v46 }
 0x54a   : > { %21057 = vmatprep.mubr.f32.mxu1 %v31937_v38 }
 0x54b   : > { %22411 = vmatmul.mubr.f32.gmra.mrb[18].mxu0 %v31907_v49  ;;  %v15750_v49 = vsel %vm285_vm1, %v18214_v32, 0  ;;  %v15756_v32 = vsel %vm285_vm1, %v18216_v2, 0 }
 0x54c   : > { %22413 = vmatprep.mubr.f32.mxu0 %v31908_v37  ;;  %v18215_v37 = vld [vmem:[%s24669_s9 + $0x52] sm:$0xff]  ;;  %v28532_v27 = vand.u32 4294901760, %v15750_v49  ;;  %v28551_v2 = vand.u32 4294901760, %v15756_v32 }
 0x54d   : > { %21058 = vmatmul.mubr.f32.gmra.mrb[16].mxu1 %v28189_v52 }
 0x54e   : > { %21060 = vmatprep.mubr.f32.mxu1 %v31938_v34  ;;  %31942 = vst [vmem:[#allocation167_spill] sm:$0xff] %v28532_v27  ;;  %31948 = vst [vmem:[#allocation172_spill] sm:$0xff] %v28551_v2 }
 0x54f   : > { %22414 = vmatmul.mubr.f32.gmra.mrb[20].mxu0 %v31909_v18  ;;  %v28530_v18 = vsub.f32 %v15744_v0, %v28517_v3  ;;  %v18218_v0 = vld [vmem:[%s24669_s9 + $0x7a] sm:$0xff] }
 0x550   : > { %22416 = vmatprep.mubr.f32.mxu0 %v31910_v4  ;;  %v15753_v4 = vsel %vm285_vm1, %v18215_v37, 0  ;;  %v15762_v44 = vsel %vm285_vm1, %v18218_v0, 0  ;;  %v28563_v37 = vand.u32 4294901760, %v15759_v51  ;;  %v28572_v0 = vsub.f32 %v15756_v32, %v28551_v2 }
 0x551   : > { %21061 = vmatmul.mubr.f32.gmra.mrb[18].mxu1 %v31939_v60  ;;  %31941 = vst [vmem:[#allocation31_spill] sm:$0xff] %v28530_v18 }
 0x552   : > { %21063 = vmatprep.mubr.f32.mxu1 %v31940_v12  ;;  %31950 = vst [vmem:[#allocation81_spill] sm:$0xff] %v28563_v37  ;;  %31952 = vst [vmem:[#allocation134_spill] sm:$0xff] %v28572_v0  ;;  %v28585_v32 = vsub.f32 %v15759_v51, %v28563_v37  ;;  %v18223_v37 = vld [vmem:[%s24669_s9 + $0xb2] sm:$0xff] }
 0x553   : > { %22417 = vmatmul.mubr.f32.gmra.mrb[22].mxu0 %v31911_v36  ;;  %v28543_v36 = vand.u32 4294901760, %v15753_v4 }
 0x554   : > { %22419 = vmatprep.mubr.f32.mxu0 %v31912_v47  ;;  %v28549_v47 = vsub.f32 %v15750_v49, %v28532_v27  ;;  %31954 = vst [vmem:[#allocation19_spill] sm:$0xff] %v28585_v32  ;;  %v31962_v27 = vand.u32 4294901760, %v28572_v0 }
 0x555   : > { %21064 = vmatmul.mubr.f32.gmra.mrb[20].mxu1 %v31943_v58  ;;  %31946 = vst [vmem:[#allocation60_spill] sm:$0xff] %v28543_v36  ;;  %v28561_v49 = vsub.f32 %v15753_v4, %v28543_v36  ;;  %v28576_v4 = vand.u32 4294901760, %v15762_v44  ;;  %v18222_v36 = vld [vmem:[%s24669_s9 + $0xaa] sm:$0xff] }
 0x556   : > { %21066 = vmatprep.mubr.f32.mxu1 %v31944_v19  ;;  %31947 = vst [vmem:[#allocation65_spill] sm:$0xff] %v28549_v47 }
 0x557   : > { %22420 = vmatmul.mubr.f32.gmra.mrb[24].mxu0 %v31913_v28  ;;  %31949 = vst [vmem:[#allocation92_spill] sm:$0xff] %v28561_v49  ;;  %31953 = vst [vmem:[#allocation140_spill] sm:$0xff] %v28576_v4  ;;  %v15768_v28 = vsel %vm285_vm1, %v18220_v22, 0  ;;  %v15921_v22 = vsub.f32 %v28541_v46, %v31955_v45  ;;  %v28599_v51 = vsub.f32 %v15762_v44, %v28576_v4  ;;  %v15777_v46 = vsel %vm285_vm1, %v18223_v37, 0 }
 0x558   : > { %22422 = vmatprep.mubr.f32.mxu0 %v31914_v63  ;;  %v31951_v63 = vand.u32 4294901760, %v28530_v18  ;;  %v28613_v45 = vsub.f32 %v15765_v40, %v28587_v59  ;;  %v28638_v44 = vand.u32 4294901760, %v15777_v46 }
 0x559   : > { %21067 = vmatmul.mubr.f32.gmra.mrb[22].mxu1 %v28261_v54  ;;  %31957 = vst [vmem:[#allocation166_spill] sm:$0xff] %v28599_v51 }
 0x55a   : > { %21069 = vmatprep.mubr.f32.mxu1 %v28268_v39  ;;  %v15911_v24 = vsub.f32 %v28530_v18, %v31951_v63  ;;  %v31956_v18 = vand.u32 4294901760, %v28549_v47  ;;  %v28601_v63 = vand.u32 4294901760, %v15768_v28  ;;  %31965 = vst [vmem:[#allocation204_spill] sm:$0xff] %v28638_v44 }
 0x55b   : > { %22423 = vmatmul.mubr.f32.gmra.mrb[26].mxu0 %v31915_v10  ;;  %v18221_v10 = vld [vmem:[%s24669_s9 + $0x9a] sm:$0xff] }
 0x55c   : > { %22425 = vmatprep.mubr.f32.mxu0 %v31916_v35  ;;  %v15912_v35 = vand.u32 4294901760, %v15911_v24  ;;  %v15931_v2 = vsub.f32 %v28549_v47, %v31956_v18  ;;  %31958 = vst [vmem:[#allocation174_spill] sm:$0xff] %v28601_v63  ;;  %v15774_v24 = vsel %vm285_vm1, %v18222_v36, 0  ;;  %v31959_v18 = vand.u32 4294901760, %v28561_v49 }
 0x55d   : > { %21070 = vmatmul.mubr.f32.gmra.mrb[24].mxu1 %v28294_v29  ;;  %v15922_v36 = vand.u32 4294901760, %v15921_v22  ;;  %v28619_v47 = vand.u32 4294901760, %v15774_v24  ;;  %v28627_v40 = vsub.f32 %v15768_v28, %v28601_v63  ;;  %v15780_v22 = vsel %vm285_vm1, %v18224_v9, 0 }
 0x55e   : > { %21072 = vmatprep.mubr.f32.mxu1 %v28299_v53  ;;  %v15932_v4 = vand.u32 4294901760, %v15931_v2  ;;  %v31964_v2 = vand.u32 4294901760, %v28585_v32 }
 0x55f   : > { %22426 = vmatmul.mubr.f32.gmra.mrb[28].mxu0 %v31918_v55  ;;  %v15771_v55 = vsel %vm285_vm1, %v18221_v10, 0  ;;  %31961 = vst [vmem:[#allocation194_spill] sm:$0xff] %v28619_v47  ;;  %31963 = vst [vmem:[#allocation203_spill] sm:$0xff] %v28627_v40 }
 0x560   : > { %22428 = vmatprep.mubr.f32.mxu0 %v31919_v13  ;;  %v15941_v13 = vsub.f32 %v28561_v49, %v31959_v18  ;;  %v28617_v10 = vand.u32 4294901760, %v15771_v55  ;;  %v15951_v18 = vsub.f32 %v28572_v0, %v31962_v27  ;;  %v18225_v49 = vld [vmem:[%s24669_s9 + $0xca] sm:$0xff]  ;;  %v28644_v0 = vsub.f32 %v15774_v24, %v28619_v47 }
 0x561   : > { %21073 = vmatmul.mubr.f32.gmra.mrb[26].mxu1 %v28318_v62  ;;  %v15783_v9 = vsel %vm285_vm1, %v18225_v49, 0  ;;  %v31968_v27 = vand.u32 4294901760, %v28599_v51  ;;  %v31970_v49 = vand.u32 4294901760, %v31921_v6  ;;  %v31978_v6 = vand.u32 4294901760, %v31923_v26 }
 0x562   : > { %21075 = vmatprep.mubr.f32.mxu1 %v28324_v56  ;;  %31960 = vst [vmem:[#allocation186_spill] sm:$0xff] %v28617_v10  ;;  %v15942_v37 = vand.u32 4294901760, %v15941_v13  ;;  %v28641_v28 = vsub.f32 %v15771_v55, %v28617_v10  ;;  %31967 = vst [vmem:[#allocation177_spill] sm:$0xff] %v28644_v0  ;;  %v28653_v55 = vand.u32 4294901760, %v15780_v22  ;;  %v18227_v10 = vld [vmem:[%s24669_s9 + $0xe2] sm:$0xff]  ;;  %v28663_v24 = vand.u32 4294901760, %v15783_v9 }
 0x563   : > { %22429 = vmatmul.mubr.f32.gmra.mrb[30].mxu0 %v31920_v30  ;;  %v18226_v30 = vld [vmem:[%s24669_s9 + $0xda] sm:$0xff]  ;;  %v31983_v26 = vand.u32 4294901760, %v28644_v0 }
 0x564   : > { %22433 = vmatprep.mubr.f32.mxu0 %v15912_v35  ;;  %v15961_v35 = vsub.f32 %v28585_v32, %v31964_v2  ;;  %31966 = vst [vmem:[#allocation205_spill] sm:$0xff] %v28641_v28  ;;  %v15786_v13 = vsel %vm285_vm1, %v18226_v30, 0  ;;  %v15952_v2 = vand.u32 4294901760, %v15951_v18  ;;  %v15971_v32 = vsub.f32 %v28599_v51, %v31968_v27  ;;  %31969 = vst [vmem:[#allocation183_spill] sm:$0xff] %v28653_v55  ;;  %v18228_v30 = vld [vmem:[%s24669_s9 + $0xf2] sm:$0xff]  ;;  %v18229_v51 = vld [vmem:[%s24669_s9 + $0xfa] sm:$0xff] }
 0x565   : > { %21076 = vmatmul.mubr.f32.gmra.mrb[28].mxu1 %v28338_v20  ;;  %31972 = vst [vmem:[#allocation196_spill] sm:$0xff] %v28663_v24  ;;  %v28665_v18 = vand.u32 4294901760, %v15786_v13  ;;  %v31974_v27 = vand.u32 4294901760, %v28613_v45  ;;  %v28678_v47 = vsub.f32 %v15780_v22, %v28653_v55 }
 0x566   : > { %21078 = vmatprep.mubr.f32.mxu1 %v28347_v25 }
 0x567   : > { %22434 = vmatmul.mubr.f32.vlgmr.msra.gmra.mrb[0].mxu0 %v15922_v36  ;;  %31973 = vst [vmem:[#allocation207_spill] sm:$0xff] %v28665_v18  ;;  %v15981_v36 = vsub.f32 %v28613_v45, %v31974_v27  ;;  %31976 = vst [vmem:[#allocation210_spill] sm:$0xff] %v28678_v47  ;;  %v15792_v27 = vsel %vm285_vm1, %v18228_v30, 0  ;;  %v28692_v22 = vsub.f32 %v15786_v13, %v28665_v18 }
 0x568   : > { %22436 = vmatprep.mubr.f32.mxu0 %v15932_v4  ;;  %22482 = vmatpush3.msra.mxu0 %v28465_v33  ;;  %v15962_v4 = vand.u32 4294901760, %v15961_v35  ;;  %v28661_v33 = vsub.f32 %v15777_v46, %v28638_v44  ;;  %v15789_v35 = vsel %vm285_vm1, %v18227_v10, 0  ;;  %v15972_v46 = vand.u32 4294901760, %v15971_v32  ;;  %v18231_v32 = vld [vmem:[%s24669_s9 + $0x112] sm:$0xff] }
 0x569   : > { %21079 = vmatmul.mubr.f32.gmra.mrb[30].mxu1 %v28358_v43  ;;  %22531 = vmatprep.subr.mxu0 %v28446_v61  ;;  %v28689_v10 = vsub.f32 %v15783_v9, %v28663_v24  ;;  %31980 = vst [vmem:[#allocation214_spill] sm:$0xff] %v28692_v22  ;;  %v15982_v30 = vand.u32 4294901760, %v15981_v36  ;;  %v31985_v36 = vand.u32 4294901760, %v31925_v41  ;;  %v18232_v41 = vld [vmem:[%s24669_s9 + $0x122] sm:$0xff]  ;;  %v15801_v13 = vsel %vm285_vm1, %v18231_v32, 0 }
 0x56a   : > { %21083 = vmatprep.mubr.f32.mxu1 %v31970_v49  ;;  %31971 = vst [vmem:[#allocation192_spill] sm:$0xff] %v28661_v33  ;;  %v31975_v49 = vand.u32 4294901760, %v28627_v40 }
 0x56b   : > { %22437 = vmatmul.mubr.f32.gmra.mrb[2].mxu0 %v15942_v37  ;;  %v31977_v37 = vand.u32 4294901760, %v31922_v42  ;;  %31979 = vst [vmem:[#allocation238_spill] sm:$0xff] %v28689_v10  ;;  %v18230_v42 = vld [vmem:[%s24669_s9 + $0x10a] sm:$0xff] }
 0x56c   : > { %22439 = vmatprep.mubr.f32.mxu0 %v15952_v2  ;;  %v15991_v44 = vsub.f32 %v28627_v40, %v31975_v49  ;;  %v28694_v2 = vand.u32 4294901760, %v15789_v35  ;;  %v31982_v49 = vand.u32 4294901760, %v28641_v28  ;;  %v18235_v40 = vld [vmem:[%s24669_s9 + $0x142] sm:$0xff] }
 0x56d   : > { %21084 = vmatmul.mubr.f32.vlgmr.msra.gmra.mrb[0].mxu1 %v31977_v37  ;;  %v28705_v37 = vand.u32 4294901760, %v15792_v27 }
 0x56e   : > { %21132 = vmatpush3.msra.mxu1 %v31924_v8  ;;  %21086 = vmatprep.mubr.f32.mxu1 %v31978_v6  ;;  %31981 = vst [vmem:[#allocation218_spill] sm:$0xff] %v28694_v2  ;;  %v16001_v8 = vsub.f32 %v28641_v28, %v31982_v49  ;;  %v16011_v6 = vsub.f32 %v28644_v0, %v31983_v26  ;;  %v15992_v9 = vand.u32 4294901760, %v15991_v44  ;;  %v15798_v49 = vsel %vm285_vm1, %v18230_v42, 0 }
 0x56f   : > { %22440 = vmatmul.mubr.f32.gmra.mrb[4].mxu0 %v15962_v4  ;;  %21181 = vmatprep.subr.mxu1 %v31890_v57  ;;  %31984 = vst [vmem:[#allocation115_spill] sm:$0xff] %v28705_v37  ;;  %v15795_v4 = vsel %vm285_vm1, %v18229_v51, 0  ;;  %v31986_v28 = vand.u32 4294901760, %v31926_v31  ;;  %v31987_v26 = vand.u32 4294901760, %v28661_v33  ;;  %v28720_v51 = vsub.f32 %v15789_v35, %v28694_v2  ;;  %v18233_v35 = vld [vmem:[%s24669_s9 + $0x12a] sm:$0xff] }
 0x570   : > { %22442 = vmatprep.mubr.f32.mxu0 %v15972_v46  ;;  %v16002_v42 = vand.u32 4294901760, %v16001_v8  ;;  %v28723_v0 = vand.u32 4294901760, %v15795_v4  ;;  %v31990_v31 = vand.u32 4294901760, %v28678_v47  ;;  %v28731_v46 = vand.u32 4294901760, %v15798_v49 }
 0x571   : > { %21087 = vmatmul.mubr.f32.gmra.mrb[2].mxu1 %v31985_v36  ;;  %v16021_v44 = vsub.f32 %v28661_v33, %v31987_v26  ;;  %31988 = vst [vmem:[#allocation136_spill] sm:$0xff] %v28720_v51  ;;  %v16012_v36 = vand.u32 4294901760, %v16011_v6  ;;  %v28729_v26 = vsub.f32 %v15792_v27, %v28705_v37  ;;  %v18234_v33 = vld [vmem:[%s24669_s9 + $0x13a] sm:$0xff]  ;;  %v15804_v8 = vsel %vm285_vm1, %v18232_v41, 0 }
 0x572   : > { %21089 = vmatprep.mubr.f32.mxu1 %v31986_v28  ;;  %31989 = vst [vmem:[#allocation221_spill] sm:$0xff] %v28723_v0  ;;  %v16031_v28 = vsub.f32 %v28678_v47, %v31990_v31  ;;  %31992 = vst [vmem:[#allocation132_spill] sm:$0xff] %v28731_v46  ;;  %v31994_v6 = vand.u32 4294901760, %v31927_v16  ;;  %v31995_v31 = vand.u32 4294901760, %v28689_v10  ;;  %v31996_v47 = vand.u32 4294901760, %v28692_v22 }
 0x573   : > { %22443 = vmatmul.mubr.f32.gmra.mrb[6].mxu0 %v15982_v30  ;;  %31991 = vst [vmem:[#allocation237_spill] sm:$0xff] %v28729_v26  ;;  %v31993_v30 = vand.u32 4294901760, %v28020_v23  ;;  %v28749_v23 = vsub.f32 %v15795_v4, %v28723_v0  ;;  %v28751_v41 = vand.u32 4294901760, %v15801_v13  ;;  %v15807_v16 = vsel %vm285_vm1, %v18233_v35, 0  ;;  %v18236_v4 = vld [vmem:[%s24669_s9 + $0x152] sm:$0xff] }
 0x574   : > { %22445 = vmatprep.mubr.f32.mxu0 %v15992_v9  ;;  %v16022_v9 = vand.u32 4294901760, %v16021_v44  ;;  %v16041_v27 = vsub.f32 %v28689_v10, %v31995_v31  ;;  %v16051_v32 = vsub.f32 %v28692_v22, %v31996_v47  ;;  %v15810_v44 = vsel %vm285_vm1, %v18234_v33, 0 }
 0x575   : > { %21090 = vmatmul.mubr.f32.gmra.mrb[4].mxu1 %v31993_v30  ;;  %31997 = vst [vmem:[#allocation89_spill] sm:$0xff] %v28751_v41  ;;  %v16032_v30 = vand.u32 4294901760, %v16031_v28  ;;  %v28757_v31 = vsub.f32 %v15798_v49, %v28731_v46  ;;  %v28759_v47 = vand.u32 4294901760, %v15804_v8  ;;  %v32001_v22 = vand.u32 4294901760, %v31929_v17 }
 0x576   : > { %21092 = vmatprep.mubr.f32.mxu1 %v31994_v6  ;;  %v16042_v35 = vand.u32 4294901760, %v16041_v27  ;;  %v16052_v33 = vand.u32 4294901760, %v16051_v32  ;;  %v28769_v28 = vand.u32 4294901760, %v15810_v44  ;;  %v32004_v49 = vand.u32 4294901760, %v28720_v51 }
 0x577   : > { %22446 = vmatmul.mubr.f32.gmra.mrb[8].mxu0 %v16002_v42  ;;  %31998 = vst [vmem:[#allocation149_spill] sm:$0xff] %v28757_v31  ;;  %31999 = vst [vmem:[#allocation105_spill] sm:$0xff] %v28759_v47  ;;  %v32000_v42 = vand.u32 4294901760, %v31928_v15  ;;  %v15813_v17 = vsel %vm285_vm1, %v18235_v40, 0  ;;  %v15816_v10 = vsel %vm285_vm1, %v18236_v4, 0  ;;  %v18237_v15 = vld [vmem:[%s24669_s9 + $0x15a] sm:$0xff] }
 0x578   : > { %22448 = vmatprep.mubr.f32.mxu0 %v16012_v36  ;;  %v28767_v36 = vand.u32 4294901760, %v15807_v16  ;;  %32003 = vst [vmem:[#allocation179_spill] sm:$0xff] %v28769_v28  ;;  %v16061_v6 = vsub.f32 %v28720_v51, %v32004_v49  ;;  %v32008_v49 = vand.u32 4294901760, %v31930_v5  ;;  %v32013_v4 = vand.u32 4294901760, %v28749_v23 }
 0x579   : > { %21093 = vmatmul.mubr.f32.gmra.mrb[6].mxu1 %v32000_v42  ;;  %v28776_v42 = vsub.f32 %v15801_v13, %v28751_v41  ;;  %v32009_v13 = vand.u32 4294901760, %v31931_v11  ;;  %v32017_v11 = vand.u32 4294901760, %v31933_v21 }
 0x57a   : > { %21095 = vmatprep.mubr.f32.mxu1 %v32001_v22  ;;  %32002 = vst [vmem:[#allocation46_spill] sm:$0xff] %v28767_v36  ;;  %v32006_v22 = vand.u32 4294901760, %v28729_v26  ;;  %v28793_v40 = vsub.f32 %v15807_v16, %v28767_v36  ;;  %v16062_v32 = vand.u32 4294901760, %v16061_v6  ;;  %v16081_v5 = vsub.f32 %v28749_v23, %v32013_v4  ;;  %v18239_v4 = vld [vmem:[%s24669_s9 + $0x172] sm:$0xff] }
 0x57b   : > { %22449 = vmatmul.mubr.f32.gmra.mrb[10].mxu0 %v16022_v9  ;;  %32005 = vst [vmem:[#allocation185_spill] sm:$0xff] %v28776_v42  ;;  %v28784_v9 = vsub.f32 %v15804_v8, %v28759_v47  ;;  %v18238_v8 = vld [vmem:[%s24669_s9 + $0x16a] sm:$0xff]  ;;  %v32016_v6 = vand.u32 4294901760, %v31932_v48  ;;  %v32018_v48 = vand.u32 4294901760, %v28776_v42 }
 0x57c   : > { %22451 = vmatprep.mubr.f32.mxu0 %v16032_v30  ;;  %v16071_v27 = vsub.f32 %v28729_v26, %v32006_v22  ;;  %32010 = vst [vmem:[#allocation229_spill] sm:$0xff] %v28793_v40  ;;  %v28796_v30 = vsub.f32 %v15810_v44, %v28769_v28  ;;  %v28798_v22 = vand.u32 4294901760, %v15813_v17  ;;  %v15822_v51 = vsel %vm285_vm1, %v18238_v8, 0  ;;  %v18240_v26 = vld [vmem:[%s24669_s9 + $0x182] sm:$0xff] }
 0x57d   : > { %32007 = vst [vmem:[#allocation191_spill] sm:$0xff] %v28784_v9  ;;  %21096 = vmatmul.mubr.f32.gmra.mrb[8].mxu1 %v32008_v49  ;;  %v28805_v49 = vand.u32 4294901760, %v15816_v10  ;;  %v16101_v8 = vsub.f32 %v28776_v42, %v32018_v48  ;;  %v15828_v48 = vsel %vm285_vm1, %v18240_v26, 0  ;;  %v18241_v42 = vld [vmem:[%s24669_s9 + $0x18a] sm:$0xff] }
 0x57e   : > { %21098 = vmatprep.mubr.f32.mxu1 %v32009_v13  ;;  %32011 = vst [vmem:[#allocation232_spill] sm:$0xff] %v28796_v30  ;;  %32012 = vst [vmem:[#allocation234_spill] sm:$0xff] %v28798_v22  ;;  %v16072_v16 = vand.u32 4294901760, %v16071_v27  ;;  %v32015_v13 = vand.u32 4294901760, %v28757_v31  ;;  %v32020_v27 = vand.u32 4294901760, %v28784_v9 }
 0x57f   : > { %22452 = vmatmul.mubr.f32.gmra.mrb[12].mxu0 %v16042_v35  ;;  %32014 = vst [vmem:[#allocation147_spill] sm:$0xff] %v28805_v49  ;;  %v15819_v35 = vsel %vm285_vm1, %v18237_v15, 0  ;;  %v16082_v15 = vand.u32 4294901760, %v16081_v5  ;;  %v32022_v5 = vand.u32 4294901760, %v31934_v50  ;;  %v16102_v50 = vand.u32 4294901760, %v16101_v8  ;;  %v18243_v8 = vld [vmem:[%s24669_s9 + $0x1a2] sm:$0xff] }
 0x580   : > { %22454 = vmatprep.mubr.f32.mxu0 %v16052_v33  ;;  %v16091_v44 = vsub.f32 %v28757_v31, %v32015_v13  ;;  %v28821_v13 = vsub.f32 %v15813_v17, %v28798_v22  ;;  %v28830_v21 = vand.u32 4294901760, %v15819_v35  ;;  %v16111_v17 = vsub.f32 %v28784_v9, %v32020_v27  ;;  %v18242_v9 = vld [vmem:[%s24669_s9 + $0x19a] sm:$0xff] }
 0x581   : > { %21099 = vmatmul.mubr.f32.gmra.mrb[10].mxu1 %v32016_v6  ;;  %v28828_v6 = vsub.f32 %v15816_v10, %v28805_v49  ;;  %v28835_v33 = vand.u32 4294901760, %v15822_v51  ;;  %v32023_v10 = vand.u32 4294901760, %v31935_v14  ;;  %v32025_v31 = vand.u32 4294901760, %v28796_v30 }
 0x582   : > { %21101 = vmatprep.mubr.f32.mxu1 %v32017_v11  ;;  %32019 = vst [vmem:[#allocation138_spill] sm:$0xff] %v28830_v21  ;;  %v16092_v11 = vand.u32 4294901760, %v16091_v44 }
 0x583   : > { %22455 = vmatmul.mubr.f32.gmra.mrb[14].mxu0 %v16062_v32  ;;  %32021 = vst [vmem:[#allocation157_spill] sm:$0xff] %v28835_v33  ;;  %v15825_v32 = vsel %vm285_vm1, %v18239_v4, 0  ;;  %v16131_v27 = vsub.f32 %v28796_v30, %v32025_v31  ;;  %v15831_v31 = vsel %vm285_vm1, %v18241_v42, 0  ;;  %v32028_v4 = vand.u32 4294901760, %v31936_v1 }
 0x584   : > { %22457 = vmatprep.mubr.f32.mxu0 %v16072_v16  ;;  %v32024_v16 = vand.u32 4294901760, %v28793_v40  ;;  %v28856_v14 = vand.u32 4294901760, %v15825_v32 }
 0x585   : > { %21102 = vmatmul.mubr.f32.gmra.mrb[12].mxu1 %v32022_v5  ;;  %v28854_v5 = vsub.f32 %v15819_v35, %v28830_v21  ;;  %v32029_v35 = vand.u32 4294901760, %v31937_v38  ;;  %v16132_v30 = vand.u32 4294901760, %v16131_v27 }
 0x586   : > { %21104 = vmatprep.mubr.f32.mxu1 %v32023_v10  ;;  %v16121_v44 = vsub.f32 %v28793_v40, %v32024_v16  ;;  %32026 = vst [vmem:[#allocation68_spill] sm:$0xff] %v28856_v14  ;;  %v16112_v10 = vand.u32 4294901760, %v16111_v17  ;;  %v28859_v16 = vsub.f32 %v15822_v51, %v28835_v33  ;;  %v28861_v40 = vand.u32 4294901760, %v15828_v48 }
 0x587   : > { %22458 = vmatmul.mubr.f32.gmra.mrb[16].mxu0 %v16082_v15  ;;  %v15834_v15 = vsel %vm285_vm1, %v18242_v9, 0  ;;  %v32031_v17 = vand.u32 4294901760, %v28828_v6  ;;  %v30776_v1 = vand.u32 4294901760, %v28854_v5  ;;  %v28880_v9 = vand.u32 4294901760, %v15831_v31 }
 0x588   : > { %22460 = vmatprep.mubr.f32.mxu0 %v16092_v11  ;;  %32027 = vst [vmem:[#allocation178_spill] sm:$0xff] %v28861_v40  ;;  %v16122_v26 = vand.u32 4294901760, %v16121_v44  ;;  %v32030_v11 = vand.u32 4294901760, %v28821_v13  ;;  %v28884_v44 = vsub.f32 %v15828_v48, %v28861_v40  ;;  %v28886_v27 = vand.u32 4294901760, %v15834_v15 }
 0x589   : > { %21105 = vmatmul.mubr.f32.gmra.mrb[14].mxu1 %v32028_v4  ;;  %v16151_v42 = vsub.f32 %v28828_v6, %v32031_v17  ;;  %v28878_v4 = vsub.f32 %v15825_v32, %v28856_v14  ;;  %32032 = vst [vmem:[#allocation180_spill] sm:$0xff] %v28880_v9  ;;  %v28898_v48 = vsub.f32 %v15831_v31, %v28880_v9 }
 0x58a   : > { %21107 = vmatprep.mubr.f32.mxu1 %v32029_v35  ;;  %v16141_v51 = vsub.f32 %v28821_v13, %v32030_v11  ;;  %32033 = vst [vmem:[#allocation181_spill] sm:$0xff] %v28886_v27  ;;  %v32034_v35 = vand.u32 4294901760, %v28189_v52  ;;  %v32035_v11 = vand.u32 4294901760, %v31938_v34  ;;  %v32037_v52 = vand.u32 4294901760, %v28859_v16 }
 0x58b   : > { %22461 = vmatmul.mubr.f32.gmra.mrb[18].mxu0 %v16102_v50  ;;  %v15837_v50 = vsel %vm285_vm1, %v18243_v8, 0  ;;  %v30775_v17 = vand.u32 4294901760, %v28878_v4  ;;  %v16152_v8 = vand.u32 4294901760, %v16151_v42  ;;  %v30773_v42 = vand.u32 4294901760, %v28898_v48 }
 0x58c   : > { %22463 = vmatprep.mubr.f32.mxu0 %v16112_v10  ;;  %v16142_v32 = vand.u32 4294901760, %v16141_v51  ;;  %v16161_v10 = vsub.f32 %v28854_v5, %v30776_v1  ;;  %v28900_v38 = vand.u32 4294901760, %v15837_v50  ;;  %v16171_v34 = vsub.f32 %v28859_v16, %v32037_v52  ;;  %v32079_v1 = vld [vmem:[#allocation146_spill] sm:$0xff] }
 0x58d   : > { %21108 = vmatmul.mubr.f32.gmra.mrb[16].mxu1 %v32034_v35  ;;  %v30774_v51 = vand.u32 4294901760, %v28884_v44  ;;  %v32038_v35 = vand.u32 4294901760, %v31939_v60 }
 0x58e   : > { %21110 = vmatprep.mubr.f32.mxu1 %v32035_v11  ;;  %32036 = vst [vmem:[#allocation133_spill] sm:$0xff] %v28900_v38  ;;  %v32039_v11 = vand.u32 4294901760, %v31940_v12  ;;  %v16162_v31 = vand.u32 4294901760, %v16161_v10  ;;  %v28918_v52 = vsub.f32 %v15837_v50, %v28900_v38  ;;  %v32041_v10 = vand.u32 4294901760, %v31944_v19 }
 0x58f   : > { %22464 = vmatmul.mubr.f32.gmra.mrb[20].mxu0 %v16122_v26  ;;  %v28907_v26 = vsub.f32 %v15834_v15, %v28886_v27  ;;  %v16172_v15 = vand.u32 4294901760, %v16171_v34  ;;  %v16191_v60 = vsub.f32 %v28884_v44, %v30774_v51  ;;  %v16201_v50 = vsub.f32 %v28898_v48, %v30773_v42  ;;  %v32076_v42 = vld [vmem:[#allocation171_spill] sm:$0xff]  ;;  %v32077_v51 = vld [vmem:[#allocation73_spill] sm:$0xff] }
 0x590   : > { %22466 = vmatprep.mubr.f32.mxu0 %v16132_v30  ;;  %v16181_v30 = vsub.f32 %v28878_v4, %v30775_v17  ;;  %v32043_v19 = vand.u32 4294901760, %v28268_v39  ;;  %v32046_v39 = vand.u32 4294901760, %v28318_v62  ;;  %v32051_v62 = vand.u32 4294901760, %v28358_v43  ;;  %v32060_v43 = vld [vmem:[#allocation140_spill] sm:$0xff] }
 0x591   : > { %21111 = vmatmul.mubr.f32.gmra.mrb[18].mxu1 %v32038_v35  ;;  %v30772_v12 = vand.u32 4294901760, %v28907_v26  ;;  %v16192_v34 = vand.u32 4294901760, %v16191_v60  ;;  %v32045_v60 = vand.u32 4294901760, %v28299_v53  ;;  %v32050_v53 = vld [vmem:[#allocation167_spill] sm:$0xff]  ;;  %v32078_v17 = vld [vmem:[#allocation108_spill] sm:$0xff] }
 0x592   : > { %21113 = vmatprep.mubr.f32.mxu1 %v32039_v11  ;;  %v16182_v35 = vand.u32 4294901760, %v16181_v30 }
 0x593   : > { %22467 = vmatmul.mubr.f32.gmra.mrb[22].mxu0 %v16142_v32  ;;  %v32040_v32 = vand.u32 4294901760, %v31943_v58  ;;  %v16211_v11 = vsub.f32 %v28907_v26, %v30772_v12  ;;  %v32042_v58 = vand.u32 4294901760, %v28261_v54  ;;  %v32075_v12 = vld [vmem:[#allocation164_spill] sm:$0xff] }
 0x594   : > { %22469 = vmatprep.mubr.f32.mxu0 %v16152_v8  ;;  %v30771_v8 = vand.u32 4294901760, %v28918_v52 }
 0x595   : > { %21114 = vmatmul.mubr.f32.gmra.mrb[20].mxu1 %v32040_v32  ;;  %v16212_v32 = vand.u32 4294901760, %v16211_v11  ;;  %v32056_v11 = vld [vmem:[#allocation228_spill] sm:$0xff] }
 0x596   : > { %21116 = vmatprep.mubr.f32.mxu1 %v32041_v10  ;;  %v16221_v30 = vsub.f32 %v28918_v52, %v30771_v8  ;;  %v32047_v10 = vand.u32 4294901760, %v28324_v56  ;;  %v32052_v56 = vld [vmem:[#allocation24_spill] sm:$0xff]  ;;  %v32074_v8 = vld [vmem:[#allocation150_spill] sm:$0xff] }
 0x597   : > { %22470 = vmatmul.mubr.f32.gmra.mrb[24].mxu0 %v16162_v31  ;;  %v16202_v31 = vand.u32 4294901760, %v16201_v50  ;;  %v32053_v50 = vld [vmem:[#allocation226_spill] sm:$0xff] }
 0x598   : > { %22472 = vmatprep.mubr.f32.mxu0 %v16172_v15  ;;  %v32044_v15 = vand.u32 4294901760, %v28294_v29  ;;  %v16222_v54 = vand.u32 4294901760, %v16221_v30  ;;  %v32049_v29 = vand.u32 4294901760, %v28347_v25  ;;  %v32057_v25 = vld [vmem:[#allocation233_spill] sm:$0xff] }
 0x599   : > { %21117 = vmatmul.mubr.f32.gmra.mrb[22].mxu1 %v32042_v58  ;;  %v32058_v58 = vld [vmem:[#allocation81_spill] sm:$0xff] }
 0x59a   : > { %21119 = vmatprep.mubr.f32.mxu1 %v32043_v19  ;;  %v32061_v19 = vld [vmem:[#allocation236_spill] sm:$0xff]  ;;  %v32063_v30 = vld [vmem:[#allocation209_spill] sm:$0xff] }
 0x59b   : > { %22473 = vmatmul.mubr.f32.gmra.mrb[26].mxu0 %v16182_v35  ;;  %v32048_v35 = vand.u32 4294901760, %v28338_v20  ;;  %v32055_v20 = vld [vmem:[#allocation172_spill] sm:$0xff] }
 0x59c   : > { %22475 = vmatprep.mubr.f32.mxu0 %v16192_v34  ;;  %v32054_v34 = vld [vmem:[#allocation60_spill] sm:$0xff] }
 0x59d   : > { %21120 = vmatmul.mubr.f32.gmra.mrb[24].mxu1 %v32044_v15  ;;  %v32066_v15 = vld [vmem:[#allocation194_spill] sm:$0xff] }
 0x59e   : > { %21122 = vmatprep.mubr.f32.mxu1 %v32045_v60  ;;  %v32067_v60 = vld [vmem:[#allocation220_spill] sm:$0xff] }
 0x59f   : > { %22476 = vmatmul.mubr.f32.gmra.mrb[28].mxu0 %v16202_v31  ;;  %v32062_v31 = vld [vmem:[#allocation199_spill] sm:$0xff] }
 0x5a0   : > { %22478 = vmatprep.mubr.f32.mxu0 %v16212_v32  ;;  %v32064_v32 = vld [vmem:[#allocation216_spill] sm:$0xff] }
 0x5a1   : > { %21123 = vmatmul.mubr.f32.gmra.mrb[26].mxu1 %v32046_v39  ;;  %v32069_v39 = vld [vmem:[#allocation204_spill] sm:$0xff] }
 0x5a2   : > { %21125 = vmatprep.mubr.f32.mxu1 %v32047_v10  ;;  %v32070_v10 = vld [vmem:[#allocation230_spill] sm:$0xff] }
 0x5a3   : > { %22479 = vmatmul.mubr.f32.gmra.mrb[30].mxu0 %v16222_v54  ;;  %v32068_v54 = vld [vmem:[#allocation225_spill] sm:$0xff] }
 0x5a4   : > { %22483 = vmatprep.mubr.f32.mxu0 %v28517_v3 }
 0x5a5   : > { %21126 = vmatmul.mubr.f32.gmra.mrb[28].mxu1 %v32048_v35  ;;  %v32071_v35 = vld [vmem:[#allocation137_spill] sm:$0xff] }
 0x5a6   : > { %21128 = vmatprep.mubr.f32.mxu1 %v32049_v29  ;;  %v32072_v29 = vld [vmem:[#allocation141_spill] sm:$0xff] }
 0x5a7   : > { %22484 = vmatmul.mubr.f32.vlgmr.msra.gmra.mrb[0].mxu0 %v28526_v7 }
 0x5a8   : > { %22486 = vmatprep.mubr.f32.mxu0 %v32050_v53  ;;  %22532 = vmatpush3.msra.mxu0 %v28446_v61  ;;  %v32059_v61 = vld [vmem:[#allocation8_spill] sm:$0xff] }
 0x5a9   : > { %21129 = vmatmul.mubr.f32.gmra.mrb[30].mxu1 %v32051_v62  ;;  %22581 = vmatprep.subr.mxu0 %v32052_v56  ;;  %v32073_v62 = vld [vmem:[#allocation160_spill] sm:$0xff] }
 0x5aa   : > { %21133 = vmatprep.mubr.f32.mxu1 %v32053_v50 }
 0x5ab   : > { %22487 = vmatmul.mubr.f32.gmra.mrb[2].mxu0 %v32054_v34 }
 0x5ac   : > { %22489 = vmatprep.mubr.f32.mxu0 %v32055_v20 }
 0x5ad   : > { %21134 = vmatmul.mubr.f32.vlgmr.msra.gmra.mrb[0].mxu1 %v32056_v11 }
 0x5ae   : > { %21182 = vmatpush3.msra.mxu1 %v31890_v57  ;;  %21136 = vmatprep.mubr.f32.mxu1 %v32057_v25  ;;  %v32065_v57 = vld [vmem:[#allocation186_spill] sm:$0xff] }
 0x5af   : > { %22490 = vmatmul.mubr.f32.gmra.mrb[4].mxu0 %v32058_v58  ;;  %21231 = vmatprep.subr.mxu1 %v32059_v61 }
 0x5b0   : > { %22492 = vmatprep.mubr.f32.mxu0 %v32060_v43 }
 0x5b1   : > { %21137 = vmatmul.mubr.f32.gmra.mrb[2].mxu1 %v32061_v19 }
 0x5b2   : > { %21139 = vmatprep.mubr.f32.mxu1 %v32062_v31 }
 0x5b3   : > { %22493 = vmatmul.mubr.f32.gmra.mrb[6].mxu0 %v28587_v59 }
 0x5b4   : > { %22495 = vmatprep.mubr.f32.mxu0 %v28601_v63  ;;  %v32102_v63 = vld [vmem:[#allocation166_spill] sm:$0xff] }
 0x5b5   : > { %21140 = vmatmul.mubr.f32.gmra.mrb[4].mxu1 %v32063_v30 }
 0x5b6   : > { %21142 = vmatprep.mubr.f32.mxu1 %v32064_v32 }
 0x5b7   : > { %22496 = vmatmul.mubr.f32.gmra.mrb[8].mxu0 %v32065_v57  ;;  %v32100_v57 = vld [vmem:[#allocation134_spill] sm:$0xff] }
 0x5b8   : > { %22498 = vmatprep.mubr.f32.mxu0 %v32066_v15 }
 0x5b9   : > { %21143 = vmatmul.mubr.f32.gmra.mrb[6].mxu1 %v32067_v60 }
 0x5ba   : > { %21145 = vmatprep.mubr.f32.mxu1 %v32068_v54 }
 0x5bb   : > { %22499 = vmatmul.mubr.f32.gmra.mrb[10].mxu0 %v32069_v39  ;;  %v32098_v39 = vld [vmem:[#allocation26_spill] sm:$0xff] }
 0x5bc   : > { %22501 = vmatprep.mubr.f32.mxu0 %v28653_v55 }
 0x5bd   : > { %21146 = vmatmul.mubr.f32.gmra.mrb[8].mxu1 %v32070_v10 }
 0x5be   : > { %21148 = vmatprep.mubr.f32.mxu1 %v32071_v35 }
 0x5bf   : > { %22502 = vmatmul.mubr.f32.gmra.mrb[12].mxu0 %v28663_v24  ;;  %v32095_v24 = vld [vmem:[#allocation9_spill] sm:$0xff] }
 0x5c0   : > { %22504 = vmatprep.mubr.f32.mxu0 %v28665_v18  ;;  %v32094_v18 = vld [vmem:[#allocation10_spill] sm:$0xff] }
 0x5c1   : > { %21149 = vmatmul.mubr.f32.gmra.mrb[10].mxu1 %v32072_v29  ;;  %v8455_v55 = vsub.f32 %v32095_v24, %v32094_v18  ;;  %v32101_v18 = vld [vmem:[#allocation19_spill] sm:$0xff] }
 0x5c2   : > { %21151 = vmatprep.mubr.f32.mxu1 %v32073_v62 }
 0x5c3   : > { %22505 = vmatmul.mubr.f32.gmra.mrb[14].mxu0 %v28694_v2  ;;  %v32091_v2 = vld [vmem:[#allocation153_spill] sm:$0xff]  ;;  %v29033_v15 = vand.u32 4294901760, %v8455_v55  ;;  %v32103_v55 = vld [vmem:[#allocation203_spill] sm:$0xff] }
 0x5c4   : > { %22507 = vmatprep.mubr.f32.mxu0 %v28705_v37  ;;  %v32080_v37 = vld [vmem:[#allocation154_spill] sm:$0xff] }
 0x5c5   : > { %21152 = vmatmul.mubr.f32.gmra.mrb[12].mxu1 %v32074_v8 }
 0x5c6   : > { %21154 = vmatprep.mubr.f32.mxu1 %v32075_v12 }
 0x5c7   : > { %22508 = vmatmul.mubr.f32.gmra.mrb[16].mxu0 %v28723_v0  ;;  %v32081_v0 = vld [vmem:[#allocation173_spill] sm:$0xff] }
 0x5c8   : > { %22510 = vmatprep.mubr.f32.mxu0 %v28731_v46  ;;  %v32082_v46 = vld [vmem:[#allocation182_spill] sm:$0xff] }
 0x5c9   : > { %21155 = vmatmul.mubr.f32.gmra.mrb[14].mxu1 %v32076_v42 }
 0x5ca   : > { %21157 = vmatprep.mubr.f32.mxu1 %v32077_v51 }
 0x5cb   : > { %22511 = vmatmul.mubr.f32.gmra.mrb[18].mxu0 %v28751_v41  ;;  %v32083_v41 = vld [vmem:[#allocation190_spill] sm:$0xff] }
 0x5cc   : > { %22513 = vmatprep.mubr.f32.mxu0 %v28759_v47  ;;  %v32084_v47 = vld [vmem:[#allocation176_spill] sm:$0xff] }
 0x5cd   : > { %21158 = vmatmul.mubr.f32.gmra.mrb[16].mxu1 %v32078_v17 }
 0x5ce   : > { %21160 = vmatprep.mubr.f32.mxu1 %v32079_v1 }
 0x5cf   : > { %22514 = vmatmul.mubr.f32.gmra.mrb[20].mxu0 %v28767_v36  ;;  %v32085_v36 = vld [vmem:[#allocation184_spill] sm:$0xff] }
 0x5d0   : > { %22516 = vmatprep.mubr.f32.mxu0 %v28769_v28  ;;  %v32086_v28 = vld [vmem:[#allocation188_spill] sm:$0xff] }
 0x5d1   : > { %21161 = vmatmul.mubr.f32.gmra.mrb[18].mxu1 %v32080_v37 }
 0x5d2   : > { %21163 = vmatprep.mubr.f32.mxu1 %v32081_v0 }
 0x5d3   : > { %22517 = vmatmul.mubr.f32.gmra.mrb[22].mxu0 %v28798_v22  ;;  %v32087_v22 = vld [vmem:[#allocation197_spill] sm:$0xff] }
 0x5d4   : > { %22519 = vmatprep.mubr.f32.mxu0 %v28805_v49  ;;  %v32088_v49 = vld [vmem:[#allocation239_spill] sm:$0xff] }
 0x5d5   : > { %21164 = vmatmul.mubr.f32.gmra.mrb[20].mxu1 %v32082_v46 }
 0x5d6   : > { %21166 = vmatprep.mubr.f32.mxu1 %v32083_v41 }
 0x5d7   : > { %22520 = vmatmul.mubr.f32.gmra.mrb[24].mxu0 %v28830_v21  ;;  %v32089_v21 = vld [vmem:[#allocation223_spill] sm:$0xff] }
 0x5d8   : > { %22522 = vmatprep.mubr.f32.mxu0 %v28835_v33  ;;  %v32090_v33 = vld [vmem:[#allocation31_spill] sm:$0xff] }
 0x5d9   : > { %21167 = vmatmul.mubr.f32.gmra.mrb[22].mxu1 %v32084_v47 }
 0x5da   : > { %21169 = vmatprep.mubr.f32.mxu1 %v32085_v36 }
 0x5db   : > { %22523 = vmatmul.mubr.f32.gmra.mrb[26].mxu0 %v28856_v14  ;;  %v32092_v14 = vld [vmem:[#allocation155_spill] sm:$0xff] }
 0x5dc   : > { %22525 = vmatprep.mubr.f32.mxu0 %v28861_v40  ;;  %v32093_v40 = vld [vmem:[#allocation169_spill] sm:$0xff] }
 0x5dd   : > { %21170 = vmatmul.mubr.f32.gmra.mrb[24].mxu1 %v32086_v28 }
 0x5de   : > { %21172 = vmatprep.mubr.f32.mxu1 %v32087_v22 }
 0x5df   : > { %22526 = vmatmul.mubr.f32.gmra.mrb[28].mxu0 %v28880_v9  ;;  %v32096_v9 = vld [vmem:[#allocation65_spill] sm:$0xff] }
 0x5e0   : > { %22528 = vmatprep.mubr.f32.mxu0 %v28886_v27  ;;  %v32097_v27 = vld [vmem:[#allocation159_spill] sm:$0xff] }
 0x5e1   : > { %21173 = vmatmul.mubr.f32.gmra.mrb[26].mxu1 %v32088_v49 }
 0x5e2   : > { %21175 = vmatprep.mubr.f32.mxu1 %v32089_v21 }
 0x5e3   : > { %22529 = vmatmul.mubr.f32.gmra.mrb[30].mxu0 %v28900_v38  ;;  %v32099_v38 = vld [vmem:[#allocation92_spill] sm:$0xff] }
 0x5e4   : > { %22533 = vmatprep.mubr.f32.mxu0 %v32090_v33 }
 0x5e5   : > { %21176 = vmatmul.mubr.f32.gmra.mrb[28].mxu1 %v32091_v2 }
 0x5e6   : > { %21178 = vmatprep.mubr.f32.mxu1 %v32092_v14 }
 0x5e7   : > { %22534 = vmatmul.mubr.f32.vlgmr.msra.gmra.mrb[0].mxu0 %v32093_v40 }
 0x5e8   : > { %22536 = vmatprep.mubr.f32.mxu0 %v32096_v9  ;;  %22582 = vmatpush3.msra.mxu0 %v32052_v56 }
 0x5e9   : > { %21179 = vmatmul.mubr.f32.gmra.mrb[30].mxu1 %v32097_v27  ;;  %22631 = vmatprep.subr.mxu0 %v32098_v39 }
 0x5ea   : > { %21183 = vmatprep.mubr.f32.mxu1 %v32053_v50  ;;  %v32104_v50 = vld [vmem:[#allocation205_spill] sm:$0xff] }
 0x5eb   : > { %22537 = vmatmul.mubr.f32.gmra.mrb[2].mxu0 %v32099_v38 }
 0x5ec   : > { %22539 = vmatprep.mubr.f32.mxu0 %v32100_v57 }
 0x5ed   : > { %21184 = vmatmul.mubr.f32.vlgmr.msra.gmra.mrb[0].mxu1 %v32056_v11  ;;  %v32105_v11 = vld [vmem:[#allocation177_spill] sm:$0xff] }
 0x5ee   : > { %21232 = vmatpush3.msra.mxu1 %v32059_v61  ;;  %21186 = vmatprep.mubr.f32.mxu1 %v32057_v25  ;;  %v32106_v25 = vld [vmem:[#allocation192_spill] sm:$0xff]  ;;  %v32107_v61 = vld [vmem:[#allocation210_spill] sm:$0xff] }
 0x5ef   : > { %22540 = vmatmul.mubr.f32.gmra.mrb[4].mxu0 %v32101_v18  ;;  %21281 = vmatprep.subr.mxu1 %v29033_v15 }
 0x5f0   : > { %22542 = vmatprep.mubr.f32.mxu0 %v32102_v63 }
 0x5f1   : > { %21187 = vmatmul.mubr.f32.gmra.mrb[2].mxu1 %v32061_v19  ;;  %v32108_v19 = vld [vmem:[#allocation238_spill] sm:$0xff] }
 0x5f2   : > { %21189 = vmatprep.mubr.f32.mxu1 %v32062_v31  ;;  %v32109_v31 = vld [vmem:[#allocation214_spill] sm:$0xff] }
 0x5f3   : > { %22543 = vmatmul.mubr.f32.gmra.mrb[6].mxu0 %v28613_v45 }
 0x5f4   : > { %22545 = vmatprep.mubr.f32.mxu0 %v32103_v55 }
 0x5f5   : > { %21190 = vmatmul.mubr.f32.gmra.mrb[4].mxu1 %v32063_v30  ;;  %v32110_v30 = vld [vmem:[#allocation136_spill] sm:$0xff] }
 0x5f6   : > { %21192 = vmatprep.mubr.f32.mxu1 %v32064_v32  ;;  %v32111_v32 = vld [vmem:[#allocation237_spill] sm:$0xff] }
 0x5f7   : > { %22546 = vmatmul.mubr.f32.gmra.mrb[8].mxu0 %v32104_v50 }
 0x5f8   : > { %22548 = vmatprep.mubr.f32.mxu0 %v32105_v11 }
 0x5f9   : > { %21193 = vmatmul.mubr.f32.gmra.mrb[6].mxu1 %v32067_v60  ;;  %v32112_v60 = vld [vmem:[#allocation149_spill] sm:$0xff] }
 0x5fa   : > { %21195 = vmatprep.mubr.f32.mxu1 %v32068_v54  ;;  %v32113_v54 = vld [vmem:[#allocation185_spill] sm:$0xff] }
 0x5fb   : > { %22549 = vmatmul.mubr.f32.gmra.mrb[10].mxu0 %v32106_v25 }
 0x5fc   : > { %22551 = vmatprep.mubr.f32.mxu0 %v32107_v61 }
 0x5fd   : > { %21196 = vmatmul.mubr.f32.gmra.mrb[8].mxu1 %v32070_v10  ;;  %v32114_v10 = vld [vmem:[#allocation191_spill] sm:$0xff] }
 0x5fe   : > { %21198 = vmatprep.mubr.f32.mxu1 %v32071_v35  ;;  %v32115_v35 = vld [vmem:[#allocation229_spill] sm:$0xff] }
 0x5ff   : > { %22552 = vmatmul.mubr.f32.gmra.mrb[12].mxu0 %v32108_v19 }
 0x600   : > { %22554 = vmatprep.mubr.f32.mxu0 %v32109_v31 }
 0x601   : > { %21199 = vmatmul.mubr.f32.gmra.mrb[10].mxu1 %v32072_v29  ;;  %v32144_v29 = vld [vmem:[#allocation80_spill] sm:$0xff] }
 0x602   : > { %21201 = vmatprep.mubr.f32.mxu1 %v32073_v62  ;;  %v32145_v62 = vand.u32 4294901760, %v32110_v30 }
 0x603   : > { %22555 = vmatmul.mubr.f32.gmra.mrb[14].mxu0 %v32110_v30  ;;  %v32154_v30 = vand.u32 4294901760, %v32114_v10 }
 0x604   : > { %22557 = vmatprep.mubr.f32.mxu0 %v32111_v32 }
 0x605   : > { %21202 = vmatmul.mubr.f32.gmra.mrb[12].mxu1 %v32074_v8  ;;  %v32116_v8 = vld [vmem:[#allocation232_spill] sm:$0xff] }
 0x606   : > { %21204 = vmatprep.mubr.f32.mxu1 %v32075_v12  ;;  %v32140_v12 = vld [vmem:[#allocation72_spill] sm:$0xff] }
 0x607   : > { %22558 = vmatmul.mubr.f32.gmra.mrb[16].mxu0 %v28749_v23 }
 0x608   : > { %22560 = vmatprep.mubr.f32.mxu0 %v32112_v60 }
 0x609   : > { %21205 = vmatmul.mubr.f32.gmra.mrb[14].mxu1 %v32076_v42  ;;  %v32139_v42 = vld [vmem:[#allocation71_spill] sm:$0xff] }
 0x60a   : > { %21207 = vmatprep.mubr.f32.mxu1 %v32077_v51  ;;  %v32138_v51 = vand.u32 4294901760, %v32107_v61  ;;  %v32151_v61 = vld [vmem:[#allocation95_spill] sm:$0xff] }
 0x60b   : > { %22561 = vmatmul.mubr.f32.gmra.mrb[18].mxu0 %v32113_v54 }
 0x60c   : > { %22563 = vmatprep.mubr.f32.mxu0 %v32114_v10  ;;  %v32162_v10 = vand.u32 4294901760, %v28828_v6 }
 0x60d   : > { %21208 = vmatmul.mubr.f32.gmra.mrb[16].mxu1 %v32078_v17  ;;  %v32136_v17 = vld [vmem:[#allocation64_spill] sm:$0xff] }
 0x60e   : > { %21210 = vmatprep.mubr.f32.mxu1 %v32079_v1  ;;  %v32131_v1 = vld [vmem:[#allocation54_spill] sm:$0xff] }
 0x60f   : > { %22564 = vmatmul.mubr.f32.gmra.mrb[20].mxu0 %v32115_v35 }
 0x610   : > { %22566 = vmatprep.mubr.f32.mxu0 %v32116_v8 }
 0x611   : > { %21211 = vmatmul.mubr.f32.gmra.mrb[18].mxu1 %v32080_v37  ;;  %v32118_v37 = vand.u32 4294901760, %v32093_v40  ;;  %v32125_v40 = vand.u32 4294901760, %v32101_v18  ;;  %v32146_v18 = vand.u32 4294901760, %v32111_v32  ;;  %v32155_v32 = vld [vmem:[#allocation103_spill] sm:$0xff] }
 0x612   : > { %21213 = vmatprep.mubr.f32.mxu1 %v32081_v0  ;;  %v32117_v0 = vand.u32 4294901760, %v32090_v33  ;;  %v32128_v33 = vld [vmem:[#allocation48_spill] sm:$0xff] }
 0x613   : > { %22567 = vmatmul.mubr.f32.gmra.mrb[22].mxu0 %v28821_v13 }
 0x614   : > { %22569 = vmatprep.mubr.f32.mxu0 %v28828_v6  ;;  %v32170_v6 = vand.u32 4294901760, %v28884_v44 }
 0x615   : > { %21214 = vmatmul.mubr.f32.gmra.mrb[20].mxu1 %v32082_v46  ;;  %v32119_v46 = vand.u32 4294901760, %v32096_v9  ;;  %v32132_v9 = vld [vmem:[#allocation56_spill] sm:$0xff] }
 0x616   : > { %21216 = vmatprep.mubr.f32.mxu1 %v32083_v41  ;;  %v32120_v41 = vld [vmem:[#allocation28_spill] sm:$0xff] }
 0x617   : > { %22570 = vmatmul.mubr.f32.gmra.mrb[24].mxu0 %v28854_v5 }
 0x618   : > { %22572 = vmatprep.mubr.f32.mxu0 %v28859_v16 }
 0x619   : > { %21217 = vmatmul.mubr.f32.gmra.mrb[22].mxu1 %v32084_v47  ;;  %v32121_v47 = vand.u32 4294901760, %v32099_v38  ;;  %v32133_v38 = vand.u32 4294901760, %v32104_v50  ;;  %v32148_v50 = vld [vmem:[#allocation88_spill] sm:$0xff] }
 0x61a   : > { %21219 = vmatprep.mubr.f32.mxu1 %v32085_v36  ;;  %v32123_v36 = vld [vmem:[#allocation30_spill] sm:$0xff] }
 0x61b   : > { %22573 = vmatmul.mubr.f32.gmra.mrb[26].mxu0 %v28878_v4 }
 0x61c   : > { %22575 = vmatprep.mubr.f32.mxu0 %v28884_v44 }
 0x61d   : > { %21220 = vmatmul.mubr.f32.gmra.mrb[24].mxu1 %v32086_v28  ;;  %v32124_v28 = vld [vmem:[#allocation36_spill] sm:$0xff] }
 0x61e   : > { %21222 = vmatprep.mubr.f32.mxu1 %v32087_v22  ;;  %v32126_v22 = vand.u32 4294901760, %v32102_v63  ;;  %v32134_v63 = vand.u32 4294901760, %v32105_v11  ;;  %v32149_v11 = vand.u32 4294901760, %v28749_v23  ;;  %v32157_v23 = vand.u32 4294901760, %v32115_v35 }
 0x61f   : > { %22576 = vmatmul.mubr.f32.gmra.mrb[28].mxu0 %v28898_v48  ;;  %v32165_v35 = vand.u32 4294901760, %v28854_v5 }
 0x620   : > { %22578 = vmatprep.mubr.f32.mxu0 %v28907_v26 }
 0x621   : > { %21223 = vmatmul.mubr.f32.gmra.mrb[26].mxu1 %v32088_v49  ;;  %v32127_v49 = vld [vmem:[#allocation42_spill] sm:$0xff] }
 0x622   : > { %21225 = vmatprep.mubr.f32.mxu1 %v32089_v21  ;;  %v32129_v21 = vand.u32 4294901760, %v28613_v45  ;;  %v32137_v45 = vand.u32 4294901760, %v32106_v25  ;;  %v32150_v25 = vand.u32 4294901760, %v32112_v60  ;;  %v32158_v60 = vand.u32 4294901760, %v32116_v8 }
 0x623   : > { %22579 = vmatmul.mubr.f32.gmra.mrb[30].mxu0 %v28918_v52  ;;  %v32166_v8 = vand.u32 4294901760, %v28859_v16  ;;  %v32175_v16 = vand.u32 4294901760, %v28898_v48 }
 0x624   : > { %22583 = vmatprep.mubr.f32.mxu0 %v32117_v0  ;;  %v32156_v0 = vld [vmem:[#allocation104_spill] sm:$0xff] }
 0x625   : > { %21226 = vmatmul.mubr.f32.gmra.mrb[28].mxu1 %v32091_v2  ;;  %v32122_v2 = vand.u32 4294901760, %v32100_v57  ;;  %v32141_v57 = vand.u32 4294901760, %v32108_v19  ;;  %v32152_v19 = vld [vmem:[#allocation96_spill] sm:$0xff] }
 0x626   : > { %21228 = vmatprep.mubr.f32.mxu1 %v32092_v14  ;;  %v32130_v14 = vand.u32 4294901760, %v32103_v55  ;;  %v32147_v55 = vld [vmem:[#allocation87_spill] sm:$0xff] }
 0x627   : > { %22584 = vmatmul.mubr.f32.vlgmr.msra.gmra.mrb[0].mxu0 %v32118_v37  ;;  %v32159_v37 = vld [vmem:[#allocation111_spill] sm:$0xff] }
 0x628   : > { %22586 = vmatprep.mubr.f32.mxu0 %v32119_v46  ;;  %22632 = vmatpush3.msra.mxu0 %v32098_v39  ;;  %v32143_v39 = vld [vmem:[#allocation79_spill] sm:$0xff]  ;;  %v32160_v46 = vld [vmem:[#allocation112_spill] sm:$0xff] }
 0x629   : > { %21229 = vmatmul.mubr.f32.gmra.mrb[30].mxu1 %v32097_v27  ;;  %22681 = vmatprep.subr.mxu0 %v32052_v56  ;;  %v32135_v27 = vld [vmem:[#allocation62_spill] sm:$0xff] }
 0x62a   : > { %21233 = vmatprep.mubr.f32.mxu1 %v32120_v41  ;;  %v32163_v41 = vld [vmem:[#allocation118_spill] sm:$0xff] }
 0x62b   : > { %22587 = vmatmul.mubr.f32.gmra.mrb[2].mxu0 %v32121_v47  ;;  %v32164_v47 = vld [vmem:[#allocation119_spill] sm:$0xff] }
 0x62c   : > { %22589 = vmatprep.mubr.f32.mxu0 %v32122_v2  ;;  %v32167_v2 = vld [vmem:[#allocation124_spill] sm:$0xff] }
 0x62d   : > { %21234 = vmatmul.mubr.f32.vlgmr.msra.gmra.mrb[0].mxu1 %v32123_v36  ;;  %v32168_v36 = vld [vmem:[#allocation125_spill] sm:$0xff] }
 0x62e   : > { %21282 = vmatpush3.msra.mxu1 %v29033_v15  ;;  %21236 = vmatprep.mubr.f32.mxu1 %v32124_v28  ;;  %v32142_v15 = vand.u32 4294901760, %v32109_v31  ;;  %v32153_v31 = vand.u32 4294901760, %v32113_v54  ;;  %v32161_v54 = vand.u32 4294901760, %v28821_v13  ;;  %v32169_v13 = vand.u32 4294901760, %v28878_v4  ;;  %v32171_v28 = vld [vmem:[#allocation127_spill] sm:$0xff]  ;;  %v32178_v4 = vld [vmem:[#allocation126_spill] sm:$0xff] }
 0x62f   : > { %22590 = vmatmul.mubr.f32.gmra.mrb[4].mxu0 %v32125_v40  ;;  %21331 = vmatprep.subr.mxu1 %v32095_v24  ;;  %v32172_v40 = vld [vmem:[#allocation128_spill] sm:$0xff] }
 0x630   : > { %22592 = vmatprep.mubr.f32.mxu0 %v32126_v22  ;;  %v32173_v22 = vld [vmem:[#allocation123_spill] sm:$0xff] }
 0x631   : > { %21237 = vmatmul.mubr.f32.gmra.mrb[2].mxu1 %v32127_v49  ;;  %v32174_v5 = vand.u32 4294901760, %v32173_v22 }
 0x632   : > { %21239 = vmatprep.mubr.f32.mxu1 %v32128_v33  ;;  %v32176_v33 = vand.u32 4294901760, %v28907_v26  ;;  %v32183_v26 = vld [vmem:[#allocation11_spill] sm:$0xff] }
 0x633   : > { %22593 = vmatmul.mubr.f32.gmra.mrb[6].mxu0 %v32129_v21  ;;  %v8434_v49 = vsub.f32 %v32173_v22, %v32174_v5  ;;  %v32177_v21 = vld [vmem:[#allocation129_spill] sm:$0xff]  ;;  %v32225_v5 = vld [vmem:[#allocation91_spill] sm:$0xff] }
 0x634   : > { %22595 = vmatprep.mubr.f32.mxu0 %v32130_v14  ;;  %v32179_v14 = vand.u32 4294901760, %v32178_v4 }
 0x635   : > { %21240 = vmatmul.mubr.f32.gmra.mrb[4].mxu1 %v32131_v1  ;;  %v32180_v1 = vld [vmem:[#allocation130_spill] sm:$0xff] }
 0x636   : > { %21242 = vmatprep.mubr.f32.mxu1 %v32132_v9  ;;  %v8444_v44 = vsub.f32 %v32178_v4, %v32179_v14  ;;  %v8435_v9 = vand.u32 4294901760, %v8434_v49  ;;  %v32226_v49 = vld [vmem:[#allocation94_spill] sm:$0xff] }
 0x637   : > { %22596 = vmatmul.mubr.f32.gmra.mrb[8].mxu0 %v32133_v38  ;;  %v32181_v38 = vand.u32 4294901760, %v28918_v52  ;;  %v32184_v52 = vld [vmem:[#allocation12_spill] sm:$0xff]  ;;  %v32230_v14 = vld [vmem:[#allocation102_spill] sm:$0xff] }
 0x638   : > { %22598 = vmatprep.mubr.f32.mxu0 %v32134_v63  ;;  %v32182_v63 = vld [vmem:[#allocation131_spill] sm:$0xff]  ;;  %v8445_v48 = vand.u32 4294901760, %v8444_v44  ;;  %v32231_v44 = vld [vmem:[#allocation180_spill] sm:$0xff] }
 0x639   : > { %21243 = vmatmul.mubr.f32.gmra.mrb[6].mxu1 %v32135_v27  ;;  %v32185_v27 = vld [vmem:[#allocation15_spill] sm:$0xff] }
 0x63a   : > { %21245 = vmatprep.mubr.f32.mxu1 %v32136_v17  ;;  %v32186_v17 = vld [vmem:[#allocation16_spill] sm:$0xff] }
 0x63b   : > { %22599 = vmatmul.mubr.f32.gmra.mrb[10].mxu0 %v32137_v45  ;;  %v32188_v45 = vld [vmem:[#allocation174_spill] sm:$0xff] }
 0x63c   : > { %22601 = vmatprep.mubr.f32.mxu0 %v32138_v51  ;;  %v32189_v51 = vld [vmem:[#allocation23_spill] sm:$0xff] }
 0x63d   : > { %21246 = vmatmul.mubr.f32.gmra.mrb[8].mxu1 %v32139_v42  ;;  %v32190_v42 = vld [vmem:[#allocation29_spill] sm:$0xff] }
 0x63e   : > { %21248 = vmatprep.mubr.f32.mxu1 %v32140_v12  ;;  %v32191_v12 = vld [vmem:[#allocation186_spill] sm:$0xff] }
 0x63f   : > { %22602 = vmatmul.mubr.f32.gmra.mrb[12].mxu0 %v32141_v57  ;;  %v32193_v57 = vld [vmem:[#allocation32_spill] sm:$0xff] }
 0x640   : > { %22604 = vmatprep.mubr.f32.mxu0 %v32142_v15  ;;  %v32194_v15 = vld [vmem:[#allocation35_spill] sm:$0xff] }
 0x641   : > { %21249 = vmatmul.mubr.f32.gmra.mrb[10].mxu1 %v32143_v39  ;;  %v32195_v39 = vld [vmem:[#allocation204_spill] sm:$0xff] }
 0x642   : > { %21251 = vmatprep.mubr.f32.mxu1 %v32144_v29  ;;  %v32196_v29 = vld [vmem:[#allocation183_spill] sm:$0xff] }
 0x643   : > { %22605 = vmatmul.mubr.f32.gmra.mrb[14].mxu0 %v32145_v62  ;;  %v32197_v62 = vld [vmem:[#allocation38_spill] sm:$0xff] }
 0x644   : > { %22607 = vmatprep.mubr.f32.mxu0 %v32146_v18  ;;  %v32198_v18 = vld [vmem:[#allocation39_spill] sm:$0xff] }
 0x645   : > { %21252 = vmatmul.mubr.f32.gmra.mrb[12].mxu1 %v32147_v55  ;;  %v32199_v55 = vld [vmem:[#allocation196_spill] sm:$0xff] }
 0x646   : > { %21254 = vmatprep.mubr.f32.mxu1 %v32148_v50  ;;  %v32200_v50 = vld [vmem:[#allocation207_spill] sm:$0xff] }
 0x647   : > { %22608 = vmatmul.mubr.f32.gmra.mrb[16].mxu0 %v32149_v11  ;;  %v32201_v11 = vld [vmem:[#allocation45_spill] sm:$0xff] }
 0x648   : > { %22610 = vmatprep.mubr.f32.mxu0 %v32150_v25  ;;  %v32202_v25 = vld [vmem:[#allocation47_spill] sm:$0xff] }
 0x649   : > { %21255 = vmatmul.mubr.f32.gmra.mrb[14].mxu1 %v32151_v61  ;;  %v32203_v61 = vld [vmem:[#allocation218_spill] sm:$0xff] }
 0x64a   : > { %21257 = vmatprep.mubr.f32.mxu1 %v32152_v19  ;;  %v32204_v19 = vld [vmem:[#allocation115_spill] sm:$0xff] }
 0x64b   : > { %22611 = vmatmul.mubr.f32.gmra.mrb[18].mxu0 %v32153_v31  ;;  %v32205_v31 = vld [vmem:[#allocation51_spill] sm:$0xff] }
 0x64c   : > { %22613 = vmatprep.mubr.f32.mxu0 %v32154_v30  ;;  %v32206_v30 = vld [vmem:[#allocation55_spill] sm:$0xff] }
 0x64d   : > { %21258 = vmatmul.mubr.f32.gmra.mrb[16].mxu1 %v32155_v32  ;;  %v32207_v32 = vld [vmem:[#allocation221_spill] sm:$0xff] }
 0x64e   : > { %21260 = vmatprep.mubr.f32.mxu1 %v32156_v0  ;;  %v32208_v0 = vld [vmem:[#allocation132_spill] sm:$0xff] }
 0x64f   : > { %22614 = vmatmul.mubr.f32.gmra.mrb[20].mxu0 %v32157_v23  ;;  %v32209_v23 = vld [vmem:[#allocation59_spill] sm:$0xff] }
 0x650   : > { %22616 = vmatprep.mubr.f32.mxu0 %v32158_v60  ;;  %v32210_v60 = vld [vmem:[#allocation63_spill] sm:$0xff] }
 0x651   : > { %21261 = vmatmul.mubr.f32.gmra.mrb[18].mxu1 %v32159_v37  ;;  %v32211_v37 = vld [vmem:[#allocation89_spill] sm:$0xff] }
 0x652   : > { %21263 = vmatprep.mubr.f32.mxu1 %v32160_v46  ;;  %v32212_v46 = vld [vmem:[#allocation105_spill] sm:$0xff] }
 0x653   : > { %22617 = vmatmul.mubr.f32.gmra.mrb[22].mxu0 %v32161_v54  ;;  %v32213_v54 = vld [vmem:[#allocation67_spill] sm:$0xff] }
 0x654   : > { %22619 = vmatprep.mubr.f32.mxu0 %v32162_v10  ;;  %v32214_v10 = vld [vmem:[#allocation70_spill] sm:$0xff] }
 0x655   : > { %21264 = vmatmul.mubr.f32.gmra.mrb[20].mxu1 %v32163_v41  ;;  %v32215_v41 = vld [vmem:[#allocation46_spill] sm:$0xff] }
 0x656   : > { %21266 = vmatprep.mubr.f32.mxu1 %v32164_v47  ;;  %v32216_v47 = vld [vmem:[#allocation179_spill] sm:$0xff] }
 0x657   : > { %22620 = vmatmul.mubr.f32.gmra.mrb[24].mxu0 %v32165_v35  ;;  %v32217_v35 = vld [vmem:[#allocation75_spill] sm:$0xff] }
 0x658   : > { %22622 = vmatprep.mubr.f32.mxu0 %v32166_v8  ;;  %v32218_v8 = vld [vmem:[#allocation78_spill] sm:$0xff] }
 0x659   : > { %21267 = vmatmul.mubr.f32.gmra.mrb[22].mxu1 %v32167_v2  ;;  %v32219_v2 = vld [vmem:[#allocation234_spill] sm:$0xff] }
 0x65a   : > { %21269 = vmatprep.mubr.f32.mxu1 %v32168_v36  ;;  %v32220_v36 = vld [vmem:[#allocation147_spill] sm:$0xff] }
 0x65b   : > { %22623 = vmatmul.mubr.f32.gmra.mrb[26].mxu0 %v32169_v13  ;;  %v32221_v13 = vld [vmem:[#allocation83_spill] sm:$0xff] }
 0x65c   : > { %22625 = vmatprep.mubr.f32.mxu0 %v32170_v6  ;;  %v32222_v6 = vld [vmem:[#allocation86_spill] sm:$0xff] }
 0x65d   : > { %21270 = vmatmul.mubr.f32.gmra.mrb[24].mxu1 %v32171_v28  ;;  %v32223_v28 = vld [vmem:[#allocation138_spill] sm:$0xff] }
 0x65e   : > { %21272 = vmatprep.mubr.f32.mxu1 %v32172_v40  ;;  %v32224_v40 = vld [vmem:[#allocation157_spill] sm:$0xff] }
 0x65f   : > { %22626 = vmatmul.mubr.f32.gmra.mrb[28].mxu0 %v32175_v16  ;;  %v32227_v16 = vld [vmem:[#allocation68_spill] sm:$0xff] }
 0x660   : > { %22628 = vmatprep.mubr.f32.mxu0 %v32176_v33  ;;  %v32228_v33 = vld [vmem:[#allocation178_spill] sm:$0xff] }
 0x661   : > { %21273 = vmatmul.mubr.f32.gmra.mrb[26].mxu1 %v32177_v21  ;;  %v32229_v21 = vld [vmem:[#allocation99_spill] sm:$0xff] }
 0x662   : > { %21275 = vmatprep.mubr.f32.mxu1 %v32180_v1  ;;  %v32232_v1 = vld [vmem:[#allocation181_spill] sm:$0xff] }
 0x663   : > { %22629 = vmatmul.mubr.f32.gmra.mrb[30].mxu0 %v32181_v38  ;;  %v32234_v38 = vld [vmem:[#allocation110_spill] sm:$0xff] }
 0x664   : > { %22633 = vmatprep.mubr.f32.mxu0 %v28517_v3 }
 0x665   : > { %21276 = vmatmul.mubr.f32.gmra.mrb[28].mxu1 %v32182_v63  ;;  %v32235_v63 = vld [vmem:[#allocation133_spill] sm:$0xff] }
 0x666   : > { %21278 = vmatprep.mubr.f32.mxu1 %v8435_v9  ;;  %v32233_v9 = vld [vmem:[#allocation107_spill] sm:$0xff] }
 0x667   : > { %22634 = vmatmul.mubr.f32.vlgmr.msra.gmra.mrb[0].mxu0 %v28526_v7 }
 0x668   : > { %22636 = vmatprep.mubr.f32.mxu0 %v32050_v53  ;;  %22682 = vmatpush3.msra.mxu0 %v32052_v56  ;;  %v32187_v56 = vld [vmem:[#allocation17_spill] sm:$0xff] }
 0x669   : > { %21279 = vmatmul.mubr.f32.gmra.mrb[30].mxu1 %v8445_v48  ;;  %v32236_v48 = vld [vmem:[#allocation114_spill] sm:$0xff] }
 0x66a   : > { %21283 = vmatprep.mubr.f32.mxu1 %v32183_v26  ;;  %v32237_v26 = vld [vmem:[#allocation117_spill] sm:$0xff] }
 0x66b   : > { %22637 = vmatmul.mubr.f32.gmra.mrb[2].mxu0 %v32054_v34 }
 0x66c   : > { %22639 = vmatprep.mubr.f32.mxu0 %v32055_v20 }
 0x66d   : > { %21284 = vmatmul.mubr.f32.vlgmr.msra.gmra.mrb[0].mxu1 %v32184_v52  ;;  %v32238_v52 = vld [vmem:[#allocation121_spill] sm:$0xff] }
 0x66e   : > { %21332 = vmatpush3.msra.mxu1 %v32095_v24  ;;  %21286 = vmatprep.mubr.f32.mxu1 %v32185_v27  ;;  %v32192_v24 = vld [vmem:[#allocation194_spill] sm:$0xff]  ;;  %v32239_v27 = vld [vmem:[#allocation13_spill] sm:$0xff] }
 0x66f   : > { %22640 = vmatmul.mubr.f32.gmra.mrb[4].mxu0 %v32058_v58 }
 0x670   : > { %22642 = vmatprep.mubr.f32.mxu0 %v32060_v43 }
 0x671   : > { %21287 = vmatmul.mubr.f32.gmra.mrb[2].mxu1 %v32186_v17  ;;  %v32240_v17 = vld [vmem:[#allocation14_spill] sm:$0xff] }
 0x672   : > { %21289 = vmatprep.mubr.f32.mxu1 %v32187_v56  ;;  %v32241_v56 = vld [vmem:[#allocation20_spill] sm:$0xff] }
 0x673   : > { %22643 = vmatmul.mubr.f32.gmra.mrb[6].mxu0 %v28587_v59 }
 0x674   : > { %22645 = vmatprep.mubr.f32.mxu0 %v32188_v45 }
 0x675   : > { %21290 = vmatmul.mubr.f32.gmra.mrb[4].mxu1 %v32189_v51  ;;  %v32251_v51 = vld [vmem:[#allocation53_spill] sm:$0xff] }
 0x676   : > { %21292 = vmatprep.mubr.f32.mxu1 %v32190_v42  ;;  %v32252_v42 = vld [vmem:[#allocation58_spill] sm:$0xff] }
 0x677   : > { %22646 = vmatmul.mubr.f32.gmra.mrb[8].mxu0 %v32191_v12 }
 0x678   : > { %22648 = vmatprep.mubr.f32.mxu0 %v32192_v24 }
 0x679   : > { %21293 = vmatmul.mubr.f32.gmra.mrb[6].mxu1 %v32193_v57  ;;  %v32255_v57 = vld [vmem:[#allocation69_spill] sm:$0xff] }
 0x67a   : > { %21295 = vmatprep.mubr.f32.mxu1 %v32194_v15  ;;  %v32256_v15 = vld [vmem:[#allocation74_spill] sm:$0xff] }
 0x67b   : > { %22649 = vmatmul.mubr.f32.gmra.mrb[10].mxu0 %v32195_v39 }
 0x67c   : > { %22651 = vmatprep.mubr.f32.mxu0 %v32196_v29 }
 0x67d   : > { %21296 = vmatmul.mubr.f32.gmra.mrb[8].mxu1 %v32197_v62  ;;  %v32259_v62 = vld [vmem:[#allocation85_spill] sm:$0xff] }
 0x67e   : > { %21298 = vmatprep.mubr.f32.mxu1 %v32198_v18  ;;  %v32260_v18 = vld [vmem:[#allocation90_spill] sm:$0xff] }
 0x67f   : > { %22652 = vmatmul.mubr.f32.gmra.mrb[12].mxu0 %v32199_v55 }
 0x680   : > { %22654 = vmatprep.mubr.f32.mxu0 %v32200_v50 }
 0x681   : > { %21299 = vmatmul.mubr.f32.gmra.mrb[10].mxu1 %v32201_v11  ;;  %v32263_v11 = vld [vmem:[#allocation101_spill] sm:$0xff] }
 0x682   : > { %21301 = vmatprep.mubr.f32.mxu1 %v32202_v25  ;;  %v32264_v25 = vld [vmem:[#allocation106_spill] sm:$0xff] }
 0x683   : > { %22655 = vmatmul.mubr.f32.gmra.mrb[14].mxu0 %v32203_v61 }
 0x684   : > { %22657 = vmatprep.mubr.f32.mxu0 %v32204_v19 }
 0x685   : > { %21302 = vmatmul.mubr.f32.gmra.mrb[12].mxu1 %v32205_v31  ;;  %v32267_v31 = vld [vmem:[#allocation116_spill] sm:$0xff] }
 0x686   : > { %21304 = vmatprep.mubr.f32.mxu1 %v32206_v30  ;;  %v32268_v30 = vld [vmem:[#allocation120_spill] sm:$0xff] }
 0x687   : > { %22658 = vmatmul.mubr.f32.gmra.mrb[16].mxu0 %v32207_v32 }
 0x688   : > { %22660 = vmatprep.mubr.f32.mxu0 %v32208_v0 }
 0x689   : > { %21305 = vmatmul.mubr.f32.gmra.mrb[14].mxu1 %v32209_v23 }
 0x68a   : > { %21307 = vmatprep.mubr.f32.mxu1 %v32210_v60 }
 0x68b   : > { %22661 = vmatmul.mubr.f32.gmra.mrb[18].mxu0 %v32211_v37 }
 0x68c   : > { %22663 = vmatprep.mubr.f32.mxu0 %v32212_v46 }
 0x68d   : > { %21308 = vmatmul.mubr.f32.gmra.mrb[16].mxu1 %v32213_v54 }
 0x68e   : > { %21310 = vmatprep.mubr.f32.mxu1 %v32214_v10 }
 0x68f   : > { %22664 = vmatmul.mubr.f32.gmra.mrb[20].mxu0 %v32215_v41 }
 0x690   : > { %22666 = vmatprep.mubr.f32.mxu0 %v32216_v47 }
 0x691   : > { %21311 = vmatmul.mubr.f32.gmra.mrb[18].mxu1 %v32217_v35 }
 0x692   : > { %21313 = vmatprep.mubr.f32.mxu1 %v32218_v8 }
 0x693   : > { %22667 = vmatmul.mubr.f32.gmra.mrb[22].mxu0 %v32219_v2 }
 0x694   : > { %22669 = vmatprep.mubr.f32.mxu0 %v32220_v36 }
 0x695   : > { %21314 = vmatmul.mubr.f32.gmra.mrb[20].mxu1 %v32221_v13 }
 0x696   : > { %21316 = vmatprep.mubr.f32.mxu1 %v32222_v6 }
 0x697   : > { %22670 = vmatmul.mubr.f32.gmra.mrb[24].mxu0 %v32223_v28 }
 0x698   : > { %22672 = vmatprep.mubr.f32.mxu0 %v32224_v40 }
 0x699   : > { %21317 = vmatmul.mubr.f32.gmra.mrb[22].mxu1 %v32225_v5 }
 0x69a   : > { %21319 = vmatprep.mubr.f32.mxu1 %v32226_v49 }
 0x69b   : > { %22673 = vmatmul.mubr.f32.gmra.mrb[26].mxu0 %v32227_v16 }
 0x69c   : > { %22675 = vmatprep.mubr.f32.mxu0 %v32228_v33 }
 0x69d   : > { %21320 = vmatmul.mubr.f32.gmra.mrb[24].mxu1 %v32229_v21 }
 0x69e   : > { %21322 = vmatprep.mubr.f32.mxu1 %v32230_v14 }
 0x69f   : > { %22676 = vmatmul.mubr.f32.gmra.mrb[28].mxu0 %v32231_v44 }
 0x6a0   : > { %22678 = vmatprep.mubr.f32.mxu0 %v32232_v1 }
 0x6a1   : > { %21323 = vmatmul.mubr.f32.gmra.mrb[26].mxu1 %v32233_v9 }
 0x6a2   : > { %21325 = vmatprep.mubr.f32.mxu1 %v32234_v38 }
 0x6a3   : > { %22679 = vmatmul.mubr.f32.gmra.mrb[30].mxu0 %v32235_v63 }
 0x6a4   : > { %22683 = vmatprep.mubr.f32.mxu0 %v28517_v3  ;;  %v32242_v3 = vld [vmem:[#allocation21_spill] sm:$0xff] }
 0x6a5   : > { %21326 = vmatmul.mubr.f32.gmra.mrb[28].mxu1 %v32236_v48 }
 0x6a6   : > { %21328 = vmatprep.mubr.f32.mxu1 %v32237_v26 }
 0x6a7   : > { %22684 = vmatmul.mubr.f32.vlgmr.msra.gmra.mrb[0].mxu0 %v28526_v7  ;;  %v32243_v7 = vld [vmem:[#allocation22_spill] sm:$0xff] }
 0x6a8   : > { %22686 = vmatprep.mubr.f32.mxu0 %v32050_v53  ;;  %v32244_v53 = vld [vmem:[#allocation27_spill] sm:$0xff] }
 0x6a9   : > { %21329 = vmatmul.mubr.f32.gmra.mrb[30].mxu1 %v32238_v52 }
 0x6aa   : > { %21333 = vmatprep.mubr.f32.mxu1 %v32239_v27 }
 0x6ab   : > { %22687 = vmatmul.mubr.f32.gmra.mrb[2].mxu0 %v32054_v34  ;;  %v32245_v34 = vld [vmem:[#allocation33_spill] sm:$0xff] }
 0x6ac   : > { %22689 = vmatprep.mubr.f32.mxu0 %v32055_v20  ;;  %v32246_v20 = vld [vmem:[#allocation34_spill] sm:$0xff] }
 0x6ad   : > { %21334 = vmatmul.mubr.f32.vlgmr.msra.gmra.mrb[0].mxu1 %v32240_v17 }
 0x6ae   : > { %21336 = vmatprep.mubr.f32.mxu1 %v32241_v56 }
 0x6af   : > { %22690 = vmatmul.mubr.f32.gmra.mrb[4].mxu0 %v32058_v58  ;;  %v32247_v58 = vld [vmem:[#allocation41_spill] sm:$0xff] }
 0x6b0   : > { %22692 = vmatprep.mubr.f32.mxu0 %v32060_v43  ;;  %v32248_v43 = vld [vmem:[#allocation43_spill] sm:$0xff] }
 0x6b1   : > { %21337 = vmatmul.mubr.f32.gmra.mrb[2].mxu1 %v32242_v3 }
 0x6b2   : > { %21339 = vmatprep.mubr.f32.mxu1 %v32243_v7 }
 0x6b3   : > { %22693 = vmatmul.mubr.f32.gmra.mrb[6].mxu0 %v28587_v59  ;;  %v32249_v59 = vld [vmem:[#allocation44_spill] sm:$0xff] }
 0x6b4   : > { %22695 = vmatprep.mubr.f32.mxu0 %v32188_v45  ;;  %v32250_v45 = vld [vmem:[#allocation50_spill] sm:$0xff] }
 0x6b5   : > { %21340 = vmatmul.mubr.f32.gmra.mrb[4].mxu1 %v32244_v53 }
 0x6b6   : > { %21342 = vmatprep.mubr.f32.mxu1 %v32245_v34 }
 0x6b7   : > { %22696 = vmatmul.mubr.f32.gmra.mrb[8].mxu0 %v32191_v12  ;;  %v32253_v12 = vld [vmem:[#allocation61_spill] sm:$0xff] }
 0x6b8   : > { %22698 = vmatprep.mubr.f32.mxu0 %v32192_v24  ;;  %v32254_v24 = vld [vmem:[#allocation66_spill] sm:$0xff] }
 0x6b9   : > { %21343 = vmatmul.mubr.f32.gmra.mrb[6].mxu1 %v32246_v20 }
 0x6ba   : > { %21345 = vmatprep.mubr.f32.mxu1 %v32247_v58 }
 0x6bb   : > { %22699 = vmatmul.mubr.f32.gmra.mrb[10].mxu0 %v32195_v39  ;;  %v32257_v39 = vld [vmem:[#allocation77_spill] sm:$0xff] }
 0x6bc   : > { %22701 = vmatprep.mubr.f32.mxu0 %v32196_v29  ;;  %v32258_v29 = vld [vmem:[#allocation82_spill] sm:$0xff] }
 0x6bd   : > { %21346 = vmatmul.mubr.f32.gmra.mrb[8].mxu1 %v32248_v43 }
 0x6be   : > { %21348 = vmatprep.mubr.f32.mxu1 %v32249_v59 }
 0x6bf   : > { %22702 = vmatmul.mubr.f32.gmra.mrb[12].mxu0 %v32199_v55  ;;  %v32261_v55 = vld [vmem:[#allocation93_spill] sm:$0xff] }
 0x6c0   : > { %22704 = vmatprep.mubr.f32.mxu0 %v32200_v50  ;;  %v32262_v50 = vld [vmem:[#allocation98_spill] sm:$0xff] }
 0x6c1   : > { %21349 = vmatmul.mubr.f32.gmra.mrb[10].mxu1 %v32250_v45 }
 0x6c2   : > { %21351 = vmatprep.mubr.f32.mxu1 %v32251_v51 }
 0x6c3   : > { %22705 = vmatmul.mubr.f32.gmra.mrb[14].mxu0 %v32203_v61  ;;  %v32265_v61 = vld [vmem:[#allocation109_spill] sm:$0xff] }
 0x6c4   : > { %22707 = vmatprep.mubr.f32.mxu0 %v32204_v19  ;;  %v32266_v19 = vld [vmem:[#allocation113_spill] sm:$0xff] }
 0x6c5   : > { %21352 = vmatmul.mubr.f32.gmra.mrb[12].mxu1 %v32252_v42 }
 0x6c6   : > { %21354 = vmatprep.mubr.f32.mxu1 %v32253_v12 }
 0x6c7   : > { %22708 = vmatmul.mubr.f32.gmra.mrb[16].mxu0 %v32207_v32 }
 0x6c8   : > { %22710 = vmatprep.mubr.f32.mxu0 %v32208_v0 }
 0x6c9   : > { %21355 = vmatmul.mubr.f32.gmra.mrb[14].mxu1 %v32254_v24 }
 0x6ca   : > { %21357 = vmatprep.mubr.f32.mxu1 %v32255_v57 }
 0x6cb   : > { %22711 = vmatmul.mubr.f32.gmra.mrb[18].mxu0 %v32211_v37 }
 0x6cc   : > { %22713 = vmatprep.mubr.f32.mxu0 %v32212_v46 }
 0x6cd   : > { %21358 = vmatmul.mubr.f32.gmra.mrb[16].mxu1 %v32256_v15 }
 0x6ce   : > { %21360 = vmatprep.mubr.f32.mxu1 %v32257_v39 }
 0x6cf   : > { %22714 = vmatmul.mubr.f32.gmra.mrb[20].mxu0 %v32215_v41 }
 0x6d0   : > { %22716 = vmatprep.mubr.f32.mxu0 %v32216_v47 }
 0x6d1   : > { %21361 = vmatmul.mubr.f32.gmra.mrb[18].mxu1 %v32258_v29 }
 0x6d2   : > { %21363 = vmatprep.mubr.f32.mxu1 %v32259_v62 }
 0x6d3   : > { %22717 = vmatmul.mubr.f32.gmra.mrb[22].mxu0 %v32219_v2 }
 0x6d4   : > { %22719 = vmatprep.mubr.f32.mxu0 %v32220_v36 }
 0x6d5   : > { %21364 = vmatmul.mubr.f32.gmra.mrb[20].mxu1 %v32260_v18 }
 0x6d6   : > { %21366 = vmatprep.mubr.f32.mxu1 %v32261_v55 }
 0x6d7   : > { %22720 = vmatmul.mubr.f32.gmra.mrb[24].mxu0 %v32223_v28 }
 0x6d8   : > { %22722 = vmatprep.mubr.f32.mxu0 %v32224_v40 }
 0x6d9   : > { %21367 = vmatmul.mubr.f32.gmra.mrb[22].mxu1 %v32262_v50 }
 0x6da   : > { %21369 = vmatprep.mubr.f32.mxu1 %v32263_v11 }
 0x6db   : > { %22723 = vmatmul.mubr.f32.gmra.mrb[26].mxu0 %v32227_v16 }
 0x6dc   : > { %22725 = vmatprep.mubr.f32.mxu0 %v32228_v33 }
 0x6dd   : > { %21370 = vmatmul.mubr.f32.gmra.mrb[24].mxu1 %v32264_v25 }
 0x6de   : > { %21372 = vmatprep.mubr.f32.mxu1 %v32265_v61 }
 0x6df   : > { %22726 = vmatmul.mubr.f32.gmra.mrb[28].mxu0 %v32231_v44 }
 0x6e0   : > { %22728 = vmatprep.mubr.f32.mxu0 %v32232_v1 }
 0x6e1   : > { %21373 = vmatmul.mubr.f32.gmra.mrb[26].mxu1 %v32266_v19 }
 0x6e2   : > { %21375 = vmatprep.mubr.f32.mxu1 %v32267_v31 }
 0x6e3   : > { %22729 = vmatmul.mubr.f32.gmra.mrb[30].mxu0 %v32235_v63 }
 0x6e5   : > { %21376 = vmatmul.mubr.f32.gmra.mrb[28].mxu1 %v32268_v30 }
 0x6e6   : > { %21378 = vmatprep.mubr.f32.mxu1 %v32173_v22 }
 0x6e9   : > { %21379 = vmatmul.mubr.f32.gmra.mrb[30].mxu1 %v32178_v4 }
 0x77a   : > { %v22685_v32 = vpop.f32.mrb[0].mxu0 }
 0x77b   : > { %v17431_v0 = vpop.f32.mrb[1].mxu0 }
 0x77e   : > { %v22688_v23 = vpop.f32.mrb[2].mxu0 }
 0x77f   : > { %v17443_v60 = vpop.f32.mrb[3].mxu0 }
 0x780   : > { %v21335_v37 = vpop.f32.mrb[0].mxu1 }
 0x781   : > { %v29336_v22 = vadd.f32 %v22685_v32, %v21335_v37  ;;  %v8783_v4 = vpop.f32.mrb[1].mxu1 }
 0x782   : > { %v29338_v46 = vadd.f32 %v17431_v0, %v8783_v4  ;;  %v22691_v54 = vpop.f32.mrb[4].mxu0 }
 0x783   : > { %17654 = vst.msk [vmem:[%s29334_s11 + $0x8] sm:$0xff] %vm285_vm1, %v29336_v22  ;;  %v17455_v10 = vpop.f32.mrb[5].mxu0  ;;  %v17686_v41 = vsel %vm285_vm1, %v29336_v22, 0.0 }
 0x784   : > { %17653 = vst.msk [vmem:[%s29334_s11] sm:$0xff] %vm285_vm1, %v29338_v46  ;;  %v17685_v47 = vsel %vm285_vm1, %v29338_v46, 0.0  ;;  %v21338_v35 = vpop.f32.mrb[2].mxu1 }
 0x785   : > { %v29350_v8 = vadd.f32 %v22688_v23, %v21338_v35  ;;  %v8797_v2 = vpop.f32.mrb[3].mxu1  ;;  %v17687_v6 = vadd.f32 %v17686_v41, %v17685_v47 }
 0x786   : > { %v29352_v36 = vadd.f32 %v17443_v60, %v8797_v2  ;;  %v22694_v13 = vpop.f32.mrb[6].mxu0 }
 0x787   : > { %17656 = vst.msk [vmem:[%s29334_s11 + $0x18] sm:$0xff] %vm285_vm1, %v29350_v8  ;;  %v17467_v28 = vpop.f32.mrb[7].mxu0  ;;  %v17690_v21 = vsel %vm285_vm1, %v29350_v8, 0.0 }
 0x788   : > { %17655 = vst.msk [vmem:[%s29334_s11 + $0x10] sm:$0xff] %vm285_vm1, %v29352_v36  ;;  %v17688_v40 = vsel %vm285_vm1, %v29352_v36, 0.0  ;;  %v21341_v5 = vpop.f32.mrb[4].mxu1 }
 0x789   : > { %v17689_v49 = vadd.f32 %v17688_v40, %v17687_v6  ;;  %v29362_v16 = vadd.f32 %v22691_v54, %v21341_v5  ;;  %v8811_v33 = vpop.f32.mrb[5].mxu1 }
 0x78a   : > { %v29366_v14 = vadd.f32 %v17455_v10, %v8811_v33  ;;  %v22697_v44 = vpop.f32.mrb[8].mxu0 }
 0x78b   : > { %17658 = vst.msk [vmem:[%s29334_s11 + $0x28] sm:$0xff] %vm285_vm1, %v29362_v16  ;;  %v17691_v1 = vadd.f32 %v17690_v21, %v17689_v49  ;;  %v17479_v9 = vpop.f32.mrb[9].mxu0  ;;  %v17694_v27 = vsel %vm285_vm1, %v29362_v16, 0.0 }
 0x78c   : > { %17657 = vst.msk [vmem:[%s29334_s11 + $0x20] sm:$0xff] %vm285_vm1, %v29366_v14  ;;  %v17692_v38 = vsel %vm285_vm1, %v29366_v14, 0.0  ;;  %v21344_v63 = vpop.f32.mrb[6].mxu1 }
 0x78d   : > { %v17693_v48 = vadd.f32 %v17692_v38, %v17691_v1  ;;  %v29376_v26 = vadd.f32 %v22694_v13, %v21344_v63  ;;  %v8825_v52 = vpop.f32.mrb[7].mxu1 }
 0x78e   : > { %v29380_v17 = vadd.f32 %v17467_v28, %v8825_v52  ;;  %v22700_v56 = vpop.f32.mrb[10].mxu0 }
 0x78f   : > { %17660 = vst.msk [vmem:[%s29334_s11 + $0x38] sm:$0xff] %vm285_vm1, %v29376_v26  ;;  %v17695_v3 = vadd.f32 %v17694_v27, %v17693_v48  ;;  %v17491_v7 = vpop.f32.mrb[11].mxu0  ;;  %v17698_v59 = vsel %vm285_vm1, %v29376_v26, 0.0 }
 0x790   : > { %17659 = vst.msk [vmem:[%s29334_s11 + $0x30] sm:$0xff] %vm285_vm1, %v29380_v17  ;;  %v17696_v53 = vsel %vm285_vm1, %v29380_v17, 0.0  ;;  %v21347_v34 = vpop.f32.mrb[8].mxu1 }
 0x791   : > { %v17697_v20 = vadd.f32 %v17696_v53, %v17695_v3  ;;  %v29390_v58 = vadd.f32 %v22697_v44, %v21347_v34  ;;  %v8839_v43 = vpop.f32.mrb[9].mxu1 }
 0x792   : > { %v29394_v45 = vadd.f32 %v17479_v9, %v8839_v43  ;;  %v22703_v51 = vpop.f32.mrb[12].mxu0 }
 0x793   : > { %17662 = vst.msk [vmem:[%s29334_s11 + $0x48] sm:$0xff] %vm285_vm1, %v29390_v58  ;;  %v17699_v42 = vadd.f32 %v17698_v59, %v17697_v20  ;;  %v17503_v12 = vpop.f32.mrb[13].mxu0  ;;  %v17702_v62 = vsel %vm285_vm1, %v29390_v58, 0.0 }
 0x794   : > { %17661 = vst.msk [vmem:[%s29334_s11 + $0x40] sm:$0xff] %vm285_vm1, %v29394_v45  ;;  %v17700_v24 = vsel %vm285_vm1, %v29394_v45, 0.0  ;;  %v21350_v57 = vpop.f32.mrb[10].mxu1 }
 0x795   : > { %v17701_v15 = vadd.f32 %v17700_v24, %v17699_v42  ;;  %v29404_v39 = vadd.f32 %v22700_v56, %v21350_v57  ;;  %v8853_v29 = vpop.f32.mrb[11].mxu1 }
 0x796   : > { %v29408_v18 = vadd.f32 %v17491_v7, %v8853_v29  ;;  %v22706_v55 = vpop.f32.mrb[14].mxu0 }
 0x797   : > { %17664 = vst.msk [vmem:[%s29334_s11 + $0x58] sm:$0xff] %vm285_vm1, %v29404_v39  ;;  %v17703_v50 = vadd.f32 %v17702_v62, %v17701_v15  ;;  %v17515_v11 = vpop.f32.mrb[15].mxu0  ;;  %v17706_v32 = vsel %vm285_vm1, %v29404_v39, 0.0 }
 0x798   : > { %17663 = vst.msk [vmem:[%s29334_s11 + $0x50] sm:$0xff] %vm285_vm1, %v29408_v18  ;;  %v17704_v25 = vsel %vm285_vm1, %v29408_v18, 0.0  ;;  %v21353_v61 = vpop.f32.mrb[12].mxu1 }
 0x799   : > { %v17705_v19 = vadd.f32 %v17704_v25, %v17703_v50  ;;  %v29418_v31 = vadd.f32 %v22703_v51, %v21353_v61  ;;  %v8867_v30 = vpop.f32.mrb[13].mxu1 }
 0x79a   : > { %v29422_v0 = vadd.f32 %v17503_v12, %v8867_v30  ;;  %v22709_v23 = vpop.f32.mrb[16].mxu0 }
 0x79b   : > { %17666 = vst.msk [vmem:[%s29334_s11 + $0x68] sm:$0xff] %vm285_vm1, %v29418_v31  ;;  %v17707_v60 = vadd.f32 %v17706_v32, %v17705_v19  ;;  %v17527_v37 = vpop.f32.mrb[17].mxu0  ;;  %v17710_v35 = vsel %vm285_vm1, %v29418_v31, 0.0 }
 0x79c   : > { %17665 = vst.msk [vmem:[%s29334_s11 + $0x60] sm:$0xff] %vm285_vm1, %v29422_v0  ;;  %v17708_v4 = vsel %vm285_vm1, %v29422_v0, 0.0  ;;  %v21356_v54 = vpop.f32.mrb[14].mxu1 }
 0x79d   : > { %v17709_v10 = vadd.f32 %v17708_v4, %v17707_v60  ;;  %v29432_v41 = vadd.f32 %v22706_v55, %v21356_v54  ;;  %v8881_v47 = vpop.f32.mrb[15].mxu1 }
 0x79e   : > { %v29436_v2 = vadd.f32 %v17515_v11, %v8881_v47  ;;  %v22712_v13 = vpop.f32.mrb[18].mxu0 }
 0x79f   : > { %17668 = vst.msk [vmem:[%s29334_s11 + $0x78] sm:$0xff] %vm285_vm1, %v29432_v41  ;;  %v17711_v6 = vadd.f32 %v17710_v35, %v17709_v10  ;;  %v17539_v28 = vpop.f32.mrb[19].mxu0  ;;  %v17714_v44 = vsel %vm285_vm1, %v29432_v41, 0.0 }
 0x7a0   : > { %17667 = vst.msk [vmem:[%s29334_s11 + $0x70] sm:$0xff] %vm285_vm1, %v29436_v2  ;;  %v17712_v40 = vsel %vm285_vm1, %v29436_v2, 0.0  ;;  %v21359_v5 = vpop.f32.mrb[16].mxu1 }
 0x7a1   : > { %v17713_v49 = vadd.f32 %v17712_v40, %v17711_v6  ;;  %v29446_v33 = vadd.f32 %v22709_v23, %v21359_v5  ;;  %v8895_v21 = vpop.f32.mrb[17].mxu1 }
 0x7a2   : > { %v29450_v1 = vadd.f32 %v17527_v37, %v8895_v21  ;;  %v22715_v9 = vpop.f32.mrb[20].mxu0 }
 0x7a3   : > { %17670 = vst.msk [vmem:[%s29334_s11 + $0x88] sm:$0xff] %vm285_vm1, %v29446_v33  ;;  %v17715_v38 = vadd.f32 %v17714_v44, %v17713_v49  ;;  %v17551_v63 = vpop.f32.mrb[21].mxu0  ;;  %v17718_v7 = vsel %vm285_vm1, %v29446_v33, 0.0 }
 0x7a4   : > { %17669 = vst.msk [vmem:[%s29334_s11 + $0x80] sm:$0xff] %vm285_vm1, %v29450_v1  ;;  %v17716_v48 = vsel %vm285_vm1, %v29450_v1, 0.0  ;;  %v21362_v52 = vpop.f32.mrb[18].mxu1 }
 0x7a5   : > { %v17717_v27 = vadd.f32 %v17716_v48, %v17715_v38  ;;  %v29460_v56 = vadd.f32 %v22712_v13, %v21362_v52  ;;  %v8909_v3 = vpop.f32.mrb[19].mxu1 }
 0x7a6   : > { %v29464_v53 = vadd.f32 %v17539_v28, %v8909_v3  ;;  %v22718_v34 = vpop.f32.mrb[22].mxu0 }
 0x7a7   : > { %17672 = vst.msk [vmem:[%s29334_s11 + $0x98] sm:$0xff] %vm285_vm1, %v29460_v56  ;;  %v17719_v20 = vadd.f32 %v17718_v7, %v17717_v27  ;;  %v17563_v43 = vpop.f32.mrb[23].mxu0  ;;  %v17722_v57 = vsel %vm285_vm1, %v29460_v56, 0.0 }
 0x7a8   : > { %17671 = vst.msk [vmem:[%s29334_s11 + $0x90] sm:$0xff] %vm285_vm1, %v29464_v53  ;;  %v17720_v59 = vsel %vm285_vm1, %v29464_v53, 0.0  ;;  %v21365_v51 = vpop.f32.mrb[20].mxu1 }
 0x7a9   : > { %v17721_v42 = vadd.f32 %v17720_v59, %v17719_v20  ;;  %v29474_v12 = vadd.f32 %v22715_v9, %v21365_v51  ;;  %v8923_v24 = vpop.f32.mrb[21].mxu1 }
 0x7aa   : > { %v29478_v15 = vadd.f32 %v17551_v63, %v8923_v24  ;;  %v22721_v29 = vpop.f32.mrb[24].mxu0 }
 0x7ab   : > { %17674 = vst.msk [vmem:[%s29334_s11 + $0xa8] sm:$0xff] %vm285_vm1, %v29474_v12  ;;  %v17723_v62 = vadd.f32 %v17722_v57, %v17721_v42  ;;  %v17575_v55 = vpop.f32.mrb[25].mxu0  ;;  %v17726_v30 = vsel %vm285_vm1, %v29474_v12, 0.0 }
 0x7ac   : > { %17673 = vst.msk [vmem:[%s29334_s11 + $0xa0] sm:$0xff] %vm285_vm1, %v29478_v15  ;;  %v17724_v50 = vsel %vm285_vm1, %v29478_v15, 0.0  ;;  %v21368_v11 = vpop.f32.mrb[22].mxu1 }
 0x7ad   : > { %v17725_v25 = vadd.f32 %v17724_v50, %v17723_v62  ;;  %v29488_v61 = vadd.f32 %v22718_v34, %v21368_v11  ;;  %v8937_v19 = vpop.f32.mrb[23].mxu1 }
 0x7ae   : > { %v29492_v32 = vadd.f32 %v17563_v43, %v8937_v19  ;;  %v22724_v23 = vpop.f32.mrb[26].mxu0 }
 0x7af   : > { %17676 = vst.msk [vmem:[%s29334_s11 + $0xb8] sm:$0xff] %vm285_vm1, %v29488_v61  ;;  %v17727_v60 = vadd.f32 %v17726_v30, %v17725_v25  ;;  %v17587_v37 = vpop.f32.mrb[27].mxu0  ;;  %v17730_v13 = vsel %vm285_vm1, %v29488_v61, 0.0 }
 0x7b0   : > { %17675 = vst.msk [vmem:[%s29334_s11 + $0xb0] sm:$0xff] %vm285_vm1, %v29492_v32  ;;  %v17728_v4 = vsel %vm285_vm1, %v29492_v32, 0.0  ;;  %v21371_v54 = vpop.f32.mrb[24].mxu1 }
 0x7b1   : > { %v17729_v10 = vadd.f32 %v17728_v4, %v17727_v60  ;;  %v29502_v47 = vadd.f32 %v22721_v29, %v21371_v54  ;;  %v8951_v35 = vpop.f32.mrb[25].mxu1 }
 0x7b2   : > { %v29506_v6 = vadd.f32 %v17575_v55, %v8951_v35  ;;  %v22727_v28 = vpop.f32.mrb[28].mxu0 }
 0x7b3   : > { %17678 = vst.msk [vmem:[%s29334_s11 + $0xc8] sm:$0xff] %vm285_vm1, %v29502_v47  ;;  %v17731_v40 = vadd.f32 %v17730_v13, %v17729_v10  ;;  %v17599_v5 = vpop.f32.mrb[29].mxu0  ;;  %v17734_v63 = vsel %vm285_vm1, %v29502_v47, 0.0 }
 0x7b4   : > { %17677 = vst.msk [vmem:[%s29334_s11 + $0xc0] sm:$0xff] %vm285_vm1, %v29506_v6  ;;  %v17732_v49 = vsel %vm285_vm1, %v29506_v6, 0.0  ;;  %v21374_v21 = vpop.f32.mrb[26].mxu1 }
 0x7b5   : > { %v17733_v44 = vadd.f32 %v17732_v49, %v17731_v40  ;;  %v29516_v9 = vadd.f32 %v22724_v23, %v21374_v21  ;;  %v8965_v38 = vpop.f32.mrb[27].mxu1 }
 0x7b6   : > { %v29520_v48 = vadd.f32 %v17587_v37, %v8965_v38  ;;  %v22730_v52 = vpop.f32.mrb[30].mxu0 }
 0x7b7   : > { %17680 = vst.msk [vmem:[%s29334_s11 + $0xd8] sm:$0xff] %vm285_vm1, %v29516_v9  ;;  %v17735_v27 = vadd.f32 %v17734_v63, %v17733_v44  ;;  %v17611_v3 = vpop.f32.mrb[31].mxu0  ;;  %v17738_v51 = vsel %vm285_vm1, %v29516_v9, 0.0 }
 0x7b8   : > { %17679 = vst.msk [vmem:[%s29334_s11 + $0xd0] sm:$0xff] %vm285_vm1, %v29520_v48  ;;  %v17736_v7 = vsel %vm285_vm1, %v29520_v48, 0.0  ;;  %v21377_v34 = vpop.f32.mrb[28].mxu1 }
 0x7b9   : > { %v17737_v20 = vadd.f32 %v17736_v7, %v17735_v27  ;;  %v29530_v43 = vadd.f32 %v22727_v28, %v21377_v34  ;;  %v8979_v59 = vpop.f32.mrb[29].mxu1 }
 0x7ba   : > { %v29534_v42 = vadd.f32 %v17599_v5, %v8979_v59 }
 0x7bb   : > { %17682 = vst.msk [vmem:[%s29334_s11 + $0xe8] sm:$0xff] %vm285_vm1, %v29530_v43  ;;  %v17739_v24 = vadd.f32 %v17738_v51, %v17737_v20  ;;  %v17742_v11 = vsel %vm285_vm1, %v29530_v43, 0.0 }
 0x7bc   : > { %17681 = vst.msk [vmem:[%s29334_s11 + $0xe0] sm:$0xff] %vm285_vm1, %v29534_v42  ;;  %v17740_v57 = vsel %vm285_vm1, %v29534_v42, 0.0  ;;  %v21380_v29 = vpop.f32.mrb[30].mxu1 }
 0x7bd   : > { %v17741_v62 = vadd.f32 %v17740_v57, %v17739_v24  ;;  %v29544_v55 = vadd.f32 %v22730_v52, %v21380_v29  ;;  %v8993_v50 = vpop.f32.mrb[31].mxu1 }
 0x7be   : > { %v29548_v25 = vadd.f32 %v17611_v3, %v8993_v50 }
 0x7bf   : > { %17684 = vst.msk [vmem:[%s29334_s11 + $0xf8] sm:$0xff] %vm285_vm1, %v29544_v55  ;;  %v17743_v19 = vadd.f32 %v17742_v11, %v17741_v62  ;;  %v17746_v60 = vsel %vm285_vm1, %v29544_v55, 0.0 }
 0x7c0   : > { %17683 = vst.msk [vmem:[%s29334_s11 + $0xf0] sm:$0xff] %vm285_vm1, %v29548_v25  ;;  %v17744_v30 = vsel %vm285_vm1, %v29548_v25, 0.0 }
 0x7c1   : > { %v17745_v23 = vadd.f32 %v17744_v30, %v17743_v19 }
 0x7c3   : > { %v17747_v37 = vadd.f32 %v17746_v60, %v17745_v23 }
 0x7c5   : > { %v17748_v4 = vrot.slane %v17747_v37, 4 }
 0x7c7   : > { %v17749_v54 = vadd.f32 %v17748_v4, %v17747_v37 }
 0x7c9   : > { %v17750_v10 = vrot.slane %v17749_v54, 2 }
 0x7cb   : > { %v17751_v35 = vadd.f32 %v17750_v10, %v17749_v54 }
 0x7cd   : > { %v17752_v13 = vrot.slane %v17751_v35, 1 }
 0x7cf   : > { %v17753_v28 = vadd.f32 %v17752_v13, %v17751_v35 }
 0x7d1   : > { %v29565_v40 = vmul.f32 0.00390625, %v17753_v28 }
 0x7d3   : > { %17788 = vst.msk [vmem:[%s200_s14] sm:$0x1] %vm17787_vm2, %v29565_v40 }
 0x7d4   : > { %24485 = shalt.err (!%p24482_p4)
}
 0x7d5   : > { %s24486_s7 = scalar_lea.hbm %s29572_s27, 16  ;;  %s24490_s10 = scalar_lea.hbm %s29825_s3, 32 }
 0x7d6   : > { %p24487_p7 = scmp.ne.s32.totalorder %s29572_s27, %s24486_s7  ;;  %p24491_p10 = scmp.lt.u32.totalorder %s29572_s27, %s29825_s3 }
 0x7d7   : > { %p24492_p11 = scmp.lt.u32.totalorder %s24490_s10, %s24486_s7  ;;  %p24494_p13 = scmp.lt.u32.totalorder %s24486_s7, %s29572_s27 }
 0x7d8   : > { %p24488_p8 = pnand %p24487_p7, %p24633_p5 }
 0x7d9   : > { %p24493_p12 = por %p24492_p11, %p24491_p10 }
 0x7da   : > { %p24489_p9 = pneg %p24488_p8 }
 0x7db   : > { %p24495_p0 = por %p24494_p13, %p24493_p12 }
 0x7dd   : > { %p24496_p1 = pnand %p24495_p0, %p24489_p9 }
 0x7df   : > { %24499 = shalt.err (!%p24496_p1)
}
 0x7e0   : > { %24428 = dma.vmem_to_hbm [thread:$0]  (%p24633_p5), %s29574_s20, 16, %s29572_s27, %s17897_s28   ;;  %v17765_v5 = vsub.f32 %v29408_v18, %v29565_v40  ;;  %v17766_v49 = vsub.f32 %v29404_v39, %v29565_v40  ;;  %v17767_v21 = vsub.f32 %v29422_v0, %v29565_v40  ;;  %v29608_v44 = vsub.f32 %v29418_v31, %v29565_v40 }
 0x7e1   : > { %v29612_v38 = vsub.f32 %v29436_v2, %v29565_v40  ;;  %v29616_v63 = vsub.f32 %v29432_v41, %v29565_v40  ;;  %v29620_v18 = vsub.f32 %v29450_v1, %v29565_v40  ;;  %v29624_v39 = vsub.f32 %v29446_v33, %v29565_v40  ;;  %s206_s20 = scalar_lea.vmem [#allocation4], %s29561_s12  ;;  %s29778_s28 = scalar_lea.hbm %s29826_s4, %s18245_s13 }
 0x7e2   : > { %v29628_v31 = vsub.f32 %v29464_v53, %v29565_v40  ;;  %v29632_v0 = vsub.f32 %v29460_v56, %v29565_v40  ;;  %v29636_v41 = vsub.f32 %v29478_v15, %v29565_v40  ;;  %v29640_v2 = vsub.f32 %v29474_v12, %v29565_v40  ;;  %s17930_s22 = sshll.u32 %s206_s20, 4  ;;  %s17901_s29 = scalar_lea.sflag [#allocation5], %s29561_s12  ;;  %s29780_s22 = int_to_ptr.vmem [resolvable:$true] %s17930_s22 }
 0x7e3   : > { %v29644_v33 = vsub.f32 %v29492_v32, %v29565_v40  ;;  %v29648_v1 = vsub.f32 %v29488_v61, %v29565_v40  ;;  %v29652_v56 = vsub.f32 %v29506_v6, %v29565_v40  ;;  %v29656_v53 = vsub.f32 %v29502_v47, %v29565_v40  ;;  %s24500_s30 = scalar_lea.vmem %s29780_s22, 16  ;;  %s24569_s5 = smov [#allocation4]  }
 0x7e4   : > { %v29660_v12 = vsub.f32 %v29520_v48, %v29565_v40  ;;  %v29664_v15 = vsub.f32 %v29516_v9, %v29565_v40  ;;  %v29668_v61 = vsub.f32 %v29534_v42, %v29565_v40  ;;  %v29672_v32 = vsub.f32 %v29530_v43, %v29565_v40  ;;  %p24501_p2 = scmp.ne.s32.totalorder %s29780_s22, %s24500_s30  ;;  %s24504_s19 = sshll.u32 %s24569_s5, 4  ;;  %s24505_s19 = int_to_ptr.vmem [resolvable:$false] %s24504_s19 }
 0x7e5   : > { %v29676_v47 = vsub.f32 %v29548_v25, %v29565_v40  ;;  %v29680_v6 = vsub.f32 %v29544_v55, %v29565_v40  ;;  %v17755_v9 = vsub.f32 %v29338_v46, %v29565_v40  ;;  %v17756_v48 = vsub.f32 %v29336_v22, %v29565_v40  ;;  %s24506_s6 = scalar_lea.vmem %s24505_s19, 32  ;;  %p24507_p7 = scmp.lt.s32.totalorder %s29780_s22, %s24505_s19 }
 0x7e6   : > { %v17757_v52 = vsub.f32 %v29352_v36, %v29565_v40  ;;  %v17758_v27 = vsub.f32 %v29350_v8, %v29565_v40  ;;  %v17759_v34 = vsub.f32 %v29366_v14, %v29565_v40  ;;  %v17760_v43 = vsub.f32 %v29362_v16, %v29565_v40  ;;  %p24502_p3 = pnand %p24501_p2, %p24633_p5  ;;  %p24508_p8 = scmp.lt.s32.totalorder %s24506_s6, %s24500_s30 }
 0x7e7   : > { %v17789_v3 = vmul.f32 %v17755_v9, %v17755_v9  ;;  %v17790_v7 = vmul.f32 %v17756_v48, %v17756_v48  ;;  %v17761_v36 = vsub.f32 %v29380_v17, %v29565_v40  ;;  %v17762_v14 = vsub.f32 %v29376_v26, %v29565_v40 }
 0x7e8   : > { %v17791_v20 = vmul.f32 %v17757_v52, %v17757_v52  ;;  %v17792_v59 = vmul.f32 %v17758_v27, %v17758_v27  ;;  %v17793_v42 = vmul.f32 %v17759_v34, %v17759_v34  ;;  %v17794_v57 = vmul.f32 %v17760_v43, %v17760_v43  ;;  %p24503_p4 = pneg %p24502_p3  ;;  %p24509_p9 = por %p24508_p8, %p24507_p7 }
 0x7e9   : > { %v17821_v46 = vsel %vm285_vm1, %v17789_v3, 0.0  ;;  %v17822_v22 = vsel %vm285_vm1, %v17790_v7, 0.0  ;;  %v17763_v62 = vsub.f32 %v29394_v45, %v29565_v40  ;;  %v17795_v55 = vmul.f32 %v17761_v36, %v17761_v36 }
 0x7ea   : > { %v17823_v51 = vadd.f32 %v17822_v22, %v17821_v46  ;;  %v17824_v8 = vsel %vm285_vm1, %v17791_v20, 0.0  ;;  %v17826_v29 = vsel %vm285_vm1, %v17792_v59, 0.0  ;;  %v17828_v50 = vsel %vm285_vm1, %v17793_v42, 0.0  ;;  %p24510_p10 = pnand %p24509_p9, %p24503_p4 }
 0x7eb   : > { %v17764_v17 = vsub.f32 %v29390_v58, %v29565_v40  ;;  %v17796_v25 = vmul.f32 %v17762_v14, %v17762_v14  ;;  %v17830_v19 = vsel %vm285_vm1, %v17794_v57, 0.0  ;;  %v17797_v23 = vmul.f32 %v17763_v62, %v17763_v62 }
 0x7ec   : > { %v17825_v24 = vadd.f32 %v17824_v8, %v17823_v51  ;;  %v17832_v26 = vsel %vm285_vm1, %v17795_v55, 0.0  ;;  %v17799_v45 = vmul.f32 %v17765_v5, %v17765_v5  ;;  %v17800_v13 = vmul.f32 %v17766_v49, %v17766_v49 }
 0x7ed   : > { %v17798_v37 = vmul.f32 %v17764_v17, %v17764_v17  ;;  %v17834_v4 = vsel %vm285_vm1, %v17796_v25, 0.0  ;;  %v17836_v10 = vsel %vm285_vm1, %v17797_v23, 0.0  ;;  %v17801_v40 = vmul.f32 %v17767_v21, %v17767_v21 }
 0x7ee   : > { %v17827_v16 = vadd.f32 %v17826_v29, %v17825_v24  ;;  %v17840_v9 = vsel %vm285_vm1, %v17799_v45, 0.0  ;;  %v17802_v52 = vmul.f32 %v29608_v44, %v29608_v44  ;;  %v17842_v27 = vsel %vm285_vm1, %v17800_v13, 0.0 }
 0x7ef   : > { %v17838_v28 = vsel %vm285_vm1, %v17798_v37, 0.0  ;;  %v17803_v5 = vmul.f32 %v29612_v38, %v29612_v38  ;;  %v17844_v7 = vsel %vm285_vm1, %v17801_v40, 0.0  ;;  %v17804_v49 = vmul.f32 %v29616_v63, %v29616_v63 }
 0x7f0   : > { %v17829_v11 = vadd.f32 %v17828_v50, %v17827_v16  ;;  %v17846_v21 = vsel %vm285_vm1, %v17802_v52, 0.0  ;;  %v17805_v43 = vmul.f32 %v29620_v18, %v29620_v18  ;;  %v17806_v46 = vmul.f32 %v29624_v39, %v29624_v39 }
 0x7f1   : > { %v17848_v44 = vsel %vm285_vm1, %v17803_v5, 0.0  ;;  %v17850_v38 = vsel %vm285_vm1, %v17804_v49, 0.0  ;;  %v17807_v51 = vmul.f32 %v29628_v31, %v29628_v31  ;;  %v17808_v42 = vmul.f32 %v29632_v0, %v29632_v0 }
 0x7f2   : > { %v17831_v30 = vadd.f32 %v17830_v19, %v17829_v11  ;;  %v17852_v63 = vsel %vm285_vm1, %v17805_v43, 0.0  ;;  %v17854_v18 = vsel %vm285_vm1, %v17806_v46, 0.0  ;;  %v17809_v24 = vmul.f32 %v29636_v41, %v29636_v41 }
 0x7f3   : > { %v17856_v39 = vsel %vm285_vm1, %v17807_v51, 0.0  ;;  %v17810_v57 = vmul.f32 %v29640_v2, %v29640_v2  ;;  %v17858_v31 = vsel %vm285_vm1, %v17808_v42, 0.0  ;;  %v17811_v16 = vmul.f32 %v29644_v33, %v29644_v33 }
 0x7f4   : > { %v17833_v60 = vadd.f32 %v17832_v26, %v17831_v30  ;;  %v17860_v0 = vsel %vm285_vm1, %v17809_v24, 0.0  ;;  %v17812_v55 = vmul.f32 %v29648_v1, %v29648_v1  ;;  %v17813_v11 = vmul.f32 %v29652_v56, %v29652_v56 }
 0x7f5   : > { %v17862_v41 = vsel %vm285_vm1, %v17810_v57, 0.0  ;;  %v17864_v2 = vsel %vm285_vm1, %v17811_v16, 0.0  ;;  %v17814_v25 = vmul.f32 %v29656_v53, %v29656_v53  ;;  %v17815_v30 = vmul.f32 %v29660_v12, %v29660_v12 }
 0x7f6   : > { %v17835_v54 = vadd.f32 %v17834_v4, %v17833_v60  ;;  %v17866_v33 = vsel %vm285_vm1, %v17812_v55, 0.0  ;;  %v17868_v1 = vsel %vm285_vm1, %v17813_v11, 0.0  ;;  %v17816_v26 = vmul.f32 %v29664_v15, %v29664_v15 }
 0x7f7   : > { %v17870_v56 = vsel %vm285_vm1, %v17814_v25, 0.0  ;;  %v17817_v37 = vmul.f32 %v29668_v61, %v29668_v61  ;;  %v17872_v53 = vsel %vm285_vm1, %v17815_v30, 0.0  ;;  %v17820_v61 = vmul.f32 %v29680_v6, %v29680_v6 }
 0x7f8   : > { %v17837_v35 = vadd.f32 %v17836_v10, %v17835_v54  ;;  %v17818_v54 = vmul.f32 %v29672_v32, %v29672_v32  ;;  %v17874_v12 = vsel %vm285_vm1, %v17816_v26, 0.0  ;;  %v17819_v10 = vmul.f32 %v29676_v47, %v29676_v47 }
 0x7f9   : > { %v17876_v15 = vsel %vm285_vm1, %v17817_v37, 0.0  ;;  %v17882_v40 = vsel %vm285_vm1, %v17820_v61, 0.0 }
 0x7fa   : > { %v17839_v58 = vadd.f32 %v17838_v28, %v17837_v35  ;;  %v17878_v13 = vsel %vm285_vm1, %v17818_v54, 0.0  ;;  %v17880_v32 = vsel %vm285_vm1, %v17819_v10, 0.0 }
 0x7fc   : > { %v17841_v48 = vadd.f32 %v17840_v9, %v17839_v58 }
 0x7fe   : > { %v17843_v3 = vadd.f32 %v17842_v27, %v17841_v48 }
 0x800   : > { %v17845_v34 = vadd.f32 %v17844_v7, %v17843_v3 }
 0x802   : > { %v17847_v20 = vadd.f32 %v17846_v21, %v17845_v34 }
 0x804   : > { %v17849_v59 = vadd.f32 %v17848_v44, %v17847_v20 }
 0x806   : > { %v17851_v22 = vadd.f32 %v17850_v38, %v17849_v59 }
 0x808   : > { %v17853_v36 = vadd.f32 %v17852_v63, %v17851_v22 }
 0x80a   : > { %v17855_v8 = vadd.f32 %v17854_v18, %v17853_v36 }
 0x80c   : > { %v17857_v14 = vadd.f32 %v17856_v39, %v17855_v8 }
 0x80e   : > { %v17859_v29 = vadd.f32 %v17858_v31, %v17857_v14 }
 0x810   : > { %v17861_v62 = vadd.f32 %v17860_v0, %v17859_v29 }
 0x812   : > { %v17863_v50 = vadd.f32 %v17862_v41, %v17861_v62 }
 0x814   : > { %v17865_v17 = vadd.f32 %v17864_v2, %v17863_v50 }
 0x816   : > { %v17867_v19 = vadd.f32 %v17866_v33, %v17865_v17 }
 0x818   : > { %v17869_v23 = vadd.f32 %v17868_v1, %v17867_v19 }
 0x81a   : > { %v17871_v60 = vadd.f32 %v17870_v56, %v17869_v23 }
 0x81c   : > { %v17873_v4 = vadd.f32 %v17872_v53, %v17871_v60 }
 0x81e   : > { %v17875_v45 = vadd.f32 %v17874_v12, %v17873_v4 }
 0x820   : > { %v17877_v35 = vadd.f32 %v17876_v15, %v17875_v45 }
 0x822   : > { %v17879_v28 = vadd.f32 %v17878_v13, %v17877_v35 }
 0x824   : > { %v17881_v58 = vadd.f32 %v17880_v32, %v17879_v28 }
 0x826   : > { %v17883_v9 = vadd.f32 %v17882_v40, %v17881_v58 }
 0x828   : > { %v17884_v48 = vrot.slane %v17883_v9, 4 }
 0x82a   : > { %v17885_v47 = vadd.f32 %v17884_v48, %v17883_v9 }
 0x82c   : > { %v17886_v52 = vrot.slane %v17885_v47, 2 }
 0x82e   : > { %v17887_v27 = vadd.f32 %v17886_v52, %v17885_v47 }
 0x830   : > { %v17888_v3 = vrot.slane %v17887_v27, 1 }
 0x832   : > { %v17889_v5 = vadd.f32 %v17888_v3, %v17887_v27 }
 0x834   : > { %17890 = vst.msk [vmem:[%s206_s20] sm:$0x1] %vm17787_vm2, %v17889_v5 }
 0x835   : > { %24513 = shalt.err (!%p24510_p10)
}
 0x836   : > { %s24514_s12 = scalar_lea.hbm %s29778_s28, 16  ;;  %s24518_s8 = scalar_lea.hbm %s29826_s4, 32 }
 0x837   : > { %p24515_p11 = scmp.ne.s32.totalorder %s29778_s28, %s24514_s12  ;;  %p24519_p0 = scmp.lt.u32.totalorder %s29778_s28, %s29826_s4 }
 0x838   : > { %p24520_p1 = scmp.lt.u32.totalorder %s24518_s8, %s24514_s12  ;;  %p24522_p3 = scmp.lt.u32.totalorder %s24514_s12, %s29778_s28 }
 0x839   : > { %p24516_p12 = pnand %p24515_p11, %p24633_p5 }
 0x83a   : > { %p24521_p2 = por %p24520_p1, %p24519_p0 }
 0x83b   : > { %p24517_p13 = pneg %p24516_p12 }
 0x83c   : > { %p24523_p4 = por %p24522_p3, %p24521_p2 }
 0x83e   : > { %p24524_p7 = pnand %p24523_p4, %p24517_p13 }
 0x840   : > { %24527 = shalt.err (!%p24524_p7)
}
 0x841   : > { %24429 = dma.vmem_to_hbm [thread:$0]  (%p24633_p5), %s29780_s22, 16, %s29778_s28, %s17901_s29  }
 0x842 PF: > { %p24439_p8 = scmp.ge.s32.totalorder %s24566_s18, 2  ;;  %s17950_s11 = sand.u32 1, %s24554_s15  }
 0x843   : > { %s17951_s14 = scalar_lea.sflag [#allocation3], %s17950_s11 }
 0x844   : > { %p24433_p9 = pnand %p24439_p8, %p24637_p6 }
 0x846   : > { %24545 = dma.done.wait (!%p24433_p9), %s17951_s14, 16  }
 0x847   : > { %24547 = vsyncadd (!%p24433_p9), %s17951_s14, 4294967280  ;;  %s17959_s20 = scalar_lea.sflag [#allocation5], %s17950_s11 }
 0x848   : > { %24549 = dma.done.wait (!%p24433_p9), %s17959_s20, 16  }
 0x849   : > { %24551 = vsyncadd (!%p24433_p9), %s17959_s20, 4294967280  ;;  %p18_p5 = scmp.ge.s32.totalorder %s24620_s21, 4   ;;  %s32269_s15 = smov %s24558_s16 }
 0x84a   : > { %s32270_s16 = smov %s24562_s17  ;;  %s32271_s17 = smov %s24631_s24 }
 0x84b   : > { %s32272_s18 = smov %s24620_s21  ;;  %20 = sbr.rel (!%p18_p5) target bundleno = 5 (0x5), region = 102 }
 0x852   :  { %17963 = vsyncpa [#allocation3], 1 }
 0x853   :  { %17965 = vsyncpa [#allocation3 + $0x1], 1 }
 0x854   :  { %17966 = vsyncpa [#allocation5], 1 }
 0x855   :  { %17968 = vsyncpa [#allocation5 + $0x1], 1 }

</bundles_post_ra>
